<compile_context>
chip_gen: v6e
topology: v6e:2x2x1
jax: 0.10.0
libtpu: 0.0.40
codegen_flags: <defaults>
</compile_context>

<pallas_src>
import math

import jax
import jax.numpy as jnp
from jax import lax
from jax.experimental import pallas as pl
from jax.experimental.pallas import tpu as pltpu

# ---- small config, consistent with the module (n_layers = n_embd // 64) ----
N_EMBD = 128
N_HEADS = 4
HEAD_SIZE = N_EMBD // N_HEADS   # 32
BLOCK_SIZE = 64                 # max sequence length
N_LAYERS = N_EMBD // 64         # 2
VOCAB_SIZE = 65
VOCAB_PAD = 128                 # lane-aligned LM head width (cols >= 65 are zero)
LN_EPS = 1e-5
NEG_INF = -1e30                 # large finite negative (robust masking)


# --------------------------- fused model kernel -----------------------------

def _model_kernel(x_ref,
                  ln1g_r, ln1b_r, wqkv_r, wproj_r, bproj_r,
                  ln2g_r, ln2b_r, w1_r, b1_r, w2_r, b2_r,
                  wlm_r, blm_r,
                  o_ref):
    """One grid step == B_BLK batch elements; dense matmuls run at M = B_BLK*T."""
    b_blk, T, C = x_ref.shape
    M = b_blk * T

    # fold batch into the matmul M dimension (leading-dim collapse, layout-free)
    x = x_ref[...].reshape(M, C).astype(jnp.float32)       # (M, C)

    # causal mask built in-kernel (no DMA, no float compare) — hoisted once
    row = lax.broadcasted_iota(jnp.int32, (T, T), 0)
    col = lax.broadcasted_iota(jnp.int32, (T, T), 1)
    causal = row >= col

    scale = 1.0 / math.sqrt(C)                              # reference: / C**0.5, C = n_embd

    def layernorm(v, g, b):                                 # f32 math
        mu = jnp.mean(v, axis=-1, keepdims=True)
        var = jnp.mean(jnp.square(v - mu), axis=-1, keepdims=True)
        return (v - mu) * lax.rsqrt(var + LN_EPS) * g + b

    for l in range(N_LAYERS):
        # ---------------- self-attention (pre-LN) ----------------
        xn = layernorm(x, ln1g_r[l], ln1b_r[l])             # (M, C) f32

        # fused QKV projection: one (M,C) @ (C,3C) bf16 MXU matmul, f32 accum
        qkv = jnp.dot(xn.astype(jnp.bfloat16), wqkv_r[l],
                      preferred_element_type=jnp.float32)   # (M, 3C) f32
        wproj_l = wproj_r[l]                                # (C, C) bf16

        sa_rows = [None] * b_blk
        for h in range(N_HEADS):
            lo = h * HEAD_SIZE
            hi = lo + HEAD_SIZE

            # Reassociated concat+proj: project v_h through Wproj row-block first
            # (K=head_size, N=C lane-dense), done once for all batch rows.
            v_h = qkv[:, 2 * C + lo:2 * C + hi].astype(jnp.bfloat16)      # (M, hs)
            vproj = jnp.dot(v_h, wproj_l[lo:hi, :],
                            preferred_element_type=jnp.float32)           # (M, C)
            vproj_bf = vproj.astype(jnp.bfloat16)

            for b in range(b_blk):                          # causal attn per batch elem
                r0 = b * T
                q = (qkv[r0:r0 + T, lo:hi] * scale).astype(jnp.bfloat16)  # scale folded in
                k = qkv[r0:r0 + T, C + lo:C + hi].astype(jnp.bfloat16)

                # q @ k^T without materializing a transpose; f32 accum
                s = lax.dot_general(q, k, (((1,), (1,)), ((), ())),
                                    preferred_element_type=jnp.float32)   # (T, T)
                s = jnp.where(causal, s, NEG_INF)
                m = jnp.max(s, axis=-1, keepdims=True)
                p = jnp.exp(s - m)                          # f32 softmax numerics
                p = p * pl.reciprocal(jnp.sum(p, axis=-1, keepdims=True),
                                      approx=True)          # EUP recip, no divide

                # sa_b += p_h @ v'_h   (K=T, N=C lane-dense)
                contrib = jnp.dot(p.astype(jnp.bfloat16), vproj_bf[r0:r0 + T, :],
                                  preferred_element_type=jnp.float32)     # (T, C)
                sa_rows[b] = contrib if sa_rows[b] is None else sa_rows[b] + contrib

        sa = sa_rows[0] if b_blk == 1 else jnp.concatenate(sa_rows, axis=0)  # (M, C)
        x = x + sa + bproj_r[l]                             # residual fused in-kernel

        # ---------------- feed-forward (pre-LN) ------------------
        xn2 = layernorm(x, ln2g_r[l], ln2b_r[l])
        h1 = jnp.dot(xn2.astype(jnp.bfloat16), w1_r[l],
                     preferred_element_type=jnp.float32) + b1_r[l]
        h1 = jnp.maximum(h1, 0.0)                           # ReLU
        ff = jnp.dot(h1.astype(jnp.bfloat16), w2_r[l],
                     preferred_element_type=jnp.float32) + b2_r[l]
        x = x + ff                                          # residual fused in-kernel

    # NOTE: reference forward() never applies self.ln_final, so it is skipped.
    logits = jnp.dot(x.astype(jnp.bfloat16), wlm_r[...],
                     preferred_element_type=jnp.float32) + blm_r[...]     # (M, VOCAB_PAD)
    o_ref[...] = logits.reshape(b_blk, T, VOCAB_PAD).astype(o_ref.dtype)  # lane-dense store


def _resident_spec(arr):
    """Whole-array block, constant block index => stays resident across grid steps."""
    nd = arr.ndim
    return pl.BlockSpec(arr.shape, lambda g, _nd=nd: (0,) * _nd)


def fused_forward(x, params):
    """x: (B, T, C) f32 embedded tokens -> (B, T, VOCAB_PAD) padded logits."""
    B, T, C = x.shape
    b_blk = math.gcd(B, 8)          # fold up to 8 batch elements into the matmul M dim
    grid = (B // b_blk,)

    weights = [
        params["ln1_g"], params["ln1_b"],
        params["wqkv"], params["wproj"], params["bproj"],
        params["ln2_g"], params["ln2_b"],
        params["w1"], params["b1"], params["w2"], params["b2"],
        params["wlm"], params["blm"],
    ]

    # advisory cost estimate (kernel is DMA/overhead bound; helps XLA scheduling)
    Mtot = B * T
    flops = (N_LAYERS * (2 * Mtot * C * (12 * C) + 4 * Mtot * T * C)
             + 2 * Mtot * C * VOCAB_PAD)
    transcendentals = N_LAYERS * N_HEADS * Mtot * T
    bytes_accessed = (sum(int(w.size) * w.dtype.itemsize for w in weights)
                      + int(x.size) * x.dtype.itemsize
                      + Mtot * VOCAB_PAD * 4)

    return pl.pallas_call(
        _model_kernel,
        out_shape=jax.ShapeDtypeStruct((B, T, VOCAB_PAD), jnp.float32),
        grid=grid,
        in_specs=[pl.BlockSpec((b_blk, T, C), lambda g: (g, 0, 0))]
                 + [_resident_spec(w) for w in weights],
        out_specs=pl.BlockSpec((b_blk, T, VOCAB_PAD), lambda g: (g, 0, 0)),
        compiler_params=pltpu.CompilerParams(
            dimension_semantics=("parallel",),
        ),
        cost_estimate=pl.CostEstimate(flops=int(flops),
                                      transcendentals=int(transcendentals),
                                      bytes_accessed=int(bytes_accessed)),
    )(x, *weights)


# --------------------------- params & glue (plain JAX) ----------------------

def init_params(key):
    C = N_EMBD
    bf16 = jnp.bfloat16

    def nrm(k, shape, scale=0.02):
        return scale * jax.random.normal(k, shape, jnp.float32)

    kt, kp, kqkv, kproj, kw1, kw2, klm = jax.random.split(key, 7)

    wlm = jnp.zeros((C, VOCAB_PAD), jnp.float32)
    wlm = wlm.at[:, :VOCAB_SIZE].set(nrm(klm, (C, VOCAB_SIZE)))

    return {
        "tok_emb": nrm(kt, (VOCAB_SIZE, C)),
        "pos_emb": nrm(kp, (BLOCK_SIZE, C)),
        # per-block weights stacked along a leading layer axis
        # LayerNorm / bias params stay f32 (LN & residual math is f32 in-kernel)
        "ln1_g": jnp.ones((N_LAYERS, 1, C), jnp.float32),
        "ln1_b": jnp.zeros((N_LAYERS, 1, C), jnp.float32),
        # merged QKV: columns [0:C]=Q, [C:2C]=K, [2C:3C]=V; head h owns cols h*hs:(h+1)*hs
        "wqkv": nrm(kqkv, (N_LAYERS, C, 3 * C)).astype(bf16),
        "wproj": nrm(kproj, (N_LAYERS, C, C)).astype(bf16),
        "bproj": jnp.zeros((N_LAYERS, 1, C), jnp.float32),
        "ln2_g": jnp.ones((N_LAYERS, 1, C), jnp.float32),
        "ln2_b": jnp.zeros((N_LAYERS, 1, C), jnp.float32),
        "w1": nrm(kw1, (N_LAYERS, C, 4 * C)).astype(bf16),
        "b1": jnp.zeros((N_LAYERS, 1, 4 * C), jnp.float32),
        "w2": nrm(kw2, (N_LAYERS, 4 * C, C)).astype(bf16),
        "b2": jnp.zeros((N_LAYERS, 1, C), jnp.float32),
        # lane-aligned (padded) LM head
        "wlm": wlm.astype(bf16),
        "blm": jnp.zeros((1, VOCAB_PAD), jnp.float32),
    }


def model_forward(params, idx):
    B, T = idx.shape
    # embedding gathers stay in plain JAX (glue)
    tok = jnp.take(params["tok_emb"], idx, axis=0)          # (B, T, C)
    pos = params["pos_emb"][:T]                             # (T, C)
    x = tok + pos                                           # (B, T, C) f32

    logits_pad = fused_forward(x, params)                   # (B, T, VOCAB_PAD)
    return logits_pad[..., :VOCAB_SIZE]                     # drop vocab padding


if __name__ == "__main__":
    key = jax.random.PRNGKey(0)
    pkey, ikey = jax.random.split(key)
    params = init_params(pkey)

    B, T = 2, BLOCK_SIZE                                    # idx: (2, 64) int tokens
    idx = jax.random.randint(ikey, (B, T), 0, VOCAB_SIZE, dtype=jnp.int32)

    logits = jax.jit(model_forward)(params, idx)
    jax.block_until_ready(logits)
    assert logits.shape == (B, T, VOCAB_SIZE)
    assert bool(jnp.all(jnp.isfinite(logits)))
    print("KERNEL_OK")
</pallas_src>

<mosaic_0001>
module attributes {stable_mosaic.version = 11 : i64} {
  func.func @_model_kernel(%arg0: i32, %arg1: memref<2x64x128xf32, #tpu.memory_space<vmem>>, %arg2: memref<2x1x128xf32, #tpu.memory_space<vmem>>, %arg3: memref<2x1x128xf32, #tpu.memory_space<vmem>>, %arg4: memref<2x128x384xbf16, #tpu.memory_space<vmem>>, %arg5: memref<2x128x128xbf16, #tpu.memory_space<vmem>>, %arg6: memref<2x1x128xf32, #tpu.memory_space<vmem>>, %arg7: memref<2x1x128xf32, #tpu.memory_space<vmem>>, %arg8: memref<2x1x128xf32, #tpu.memory_space<vmem>>, %arg9: memref<2x128x512xbf16, #tpu.memory_space<vmem>>, %arg10: memref<2x1x512xf32, #tpu.memory_space<vmem>>, %arg11: memref<2x512x128xbf16, #tpu.memory_space<vmem>>, %arg12: memref<2x1x128xf32, #tpu.memory_space<vmem>>, %arg13: memref<128x128xbf16, #tpu.memory_space<vmem>>, %arg14: memref<1x128xf32, #tpu.memory_space<vmem>>, %arg15: memref<2x64x128xf32, #tpu.memory_space<vmem>>) attributes {dimension_semantics = [#tpu.dimension_semantics<parallel>], iteration_bounds = array<i64: 1>, scalar_prefetch = 0 : i64, scratch_operands = 0 : i64, tpu.core_type = #tpu.core_type<tc>, window_params = [{transform_indices = @transform_0, window_bounds = array<i64: 2, 64, 128>}, {pipeline_mode = #tpu.pipeline_mode<synchronous>, transform_indices = @transform_1, window_bounds = array<i64: 2, 1, 128>}, {pipeline_mode = #tpu.pipeline_mode<synchronous>, transform_indices = @transform_2, window_bounds = array<i64: 2, 1, 128>}, {pipeline_mode = #tpu.pipeline_mode<synchronous>, transform_indices = @transform_3, window_bounds = array<i64: 2, 128, 384>}, {pipeline_mode = #tpu.pipeline_mode<synchronous>, transform_indices = @transform_4, window_bounds = array<i64: 2, 128, 128>}, {pipeline_mode = #tpu.pipeline_mode<synchronous>, transform_indices = @transform_5, window_bounds = array<i64: 2, 1, 128>}, {pipeline_mode = #tpu.pipeline_mode<synchronous>, transform_indices = @transform_6, window_bounds = array<i64: 2, 1, 128>}, {pipeline_mode = #tpu.pipeline_mode<synchronous>, transform_indices = @transform_7, window_bounds = array<i64: 2, 1, 128>}, {pipeline_mode = #tpu.pipeline_mode<synchronous>, transform_indices = @transform_8, window_bounds = array<i64: 2, 128, 512>}, {pipeline_mode = #tpu.pipeline_mode<synchronous>, transform_indices = @transform_9, window_bounds = array<i64: 2, 1, 512>}, {pipeline_mode = #tpu.pipeline_mode<synchronous>, transform_indices = @transform_10, window_bounds = array<i64: 2, 512, 128>}, {pipeline_mode = #tpu.pipeline_mode<synchronous>, transform_indices = @transform_11, window_bounds = array<i64: 2, 1, 128>}, {pipeline_mode = #tpu.pipeline_mode<synchronous>, transform_indices = @transform_12, window_bounds = array<i64: 128, 128>}, {pipeline_mode = #tpu.pipeline_mode<synchronous>, transform_indices = @transform_13, window_bounds = array<i64: 1, 128>}, {transform_indices = @transform_14, window_bounds = array<i64: 2, 64, 128>}]} {
    %c0 = arith.constant 0 : index
    %c0_0 = arith.constant 0 : index
    %c0_1 = arith.constant 0 : index
    %0 = vector.load %arg1[%c0, %c0_0, %c0_1] : memref<2x64x128xf32, #tpu.memory_space<vmem>>, vector<2x64x128xf32>
    %1 = vector.shape_cast %0 : vector<2x64x128xf32> to vector<128x128xf32>
    %2 = tpu.iota {dimensions = array<i32: 0>} : vector<64x64xi32>
    %3 = tpu.iota {dimensions = array<i32: 1>} : vector<64x64xi32>
    %4 = arith.cmpi sge, %2, %3 : vector<64x64xi32>
    %c0_2 = arith.constant 0 : index
    %c0_3 = arith.constant 0 : index
    %c0_4 = arith.constant 0 : index
    %5 = vector.load %arg2[%c0_2, %c0_3, %c0_4] : memref<2x1x128xf32, #tpu.memory_space<vmem>>, vector<1x1x128xf32>
    %6 = vector.shape_cast %5 : vector<1x1x128xf32> to vector<1x128xf32>
    %c0_5 = arith.constant 0 : index
    %c0_6 = arith.constant 0 : index
    %c0_7 = arith.constant 0 : index
    %7 = vector.load %arg3[%c0_5, %c0_6, %c0_7] : memref<2x1x128xf32, #tpu.memory_space<vmem>>, vector<1x1x128xf32>
    %8 = vector.shape_cast %7 : vector<1x1x128xf32> to vector<1x128xf32>
    %cst = arith.constant dense<0.000000e+00> : vector<128xf32>
    %9 = vector.multi_reduction <add>, %1, %cst [1] : vector<128x128xf32> to vector<128xf32>
    %10 = vector.shape_cast %9 : vector<128xf32> to vector<128x1xf32>
    %cst_8 = arith.constant 1.280000e+02 : f32
    %11 = vector.broadcast %cst_8 : f32 to vector<128x1xf32>
    %12 = arith.divf %10, %11 : vector<128x1xf32>
    %13 = vector.broadcast %12 : vector<128x1xf32> to vector<128x128xf32>
    %14 = arith.subf %1, %13 : vector<128x128xf32>
    %15 = arith.mulf %14, %14 : vector<128x128xf32>
    %cst_9 = arith.constant dense<0.000000e+00> : vector<128xf32>
    %16 = vector.multi_reduction <add>, %15, %cst_9 [1] : vector<128x128xf32> to vector<128xf32>
    %17 = vector.shape_cast %16 : vector<128xf32> to vector<128x1xf32>
    %cst_10 = arith.constant 1.280000e+02 : f32
    %18 = vector.broadcast %cst_10 : f32 to vector<128x1xf32>
    %19 = arith.divf %17, %18 : vector<128x1xf32>
    %20 = vector.broadcast %12 : vector<128x1xf32> to vector<128x128xf32>
    %21 = arith.subf %1, %20 : vector<128x128xf32>
    %cst_11 = arith.constant 9.99999974E-6 : f32
    %22 = vector.broadcast %cst_11 : f32 to vector<128x1xf32>
    %23 = arith.addf %19, %22 : vector<128x1xf32>
    %24 = math.rsqrt %23 : vector<128x1xf32>
    %25 = vector.broadcast %24 : vector<128x1xf32> to vector<128x128xf32>
    %26 = arith.mulf %21, %25 : vector<128x128xf32>
    %27 = vector.broadcast %6 : vector<1x128xf32> to vector<128x128xf32>
    %28 = arith.mulf %26, %27 : vector<128x128xf32>
    %29 = vector.broadcast %8 : vector<1x128xf32> to vector<128x128xf32>
    %30 = arith.addf %28, %29 : vector<128x128xf32>
    %31 = arith.truncf %30 : vector<128x128xf32> to vector<128x128xbf16>
    %c0_12 = arith.constant 0 : index
    %c0_13 = arith.constant 0 : index
    %c0_14 = arith.constant 0 : index
    %32 = vector.load %arg4[%c0_12, %c0_13, %c0_14] : memref<2x128x384xbf16, #tpu.memory_space<vmem>>, vector<1x128x384xbf16>
    %33 = vector.shape_cast %32 : vector<1x128x384xbf16> to vector<128x384xbf16>
    %cst_15 = arith.constant dense<0.000000e+00> : vector<128x384xf32>
    %34 = tpu.matmul %31, %33, %cst_15 {dimension_numbers = #tpu.dot_dimension_numbers<[1], [0], [0], [1], [0, 0, 1, 1], [], []>} : vector<128x128xbf16>, vector<128x384xbf16>, vector<128x384xf32> -> vector<128x384xf32>
    %c0_16 = arith.constant 0 : index
    %c0_17 = arith.constant 0 : index
    %c0_18 = arith.constant 0 : index
    %35 = vector.load %arg5[%c0_16, %c0_17, %c0_18] : memref<2x128x128xbf16, #tpu.memory_space<vmem>>, vector<1x128x128xbf16>
    %36 = vector.shape_cast %35 : vector<1x128x128xbf16> to vector<128x128xbf16>
    %37 = vector.extract_strided_slice %34 {offsets = [0, 256], sizes = [128, 32], strides = [1, 1]} : vector<128x384xf32> to vector<128x32xf32>
    %38 = arith.truncf %37 : vector<128x32xf32> to vector<128x32xbf16>
    %39 = vector.extract_strided_slice %36 {offsets = [0, 0], sizes = [32, 128], strides = [1, 1]} : vector<128x128xbf16> to vector<32x128xbf16>
    %cst_19 = arith.constant dense<0.000000e+00> : vector<128x128xf32>
    %40 = tpu.matmul %38, %39, %cst_19 {dimension_numbers = #tpu.dot_dimension_numbers<[1], [0], [0], [1], [0, 0, 1, 1], [], []>} : vector<128x32xbf16>, vector<32x128xbf16>, vector<128x128xf32> -> vector<128x128xf32>
    %41 = arith.truncf %40 : vector<128x128xf32> to vector<128x128xbf16>
    %42 = vector.extract_strided_slice %34 {offsets = [0, 0], sizes = [64, 32], strides = [1, 1]} : vector<128x384xf32> to vector<64x32xf32>
    %cst_20 = arith.constant 0.0883883461 : f32
    %43 = vector.broadcast %cst_20 : f32 to vector<64x32xf32>
    %44 = arith.mulf %42, %43 : vector<64x32xf32>
    %45 = arith.truncf %44 : vector<64x32xf32> to vector<64x32xbf16>
    %46 = vector.extract_strided_slice %34 {offsets = [0, 128], sizes = [64, 32], strides = [1, 1]} : vector<128x384xf32> to vector<64x32xf32>
    %47 = arith.truncf %46 : vector<64x32xf32> to vector<64x32xbf16>
    %cst_21 = arith.constant dense<0.000000e+00> : vector<64x64xf32>
    %48 = tpu.matmul %45, %47, %cst_21 {dimension_numbers = #tpu.dot_dimension_numbers<[1], [1], [0], [0], [0, 0, 1, 0], [], []>} : vector<64x32xbf16>, vector<64x32xbf16>, vector<64x64xf32> -> vector<64x64xf32>
    %cst_22 = arith.constant -1.000000e+30 : f32
    %49 = vector.broadcast %cst_22 : f32 to vector<64x64xf32>
    %50 = arith.select %4, %48, %49 : vector<64x64xi1>, vector<64x64xf32>
    %cst_23 = arith.constant dense<0xFF800000> : vector<64xf32>
    %51 = vector.multi_reduction <maximumf>, %50, %cst_23 [1] : vector<64x64xf32> to vector<64xf32>
    %52 = vector.shape_cast %51 : vector<64xf32> to vector<64x1xf32>
    %53 = vector.broadcast %52 : vector<64x1xf32> to vector<64x64xf32>
    %54 = arith.subf %50, %53 : vector<64x64xf32>
    %55 = math.exp %54 : vector<64x64xf32>
    %cst_24 = arith.constant dense<0.000000e+00> : vector<64xf32>
    %56 = vector.multi_reduction <add>, %55, %cst_24 [1] : vector<64x64xf32> to vector<64xf32>
    %57 = vector.shape_cast %56 : vector<64xf32> to vector<64x1xf32>
    %58 = tpu.reciprocal %57 {approx = true} : vector<64x1xf32> -> vector<64x1xf32>
    %59 = vector.broadcast %58 : vector<64x1xf32> to vector<64x64xf32>
    %60 = arith.mulf %55, %59 : vector<64x64xf32>
    %61 = arith.truncf %60 : vector<64x64xf32> to vector<64x64xbf16>
    %62 = vector.extract_strided_slice %41 {offsets = [0, 0], sizes = [64, 128], strides = [1, 1]} : vector<128x128xbf16> to vector<64x128xbf16>
    %cst_25 = arith.constant dense<0.000000e+00> : vector<64x128xf32>
    %63 = tpu.matmul %61, %62, %cst_25 {dimension_numbers = #tpu.dot_dimension_numbers<[1], [0], [0], [1], [0, 0, 1, 1], [], []>} : vector<64x64xbf16>, vector<64x128xbf16>, vector<64x128xf32> -> vector<64x128xf32>
    %64 = vector.extract_strided_slice %34 {offsets = [64, 0], sizes = [64, 32], strides = [1, 1]} : vector<128x384xf32> to vector<64x32xf32>
    %cst_26 = arith.constant 0.0883883461 : f32
    %65 = vector.broadcast %cst_26 : f32 to vector<64x32xf32>
    %66 = arith.mulf %64, %65 : vector<64x32xf32>
    %67 = arith.truncf %66 : vector<64x32xf32> to vector<64x32xbf16>
    %68 = vector.extract_strided_slice %34 {offsets = [64, 128], sizes = [64, 32], strides = [1, 1]} : vector<128x384xf32> to vector<64x32xf32>
    %69 = arith.truncf %68 : vector<64x32xf32> to vector<64x32xbf16>
    %cst_27 = arith.constant dense<0.000000e+00> : vector<64x64xf32>
    %70 = tpu.matmul %67, %69, %cst_27 {dimension_numbers = #tpu.dot_dimension_numbers<[1], [1], [0], [0], [0, 0, 1, 0], [], []>} : vector<64x32xbf16>, vector<64x32xbf16>, vector<64x64xf32> -> vector<64x64xf32>
    %cst_28 = arith.constant -1.000000e+30 : f32
    %71 = vector.broadcast %cst_28 : f32 to vector<64x64xf32>
    %72 = arith.select %4, %70, %71 : vector<64x64xi1>, vector<64x64xf32>
    %cst_29 = arith.constant dense<0xFF800000> : vector<64xf32>
    %73 = vector.multi_reduction <maximumf>, %72, %cst_29 [1] : vector<64x64xf32> to vector<64xf32>
    %74 = vector.shape_cast %73 : vector<64xf32> to vector<64x1xf32>
    %75 = vector.broadcast %74 : vector<64x1xf32> to vector<64x64xf32>
    %76 = arith.subf %72, %75 : vector<64x64xf32>
    %77 = math.exp %76 : vector<64x64xf32>
    %cst_30 = arith.constant dense<0.000000e+00> : vector<64xf32>
    %78 = vector.multi_reduction <add>, %77, %cst_30 [1] : vector<64x64xf32> to vector<64xf32>
    %79 = vector.shape_cast %78 : vector<64xf32> to vector<64x1xf32>
    %80 = tpu.reciprocal %79 {approx = true} : vector<64x1xf32> -> vector<64x1xf32>
    %81 = vector.broadcast %80 : vector<64x1xf32> to vector<64x64xf32>
    %82 = arith.mulf %77, %81 : vector<64x64xf32>
    %83 = arith.truncf %82 : vector<64x64xf32> to vector<64x64xbf16>
    %84 = vector.extract_strided_slice %41 {offsets = [64, 0], sizes = [64, 128], strides = [1, 1]} : vector<128x128xbf16> to vector<64x128xbf16>
    %cst_31 = arith.constant dense<0.000000e+00> : vector<64x128xf32>
    %85 = tpu.matmul %83, %84, %cst_31 {dimension_numbers = #tpu.dot_dimension_numbers<[1], [0], [0], [1], [0, 0, 1, 1], [], []>} : vector<64x64xbf16>, vector<64x128xbf16>, vector<64x128xf32> -> vector<64x128xf32>
    %86 = vector.extract_strided_slice %34 {offsets = [0, 288], sizes = [128, 32], strides = [1, 1]} : vector<128x384xf32> to vector<128x32xf32>
    %87 = arith.truncf %86 : vector<128x32xf32> to vector<128x32xbf16>
    %88 = vector.extract_strided_slice %36 {offsets = [32, 0], sizes = [32, 128], strides = [1, 1]} : vector<128x128xbf16> to vector<32x128xbf16>
    %cst_32 = arith.constant dense<0.000000e+00> : vector<128x128xf32>
    %89 = tpu.matmul %87, %88, %cst_32 {dimension_numbers = #tpu.dot_dimension_numbers<[1], [0], [0], [1], [0, 0, 1, 1], [], []>} : vector<128x32xbf16>, vector<32x128xbf16>, vector<128x128xf32> -> vector<128x128xf32>
    %90 = arith.truncf %89 : vector<128x128xf32> to vector<128x128xbf16>
    %91 = vector.extract_strided_slice %34 {offsets = [0, 32], sizes = [64, 32], strides = [1, 1]} : vector<128x384xf32> to vector<64x32xf32>
    %cst_33 = arith.constant 0.0883883461 : f32
    %92 = vector.broadcast %cst_33 : f32 to vector<64x32xf32>
    %93 = arith.mulf %91, %92 : vector<64x32xf32>
    %94 = arith.truncf %93 : vector<64x32xf32> to vector<64x32xbf16>
    %95 = vector.extract_strided_slice %34 {offsets = [0, 160], sizes = [64, 32], strides = [1, 1]} : vector<128x384xf32> to vector<64x32xf32>
    %96 = arith.truncf %95 : vector<64x32xf32> to vector<64x32xbf16>
    %cst_34 = arith.constant dense<0.000000e+00> : vector<64x64xf32>
    %97 = tpu.matmul %94, %96, %cst_34 {dimension_numbers = #tpu.dot_dimension_numbers<[1], [1], [0], [0], [0, 0, 1, 0], [], []>} : vector<64x32xbf16>, vector<64x32xbf16>, vector<64x64xf32> -> vector<64x64xf32>
    %cst_35 = arith.constant -1.000000e+30 : f32
    %98 = vector.broadcast %cst_35 : f32 to vector<64x64xf32>
    %99 = arith.select %4, %97, %98 : vector<64x64xi1>, vector<64x64xf32>
    %cst_36 = arith.constant dense<0xFF800000> : vector<64xf32>
    %100 = vector.multi_reduction <maximumf>, %99, %cst_36 [1] : vector<64x64xf32> to vector<64xf32>
    %101 = vector.shape_cast %100 : vector<64xf32> to vector<64x1xf32>
    %102 = vector.broadcast %101 : vector<64x1xf32> to vector<64x64xf32>
    %103 = arith.subf %99, %102 : vector<64x64xf32>
    %104 = math.exp %103 : vector<64x64xf32>
    %cst_37 = arith.constant dense<0.000000e+00> : vector<64xf32>
    %105 = vector.multi_reduction <add>, %104, %cst_37 [1] : vector<64x64xf32> to vector<64xf32>
    %106 = vector.shape_cast %105 : vector<64xf32> to vector<64x1xf32>
    %107 = tpu.reciprocal %106 {approx = true} : vector<64x1xf32> -> vector<64x1xf32>
    %108 = vector.broadcast %107 : vector<64x1xf32> to vector<64x64xf32>
    %109 = arith.mulf %104, %108 : vector<64x64xf32>
    %110 = arith.truncf %109 : vector<64x64xf32> to vector<64x64xbf16>
    %111 = vector.extract_strided_slice %90 {offsets = [0, 0], sizes = [64, 128], strides = [1, 1]} : vector<128x128xbf16> to vector<64x128xbf16>
    %cst_38 = arith.constant dense<0.000000e+00> : vector<64x128xf32>
    %112 = tpu.matmul %110, %111, %cst_38 {dimension_numbers = #tpu.dot_dimension_numbers<[1], [0], [0], [1], [0, 0, 1, 1], [], []>} : vector<64x64xbf16>, vector<64x128xbf16>, vector<64x128xf32> -> vector<64x128xf32>
    %113 = arith.addf %63, %112 : vector<64x128xf32>
    %114 = vector.extract_strided_slice %34 {offsets = [64, 32], sizes = [64, 32], strides = [1, 1]} : vector<128x384xf32> to vector<64x32xf32>
    %cst_39 = arith.constant 0.0883883461 : f32
    %115 = vector.broadcast %cst_39 : f32 to vector<64x32xf32>
    %116 = arith.mulf %114, %115 : vector<64x32xf32>
    %117 = arith.truncf %116 : vector<64x32xf32> to vector<64x32xbf16>
    %118 = vector.extract_strided_slice %34 {offsets = [64, 160], sizes = [64, 32], strides = [1, 1]} : vector<128x384xf32> to vector<64x32xf32>
    %119 = arith.truncf %118 : vector<64x32xf32> to vector<64x32xbf16>
    %cst_40 = arith.constant dense<0.000000e+00> : vector<64x64xf32>
    %120 = tpu.matmul %117, %119, %cst_40 {dimension_numbers = #tpu.dot_dimension_numbers<[1], [1], [0], [0], [0, 0, 1, 0], [], []>} : vector<64x32xbf16>, vector<64x32xbf16>, vector<64x64xf32> -> vector<64x64xf32>
    %cst_41 = arith.constant -1.000000e+30 : f32
    %121 = vector.broadcast %cst_41 : f32 to vector<64x64xf32>
    %122 = arith.select %4, %120, %121 : vector<64x64xi1>, vector<64x64xf32>
    %cst_42 = arith.constant dense<0xFF800000> : vector<64xf32>
    %123 = vector.multi_reduction <maximumf>, %122, %cst_42 [1] : vector<64x64xf32> to vector<64xf32>
    %124 = vector.shape_cast %123 : vector<64xf32> to vector<64x1xf32>
    %125 = vector.broadcast %124 : vector<64x1xf32> to vector<64x64xf32>
    %126 = arith.subf %122, %125 : vector<64x64xf32>
    %127 = math.exp %126 : vector<64x64xf32>
    %cst_43 = arith.constant dense<0.000000e+00> : vector<64xf32>
    %128 = vector.multi_reduction <add>, %127, %cst_43 [1] : vector<64x64xf32> to vector<64xf32>
    %129 = vector.shape_cast %128 : vector<64xf32> to vector<64x1xf32>
    %130 = tpu.reciprocal %129 {approx = true} : vector<64x1xf32> -> vector<64x1xf32>
    %131 = vector.broadcast %130 : vector<64x1xf32> to vector<64x64xf32>
    %132 = arith.mulf %127, %131 : vector<64x64xf32>
    %133 = arith.truncf %132 : vector<64x64xf32> to vector<64x64xbf16>
    %134 = vector.extract_strided_slice %90 {offsets = [64, 0], sizes = [64, 128], strides = [1, 1]} : vector<128x128xbf16> to vector<64x128xbf16>
    %cst_44 = arith.constant dense<0.000000e+00> : vector<64x128xf32>
    %135 = tpu.matmul %133, %134, %cst_44 {dimension_numbers = #tpu.dot_dimension_numbers<[1], [0], [0], [1], [0, 0, 1, 1], [], []>} : vector<64x64xbf16>, vector<64x128xbf16>, vector<64x128xf32> -> vector<64x128xf32>
    %136 = arith.addf %85, %135 : vector<64x128xf32>
    %137 = vector.extract_strided_slice %34 {offsets = [0, 320], sizes = [128, 32], strides = [1, 1]} : vector<128x384xf32> to vector<128x32xf32>
    %138 = arith.truncf %137 : vector<128x32xf32> to vector<128x32xbf16>
    %139 = vector.extract_strided_slice %36 {offsets = [64, 0], sizes = [32, 128], strides = [1, 1]} : vector<128x128xbf16> to vector<32x128xbf16>
    %cst_45 = arith.constant dense<0.000000e+00> : vector<128x128xf32>
    %140 = tpu.matmul %138, %139, %cst_45 {dimension_numbers = #tpu.dot_dimension_numbers<[1], [0], [0], [1], [0, 0, 1, 1], [], []>} : vector<128x32xbf16>, vector<32x128xbf16>, vector<128x128xf32> -> vector<128x128xf32>
    %141 = arith.truncf %140 : vector<128x128xf32> to vector<128x128xbf16>
    %142 = vector.extract_strided_slice %34 {offsets = [0, 64], sizes = [64, 32], strides = [1, 1]} : vector<128x384xf32> to vector<64x32xf32>
    %cst_46 = arith.constant 0.0883883461 : f32
    %143 = vector.broadcast %cst_46 : f32 to vector<64x32xf32>
    %144 = arith.mulf %142, %143 : vector<64x32xf32>
    %145 = arith.truncf %144 : vector<64x32xf32> to vector<64x32xbf16>
    %146 = vector.extract_strided_slice %34 {offsets = [0, 192], sizes = [64, 32], strides = [1, 1]} : vector<128x384xf32> to vector<64x32xf32>
    %147 = arith.truncf %146 : vector<64x32xf32> to vector<64x32xbf16>
    %cst_47 = arith.constant dense<0.000000e+00> : vector<64x64xf32>
    %148 = tpu.matmul %145, %147, %cst_47 {dimension_numbers = #tpu.dot_dimension_numbers<[1], [1], [0], [0], [0, 0, 1, 0], [], []>} : vector<64x32xbf16>, vector<64x32xbf16>, vector<64x64xf32> -> vector<64x64xf32>
    %cst_48 = arith.constant -1.000000e+30 : f32
    %149 = vector.broadcast %cst_48 : f32 to vector<64x64xf32>
    %150 = arith.select %4, %148, %149 : vector<64x64xi1>, vector<64x64xf32>
    %cst_49 = arith.constant dense<0xFF800000> : vector<64xf32>
    %151 = vector.multi_reduction <maximumf>, %150, %cst_49 [1] : vector<64x64xf32> to vector<64xf32>
    %152 = vector.shape_cast %151 : vector<64xf32> to vector<64x1xf32>
    %153 = vector.broadcast %152 : vector<64x1xf32> to vector<64x64xf32>
    %154 = arith.subf %150, %153 : vector<64x64xf32>
    %155 = math.exp %154 : vector<64x64xf32>
    %cst_50 = arith.constant dense<0.000000e+00> : vector<64xf32>
    %156 = vector.multi_reduction <add>, %155, %cst_50 [1] : vector<64x64xf32> to vector<64xf32>
    %157 = vector.shape_cast %156 : vector<64xf32> to vector<64x1xf32>
    %158 = tpu.reciprocal %157 {approx = true} : vector<64x1xf32> -> vector<64x1xf32>
    %159 = vector.broadcast %158 : vector<64x1xf32> to vector<64x64xf32>
    %160 = arith.mulf %155, %159 : vector<64x64xf32>
    %161 = arith.truncf %160 : vector<64x64xf32> to vector<64x64xbf16>
    %162 = vector.extract_strided_slice %141 {offsets = [0, 0], sizes = [64, 128], strides = [1, 1]} : vector<128x128xbf16> to vector<64x128xbf16>
    %cst_51 = arith.constant dense<0.000000e+00> : vector<64x128xf32>
    %163 = tpu.matmul %161, %162, %cst_51 {dimension_numbers = #tpu.dot_dimension_numbers<[1], [0], [0], [1], [0, 0, 1, 1], [], []>} : vector<64x64xbf16>, vector<64x128xbf16>, vector<64x128xf32> -> vector<64x128xf32>
    %164 = arith.addf %113, %163 : vector<64x128xf32>
    %165 = vector.extract_strided_slice %34 {offsets = [64, 64], sizes = [64, 32], strides = [1, 1]} : vector<128x384xf32> to vector<64x32xf32>
    %cst_52 = arith.constant 0.0883883461 : f32
    %166 = vector.broadcast %cst_52 : f32 to vector<64x32xf32>
    %167 = arith.mulf %165, %166 : vector<64x32xf32>
    %168 = arith.truncf %167 : vector<64x32xf32> to vector<64x32xbf16>
    %169 = vector.extract_strided_slice %34 {offsets = [64, 192], sizes = [64, 32], strides = [1, 1]} : vector<128x384xf32> to vector<64x32xf32>
    %170 = arith.truncf %169 : vector<64x32xf32> to vector<64x32xbf16>
    %cst_53 = arith.constant dense<0.000000e+00> : vector<64x64xf32>
    %171 = tpu.matmul %168, %170, %cst_53 {dimension_numbers = #tpu.dot_dimension_numbers<[1], [1], [0], [0], [0, 0, 1, 0], [], []>} : vector<64x32xbf16>, vector<64x32xbf16>, vector<64x64xf32> -> vector<64x64xf32>
    %cst_54 = arith.constant -1.000000e+30 : f32
    %172 = vector.broadcast %cst_54 : f32 to vector<64x64xf32>
    %173 = arith.select %4, %171, %172 : vector<64x64xi1>, vector<64x64xf32>
    %cst_55 = arith.constant dense<0xFF800000> : vector<64xf32>
    %174 = vector.multi_reduction <maximumf>, %173, %cst_55 [1] : vector<64x64xf32> to vector<64xf32>
    %175 = vector.shape_cast %174 : vector<64xf32> to vector<64x1xf32>
    %176 = vector.broadcast %175 : vector<64x1xf32> to vector<64x64xf32>
    %177 = arith.subf %173, %176 : vector<64x64xf32>
    %178 = math.exp %177 : vector<64x64xf32>
    %cst_56 = arith.constant dense<0.000000e+00> : vector<64xf32>
    %179 = vector.multi_reduction <add>, %178, %cst_56 [1] : vector<64x64xf32> to vector<64xf32>
    %180 = vector.shape_cast %179 : vector<64xf32> to vector<64x1xf32>
    %181 = tpu.reciprocal %180 {approx = true} : vector<64x1xf32> -> vector<64x1xf32>
    %182 = vector.broadcast %181 : vector<64x1xf32> to vector<64x64xf32>
    %183 = arith.mulf %178, %182 : vector<64x64xf32>
    %184 = arith.truncf %183 : vector<64x64xf32> to vector<64x64xbf16>
    %185 = vector.extract_strided_slice %141 {offsets = [64, 0], sizes = [64, 128], strides = [1, 1]} : vector<128x128xbf16> to vector<64x128xbf16>
    %cst_57 = arith.constant dense<0.000000e+00> : vector<64x128xf32>
    %186 = tpu.matmul %184, %185, %cst_57 {dimension_numbers = #tpu.dot_dimension_numbers<[1], [0], [0], [1], [0, 0, 1, 1], [], []>} : vector<64x64xbf16>, vector<64x128xbf16>, vector<64x128xf32> -> vector<64x128xf32>
    %187 = arith.addf %136, %186 : vector<64x128xf32>
    %188 = vector.extract_strided_slice %34 {offsets = [0, 352], sizes = [128, 32], strides = [1, 1]} : vector<128x384xf32> to vector<128x32xf32>
    %189 = arith.truncf %188 : vector<128x32xf32> to vector<128x32xbf16>
    %190 = vector.extract_strided_slice %36 {offsets = [96, 0], sizes = [32, 128], strides = [1, 1]} : vector<128x128xbf16> to vector<32x128xbf16>
    %cst_58 = arith.constant dense<0.000000e+00> : vector<128x128xf32>
    %191 = tpu.matmul %189, %190, %cst_58 {dimension_numbers = #tpu.dot_dimension_numbers<[1], [0], [0], [1], [0, 0, 1, 1], [], []>} : vector<128x32xbf16>, vector<32x128xbf16>, vector<128x128xf32> -> vector<128x128xf32>
    %192 = arith.truncf %191 : vector<128x128xf32> to vector<128x128xbf16>
    %193 = vector.extract_strided_slice %34 {offsets = [0, 96], sizes = [64, 32], strides = [1, 1]} : vector<128x384xf32> to vector<64x32xf32>
    %cst_59 = arith.constant 0.0883883461 : f32
    %194 = vector.broadcast %cst_59 : f32 to vector<64x32xf32>
    %195 = arith.mulf %193, %194 : vector<64x32xf32>
    %196 = arith.truncf %195 : vector<64x32xf32> to vector<64x32xbf16>
    %197 = vector.extract_strided_slice %34 {offsets = [0, 224], sizes = [64, 32], strides = [1, 1]} : vector<128x384xf32> to vector<64x32xf32>
    %198 = arith.truncf %197 : vector<64x32xf32> to vector<64x32xbf16>
    %cst_60 = arith.constant dense<0.000000e+00> : vector<64x64xf32>
    %199 = tpu.matmul %196, %198, %cst_60 {dimension_numbers = #tpu.dot_dimension_numbers<[1], [1], [0], [0], [0, 0, 1, 0], [], []>} : vector<64x32xbf16>, vector<64x32xbf16>, vector<64x64xf32> -> vector<64x64xf32>
    %cst_61 = arith.constant -1.000000e+30 : f32
    %200 = vector.broadcast %cst_61 : f32 to vector<64x64xf32>
    %201 = arith.select %4, %199, %200 : vector<64x64xi1>, vector<64x64xf32>
    %cst_62 = arith.constant dense<0xFF800000> : vector<64xf32>
    %202 = vector.multi_reduction <maximumf>, %201, %cst_62 [1] : vector<64x64xf32> to vector<64xf32>
    %203 = vector.shape_cast %202 : vector<64xf32> to vector<64x1xf32>
    %204 = vector.broadcast %203 : vector<64x1xf32> to vector<64x64xf32>
    %205 = arith.subf %201, %204 : vector<64x64xf32>
    %206 = math.exp %205 : vector<64x64xf32>
    %cst_63 = arith.constant dense<0.000000e+00> : vector<64xf32>
    %207 = vector.multi_reduction <add>, %206, %cst_63 [1] : vector<64x64xf32> to vector<64xf32>
    %208 = vector.shape_cast %207 : vector<64xf32> to vector<64x1xf32>
    %209 = tpu.reciprocal %208 {approx = true} : vector<64x1xf32> -> vector<64x1xf32>
    %210 = vector.broadcast %209 : vector<64x1xf32> to vector<64x64xf32>
    %211 = arith.mulf %206, %210 : vector<64x64xf32>
    %212 = arith.truncf %211 : vector<64x64xf32> to vector<64x64xbf16>
    %213 = vector.extract_strided_slice %192 {offsets = [0, 0], sizes = [64, 128], strides = [1, 1]} : vector<128x128xbf16> to vector<64x128xbf16>
    %cst_64 = arith.constant dense<0.000000e+00> : vector<64x128xf32>
    %214 = tpu.matmul %212, %213, %cst_64 {dimension_numbers = #tpu.dot_dimension_numbers<[1], [0], [0], [1], [0, 0, 1, 1], [], []>} : vector<64x64xbf16>, vector<64x128xbf16>, vector<64x128xf32> -> vector<64x128xf32>
    %215 = arith.addf %164, %214 : vector<64x128xf32>
    %216 = vector.extract_strided_slice %34 {offsets = [64, 96], sizes = [64, 32], strides = [1, 1]} : vector<128x384xf32> to vector<64x32xf32>
    %cst_65 = arith.constant 0.0883883461 : f32
    %217 = vector.broadcast %cst_65 : f32 to vector<64x32xf32>
    %218 = arith.mulf %216, %217 : vector<64x32xf32>
    %219 = arith.truncf %218 : vector<64x32xf32> to vector<64x32xbf16>
    %220 = vector.extract_strided_slice %34 {offsets = [64, 224], sizes = [64, 32], strides = [1, 1]} : vector<128x384xf32> to vector<64x32xf32>
    %221 = arith.truncf %220 : vector<64x32xf32> to vector<64x32xbf16>
    %cst_66 = arith.constant dense<0.000000e+00> : vector<64x64xf32>
    %222 = tpu.matmul %219, %221, %cst_66 {dimension_numbers = #tpu.dot_dimension_numbers<[1], [1], [0], [0], [0, 0, 1, 0], [], []>} : vector<64x32xbf16>, vector<64x32xbf16>, vector<64x64xf32> -> vector<64x64xf32>
    %cst_67 = arith.constant -1.000000e+30 : f32
    %223 = vector.broadcast %cst_67 : f32 to vector<64x64xf32>
    %224 = arith.select %4, %222, %223 : vector<64x64xi1>, vector<64x64xf32>
    %cst_68 = arith.constant dense<0xFF800000> : vector<64xf32>
    %225 = vector.multi_reduction <maximumf>, %224, %cst_68 [1] : vector<64x64xf32> to vector<64xf32>
    %226 = vector.shape_cast %225 : vector<64xf32> to vector<64x1xf32>
    %227 = vector.broadcast %226 : vector<64x1xf32> to vector<64x64xf32>
    %228 = arith.subf %224, %227 : vector<64x64xf32>
    %229 = math.exp %228 : vector<64x64xf32>
    %cst_69 = arith.constant dense<0.000000e+00> : vector<64xf32>
    %230 = vector.multi_reduction <add>, %229, %cst_69 [1] : vector<64x64xf32> to vector<64xf32>
    %231 = vector.shape_cast %230 : vector<64xf32> to vector<64x1xf32>
    %232 = tpu.reciprocal %231 {approx = true} : vector<64x1xf32> -> vector<64x1xf32>
    %233 = vector.broadcast %232 : vector<64x1xf32> to vector<64x64xf32>
    %234 = arith.mulf %229, %233 : vector<64x64xf32>
    %235 = arith.truncf %234 : vector<64x64xf32> to vector<64x64xbf16>
    %236 = vector.extract_strided_slice %192 {offsets = [64, 0], sizes = [64, 128], strides = [1, 1]} : vector<128x128xbf16> to vector<64x128xbf16>
    %cst_70 = arith.constant dense<0.000000e+00> : vector<64x128xf32>
    %237 = tpu.matmul %235, %236, %cst_70 {dimension_numbers = #tpu.dot_dimension_numbers<[1], [0], [0], [1], [0, 0, 1, 1], [], []>} : vector<64x64xbf16>, vector<64x128xbf16>, vector<64x128xf32> -> vector<64x128xf32>
    %238 = arith.addf %187, %237 : vector<64x128xf32>
    %239 = tpu.concatenate %215, %238 in 0 : vector<64x128xf32>, vector<64x128xf32> -> vector<128x128xf32>
    %240 = arith.addf %1, %239 : vector<128x128xf32>
    %c0_71 = arith.constant 0 : index
    %c0_72 = arith.constant 0 : index
    %c0_73 = arith.constant 0 : index
    %241 = vector.load %arg6[%c0_71, %c0_72, %c0_73] : memref<2x1x128xf32, #tpu.memory_space<vmem>>, vector<1x1x128xf32>
    %242 = vector.shape_cast %241 : vector<1x1x128xf32> to vector<1x128xf32>
    %243 = vector.broadcast %242 : vector<1x128xf32> to vector<128x128xf32>
    %244 = arith.addf %240, %243 : vector<128x128xf32>
    %c0_74 = arith.constant 0 : index
    %c0_75 = arith.constant 0 : index
    %c0_76 = arith.constant 0 : index
    %245 = vector.load %arg7[%c0_74, %c0_75, %c0_76] : memref<2x1x128xf32, #tpu.memory_space<vmem>>, vector<1x1x128xf32>
    %246 = vector.shape_cast %245 : vector<1x1x128xf32> to vector<1x128xf32>
    %c0_77 = arith.constant 0 : index
    %c0_78 = arith.constant 0 : index
    %c0_79 = arith.constant 0 : index
    %247 = vector.load %arg8[%c0_77, %c0_78, %c0_79] : memref<2x1x128xf32, #tpu.memory_space<vmem>>, vector<1x1x128xf32>
    %248 = vector.shape_cast %247 : vector<1x1x128xf32> to vector<1x128xf32>
    %cst_80 = arith.constant dense<0.000000e+00> : vector<128xf32>
    %249 = vector.multi_reduction <add>, %244, %cst_80 [1] : vector<128x128xf32> to vector<128xf32>
    %250 = vector.shape_cast %249 : vector<128xf32> to vector<128x1xf32>
    %cst_81 = arith.constant 1.280000e+02 : f32
    %251 = vector.broadcast %cst_81 : f32 to vector<128x1xf32>
    %252 = arith.divf %250, %251 : vector<128x1xf32>
    %253 = vector.broadcast %252 : vector<128x1xf32> to vector<128x128xf32>
    %254 = arith.subf %244, %253 : vector<128x128xf32>
    %255 = arith.mulf %254, %254 : vector<128x128xf32>
    %cst_82 = arith.constant dense<0.000000e+00> : vector<128xf32>
    %256 = vector.multi_reduction <add>, %255, %cst_82 [1] : vector<128x128xf32> to vector<128xf32>
    %257 = vector.shape_cast %256 : vector<128xf32> to vector<128x1xf32>
    %cst_83 = arith.constant 1.280000e+02 : f32
    %258 = vector.broadcast %cst_83 : f32 to vector<128x1xf32>
    %259 = arith.divf %257, %258 : vector<128x1xf32>
    %260 = vector.broadcast %252 : vector<128x1xf32> to vector<128x128xf32>
    %261 = arith.subf %244, %260 : vector<128x128xf32>
    %cst_84 = arith.constant 9.99999974E-6 : f32
    %262 = vector.broadcast %cst_84 : f32 to vector<128x1xf32>
    %263 = arith.addf %259, %262 : vector<128x1xf32>
    %264 = math.rsqrt %263 : vector<128x1xf32>
    %265 = vector.broadcast %264 : vector<128x1xf32> to vector<128x128xf32>
    %266 = arith.mulf %261, %265 : vector<128x128xf32>
    %267 = vector.broadcast %246 : vector<1x128xf32> to vector<128x128xf32>
    %268 = arith.mulf %266, %267 : vector<128x128xf32>
    %269 = vector.broadcast %248 : vector<1x128xf32> to vector<128x128xf32>
    %270 = arith.addf %268, %269 : vector<128x128xf32>
    %271 = arith.truncf %270 : vector<128x128xf32> to vector<128x128xbf16>
    %c0_85 = arith.constant 0 : index
    %c0_86 = arith.constant 0 : index
    %c0_87 = arith.constant 0 : index
    %272 = vector.load %arg9[%c0_85, %c0_86, %c0_87] : memref<2x128x512xbf16, #tpu.memory_space<vmem>>, vector<1x128x512xbf16>
    %273 = vector.shape_cast %272 : vector<1x128x512xbf16> to vector<128x512xbf16>
    %cst_88 = arith.constant dense<0.000000e+00> : vector<128x512xf32>
    %274 = tpu.matmul %271, %273, %cst_88 {dimension_numbers = #tpu.dot_dimension_numbers<[1], [0], [0], [1], [0, 0, 1, 1], [], []>} : vector<128x128xbf16>, vector<128x512xbf16>, vector<128x512xf32> -> vector<128x512xf32>
    %c0_89 = arith.constant 0 : index
    %c0_90 = arith.constant 0 : index
    %c0_91 = arith.constant 0 : index
    %275 = vector.load %arg10[%c0_89, %c0_90, %c0_91] : memref<2x1x512xf32, #tpu.memory_space<vmem>>, vector<1x1x512xf32>
    %276 = vector.shape_cast %275 : vector<1x1x512xf32> to vector<1x512xf32>
    %277 = vector.broadcast %276 : vector<1x512xf32> to vector<128x512xf32>
    %278 = arith.addf %274, %277 : vector<128x512xf32>
    %cst_92 = arith.constant 0.000000e+00 : f32
    %279 = vector.broadcast %cst_92 : f32 to vector<128x512xf32>
    %280 = arith.maximumf %278, %279 : vector<128x512xf32>
    %281 = arith.truncf %280 : vector<128x512xf32> to vector<128x512xbf16>
    %c0_93 = arith.constant 0 : index
    %c0_94 = arith.constant 0 : index
    %c0_95 = arith.constant 0 : index
    %282 = vector.load %arg11[%c0_93, %c0_94, %c0_95] : memref<2x512x128xbf16, #tpu.memory_space<vmem>>, vector<1x512x128xbf16>
    %283 = vector.shape_cast %282 : vector<1x512x128xbf16> to vector<512x128xbf16>
    %cst_96 = arith.constant dense<0.000000e+00> : vector<128x128xf32>
    %284 = tpu.matmul %281, %283, %cst_96 {dimension_numbers = #tpu.dot_dimension_numbers<[1], [0], [0], [1], [0, 0, 1, 1], [], []>} : vector<128x512xbf16>, vector<512x128xbf16>, vector<128x128xf32> -> vector<128x128xf32>
    %c0_97 = arith.constant 0 : index
    %c0_98 = arith.constant 0 : index
    %c0_99 = arith.constant 0 : index
    %285 = vector.load %arg12[%c0_97, %c0_98, %c0_99] : memref<2x1x128xf32, #tpu.memory_space<vmem>>, vector<1x1x128xf32>
    %286 = vector.shape_cast %285 : vector<1x1x128xf32> to vector<1x128xf32>
    %287 = vector.broadcast %286 : vector<1x128xf32> to vector<128x128xf32>
    %288 = arith.addf %284, %287 : vector<128x128xf32>
    %289 = arith.addf %244, %288 : vector<128x128xf32>
    %c1 = arith.constant 1 : index
    %c0_100 = arith.constant 0 : index
    %c0_101 = arith.constant 0 : index
    %290 = vector.load %arg2[%c1, %c0_100, %c0_101] : memref<2x1x128xf32, #tpu.memory_space<vmem>>, vector<1x1x128xf32>
    %291 = vector.shape_cast %290 : vector<1x1x128xf32> to vector<1x128xf32>
    %c1_102 = arith.constant 1 : index
    %c0_103 = arith.constant 0 : index
    %c0_104 = arith.constant 0 : index
    %292 = vector.load %arg3[%c1_102, %c0_103, %c0_104] : memref<2x1x128xf32, #tpu.memory_space<vmem>>, vector<1x1x128xf32>
    %293 = vector.shape_cast %292 : vector<1x1x128xf32> to vector<1x128xf32>
    %cst_105 = arith.constant dense<0.000000e+00> : vector<128xf32>
    %294 = vector.multi_reduction <add>, %289, %cst_105 [1] : vector<128x128xf32> to vector<128xf32>
    %295 = vector.shape_cast %294 : vector<128xf32> to vector<128x1xf32>
    %cst_106 = arith.constant 1.280000e+02 : f32
    %296 = vector.broadcast %cst_106 : f32 to vector<128x1xf32>
    %297 = arith.divf %295, %296 : vector<128x1xf32>
    %298 = vector.broadcast %297 : vector<128x1xf32> to vector<128x128xf32>
    %299 = arith.subf %289, %298 : vector<128x128xf32>
    %300 = arith.mulf %299, %299 : vector<128x128xf32>
    %cst_107 = arith.constant dense<0.000000e+00> : vector<128xf32>
    %301 = vector.multi_reduction <add>, %300, %cst_107 [1] : vector<128x128xf32> to vector<128xf32>
    %302 = vector.shape_cast %301 : vector<128xf32> to vector<128x1xf32>
    %cst_108 = arith.constant 1.280000e+02 : f32
    %303 = vector.broadcast %cst_108 : f32 to vector<128x1xf32>
    %304 = arith.divf %302, %303 : vector<128x1xf32>
    %305 = vector.broadcast %297 : vector<128x1xf32> to vector<128x128xf32>
    %306 = arith.subf %289, %305 : vector<128x128xf32>
    %cst_109 = arith.constant 9.99999974E-6 : f32
    %307 = vector.broadcast %cst_109 : f32 to vector<128x1xf32>
    %308 = arith.addf %304, %307 : vector<128x1xf32>
    %309 = math.rsqrt %308 : vector<128x1xf32>
    %310 = vector.broadcast %309 : vector<128x1xf32> to vector<128x128xf32>
    %311 = arith.mulf %306, %310 : vector<128x128xf32>
    %312 = vector.broadcast %291 : vector<1x128xf32> to vector<128x128xf32>
    %313 = arith.mulf %311, %312 : vector<128x128xf32>
    %314 = vector.broadcast %293 : vector<1x128xf32> to vector<128x128xf32>
    %315 = arith.addf %313, %314 : vector<128x128xf32>
    %316 = arith.truncf %315 : vector<128x128xf32> to vector<128x128xbf16>
    %c1_110 = arith.constant 1 : index
    %c0_111 = arith.constant 0 : index
    %c0_112 = arith.constant 0 : index
    %317 = vector.load %arg4[%c1_110, %c0_111, %c0_112] : memref<2x128x384xbf16, #tpu.memory_space<vmem>>, vector<1x128x384xbf16>
    %318 = vector.shape_cast %317 : vector<1x128x384xbf16> to vector<128x384xbf16>
    %cst_113 = arith.constant dense<0.000000e+00> : vector<128x384xf32>
    %319 = tpu.matmul %316, %318, %cst_113 {dimension_numbers = #tpu.dot_dimension_numbers<[1], [0], [0], [1], [0, 0, 1, 1], [], []>} : vector<128x128xbf16>, vector<128x384xbf16>, vector<128x384xf32> -> vector<128x384xf32>
    %c1_114 = arith.constant 1 : index
    %c0_115 = arith.constant 0 : index
    %c0_116 = arith.constant 0 : index
    %320 = vector.load %arg5[%c1_114, %c0_115, %c0_116] : memref<2x128x128xbf16, #tpu.memory_space<vmem>>, vector<1x128x128xbf16>
    %321 = vector.shape_cast %320 : vector<1x128x128xbf16> to vector<128x128xbf16>
    %322 = vector.extract_strided_slice %319 {offsets = [0, 256], sizes = [128, 32], strides = [1, 1]} : vector<128x384xf32> to vector<128x32xf32>
    %323 = arith.truncf %322 : vector<128x32xf32> to vector<128x32xbf16>
    %324 = vector.extract_strided_slice %321 {offsets = [0, 0], sizes = [32, 128], strides = [1, 1]} : vector<128x128xbf16> to vector<32x128xbf16>
    %cst_117 = arith.constant dense<0.000000e+00> : vector<128x128xf32>
    %325 = tpu.matmul %323, %324, %cst_117 {dimension_numbers = #tpu.dot_dimension_numbers<[1], [0], [0], [1], [0, 0, 1, 1], [], []>} : vector<128x32xbf16>, vector<32x128xbf16>, vector<128x128xf32> -> vector<128x128xf32>
    %326 = arith.truncf %325 : vector<128x128xf32> to vector<128x128xbf16>
    %327 = vector.extract_strided_slice %319 {offsets = [0, 0], sizes = [64, 32], strides = [1, 1]} : vector<128x384xf32> to vector<64x32xf32>
    %cst_118 = arith.constant 0.0883883461 : f32
    %328 = vector.broadcast %cst_118 : f32 to vector<64x32xf32>
    %329 = arith.mulf %327, %328 : vector<64x32xf32>
    %330 = arith.truncf %329 : vector<64x32xf32> to vector<64x32xbf16>
    %331 = vector.extract_strided_slice %319 {offsets = [0, 128], sizes = [64, 32], strides = [1, 1]} : vector<128x384xf32> to vector<64x32xf32>
    %332 = arith.truncf %331 : vector<64x32xf32> to vector<64x32xbf16>
    %cst_119 = arith.constant dense<0.000000e+00> : vector<64x64xf32>
    %333 = tpu.matmul %330, %332, %cst_119 {dimension_numbers = #tpu.dot_dimension_numbers<[1], [1], [0], [0], [0, 0, 1, 0], [], []>} : vector<64x32xbf16>, vector<64x32xbf16>, vector<64x64xf32> -> vector<64x64xf32>
    %cst_120 = arith.constant -1.000000e+30 : f32
    %334 = vector.broadcast %cst_120 : f32 to vector<64x64xf32>
    %335 = arith.select %4, %333, %334 : vector<64x64xi1>, vector<64x64xf32>
    %cst_121 = arith.constant dense<0xFF800000> : vector<64xf32>
    %336 = vector.multi_reduction <maximumf>, %335, %cst_121 [1] : vector<64x64xf32> to vector<64xf32>
    %337 = vector.shape_cast %336 : vector<64xf32> to vector<64x1xf32>
    %338 = vector.broadcast %337 : vector<64x1xf32> to vector<64x64xf32>
    %339 = arith.subf %335, %338 : vector<64x64xf32>
    %340 = math.exp %339 : vector<64x64xf32>
    %cst_122 = arith.constant dense<0.000000e+00> : vector<64xf32>
    %341 = vector.multi_reduction <add>, %340, %cst_122 [1] : vector<64x64xf32> to vector<64xf32>
    %342 = vector.shape_cast %341 : vector<64xf32> to vector<64x1xf32>
    %343 = tpu.reciprocal %342 {approx = true} : vector<64x1xf32> -> vector<64x1xf32>
    %344 = vector.broadcast %343 : vector<64x1xf32> to vector<64x64xf32>
    %345 = arith.mulf %340, %344 : vector<64x64xf32>
    %346 = arith.truncf %345 : vector<64x64xf32> to vector<64x64xbf16>
    %347 = vector.extract_strided_slice %326 {offsets = [0, 0], sizes = [64, 128], strides = [1, 1]} : vector<128x128xbf16> to vector<64x128xbf16>
    %cst_123 = arith.constant dense<0.000000e+00> : vector<64x128xf32>
    %348 = tpu.matmul %346, %347, %cst_123 {dimension_numbers = #tpu.dot_dimension_numbers<[1], [0], [0], [1], [0, 0, 1, 1], [], []>} : vector<64x64xbf16>, vector<64x128xbf16>, vector<64x128xf32> -> vector<64x128xf32>
    %349 = vector.extract_strided_slice %319 {offsets = [64, 0], sizes = [64, 32], strides = [1, 1]} : vector<128x384xf32> to vector<64x32xf32>
    %cst_124 = arith.constant 0.0883883461 : f32
    %350 = vector.broadcast %cst_124 : f32 to vector<64x32xf32>
    %351 = arith.mulf %349, %350 : vector<64x32xf32>
    %352 = arith.truncf %351 : vector<64x32xf32> to vector<64x32xbf16>
    %353 = vector.extract_strided_slice %319 {offsets = [64, 128], sizes = [64, 32], strides = [1, 1]} : vector<128x384xf32> to vector<64x32xf32>
    %354 = arith.truncf %353 : vector<64x32xf32> to vector<64x32xbf16>
    %cst_125 = arith.constant dense<0.000000e+00> : vector<64x64xf32>
    %355 = tpu.matmul %352, %354, %cst_125 {dimension_numbers = #tpu.dot_dimension_numbers<[1], [1], [0], [0], [0, 0, 1, 0], [], []>} : vector<64x32xbf16>, vector<64x32xbf16>, vector<64x64xf32> -> vector<64x64xf32>
    %cst_126 = arith.constant -1.000000e+30 : f32
    %356 = vector.broadcast %cst_126 : f32 to vector<64x64xf32>
    %357 = arith.select %4, %355, %356 : vector<64x64xi1>, vector<64x64xf32>
    %cst_127 = arith.constant dense<0xFF800000> : vector<64xf32>
    %358 = vector.multi_reduction <maximumf>, %357, %cst_127 [1] : vector<64x64xf32> to vector<64xf32>
    %359 = vector.shape_cast %358 : vector<64xf32> to vector<64x1xf32>
    %360 = vector.broadcast %359 : vector<64x1xf32> to vector<64x64xf32>
    %361 = arith.subf %357, %360 : vector<64x64xf32>
    %362 = math.exp %361 : vector<64x64xf32>
    %cst_128 = arith.constant dense<0.000000e+00> : vector<64xf32>
    %363 = vector.multi_reduction <add>, %362, %cst_128 [1] : vector<64x64xf32> to vector<64xf32>
    %364 = vector.shape_cast %363 : vector<64xf32> to vector<64x1xf32>
    %365 = tpu.reciprocal %364 {approx = true} : vector<64x1xf32> -> vector<64x1xf32>
    %366 = vector.broadcast %365 : vector<64x1xf32> to vector<64x64xf32>
    %367 = arith.mulf %362, %366 : vector<64x64xf32>
    %368 = arith.truncf %367 : vector<64x64xf32> to vector<64x64xbf16>
    %369 = vector.extract_strided_slice %326 {offsets = [64, 0], sizes = [64, 128], strides = [1, 1]} : vector<128x128xbf16> to vector<64x128xbf16>
    %cst_129 = arith.constant dense<0.000000e+00> : vector<64x128xf32>
    %370 = tpu.matmul %368, %369, %cst_129 {dimension_numbers = #tpu.dot_dimension_numbers<[1], [0], [0], [1], [0, 0, 1, 1], [], []>} : vector<64x64xbf16>, vector<64x128xbf16>, vector<64x128xf32> -> vector<64x128xf32>
    %371 = vector.extract_strided_slice %319 {offsets = [0, 288], sizes = [128, 32], strides = [1, 1]} : vector<128x384xf32> to vector<128x32xf32>
    %372 = arith.truncf %371 : vector<128x32xf32> to vector<128x32xbf16>
    %373 = vector.extract_strided_slice %321 {offsets = [32, 0], sizes = [32, 128], strides = [1, 1]} : vector<128x128xbf16> to vector<32x128xbf16>
    %cst_130 = arith.constant dense<0.000000e+00> : vector<128x128xf32>
    %374 = tpu.matmul %372, %373, %cst_130 {dimension_numbers = #tpu.dot_dimension_numbers<[1], [0], [0], [1], [0, 0, 1, 1], [], []>} : vector<128x32xbf16>, vector<32x128xbf16>, vector<128x128xf32> -> vector<128x128xf32>
    %375 = arith.truncf %374 : vector<128x128xf32> to vector<128x128xbf16>
    %376 = vector.extract_strided_slice %319 {offsets = [0, 32], sizes = [64, 32], strides = [1, 1]} : vector<128x384xf32> to vector<64x32xf32>
    %cst_131 = arith.constant 0.0883883461 : f32
    %377 = vector.broadcast %cst_131 : f32 to vector<64x32xf32>
    %378 = arith.mulf %376, %377 : vector<64x32xf32>
    %379 = arith.truncf %378 : vector<64x32xf32> to vector<64x32xbf16>
    %380 = vector.extract_strided_slice %319 {offsets = [0, 160], sizes = [64, 32], strides = [1, 1]} : vector<128x384xf32> to vector<64x32xf32>
    %381 = arith.truncf %380 : vector<64x32xf32> to vector<64x32xbf16>
    %cst_132 = arith.constant dense<0.000000e+00> : vector<64x64xf32>
    %382 = tpu.matmul %379, %381, %cst_132 {dimension_numbers = #tpu.dot_dimension_numbers<[1], [1], [0], [0], [0, 0, 1, 0], [], []>} : vector<64x32xbf16>, vector<64x32xbf16>, vector<64x64xf32> -> vector<64x64xf32>
    %cst_133 = arith.constant -1.000000e+30 : f32
    %383 = vector.broadcast %cst_133 : f32 to vector<64x64xf32>
    %384 = arith.select %4, %382, %383 : vector<64x64xi1>, vector<64x64xf32>
    %cst_134 = arith.constant dense<0xFF800000> : vector<64xf32>
    %385 = vector.multi_reduction <maximumf>, %384, %cst_134 [1] : vector<64x64xf32> to vector<64xf32>
    %386 = vector.shape_cast %385 : vector<64xf32> to vector<64x1xf32>
    %387 = vector.broadcast %386 : vector<64x1xf32> to vector<64x64xf32>
    %388 = arith.subf %384, %387 : vector<64x64xf32>
    %389 = math.exp %388 : vector<64x64xf32>
    %cst_135 = arith.constant dense<0.000000e+00> : vector<64xf32>
    %390 = vector.multi_reduction <add>, %389, %cst_135 [1] : vector<64x64xf32> to vector<64xf32>
    %391 = vector.shape_cast %390 : vector<64xf32> to vector<64x1xf32>
    %392 = tpu.reciprocal %391 {approx = true} : vector<64x1xf32> -> vector<64x1xf32>
    %393 = vector.broadcast %392 : vector<64x1xf32> to vector<64x64xf32>
    %394 = arith.mulf %389, %393 : vector<64x64xf32>
    %395 = arith.truncf %394 : vector<64x64xf32> to vector<64x64xbf16>
    %396 = vector.extract_strided_slice %375 {offsets = [0, 0], sizes = [64, 128], strides = [1, 1]} : vector<128x128xbf16> to vector<64x128xbf16>
    %cst_136 = arith.constant dense<0.000000e+00> : vector<64x128xf32>
    %397 = tpu.matmul %395, %396, %cst_136 {dimension_numbers = #tpu.dot_dimension_numbers<[1], [0], [0], [1], [0, 0, 1, 1], [], []>} : vector<64x64xbf16>, vector<64x128xbf16>, vector<64x128xf32> -> vector<64x128xf32>
    %398 = arith.addf %348, %397 : vector<64x128xf32>
    %399 = vector.extract_strided_slice %319 {offsets = [64, 32], sizes = [64, 32], strides = [1, 1]} : vector<128x384xf32> to vector<64x32xf32>
    %cst_137 = arith.constant 0.0883883461 : f32
    %400 = vector.broadcast %cst_137 : f32 to vector<64x32xf32>
    %401 = arith.mulf %399, %400 : vector<64x32xf32>
    %402 = arith.truncf %401 : vector<64x32xf32> to vector<64x32xbf16>
    %403 = vector.extract_strided_slice %319 {offsets = [64, 160], sizes = [64, 32], strides = [1, 1]} : vector<128x384xf32> to vector<64x32xf32>
    %404 = arith.truncf %403 : vector<64x32xf32> to vector<64x32xbf16>
    %cst_138 = arith.constant dense<0.000000e+00> : vector<64x64xf32>
    %405 = tpu.matmul %402, %404, %cst_138 {dimension_numbers = #tpu.dot_dimension_numbers<[1], [1], [0], [0], [0, 0, 1, 0], [], []>} : vector<64x32xbf16>, vector<64x32xbf16>, vector<64x64xf32> -> vector<64x64xf32>
    %cst_139 = arith.constant -1.000000e+30 : f32
    %406 = vector.broadcast %cst_139 : f32 to vector<64x64xf32>
    %407 = arith.select %4, %405, %406 : vector<64x64xi1>, vector<64x64xf32>
    %cst_140 = arith.constant dense<0xFF800000> : vector<64xf32>
    %408 = vector.multi_reduction <maximumf>, %407, %cst_140 [1] : vector<64x64xf32> to vector<64xf32>
    %409 = vector.shape_cast %408 : vector<64xf32> to vector<64x1xf32>
    %410 = vector.broadcast %409 : vector<64x1xf32> to vector<64x64xf32>
    %411 = arith.subf %407, %410 : vector<64x64xf32>
    %412 = math.exp %411 : vector<64x64xf32>
    %cst_141 = arith.constant dense<0.000000e+00> : vector<64xf32>
    %413 = vector.multi_reduction <add>, %412, %cst_141 [1] : vector<64x64xf32> to vector<64xf32>
    %414 = vector.shape_cast %413 : vector<64xf32> to vector<64x1xf32>
    %415 = tpu.reciprocal %414 {approx = true} : vector<64x1xf32> -> vector<64x1xf32>
    %416 = vector.broadcast %415 : vector<64x1xf32> to vector<64x64xf32>
    %417 = arith.mulf %412, %416 : vector<64x64xf32>
    %418 = arith.truncf %417 : vector<64x64xf32> to vector<64x64xbf16>
    %419 = vector.extract_strided_slice %375 {offsets = [64, 0], sizes = [64, 128], strides = [1, 1]} : vector<128x128xbf16> to vector<64x128xbf16>
    %cst_142 = arith.constant dense<0.000000e+00> : vector<64x128xf32>
    %420 = tpu.matmul %418, %419, %cst_142 {dimension_numbers = #tpu.dot_dimension_numbers<[1], [0], [0], [1], [0, 0, 1, 1], [], []>} : vector<64x64xbf16>, vector<64x128xbf16>, vector<64x128xf32> -> vector<64x128xf32>
    %421 = arith.addf %370, %420 : vector<64x128xf32>
    %422 = vector.extract_strided_slice %319 {offsets = [0, 320], sizes = [128, 32], strides = [1, 1]} : vector<128x384xf32> to vector<128x32xf32>
    %423 = arith.truncf %422 : vector<128x32xf32> to vector<128x32xbf16>
    %424 = vector.extract_strided_slice %321 {offsets = [64, 0], sizes = [32, 128], strides = [1, 1]} : vector<128x128xbf16> to vector<32x128xbf16>
    %cst_143 = arith.constant dense<0.000000e+00> : vector<128x128xf32>
    %425 = tpu.matmul %423, %424, %cst_143 {dimension_numbers = #tpu.dot_dimension_numbers<[1], [0], [0], [1], [0, 0, 1, 1], [], []>} : vector<128x32xbf16>, vector<32x128xbf16>, vector<128x128xf32> -> vector<128x128xf32>
    %426 = arith.truncf %425 : vector<128x128xf32> to vector<128x128xbf16>
    %427 = vector.extract_strided_slice %319 {offsets = [0, 64], sizes = [64, 32], strides = [1, 1]} : vector<128x384xf32> to vector<64x32xf32>
    %cst_144 = arith.constant 0.0883883461 : f32
    %428 = vector.broadcast %cst_144 : f32 to vector<64x32xf32>
    %429 = arith.mulf %427, %428 : vector<64x32xf32>
    %430 = arith.truncf %429 : vector<64x32xf32> to vector<64x32xbf16>
    %431 = vector.extract_strided_slice %319 {offsets = [0, 192], sizes = [64, 32], strides = [1, 1]} : vector<128x384xf32> to vector<64x32xf32>
    %432 = arith.truncf %431 : vector<64x32xf32> to vector<64x32xbf16>
    %cst_145 = arith.constant dense<0.000000e+00> : vector<64x64xf32>
    %433 = tpu.matmul %430, %432, %cst_145 {dimension_numbers = #tpu.dot_dimension_numbers<[1], [1], [0], [0], [0, 0, 1, 0], [], []>} : vector<64x32xbf16>, vector<64x32xbf16>, vector<64x64xf32> -> vector<64x64xf32>
    %cst_146 = arith.constant -1.000000e+30 : f32
    %434 = vector.broadcast %cst_146 : f32 to vector<64x64xf32>
    %435 = arith.select %4, %433, %434 : vector<64x64xi1>, vector<64x64xf32>
    %cst_147 = arith.constant dense<0xFF800000> : vector<64xf32>
    %436 = vector.multi_reduction <maximumf>, %435, %cst_147 [1] : vector<64x64xf32> to vector<64xf32>
    %437 = vector.shape_cast %436 : vector<64xf32> to vector<64x1xf32>
    %438 = vector.broadcast %437 : vector<64x1xf32> to vector<64x64xf32>
    %439 = arith.subf %435, %438 : vector<64x64xf32>
    %440 = math.exp %439 : vector<64x64xf32>
    %cst_148 = arith.constant dense<0.000000e+00> : vector<64xf32>
    %441 = vector.multi_reduction <add>, %440, %cst_148 [1] : vector<64x64xf32> to vector<64xf32>
    %442 = vector.shape_cast %441 : vector<64xf32> to vector<64x1xf32>
    %443 = tpu.reciprocal %442 {approx = true} : vector<64x1xf32> -> vector<64x1xf32>
    %444 = vector.broadcast %443 : vector<64x1xf32> to vector<64x64xf32>
    %445 = arith.mulf %440, %444 : vector<64x64xf32>
    %446 = arith.truncf %445 : vector<64x64xf32> to vector<64x64xbf16>
    %447 = vector.extract_strided_slice %426 {offsets = [0, 0], sizes = [64, 128], strides = [1, 1]} : vector<128x128xbf16> to vector<64x128xbf16>
    %cst_149 = arith.constant dense<0.000000e+00> : vector<64x128xf32>
    %448 = tpu.matmul %446, %447, %cst_149 {dimension_numbers = #tpu.dot_dimension_numbers<[1], [0], [0], [1], [0, 0, 1, 1], [], []>} : vector<64x64xbf16>, vector<64x128xbf16>, vector<64x128xf32> -> vector<64x128xf32>
    %449 = arith.addf %398, %448 : vector<64x128xf32>
    %450 = vector.extract_strided_slice %319 {offsets = [64, 64], sizes = [64, 32], strides = [1, 1]} : vector<128x384xf32> to vector<64x32xf32>
    %cst_150 = arith.constant 0.0883883461 : f32
    %451 = vector.broadcast %cst_150 : f32 to vector<64x32xf32>
    %452 = arith.mulf %450, %451 : vector<64x32xf32>
    %453 = arith.truncf %452 : vector<64x32xf32> to vector<64x32xbf16>
    %454 = vector.extract_strided_slice %319 {offsets = [64, 192], sizes = [64, 32], strides = [1, 1]} : vector<128x384xf32> to vector<64x32xf32>
    %455 = arith.truncf %454 : vector<64x32xf32> to vector<64x32xbf16>
    %cst_151 = arith.constant dense<0.000000e+00> : vector<64x64xf32>
    %456 = tpu.matmul %453, %455, %cst_151 {dimension_numbers = #tpu.dot_dimension_numbers<[1], [1], [0], [0], [0, 0, 1, 0], [], []>} : vector<64x32xbf16>, vector<64x32xbf16>, vector<64x64xf32> -> vector<64x64xf32>
    %cst_152 = arith.constant -1.000000e+30 : f32
    %457 = vector.broadcast %cst_152 : f32 to vector<64x64xf32>
    %458 = arith.select %4, %456, %457 : vector<64x64xi1>, vector<64x64xf32>
    %cst_153 = arith.constant dense<0xFF800000> : vector<64xf32>
    %459 = vector.multi_reduction <maximumf>, %458, %cst_153 [1] : vector<64x64xf32> to vector<64xf32>
    %460 = vector.shape_cast %459 : vector<64xf32> to vector<64x1xf32>
    %461 = vector.broadcast %460 : vector<64x1xf32> to vector<64x64xf32>
    %462 = arith.subf %458, %461 : vector<64x64xf32>
    %463 = math.exp %462 : vector<64x64xf32>
    %cst_154 = arith.constant dense<0.000000e+00> : vector<64xf32>
    %464 = vector.multi_reduction <add>, %463, %cst_154 [1] : vector<64x64xf32> to vector<64xf32>
    %465 = vector.shape_cast %464 : vector<64xf32> to vector<64x1xf32>
    %466 = tpu.reciprocal %465 {approx = true} : vector<64x1xf32> -> vector<64x1xf32>
    %467 = vector.broadcast %466 : vector<64x1xf32> to vector<64x64xf32>
    %468 = arith.mulf %463, %467 : vector<64x64xf32>
    %469 = arith.truncf %468 : vector<64x64xf32> to vector<64x64xbf16>
    %470 = vector.extract_strided_slice %426 {offsets = [64, 0], sizes = [64, 128], strides = [1, 1]} : vector<128x128xbf16> to vector<64x128xbf16>
    %cst_155 = arith.constant dense<0.000000e+00> : vector<64x128xf32>
    %471 = tpu.matmul %469, %470, %cst_155 {dimension_numbers = #tpu.dot_dimension_numbers<[1], [0], [0], [1], [0, 0, 1, 1], [], []>} : vector<64x64xbf16>, vector<64x128xbf16>, vector<64x128xf32> -> vector<64x128xf32>
    %472 = arith.addf %421, %471 : vector<64x128xf32>
    %473 = vector.extract_strided_slice %319 {offsets = [0, 352], sizes = [128, 32], strides = [1, 1]} : vector<128x384xf32> to vector<128x32xf32>
    %474 = arith.truncf %473 : vector<128x32xf32> to vector<128x32xbf16>
    %475 = vector.extract_strided_slice %321 {offsets = [96, 0], sizes = [32, 128], strides = [1, 1]} : vector<128x128xbf16> to vector<32x128xbf16>
    %cst_156 = arith.constant dense<0.000000e+00> : vector<128x128xf32>
    %476 = tpu.matmul %474, %475, %cst_156 {dimension_numbers = #tpu.dot_dimension_numbers<[1], [0], [0], [1], [0, 0, 1, 1], [], []>} : vector<128x32xbf16>, vector<32x128xbf16>, vector<128x128xf32> -> vector<128x128xf32>
    %477 = arith.truncf %476 : vector<128x128xf32> to vector<128x128xbf16>
    %478 = vector.extract_strided_slice %319 {offsets = [0, 96], sizes = [64, 32], strides = [1, 1]} : vector<128x384xf32> to vector<64x32xf32>
    %cst_157 = arith.constant 0.0883883461 : f32
    %479 = vector.broadcast %cst_157 : f32 to vector<64x32xf32>
    %480 = arith.mulf %478, %479 : vector<64x32xf32>
    %481 = arith.truncf %480 : vector<64x32xf32> to vector<64x32xbf16>
    %482 = vector.extract_strided_slice %319 {offsets = [0, 224], sizes = [64, 32], strides = [1, 1]} : vector<128x384xf32> to vector<64x32xf32>
    %483 = arith.truncf %482 : vector<64x32xf32> to vector<64x32xbf16>
    %cst_158 = arith.constant dense<0.000000e+00> : vector<64x64xf32>
    %484 = tpu.matmul %481, %483, %cst_158 {dimension_numbers = #tpu.dot_dimension_numbers<[1], [1], [0], [0], [0, 0, 1, 0], [], []>} : vector<64x32xbf16>, vector<64x32xbf16>, vector<64x64xf32> -> vector<64x64xf32>
    %cst_159 = arith.constant -1.000000e+30 : f32
    %485 = vector.broadcast %cst_159 : f32 to vector<64x64xf32>
    %486 = arith.select %4, %484, %485 : vector<64x64xi1>, vector<64x64xf32>
    %cst_160 = arith.constant dense<0xFF800000> : vector<64xf32>
    %487 = vector.multi_reduction <maximumf>, %486, %cst_160 [1] : vector<64x64xf32> to vector<64xf32>
    %488 = vector.shape_cast %487 : vector<64xf32> to vector<64x1xf32>
    %489 = vector.broadcast %488 : vector<64x1xf32> to vector<64x64xf32>
    %490 = arith.subf %486, %489 : vector<64x64xf32>
    %491 = math.exp %490 : vector<64x64xf32>
    %cst_161 = arith.constant dense<0.000000e+00> : vector<64xf32>
    %492 = vector.multi_reduction <add>, %491, %cst_161 [1] : vector<64x64xf32> to vector<64xf32>
    %493 = vector.shape_cast %492 : vector<64xf32> to vector<64x1xf32>
    %494 = tpu.reciprocal %493 {approx = true} : vector<64x1xf32> -> vector<64x1xf32>
    %495 = vector.broadcast %494 : vector<64x1xf32> to vector<64x64xf32>
    %496 = arith.mulf %491, %495 : vector<64x64xf32>
    %497 = arith.truncf %496 : vector<64x64xf32> to vector<64x64xbf16>
    %498 = vector.extract_strided_slice %477 {offsets = [0, 0], sizes = [64, 128], strides = [1, 1]} : vector<128x128xbf16> to vector<64x128xbf16>
    %cst_162 = arith.constant dense<0.000000e+00> : vector<64x128xf32>
    %499 = tpu.matmul %497, %498, %cst_162 {dimension_numbers = #tpu.dot_dimension_numbers<[1], [0], [0], [1], [0, 0, 1, 1], [], []>} : vector<64x64xbf16>, vector<64x128xbf16>, vector<64x128xf32> -> vector<64x128xf32>
    %500 = arith.addf %449, %499 : vector<64x128xf32>
    %501 = vector.extract_strided_slice %319 {offsets = [64, 96], sizes = [64, 32], strides = [1, 1]} : vector<128x384xf32> to vector<64x32xf32>
    %cst_163 = arith.constant 0.0883883461 : f32
    %502 = vector.broadcast %cst_163 : f32 to vector<64x32xf32>
    %503 = arith.mulf %501, %502 : vector<64x32xf32>
    %504 = arith.truncf %503 : vector<64x32xf32> to vector<64x32xbf16>
    %505 = vector.extract_strided_slice %319 {offsets = [64, 224], sizes = [64, 32], strides = [1, 1]} : vector<128x384xf32> to vector<64x32xf32>
    %506 = arith.truncf %505 : vector<64x32xf32> to vector<64x32xbf16>
    %cst_164 = arith.constant dense<0.000000e+00> : vector<64x64xf32>
    %507 = tpu.matmul %504, %506, %cst_164 {dimension_numbers = #tpu.dot_dimension_numbers<[1], [1], [0], [0], [0, 0, 1, 0], [], []>} : vector<64x32xbf16>, vector<64x32xbf16>, vector<64x64xf32> -> vector<64x64xf32>
    %cst_165 = arith.constant -1.000000e+30 : f32
    %508 = vector.broadcast %cst_165 : f32 to vector<64x64xf32>
    %509 = arith.select %4, %507, %508 : vector<64x64xi1>, vector<64x64xf32>
    %cst_166 = arith.constant dense<0xFF800000> : vector<64xf32>
    %510 = vector.multi_reduction <maximumf>, %509, %cst_166 [1] : vector<64x64xf32> to vector<64xf32>
    %511 = vector.shape_cast %510 : vector<64xf32> to vector<64x1xf32>
    %512 = vector.broadcast %511 : vector<64x1xf32> to vector<64x64xf32>
    %513 = arith.subf %509, %512 : vector<64x64xf32>
    %514 = math.exp %513 : vector<64x64xf32>
    %cst_167 = arith.constant dense<0.000000e+00> : vector<64xf32>
    %515 = vector.multi_reduction <add>, %514, %cst_167 [1] : vector<64x64xf32> to vector<64xf32>
    %516 = vector.shape_cast %515 : vector<64xf32> to vector<64x1xf32>
    %517 = tpu.reciprocal %516 {approx = true} : vector<64x1xf32> -> vector<64x1xf32>
    %518 = vector.broadcast %517 : vector<64x1xf32> to vector<64x64xf32>
    %519 = arith.mulf %514, %518 : vector<64x64xf32>
    %520 = arith.truncf %519 : vector<64x64xf32> to vector<64x64xbf16>
    %521 = vector.extract_strided_slice %477 {offsets = [64, 0], sizes = [64, 128], strides = [1, 1]} : vector<128x128xbf16> to vector<64x128xbf16>
    %cst_168 = arith.constant dense<0.000000e+00> : vector<64x128xf32>
    %522 = tpu.matmul %520, %521, %cst_168 {dimension_numbers = #tpu.dot_dimension_numbers<[1], [0], [0], [1], [0, 0, 1, 1], [], []>} : vector<64x64xbf16>, vector<64x128xbf16>, vector<64x128xf32> -> vector<64x128xf32>
    %523 = arith.addf %472, %522 : vector<64x128xf32>
    %524 = tpu.concatenate %500, %523 in 0 : vector<64x128xf32>, vector<64x128xf32> -> vector<128x128xf32>
    %525 = arith.addf %289, %524 : vector<128x128xf32>
    %c1_169 = arith.constant 1 : index
    %c0_170 = arith.constant 0 : index
    %c0_171 = arith.constant 0 : index
    %526 = vector.load %arg6[%c1_169, %c0_170, %c0_171] : memref<2x1x128xf32, #tpu.memory_space<vmem>>, vector<1x1x128xf32>
    %527 = vector.shape_cast %526 : vector<1x1x128xf32> to vector<1x128xf32>
    %528 = vector.broadcast %527 : vector<1x128xf32> to vector<128x128xf32>
    %529 = arith.addf %525, %528 : vector<128x128xf32>
    %c1_172 = arith.constant 1 : index
    %c0_173 = arith.constant 0 : index
    %c0_174 = arith.constant 0 : index
    %530 = vector.load %arg7[%c1_172, %c0_173, %c0_174] : memref<2x1x128xf32, #tpu.memory_space<vmem>>, vector<1x1x128xf32>
    %531 = vector.shape_cast %530 : vector<1x1x128xf32> to vector<1x128xf32>
    %c1_175 = arith.constant 1 : index
    %c0_176 = arith.constant 0 : index
    %c0_177 = arith.constant 0 : index
    %532 = vector.load %arg8[%c1_175, %c0_176, %c0_177] : memref<2x1x128xf32, #tpu.memory_space<vmem>>, vector<1x1x128xf32>
    %533 = vector.shape_cast %532 : vector<1x1x128xf32> to vector<1x128xf32>
    %cst_178 = arith.constant dense<0.000000e+00> : vector<128xf32>
    %534 = vector.multi_reduction <add>, %529, %cst_178 [1] : vector<128x128xf32> to vector<128xf32>
    %535 = vector.shape_cast %534 : vector<128xf32> to vector<128x1xf32>
    %cst_179 = arith.constant 1.280000e+02 : f32
    %536 = vector.broadcast %cst_179 : f32 to vector<128x1xf32>
    %537 = arith.divf %535, %536 : vector<128x1xf32>
    %538 = vector.broadcast %537 : vector<128x1xf32> to vector<128x128xf32>
    %539 = arith.subf %529, %538 : vector<128x128xf32>
    %540 = arith.mulf %539, %539 : vector<128x128xf32>
    %cst_180 = arith.constant dense<0.000000e+00> : vector<128xf32>
    %541 = vector.multi_reduction <add>, %540, %cst_180 [1] : vector<128x128xf32> to vector<128xf32>
    %542 = vector.shape_cast %541 : vector<128xf32> to vector<128x1xf32>
    %cst_181 = arith.constant 1.280000e+02 : f32
    %543 = vector.broadcast %cst_181 : f32 to vector<128x1xf32>
    %544 = arith.divf %542, %543 : vector<128x1xf32>
    %545 = vector.broadcast %537 : vector<128x1xf32> to vector<128x128xf32>
    %546 = arith.subf %529, %545 : vector<128x128xf32>
    %cst_182 = arith.constant 9.99999974E-6 : f32
    %547 = vector.broadcast %cst_182 : f32 to vector<128x1xf32>
    %548 = arith.addf %544, %547 : vector<128x1xf32>
    %549 = math.rsqrt %548 : vector<128x1xf32>
    %550 = vector.broadcast %549 : vector<128x1xf32> to vector<128x128xf32>
    %551 = arith.mulf %546, %550 : vector<128x128xf32>
    %552 = vector.broadcast %531 : vector<1x128xf32> to vector<128x128xf32>
    %553 = arith.mulf %551, %552 : vector<128x128xf32>
    %554 = vector.broadcast %533 : vector<1x128xf32> to vector<128x128xf32>
    %555 = arith.addf %553, %554 : vector<128x128xf32>
    %556 = arith.truncf %555 : vector<128x128xf32> to vector<128x128xbf16>
    %c1_183 = arith.constant 1 : index
    %c0_184 = arith.constant 0 : index
    %c0_185 = arith.constant 0 : index
    %557 = vector.load %arg9[%c1_183, %c0_184, %c0_185] : memref<2x128x512xbf16, #tpu.memory_space<vmem>>, vector<1x128x512xbf16>
    %558 = vector.shape_cast %557 : vector<1x128x512xbf16> to vector<128x512xbf16>
    %cst_186 = arith.constant dense<0.000000e+00> : vector<128x512xf32>
    %559 = tpu.matmul %556, %558, %cst_186 {dimension_numbers = #tpu.dot_dimension_numbers<[1], [0], [0], [1], [0, 0, 1, 1], [], []>} : vector<128x128xbf16>, vector<128x512xbf16>, vector<128x512xf32> -> vector<128x512xf32>
    %c1_187 = arith.constant 1 : index
    %c0_188 = arith.constant 0 : index
    %c0_189 = arith.constant 0 : index
    %560 = vector.load %arg10[%c1_187, %c0_188, %c0_189] : memref<2x1x512xf32, #tpu.memory_space<vmem>>, vector<1x1x512xf32>
    %561 = vector.shape_cast %560 : vector<1x1x512xf32> to vector<1x512xf32>
    %562 = vector.broadcast %561 : vector<1x512xf32> to vector<128x512xf32>
    %563 = arith.addf %559, %562 : vector<128x512xf32>
    %cst_190 = arith.constant 0.000000e+00 : f32
    %564 = vector.broadcast %cst_190 : f32 to vector<128x512xf32>
    %565 = arith.maximumf %563, %564 : vector<128x512xf32>
    %566 = arith.truncf %565 : vector<128x512xf32> to vector<128x512xbf16>
    %c1_191 = arith.constant 1 : index
    %c0_192 = arith.constant 0 : index
    %c0_193 = arith.constant 0 : index
    %567 = vector.load %arg11[%c1_191, %c0_192, %c0_193] : memref<2x512x128xbf16, #tpu.memory_space<vmem>>, vector<1x512x128xbf16>
    %568 = vector.shape_cast %567 : vector<1x512x128xbf16> to vector<512x128xbf16>
    %cst_194 = arith.constant dense<0.000000e+00> : vector<128x128xf32>
    %569 = tpu.matmul %566, %568, %cst_194 {dimension_numbers = #tpu.dot_dimension_numbers<[1], [0], [0], [1], [0, 0, 1, 1], [], []>} : vector<128x512xbf16>, vector<512x128xbf16>, vector<128x128xf32> -> vector<128x128xf32>
    %c1_195 = arith.constant 1 : index
    %c0_196 = arith.constant 0 : index
    %c0_197 = arith.constant 0 : index
    %570 = vector.load %arg12[%c1_195, %c0_196, %c0_197] : memref<2x1x128xf32, #tpu.memory_space<vmem>>, vector<1x1x128xf32>
    %571 = vector.shape_cast %570 : vector<1x1x128xf32> to vector<1x128xf32>
    %572 = vector.broadcast %571 : vector<1x128xf32> to vector<128x128xf32>
    %573 = arith.addf %569, %572 : vector<128x128xf32>
    %574 = arith.addf %529, %573 : vector<128x128xf32>
    %575 = arith.truncf %574 : vector<128x128xf32> to vector<128x128xbf16>
    %c0_198 = arith.constant 0 : index
    %c0_199 = arith.constant 0 : index
    %576 = vector.load %arg13[%c0_198, %c0_199] : memref<128x128xbf16, #tpu.memory_space<vmem>>, vector<128x128xbf16>
    %cst_200 = arith.constant dense<0.000000e+00> : vector<128x128xf32>
    %577 = tpu.matmul %575, %576, %cst_200 {dimension_numbers = #tpu.dot_dimension_numbers<[1], [0], [0], [1], [0, 0, 1, 1], [], []>} : vector<128x128xbf16>, vector<128x128xbf16>, vector<128x128xf32> -> vector<128x128xf32>
    %c0_201 = arith.constant 0 : index
    %c0_202 = arith.constant 0 : index
    %578 = vector.load %arg14[%c0_201, %c0_202] : memref<1x128xf32, #tpu.memory_space<vmem>>, vector<1x128xf32>
    %579 = vector.broadcast %578 : vector<1x128xf32> to vector<128x128xf32>
    %580 = arith.addf %577, %579 : vector<128x128xf32>
    %581 = vector.shape_cast %580 : vector<128x128xf32> to vector<2x64x128xf32>
    %c0_203 = arith.constant 0 : index
    %c0_204 = arith.constant 0 : index
    %c0_205 = arith.constant 0 : index
    %582 = vector.load %arg15[%c0_203, %c0_204, %c0_205] : memref<2x64x128xf32, #tpu.memory_space<vmem>>, vector<2x64x128xf32>
    tpu.vector_store %arg15[%c0_203, %c0_204, %c0_205], %581 {strides = array<i32>} : memref<2x64x128xf32, #tpu.memory_space<vmem>>, vector<2x64x128xf32>,
    return
  }
  func.func @transform_0(%arg0: i32) -> (i32, i32, i32) {
    %c0_i32 = arith.constant 0 : i32
    %c0_i32_0 = arith.constant 0 : i32
    %c0_i32_1 = arith.constant 0 : i32
    return %arg0, %c0_i32, %c0_i32_0 : i32, i32, i32
  }
  func.func @transform_1(%arg0: i32) -> (i32, i32, i32) {
    %c0_i32 = arith.constant 0 : i32
    %c0_i32_0 = arith.constant 0 : i32
    %c0_i32_1 = arith.constant 0 : i32
    %c0_i32_2 = arith.constant 0 : i32
    return %c0_i32, %c0_i32_0, %c0_i32_1 : i32, i32, i32
  }
  func.func @transform_2(%arg0: i32) -> (i32, i32, i32) {
    %c0_i32 = arith.constant 0 : i32
    %c0_i32_0 = arith.constant 0 : i32
    %c0_i32_1 = arith.constant 0 : i32
    %c0_i32_2 = arith.constant 0 : i32
    return %c0_i32, %c0_i32_0, %c0_i32_1 : i32, i32, i32
  }
  func.func @transform_3(%arg0: i32) -> (i32, i32, i32) {
    %c0_i32 = arith.constant 0 : i32
    %c0_i32_0 = arith.constant 0 : i32
    %c0_i32_1 = arith.constant 0 : i32
    %c0_i32_2 = arith.constant 0 : i32
    return %c0_i32, %c0_i32_0, %c0_i32_1 : i32, i32, i32
  }
  func.func @transform_4(%arg0: i32) -> (i32, i32, i32) {
    %c0_i32 = arith.constant 0 : i32
    %c0_i32_0 = arith.constant 0 : i32
    %c0_i32_1 = arith.constant 0 : i32
    %c0_i32_2 = arith.constant 0 : i32
    return %c0_i32, %c0_i32_0, %c0_i32_1 : i32, i32, i32
  }
  func.func @transform_5(%arg0: i32) -> (i32, i32, i32) {
    %c0_i32 = arith.constant 0 : i32
    %c0_i32_0 = arith.constant 0 : i32
    %c0_i32_1 = arith.constant 0 : i32
    %c0_i32_2 = arith.constant 0 : i32
    return %c0_i32, %c0_i32_0, %c0_i32_1 : i32, i32, i32
  }
  func.func @transform_6(%arg0: i32) -> (i32, i32, i32) {
    %c0_i32 = arith.constant 0 : i32
    %c0_i32_0 = arith.constant 0 : i32
    %c0_i32_1 = arith.constant 0 : i32
    %c0_i32_2 = arith.constant 0 : i32
    return %c0_i32, %c0_i32_0, %c0_i32_1 : i32, i32, i32
  }
  func.func @transform_7(%arg0: i32) -> (i32, i32, i32) {
    %c0_i32 = arith.constant 0 : i32
    %c0_i32_0 = arith.constant 0 : i32
    %c0_i32_1 = arith.constant 0 : i32
    %c0_i32_2 = arith.constant 0 : i32
    return %c0_i32, %c0_i32_0, %c0_i32_1 : i32, i32, i32
  }
  func.func @transform_8(%arg0: i32) -> (i32, i32, i32) {
    %c0_i32 = arith.constant 0 : i32
    %c0_i32_0 = arith.constant 0 : i32
    %c0_i32_1 = arith.constant 0 : i32
    %c0_i32_2 = arith.constant 0 : i32
    return %c0_i32, %c0_i32_0, %c0_i32_1 : i32, i32, i32
  }
  func.func @transform_9(%arg0: i32) -> (i32, i32, i32) {
    %c0_i32 = arith.constant 0 : i32
    %c0_i32_0 = arith.constant 0 : i32
    %c0_i32_1 = arith.constant 0 : i32
    %c0_i32_2 = arith.constant 0 : i32
    return %c0_i32, %c0_i32_0, %c0_i32_1 : i32, i32, i32
  }
  func.func @transform_10(%arg0: i32) -> (i32, i32, i32) {
    %c0_i32 = arith.constant 0 : i32
    %c0_i32_0 = arith.constant 0 : i32
    %c0_i32_1 = arith.constant 0 : i32
    %c0_i32_2 = arith.constant 0 : i32
    return %c0_i32, %c0_i32_0, %c0_i32_1 : i32, i32, i32
  }
  func.func @transform_11(%arg0: i32) -> (i32, i32, i32) {
    %c0_i32 = arith.constant 0 : i32
    %c0_i32_0 = arith.constant 0 : i32
    %c0_i32_1 = arith.constant 0 : i32
    %c0_i32_2 = arith.constant 0 : i32
    return %c0_i32, %c0_i32_0, %c0_i32_1 : i32, i32, i32
  }
  func.func @transform_12(%arg0: i32) -> (i32, i32) {
    %c0_i32 = arith.constant 0 : i32
    %c0_i32_0 = arith.constant 0 : i32
    %c0_i32_1 = arith.constant 0 : i32
    return %c0_i32, %c0_i32_0 : i32, i32
  }
  func.func @transform_13(%arg0: i32) -> (i32, i32) {
    %c0_i32 = arith.constant 0 : i32
    %c0_i32_0 = arith.constant 0 : i32
    %c0_i32_1 = arith.constant 0 : i32
    return %c0_i32, %c0_i32_0 : i32, i32
  }
  func.func @transform_14(%arg0: i32) -> (i32, i32, i32) {
    %c0_i32 = arith.constant 0 : i32
    %c0_i32_0 = arith.constant 0 : i32
    %c0_i32_1 = arith.constant 0 : i32
    return %arg0, %c0_i32, %c0_i32_0 : i32, i32, i32
  }
}

</mosaic_0001>

<bundles_post_ra>
// kernel: model_forward.1
= control target key start
LH: loop header
LB: loop body
LE: loop exit
PB: predicated region body
PF: predicated region fallthrough
CT: control target
= control target key end

     0   :  { %19 = vsyncpa [#allocation3], 0  ;;  %s17539_s0 = inlined_call_operand.vmem [shape: f32[2,64,128], index: 0, kind: input, shape index: {}]   ;;  %s17540_s1 = inlined_call_operand.vmem [shape: f32[2,1,128], index: 1, kind: input, shape index: {}]   ;;  %s17541_s2 = inlined_call_operand.vmem [shape: f32[2,1,128], index: 2, kind: input, shape index: {}]   ;;  %s17542_s3 = inlined_call_operand.vmem [shape: bf16[2,128,384], index: 3, kind: input, shape index: {}]   ;;  %s17543_s4 = inlined_call_operand.hbm [shape: bf16[2,128,128], index: 4, kind: input, shape index: {}]   ;;  %s17544_s5 = inlined_call_operand.vmem [shape: f32[2,1,128], index: 5, kind: input, shape index: {}]   ;;  %s17545_s6 = inlined_call_operand.vmem [shape: f32[2,1,128], index: 6, kind: input, shape index: {}]   ;;  %s17546_s7 = inlined_call_operand.vmem [shape: f32[2,1,128], index: 7, kind: input, shape index: {}]   ;;  %s17547_s8 = inlined_call_operand.vmem [shape: bf16[2,128,512], index: 8, kind: input, shape index: {}]   ;;  %s17548_s9 = inlined_call_operand.vmem [shape: f32[2,1,512], index: 9, kind: input, shape index: {}]   ;;  %s17549_s10 = inlined_call_operand.vmem [shape: bf16[2,512,128], index: 10, kind: input, shape index: {}]   ;;  %s17550_s11 = inlined_call_operand.vmem [shape: f32[2,1,128], index: 11, kind: input, shape index: {}]   ;;  %s17551_s12 = inlined_call_operand.hbm [shape: bf16[128,128], index: 12, kind: input, shape index: {}]   ;;  %s17552_s13 = inlined_call_operand.hbm [shape: f32[1,128], index: 13, kind: input, shape index: {}]   ;;  %s17553_s14 = inlined_call_operand.hbm [shape: f32[2,64,128], index: 14, kind: output, shape index: {}]  }
   0x1   :  { %20 = vsyncpa [#allocation6], 0 }
   0x2   :  { %21 = vsyncpa [#allocation4], 0  ;;  %s13012_s29 = smov [#allocation5]   ;;  %s13013_s15 = smov [#allocation2]  }
   0x3   :  { %s61_s30 = sshll.u32 %s13012_s29, 4  ;;  %s35_s16 = sshll.u32 %s13013_s15, 4  ;;  %s62_s30 = int_to_ptr.vmem [resolvable:$true] %s61_s30  ;;  %s36_s16 = int_to_ptr.vmem [resolvable:$true] %s35_s16 }
   0x4   :  { %s12934_s17 = scalar_lea.vmem %s62_s30, 1024  ;;  %p12939_p1 = scmp.lt.s32.totalorder %s62_s30, %s62_s30 }
   0x5   :  { %p12935_p0 = scmp.ne.s32.totalorder %s62_s30, %s12934_s17  ;;  %p12940_p2 = scmp.lt.s32.totalorder %s12934_s17, %s12934_s17 }
   0x7   :  { %p12941_p3 = por %p12940_p2, %p12939_p1 }
   0x9   :  { %p12942_p4 = pnand %p12941_p3, %p12935_p0 }
   0xb   :  { %12945 = shalt.err (!%p12942_p4)
}
   0xc   :  { %s13014_s18 = smov 64   ;;  %s13015_s19 = smov 4  }
   0xd   :  { %67 = dma.hbm_to_vmem [thread:$0]  %s17551_s12, 1024, %s62_s30, [#allocation6], %s13014_s18, %s13014_s18, %s13015_s19  }
   0xe   :  { %s12954_s22 = scalar_lea.vmem %s36_s16, 2048  ;;  %p12959_p6 = scmp.lt.s32.totalorder %s36_s16, %s36_s16 }
   0xf   :  { %p12955_p5 = scmp.ne.s32.totalorder %s36_s16, %s12954_s22  ;;  %p12960_p7 = scmp.lt.s32.totalorder %s12954_s22, %s12954_s22 }
  0x11   :  { %p12961_p8 = por %p12960_p7, %p12959_p6 }
  0x13   :  { %p12962_p9 = pnand %p12961_p8, %p12955_p5 }
  0x15   :  { %12965 = shalt.err (!%p12962_p9)
}
  0x16   :  { %41 = dma.hbm_to_vmem [thread:$0]  %s17543_s4, 2048, %s36_s16, [#allocation3], %s13014_s18, %s13014_s18, %s13015_s19  }
  0x17   :  { %s13016_s25 = smov [#allocation7]  }
  0x18   :  { %s74_s26 = sshll.u32 %s13016_s25, 4  ;;  %s75_s26 = int_to_ptr.vmem [resolvable:$true] %s74_s26 }
  0x19   :  { %s12974_s27 = scalar_lea.vmem %s75_s26, 16  ;;  %s12978_s28 = scalar_lea.vmem %s75_s26, 32 }
  0x1a   :  { %p12975_p10 = scmp.ne.s32.totalorder %s75_s26, %s12974_s27  ;;  %p12979_p11 = scmp.lt.s32.totalorder %s75_s26, %s75_s26 }
  0x1b   :  { %p12980_p12 = scmp.lt.s32.totalorder %s12978_s28, %s12974_s27 }
  0x1d   :  { %p12981_p13 = por %p12980_p12, %p12979_p11 }
  0x1f   :  { %p12982_p0 = pnand %p12981_p13, %p12975_p10 }
  0x21   :  { %12985 = shalt.err (!%p12982_p0)
}
  0x22   :  { %77 = dma.hbm_to_vmem [thread:$0]  %s17552_s13, 16, %s75_s26, [#allocation6]  }
  0x23   :  { %13006 = dma.done.wait [#allocation3], 2048  }
  0x24   :  { %13007 = vsyncadd [#allocation3], 4294965248 }
  0x25   :  { %13008 = dma.done.wait [#allocation6], 1040  }
  0x26   :  { %13009 = vsyncadd [#allocation6], 4294966256  ;;  %v88_v0 = vld [vmem:[%s17539_s0] sm:$0xff]  ;;  %v90_v1 = vld [vmem:[%s17539_s0 + $0x10] sm:$0xff]  ;;  %vm760_vm0 = vcmask 261120   ;;  %s13018_s25 = smov 96  }
  0x27   :  { %125 = vadd.xlane.f32.xlu0 %v88_v0  ;;  %129 = vadd.xlane.f32.xlu1 %v90_v1  ;;  %v89_v2 = vld [vmem:[%s17539_s0 + $0x8] sm:$0xff]  ;;  %v91_v3 = vld [vmem:[%s17539_s0 + $0x18] sm:$0xff]  ;;  %v92_v4 = vld [vmem:[%s17539_s0 + $0x20] sm:$0xff]  ;;  %vm1003_vm2 = vcmask 523264   ;;  %s13019_s26 = smov 32  }
  0x28   :  { %v93_v5 = vld [vmem:[%s17539_s0 + $0x28] sm:$0xff]  ;;  %v94_v6 = vld [vmem:[%s17539_s0 + $0x30] sm:$0xff]  ;;  %v95_v7 = vld [vmem:[%s17539_s0 + $0x38] sm:$0xff] }
  0x29   :  { %v13138_v8 = vld [vmem:[%s17539_s0 + $0x40] sm:$0xff]  ;;  %v13143_v9 = vld [vmem:[%s17539_s0 + $0x48] sm:$0xff]  ;;  %v13148_v10 = vld [vmem:[%s17539_s0 + $0x50] sm:$0xff] }
  0x2a   :  { %v13153_v11 = vld [vmem:[%s17539_s0 + $0x58] sm:$0xff]  ;;  %v13160_v12 = vld [vmem:[%s17539_s0 + $0x60] sm:$0xff]  ;;  %v13165_v13 = vld [vmem:[%s17539_s0 + $0x68] sm:$0xff] }
  0x2b   :  { %127 = vadd.xlane.f32.xlu0 %v89_v2  ;;  %131 = vadd.xlane.f32.xlu1 %v91_v3  ;;  %v13172_v14 = vld [vmem:[%s17539_s0 + $0x70] sm:$0xff]  ;;  %v13177_v15 = vld [vmem:[%s17539_s0 + $0x78] sm:$0xff] }
  0x2c   :  { %v12022_v16 = vld [vmem:[%s17542_s3 + $0xac] ss:$12 sps:$4 sm:$0xff]   ;;  %v12024_v17 = vld [vmem:[%s17542_s3 + $0xa8] ss:$12 sps:$4 sm:$0xff]   ;;  %v12027_v54 = vld [vmem:[%s17542_s3 + $0xb0] ss:$12 sps:$4 sm:$0xff]  }
  0x2d   :  { %514 = vmatprep.subr.bf16.mxu0 %v12022_v16  ;;  %v12025_v53 = vld [vmem:[%s17542_s3 + $0x94] ss:$12 sps:$4 sm:$0xff]   ;;  %v12028_v55 = vld [vmem:[%s17542_s3 + $0x90] ss:$12 sps:$4 sm:$0xff]   ;;  %11179 = vmatprep.subr.bf16.mxu1 %v12027_v54 }
  0x2e   :  { %515 = vmatpush1.bf16.msra.mxu0 %v12024_v17  ;;  %11180 = vmatpush3.bf16.msra.mxu1 %v12027_v54 }
  0x2f   :  { %133 = vadd.xlane.f32.xlu0 %v92_v4  ;;  %135 = vadd.xlane.f32.xlu1 %v93_v5 }
  0x30   :  { %516 = vmatprep.subr.bf16.mxu0 %v12025_v53 }
  0x32   :  { %517 = vmatpush1.bf16.msra.mxu0 %v12028_v55 }
  0x33   :  { %137 = vadd.xlane.f32.xlu0 %v94_v6  ;;  %139 = vadd.xlane.f32.xlu1 %v95_v7 }
  0x37   :  { %141 = vadd.xlane.f32.xlu0 %v13138_v8  ;;  %143 = vadd.xlane.f32.xlu1 %v13143_v9 }
  0x3b   :  { %145 = vadd.xlane.f32.xlu0 %v13148_v10  ;;  %147 = vadd.xlane.f32.xlu1 %v13153_v11 }
  0x3f   :  { %149 = vadd.xlane.f32.xlu0 %v13160_v12  ;;  %151 = vadd.xlane.f32.xlu1 %v13165_v13 }
  0x43   :  { %153 = vadd.xlane.f32.xlu0 %v13172_v14  ;;  %155 = vadd.xlane.f32.xlu1 %v13177_v15 }
  0xb0   :  { %v126_v18 = vpop.xlane.xlu0 %125  ;;  %v130_v19 = vpop.xlane.xlu1 %129 }
  0xb1   :  { %v158_v20 = vmul.f32 0.0078125, %v126_v18  ;;  %v160_v21 = vmul.f32 0.0078125, %v130_v19 }
  0xb3   :  { %v13189_v22 = vsub.f32 %v88_v0, %v158_v20  ;;  %v13191_v23 = vsub.f32 %v90_v1, %v160_v21  ;;  %v12029_v0 = vld [vmem:[%s17542_s3 + $0x7c] ss:$12 sps:$4 sm:$0xff]   ;;  %v12031_v1 = vld [vmem:[%s17542_s3 + $0x98] ss:$12 sps:$4 sm:$0xff]   ;;  %v12036_v20 = vld [vmem:[%s17542_s3 + $0x60] ss:$12 sps:$4 sm:$0xff]  }
  0xb4   :  { %v128_v24 = vpop.xlane.xlu0 %127  ;;  %v132_v25 = vpop.xlane.xlu1 %131  ;;  %518 = vmatprep.subr.bf16.mxu0 %v12029_v0  ;;  %11181 = vmatprep.subr.bf16.mxu1 %v12031_v1 }
  0xb5   :  { %v159_v26 = vmul.f32 0.0078125, %v128_v24  ;;  %v190_v27 = vmul.f32 %v13189_v22, %v13189_v22  ;;  %v161_v28 = vmul.f32 0.0078125, %v132_v25  ;;  %v192_v29 = vmul.f32 %v13191_v23, %v13191_v23  ;;  %11182 = vmatpush3.bf16.msra.mxu1 %v12031_v1 }
  0xb7   :  { %206 = vadd.xlane.f32.xlu0 %v190_v27  ;;  %v13197_v30 = vsub.f32 %v89_v2, %v159_v26  ;;  %v13199_v31 = vsub.f32 %v91_v3, %v161_v28 }
  0xb8   :  { %v134_v32 = vpop.xlane.xlu0 %133  ;;  %v136_v33 = vpop.xlane.xlu1 %135 }
  0xb9   :  { %v162_v34 = vmul.f32 0.0078125, %v134_v32  ;;  %v191_v35 = vmul.f32 %v13197_v30, %v13197_v30  ;;  %v163_v36 = vmul.f32 0.0078125, %v136_v33  ;;  %v193_v37 = vmul.f32 %v13199_v31, %v13199_v31  ;;  %v12040_v33 = vld [vmem:[%s17542_s3 + $0x48] ss:$12 sps:$4 sm:$0xff]  }
  0xbb   :  { %210 = vadd.xlane.f32.xlu0 %v192_v29  ;;  %208 = vadd.xlane.f32.xlu1 %v191_v35  ;;  %v13205_v38 = vsub.f32 %v92_v4, %v162_v34  ;;  %v13207_v39 = vsub.f32 %v93_v5, %v163_v36  ;;  %v12032_v5 = vld [vmem:[%s17542_s3 + $0x78] ss:$12 sps:$4 sm:$0xff]   ;;  %v12041_v35 = vld [vmem:[%s17542_s3 + $0x34] ss:$12 sps:$4 sm:$0xff]   ;;  %v12044_v36 = vld [vmem:[%s17542_s3 + $0x30] ss:$12 sps:$4 sm:$0xff]  }
  0xbc   :  { %v138_v40 = vpop.xlane.xlu0 %137  ;;  %v140_v41 = vpop.xlane.xlu1 %139  ;;  %519 = vmatpush1.bf16.msra.mxu0 %v12032_v5 }
  0xbd   :  { %v164_v42 = vmul.f32 0.0078125, %v138_v40  ;;  %v194_v43 = vmul.f32 %v13205_v38, %v13205_v38  ;;  %v165_v44 = vmul.f32 0.0078125, %v140_v41  ;;  %v195_v45 = vmul.f32 %v13207_v39, %v13207_v39  ;;  %v12047_v40 = vld [vmem:[%s17542_s3 + $0x38] ss:$12 sps:$4 sm:$0xff]  }
  0xbe   :  { %v12048_v41 = vld [vmem:[%s17542_s3 + $0x18] ss:$12 sps:$4 sm:$0xff]  }
  0xbf   :  { %212 = vadd.xlane.f32.xlu1 %v193_v37  ;;  %214 = vadd.xlane.f32.xlu0 %v194_v43  ;;  %v13213_v46 = vsub.f32 %v94_v6, %v164_v42  ;;  %v13215_v47 = vsub.f32 %v95_v7, %v165_v44  ;;  %v12045_v37 = vld [vmem:[%s17542_s3 + $0x1c] ss:$12 sps:$4 sm:$0xff]   ;;  %v12049_v42 = vld [vmem:[%s17542_s3 + $0x4] ss:$12 sps:$4 sm:$0xff]   ;;  %v12051_v43 = vld [vmem:[%s17542_s3 + $0x20] ss:$12 sps:$4 sm:$0xff]  }
  0xc0   :  { %v142_v48 = vpop.xlane.xlu0 %141  ;;  %v144_v49 = vpop.xlane.xlu1 %143  ;;  %v12052_v44 = vld [vmem:[%s17542_s3] ss:$12 sps:$4 sm:$0xff]  }
  0xc1   :  { %v166_v50 = vmul.f32 0.0078125, %v142_v48  ;;  %v196_v51 = vmul.f32 %v13213_v46, %v13213_v46  ;;  %v167_v52 = vmul.f32 0.0078125, %v144_v49  ;;  %v197_v56 = vmul.f32 %v13215_v47, %v13215_v47 }
  0xc2   :  { %v17554_v48 = vmov 0  }
  0xc3   :  { %216 = vadd.xlane.f32.xlu1 %v195_v45  ;;  %218 = vadd.xlane.f32.xlu0 %v196_v51  ;;  %v13231_v57 = vsub.f32 %v13138_v8, %v166_v50  ;;  %v13234_v58 = vsub.f32 %v13143_v9, %v167_v52  ;;  %v12053_v45 = vld [vmem:[%s17542_s3 + $0x8] ss:$12 sps:$4 sm:$0xff]  }
  0xc4   :  { %v146_v59 = vpop.xlane.xlu0 %145  ;;  %v148_v60 = vpop.xlane.xlu1 %147  ;;  %546 = vmatprep.mubr.bf16.mxu0 %v17554_v48 }
  0xc5   :  { %v168_v61 = vmul.f32 0.0078125, %v146_v59  ;;  %v198_v62 = vmul.f32 %v13231_v57, %v13231_v57  ;;  %v169_v63 = vmul.f32 0.0078125, %v148_v60  ;;  %v199_v2 = vmul.f32 %v13234_v58, %v13234_v58 }
  0xc7   :  { %220 = vadd.xlane.f32.xlu1 %v197_v56  ;;  %222 = vadd.xlane.f32.xlu0 %v198_v62  ;;  %v13247_v3 = vsub.f32 %v13148_v10, %v168_v61  ;;  %v13250_v4 = vsub.f32 %v13153_v11, %v169_v63  ;;  %v12033_v10 = vld [vmem:[%s17542_s3 + $0x64] ss:$12 sps:$4 sm:$0xff]   ;;  %v12035_v11 = vld [vmem:[%s17542_s3 + $0x80] ss:$12 sps:$4 sm:$0xff]  }
  0xc8   :  { %v150_v6 = vpop.xlane.xlu0 %149  ;;  %v152_v7 = vpop.xlane.xlu1 %151  ;;  %520 = vmatprep.subr.bf16.mxu0 %v12033_v10  ;;  %11183 = vmatprep.subr.bf16.mxu1 %v12035_v11 }
  0xc9   :  { %v170_v8 = vmul.f32 0.0078125, %v150_v6  ;;  %v200_v9 = vmul.f32 %v13247_v3, %v13247_v3  ;;  %v171_v16 = vmul.f32 0.0078125, %v152_v7  ;;  %v201_v17 = vmul.f32 %v13250_v4, %v13250_v4  ;;  %521 = vmatpush1.bf16.msra.mxu0 %v12036_v20  ;;  %11184 = vmatpush3.bf16.msra.mxu1 %v12035_v11 }
  0xcb   :  { %224 = vadd.xlane.f32.xlu1 %v199_v2  ;;  %226 = vadd.xlane.f32.xlu0 %v200_v9  ;;  %v13266_v18 = vsub.f32 %v13160_v12, %v170_v8  ;;  %v13269_v19 = vsub.f32 %v13165_v13, %v171_v16  ;;  %v12037_v12 = vld [vmem:[%s17542_s3 + $0x4c] ss:$12 sps:$4 sm:$0xff]   ;;  %v12039_v13 = vld [vmem:[%s17542_s3 + $0x68] ss:$12 sps:$4 sm:$0xff]  }
  0xcc   :  { %v154_v21 = vpop.xlane.xlu0 %153  ;;  %v156_v24 = vpop.xlane.xlu1 %155  ;;  %522 = vmatprep.subr.bf16.mxu0 %v12037_v12  ;;  %11185 = vmatprep.subr.bf16.mxu1 %v12039_v13 }
  0xcd   :  { %v172_v25 = vmul.f32 0.0078125, %v154_v21  ;;  %v202_v26 = vmul.f32 %v13266_v18, %v13266_v18  ;;  %v173_v27 = vmul.f32 0.0078125, %v156_v24  ;;  %v203_v28 = vmul.f32 %v13269_v19, %v13269_v19  ;;  %523 = vmatpush1.bf16.msra.mxu0 %v12040_v33  ;;  %11186 = vmatpush3.bf16.msra.mxu1 %v12039_v13 }
  0xce   :  { %524 = vmatprep.subr.bf16.mxu0 %v12041_v35 }
  0xcf   :  { %228 = vadd.xlane.f32.xlu1 %v201_v17  ;;  %230 = vadd.xlane.f32.xlu0 %v202_v26  ;;  %v13285_v29 = vsub.f32 %v13172_v14, %v172_v25  ;;  %v13288_v32 = vsub.f32 %v13177_v15, %v173_v27  ;;  %v12043_v14 = vld [vmem:[%s17542_s3 + $0x50] ss:$12 sps:$4 sm:$0xff]   ;;  %v13331_v25 = vld [vmem:[%s17540_s1] ss:$0 sm:$0xff] }
  0xd0   :  { %11187 = vmatprep.subr.bf16.mxu1 %v12043_v14 }
  0xd1   :  { %v204_v34 = vmul.f32 %v13285_v29, %v13285_v29  ;;  %v205_v15 = vmul.f32 %v13288_v32, %v13288_v32  ;;  %525 = vmatpush1.bf16.msra.mxu0 %v12044_v36  ;;  %11188 = vmatpush3.bf16.msra.mxu1 %v12043_v14  ;;  %v13338_v36 = vld [vmem:[%s17541_s2] ss:$0 sm:$0xff] }
  0xd2   :  { %526 = vmatprep.subr.bf16.mxu0 %v12045_v37  ;;  %11189 = vmatprep.subr.bf16.mxu1 %v12047_v40 }
  0xd3   :  { %232 = vadd.xlane.f32.xlu1 %v203_v28  ;;  %234 = vadd.xlane.f32.xlu0 %v204_v34 }
  0xd5   :  { %527 = vmatpush1.bf16.msra.mxu0 %v12048_v41  ;;  %11190 = vmatpush3.bf16.msra.mxu1 %v12047_v40 }
  0xd6   :  { %528 = vmatprep.subr.bf16.mxu0 %v12049_v42  ;;  %11191 = vmatprep.subr.bf16.mxu1 %v12051_v43 }
  0xd7   :  { %236 = vadd.xlane.f32.xlu1 %v205_v15 }
  0xd9   :  { %529 = vmatpush1.bf16.msra.mxu0 %v12052_v44  ;;  %11192 = vmatpush3.bf16.msra.mxu1 %v12051_v43 }
  0xda   :  { %11193 = vmatprep.subr.bf16.mxu1 %v12053_v45 }
  0xdd   :  { %11194 = vmatpush3.bf16.msra.mxu1 %v12053_v45 }
 0x140   :  { %v207_v49 = vpop.xlane.xlu0 %206 }
 0x141   :  { %v238_v50 = vmul.f32 0.0078125, %v207_v49 }
 0x143   :  { %v254_v51 = vadd.f32 1e-05, %v238_v50 }
 0x144   :  { %v209_v52 = vpop.xlane.xlu1 %208  ;;  %v211_v53 = vpop.xlane.xlu0 %210 }
 0x145   :  { %12270 = vrsqrt.f32 %v254_v51  ;;  %v239_v54 = vmul.f32 0.0078125, %v209_v52  ;;  %v240_v55 = vmul.f32 0.0078125, %v211_v53 }
 0x147   :  { %v255_v56 = vadd.f32 1e-05, %v239_v54  ;;  %v256_v59 = vadd.f32 1e-05, %v240_v55 }
 0x148   :  { %v213_v60 = vpop.xlane.xlu1 %212  ;;  %v215_v61 = vpop.xlane.xlu0 %214 }
 0x149   :  { %12272 = vrsqrt.f32 %v255_v56  ;;  %v241_v62 = vmul.f32 0.0078125, %v213_v60  ;;  %v242_v63 = vmul.f32 0.0078125, %v215_v61 }
 0x14a   :  { %12274 = vrsqrt.f32 %v256_v59 }
 0x14b   :  { %v257_v0 = vadd.f32 1e-05, %v241_v62  ;;  %v258_v1 = vadd.f32 1e-05, %v242_v63 }
 0x14c   :  { %v217_v2 = vpop.xlane.xlu1 %216  ;;  %v219_v5 = vpop.xlane.xlu0 %218 }
 0x14d   :  { %12276 = vrsqrt.f32 %v257_v0  ;;  %v243_v6 = vmul.f32 0.0078125, %v217_v2  ;;  %v244_v7 = vmul.f32 0.0078125, %v219_v5 }
 0x14e   :  { %12278 = vrsqrt.f32 %v258_v1 }
 0x14f   :  { %v259_v8 = vadd.f32 1e-05, %v243_v6  ;;  %v260_v9 = vadd.f32 1e-05, %v244_v7 }
 0x150   :  { %v221_v16 = vpop.xlane.xlu1 %220  ;;  %v223_v10 = vpop.xlane.xlu0 %222 }
 0x151   :  { %12280 = vrsqrt.f32 %v259_v8  ;;  %v245_v11 = vmul.f32 0.0078125, %v221_v16  ;;  %v246_v17 = vmul.f32 0.0078125, %v223_v10 }
 0x152   :  { %v12271_v20 = vpop.eup %12270  ;;  %12282 = vrsqrt.f32 %v260_v9 }
 0x153   :  { %v261_v21 = vadd.f32 1e-05, %v245_v11  ;;  %v262_v24 = vadd.f32 1e-05, %v246_v17  ;;  %v286_v26 = vmul.f32 %v12271_v20, %v13189_v22 }
 0x154   :  { %v225_v27 = vpop.xlane.xlu1 %224  ;;  %v227_v12 = vpop.xlane.xlu0 %226 }
 0x155   :  { %12284 = vrsqrt.f32 %v261_v21  ;;  %v247_v13 = vmul.f32 0.0078125, %v225_v27  ;;  %v248_v28 = vmul.f32 0.0078125, %v227_v12  ;;  %v308_v34 = vmul.f32 %v13331_v25, %v286_v26 }
 0x156   :  { %v12273_v33 = vpop.eup %12272  ;;  %12286 = vrsqrt.f32 %v262_v24 }
 0x157   :  { %v12275_v35 = vpop.eup %12274  ;;  %v263_v14 = vadd.f32 1e-05, %v247_v13  ;;  %v264_v15 = vadd.f32 1e-05, %v248_v28  ;;  %v287_v37 = vmul.f32 %v12273_v33, %v13197_v30  ;;  %v330_v49 = vadd.f32 %v13338_v36, %v308_v34 }
 0x158   :  { %v229_v22 = vpop.xlane.xlu1 %228  ;;  %v231_v40 = vpop.xlane.xlu0 %230  ;;  %v288_v41 = vmul.f32 %v12275_v35, %v13191_v23 }
 0x159   :  { %12288 = vrsqrt.f32 %v263_v14  ;;  %v249_v42 = vmul.f32 0.0078125, %v229_v22  ;;  %v250_v43 = vmul.f32 0.0078125, %v231_v40  ;;  %v309_v44 = vmul.f32 %v13331_v25, %v287_v37 }
 0x15a   :  { %v12277_v45 = vpop.eup %12276  ;;  %12290 = vrsqrt.f32 %v264_v15  ;;  %v310_v23 = vmul.f32 %v13331_v25, %v288_v41 }
 0x15b   :  { %v12279_v50 = vpop.eup %12278  ;;  %v265_v51 = vadd.f32 1e-05, %v249_v42  ;;  %v266_v52 = vadd.f32 1e-05, %v250_v43  ;;  %v331_v53 = vadd.f32 %v13338_v36, %v309_v44  ;;  %v289_v30 = vmul.f32 %v12277_v45, %v13199_v31 }
 0x15c   :  { %v233_v54 = vpop.xlane.xlu1 %232  ;;  %v235_v55 = vpop.xlane.xlu0 %234  ;;  %v290_v56 = vmul.f32 %v12279_v50, %v13205_v38  ;;  %v332_v38 = vadd.f32 %v13338_v36, %v310_v23 }
 0x15d   :  { %12292 = vrsqrt.f32 %v265_v51  ;;  %v251_v59 = vmul.f32 0.0078125, %v233_v54  ;;  %v252_v60 = vmul.f32 0.0078125, %v235_v55  ;;  %v346_v61 = vpack.c.bf16 %v331_v53, %v330_v49 }
 0x15e   :  { %v12281_v62 = vpop.eup %12280  ;;  %12294 = vrsqrt.f32 %v266_v52  ;;  %v311_v63 = vmul.f32 %v13331_v25, %v289_v30  ;;  %v312_v5 = vmul.f32 %v13331_v25, %v290_v56 }
 0x15f   :  { %v12283_v0 = vpop.eup %12282  ;;  %v267_v1 = vadd.f32 1e-05, %v251_v59  ;;  %v268_v2 = vadd.f32 1e-05, %v252_v60  ;;  %547 = vmatmul.mubr.bf16.vlgmr.msra.gmra.mxu0 %v346_v61  ;;  %11195 = vmatprep.mubr.bf16.mxu1 %v346_v61  ;;  %v291_v31 = vmul.f32 %v12281_v62, %v13207_v39 }
 0x160   :  { %v237_v6 = vpop.xlane.xlu1 %236  ;;  %v333_v7 = vadd.f32 %v13338_v36, %v311_v63  ;;  %556 = vmatprep.mubr.bf16.mxu0 %v17554_v48  ;;  %v292_v8 = vmul.f32 %v12283_v0, %v13213_v46  ;;  %v334_v21 = vadd.f32 %v13338_v36, %v312_v5 }
 0x161   :  { %12296 = vrsqrt.f32 %v267_v1  ;;  %v253_v9 = vmul.f32 0.0078125, %v237_v6  ;;  %v313_v16 = vmul.f32 %v13331_v25, %v291_v31 }
 0x162   :  { %v12285_v10 = vpop.eup %12284  ;;  %12298 = vrsqrt.f32 %v268_v2  ;;  %v347_v11 = vpack.c.bf16 %v333_v7, %v332_v38  ;;  %v314_v39 = vmul.f32 %v13331_v25, %v292_v8 }
 0x163   :  { %v12287_v17 = vpop.eup %12286  ;;  %v269_v20 = vadd.f32 1e-05, %v253_v9  ;;  %v335_v24 = vadd.f32 %v13338_v36, %v313_v16  ;;  %v293_v26 = vmul.f32 %v12285_v10, %v13215_v47 }
 0x164   :  { %11196 = vmatmul.mubr.bf16.vlgmr.msra.gmra.mxu1 %v347_v11  ;;  %v294_v46 = vmul.f32 %v12287_v17, %v13231_v57  ;;  %v336_v28 = vadd.f32 %v13338_v36, %v314_v39 }
 0x165   :  { %12300 = vrsqrt.f32 %v269_v20  ;;  %v348_v27 = vpack.c.bf16 %v335_v24, %v334_v21  ;;  %v315_v12 = vmul.f32 %v13331_v25, %v293_v26 }
 0x166   :  { %v12289_v13 = vpop.eup %12288  ;;  %v316_v14 = vmul.f32 %v13331_v25, %v294_v46 }
 0x167   :  { %v12291_v33 = vpop.eup %12290  ;;  %557 = vmatmul.mubr.bf16.gmra.mxu0 %v347_v11  ;;  %11199 = vmatprep.mubr.bf16.mxu1 %v348_v27  ;;  %v337_v34 = vadd.f32 %v13338_v36, %v315_v12  ;;  %v295_v35 = vmul.f32 %v12289_v13, %v13234_v58 }
 0x168   :  { %566 = vmatprep.mubr.bf16.mxu0 %v17554_v48  ;;  %v296_v47 = vmul.f32 %v12291_v33, %v13247_v3  ;;  %v338_v41 = vadd.f32 %v13338_v36, %v316_v14 }
 0x169   :  { %v349_v57 = vpack.c.bf16 %v337_v34, %v336_v28  ;;  %v317_v15 = vmul.f32 %v13331_v25, %v295_v35 }
 0x16a   :  { %v12293_v37 = vpop.eup %12292  ;;  %v318_v22 = vmul.f32 %v13331_v25, %v296_v47 }
 0x16b   :  { %v12295_v40 = vpop.eup %12294  ;;  %v339_v42 = vadd.f32 %v13338_v36, %v317_v15  ;;  %v297_v43 = vmul.f32 %v12293_v37, %v13250_v4 }
 0x16c   :  { %11200 = vmatmul.mubr.bf16.gmra.mxu1 %v349_v57  ;;  %v298_v58 = vmul.f32 %v12295_v40, %v13266_v18  ;;  %v340_v49 = vadd.f32 %v13338_v36, %v318_v22 }
 0x16d   :  { %v350_v44 = vpack.c.bf16 %v339_v42, %v338_v41  ;;  %v319_v45 = vmul.f32 %v13331_v25, %v297_v43 }
 0x16e   :  { %v12297_v3 = vpop.eup %12296  ;;  %v320_v53 = vmul.f32 %v13331_v25, %v298_v58 }
 0x16f   :  { %v12299_v50 = vpop.eup %12298  ;;  %567 = vmatmul.mubr.bf16.gmra.mxu0 %v348_v27  ;;  %11203 = vmatprep.mubr.bf16.mxu1 %v350_v44  ;;  %v341_v51 = vadd.f32 %v13338_v36, %v319_v45  ;;  %v299_v52 = vmul.f32 %v12297_v3, %v13269_v19 }
 0x170   :  { %576 = vmatprep.mubr.bf16.mxu0 %v17554_v48  ;;  %v300_v4 = vmul.f32 %v12299_v50, %v13285_v29  ;;  %v342_v55 = vadd.f32 %v13338_v36, %v320_v53 }
 0x171   :  { %v351_v18 = vpack.c.bf16 %v341_v51, %v340_v49  ;;  %v321_v30 = vmul.f32 %v13331_v25, %v299_v52 }
 0x172   :  { %v12301_v54 = vpop.eup %12300  ;;  %v322_v59 = vmul.f32 %v13331_v25, %v300_v4 }
 0x173   :  { %v343_v23 = vadd.f32 %v13338_v36, %v321_v30  ;;  %v301_v56 = vmul.f32 %v12301_v54, %v13288_v32  ;;  %v12054_v32 = vld [vmem:[#allocation2 + $0x8] sm:$0xff]  }
 0x174   :  { %11204 = vmatmul.mubr.bf16.gmra.mxu1 %v351_v18  ;;  %v344_v29 = vadd.f32 %v13338_v36, %v322_v59  ;;  %11211 = vmatprep.subr.bf16.mxu1 %v12054_v32 }
 0x175   :  { %v352_v19 = vpack.c.bf16 %v343_v23, %v342_v55  ;;  %v323_v60 = vmul.f32 %v13331_v25, %v301_v56  ;;  %11212 = vmatpush3.bf16.msra.mxu1 %v12054_v32  ;;  %v12055_v25 = vld [vmem:[#allocation2] sm:$0xff]  }
 0x176   :  { %11213 = vmatprep.subr.bf16.mxu1 %v12055_v25 }
 0x177   :  { %577 = vmatmul.mubr.bf16.gmra.mxu0 %v349_v57  ;;  %11207 = vmatprep.mubr.bf16.mxu1 %v352_v19  ;;  %v345_v61 = vadd.f32 %v13338_v36, %v323_v60 }
 0x178   :  { %586 = vmatprep.mubr.bf16.mxu0 %v17554_v48 }
 0x179   :  { %v353_v62 = vpack.c.bf16 %v345_v61, %v344_v29  ;;  %11214 = vmatpush3.bf16.msra.mxu1 %v12055_v25 }
 0x17c   :  { %11208 = vmatmul.mubr.bf16.gmra.mxu1 %v353_v62 }
 0x17f   :  { %587 = vmatmul.mubr.bf16.gmra.mxu0 %v350_v44 }
 0x180   :  { %596 = vmatprep.mubr.bf16.mxu0 %v17554_v48 }
 0x187   :  { %597 = vmatmul.mubr.bf16.gmra.mxu0 %v351_v18 }
 0x188   :  { %606 = vmatprep.mubr.bf16.mxu0 %v17554_v48 }
 0x18f   :  { %607 = vmatmul.mubr.bf16.gmra.mxu0 %v352_v19 }
 0x190   :  { %616 = vmatprep.mubr.bf16.mxu0 %v17554_v48 }
 0x197   :  { %617 = vmatmul.mubr.bf16.gmra.mxu0 %v353_v62 }
 0x21f   :  { %v548_v36 = vpop.f32.mrf.mxu0 }
 0x220   :  { %v890_v1 = vmul.f32 0.088388346, %v548_v36 }
 0x221   :  { %v13393_v63 = vpop.f32.mrf.mxu0 }
 0x223   :  { %v552_v0 = vpop.f32.mrf.mxu0 }
 0x224   :  { %v891_v2 = vmul.f32 0.088388346, %v552_v0  ;;  %v11197_v31 = vpop.f32.mrf.mxu1 }
 0x225   :  { %v13395_v5 = vpop.f32.mrf.mxu0 }
 0x226   :  { %v13397_v6 = vpack.c.bf16 %v891_v2, %v890_v1  ;;  %v661_v38 = vpop.f32.mrf.mxu1  ;;  %v13489_v36 = vpack.c.bf16 %v13395_v5, %v13393_v63 }
 0x227   :  { %v13399_v7 = vpop.f32.mrf.mxu0 }
 0x228   :  { %v11198_v8 = vpop.f32.mrf.mxu1  ;;  %11239 = vmatprep.mubr.msk.bf16.mxu0 %vm760_vm0, %v13397_v6 }
 0x229   :  { %v13403_v9 = vpack.c.bf16 %v11198_v8, %v11197_v31  ;;  %v560_v16 = vpop.f32.mrf.mxu0 }
 0x22a   :  { %v664_v10 = vpop.f32.mrf.mxu1 }
 0x22b   :  { %17659 = vst [vmem:[#allocation12_spill] sm:$0xff] %v13403_v9  ;;  %v13405_v11 = vpack.c.bf16 %v664_v10, %v661_v38  ;;  %1311 = vrot.lane.b32.xlu1 %v13403_v9, %s13018_s25  ;;  %v13409_v39 = vpop.f32.mrf.mxu0  ;;  %v892_v38 = vmul.f32 0.088388346, %v13399_v7 }
 0x22c   :  { %v11201_v17 = vpop.f32.mrf.mxu1  ;;  %v893_v2 = vmul.f32 0.088388346, %v13409_v39  ;;  %v919_v39 = vsel %vm760_vm0, %v13489_v36, 0 }
 0x22d   :  { %17660 = vst [vmem:[#allocation13_spill] sm:$0xff] %v13405_v11  ;;  %1309 = vrot.lane.b32.xlu0 %v13405_v11, %s13018_s25  ;;  %11215 = vmatprep.mubr.msk.bf16.mxu1 %vm760_vm0, %v13405_v11  ;;  %v564_v20 = vpop.f32.mrf.mxu0 }
 0x22e   :  { %v677_v21 = vpop.f32.mrf.mxu1  ;;  %11216 = vmatmul.mubr.msk.bf16.vlgmr.msra.gmra.mxu1 %vm760_vm0, %v13403_v9  ;;  %v13441_v44 = vpack.c.bf16 %v564_v20, %v560_v16  ;;  %v13501_v5 = vpack.c.bf16 %v893_v2, %v892_v38 }
 0x22f   :  { %v568_v24 = vpop.f32.mrf.mxu0 }
 0x230   :  { %v11202_v26 = vpop.f32.mrf.mxu1  ;;  %v894_v60 = vmul.f32 0.088388346, %v568_v24  ;;  %v922_v0 = vsel %vm760_vm0, %v13441_v44, 0 }
 0x231   :  { %v13417_v46 = vpack.c.bf16 %v11202_v26, %v11201_v17  ;;  %v570_v27 = vpop.f32.mrf.mxu0 }
 0x232   :  { %v680_v12 = vpop.f32.mrf.mxu1 }
 0x233   :  { %17661 = vst [vmem:[#allocation14_spill] sm:$0xff] %v13417_v46  ;;  %v13419_v13 = vpack.c.bf16 %v680_v12, %v677_v21  ;;  %1315 = vrot.lane.b32.xlu0 %v13417_v46, %s13018_s25  ;;  %v572_v28 = vpop.f32.mrf.mxu0 }
 0x234   :  { %v11205_v33 = vpop.f32.mrf.mxu1  ;;  %v895_v56 = vmul.f32 0.088388346, %v572_v28 }
 0x235   :  { %17662 = vst [vmem:[#allocation15_spill] sm:$0xff] %v13419_v13  ;;  %11219 = vmatprep.mubr.msk.bf16.mxu1 %vm760_vm0, %v13419_v13  ;;  %v574_v34 = vpop.f32.mrf.mxu0 }
 0x236   :  { %v693_v35 = vpop.f32.mrf.mxu1  ;;  %11220 = vmatmul.mubr.msk.bf16.gmra.mxu1 %vm760_vm0, %v13417_v46  ;;  %v13443_v3 = vpack.c.bf16 %v574_v34, %v570_v27  ;;  %v13481_v61 = vpack.c.bf16 %v895_v56, %v894_v60 }
 0x237   :  { %v13427_v14 = vpop.f32.mrf.mxu0 }
 0x238   :  { %v11206_v47 = vpop.f32.mrf.mxu1  ;;  %v925_v19 = vsel %vm760_vm0, %v13443_v3, 0  ;;  %17668 = vst [vmem:[#allocation21_spill] sm:$0xff] %v13481_v61  ;;  %v896_v10 = vmul.f32 0.088388346, %v13427_v14 }
 0x239   :  { %v580_v57 = vpop.f32.mrf.mxu0  ;;  %v13431_v40 = vpack.c.bf16 %v11206_v47, %v11205_v33 }
 0x23a   :  { %v696_v15 = vpop.f32.mrf.mxu1 }
 0x23b   :  { %v13429_v37 = vpack.c.bf16 %v696_v15, %v693_v35  ;;  %v582_v22 = vpop.f32.mrf.mxu0  ;;  %17664 = vst [vmem:[#allocation17_spill] sm:$0xff] %v13431_v40  ;;  %v12056_v35 = vld [vmem:[#allocation2 + $0x18] sm:$0xff]  }
 0x23c   :  { %v11209_v41 = vpop.f32.mrf.mxu1  ;;  %v897_v8 = vmul.f32 0.088388346, %v582_v22 }
 0x23d   :  { %17663 = vst [vmem:[#allocation16_spill] sm:$0xff] %v13429_v37  ;;  %1317 = vrot.lane.b32.xlu0 %v13429_v37, %s13018_s25  ;;  %11223 = vmatprep.mubr.msk.bf16.mxu1 %vm760_vm0, %v13429_v37  ;;  %v584_v42 = vpop.f32.mrf.mxu0 }
 0x23e   :  { %v13437_v43 = vpack.c.bf16 %v584_v42, %v580_v57  ;;  %v709_v58 = vpop.f32.mrf.mxu1  ;;  %11224 = vmatmul.mubr.msk.bf16.gmra.mxu1 %vm760_vm0, %v13431_v40  ;;  %v13508_v20 = vpack.c.bf16 %v897_v8, %v896_v10  ;;  %v12057_v42 = vld [vmem:[#allocation2 + $0x10] sm:$0xff]  }
 0x23f   :  { %v588_v45 = vpop.f32.mrf.mxu0 }
 0x240   :  { %v11210_v49 = vpop.f32.mrf.mxu1  ;;  %1488 = vrot.lane.b32.xlu1 %v13437_v43, %s13018_s25  ;;  %11947 = vmatprep.subr.msk.bf16.mxu0 %vm760_vm0, %v13437_v43  ;;  %v928_v50 = vsel %vm760_vm0, %v13437_v43, 0  ;;  %v1096_v30 = vmul.f32 0.088388346, %v588_v45 }
 0x241   :  { %1484 = vrot.lane.b32.xlu0 %v13441_v44, %s13018_s25  ;;  %v13453_v51 = vpop.f32.mrf.mxu0  ;;  %11232 = vmatpush3.bf16.xpose.msra.mxu0 %v928_v50  ;;  %v13457_v53 = vpack.c.bf16 %v11210_v49, %v11209_v41 }
 0x242   :  { %v712_v52 = vpop.f32.mrf.mxu1  ;;  %11948 = vmatprep.subr.msk.bf16.mxu0 %vm760_vm0, %v13443_v3 }
 0x243   :  { %17665 = vst [vmem:[#allocation18_spill] sm:$0xff] %v13457_v53  ;;  %v13459_v4 = vpack.c.bf16 %v712_v52, %v709_v58  ;;  %v592_v18 = vpop.f32.mrf.mxu0 }
 0x244   :  { %v1097_v54 = vmul.f32 0.088388346, %v592_v18  ;;  %1313 = vrot.lane.b32.xlu1 %v13419_v13, %s13018_s25 }
 0x245   :  { %17666 = vst [vmem:[#allocation19_spill] sm:$0xff] %v13459_v4  ;;  %1323 = vrot.lane.b32.xlu0 %v13457_v53, %s13018_s25  ;;  %11227 = vmatprep.mubr.msk.bf16.mxu1 %vm760_vm0, %v13459_v4  ;;  %v594_v55 = vpop.f32.mrf.mxu0 }
 0x246   :  { %v13467_v23 = vpack.c.bf16 %v1097_v54, %v1096_v30  ;;  %11228 = vmatmul.mubr.msk.bf16.gmra.mxu1 %vm760_vm0, %v13457_v53  ;;  %v13535_v33 = vpack.c.bf16 %v594_v55, %v13453_v51 }
 0x247   :  { %v598_v59 = vpop.f32.mrf.mxu0 }
 0x248   :  { %17667 = vst [vmem:[#allocation20_spill] sm:$0xff] %v13467_v23  ;;  %1486 = vrot.lane.b32.xlu1 %v13443_v3, %s13018_s25  ;;  %11255 = vmatprep.mubr.msk.bf16.mxu1 %vm760_vm0, %v13467_v23  ;;  %17669 = vst [vmem:[#allocation22_spill] sm:$0xff] %v13535_v33  ;;  %v1125_v14 = vsel %vm760_vm0, %v13535_v33, 0  ;;  %v1098_v15 = vmul.f32 0.088388346, %v598_v59 }
 0x249   :  { %1470 = vrot.lane.b32.xlu0 %v13397_v6, %s13018_s25  ;;  %v600_v29 = vpop.f32.mrf.mxu0  ;;  %11234 = vmatpush3.bf16.xpose.msra.mxu0 %v925_v19 }
 0x24a   :  { %11949 = vmatprep.subr.msk.bf16.mxu0 %vm760_vm0, %v13441_v44 }
 0x24b   :  { %v602_v62 = vpop.f32.mrf.mxu0 }
 0x24c   :  { %1319 = vrot.lane.b32.xlu1 %v13431_v40, %s13018_s25  ;;  %v1099_v47 = vmul.f32 0.088388346, %v602_v62 }
 0x24d   :  { %1474 = vrot.lane.b32.xlu0 %v13481_v61, %s13018_s25  ;;  %v604_v32 = vpop.f32.mrf.mxu0 }
 0x24e   :  { %v13526_v12 = vpack.c.bf16 %v604_v32, %v600_v29  ;;  %v13543_v41 = vpack.c.bf16 %v1099_v47, %v1098_v15 }
 0x24f   :  { %v608_v25 = vpop.f32.mrf.mxu0 }
 0x250   :  { %1321 = vrot.lane.b32.xlu1 %v13459_v4, %s13018_s25  ;;  %v1128_v34 = vsel %vm760_vm0, %v13526_v12, 0  ;;  %v1100_v22 = vmul.f32 0.088388346, %v608_v25  ;;  %17670 = vst [vmem:[#allocation23_spill] sm:$0xff] %v13543_v41 }
 0x251   :  { %v610_v1 = vpop.f32.mrf.mxu0  ;;  %11236 = vmatpush3.bf16.xpose.msra.mxu0 %v922_v0 }
 0x252   :  { %11950 = vmatprep.subr.msk.bf16.mxu0 %vm760_vm0, %v13489_v36 }
 0x253   :  { %v612_v31 = vpop.f32.mrf.mxu0 }
 0x254   :  { %1482 = vrot.lane.b32.xlu1 %v13489_v36, %s13018_s25  ;;  %v1101_v57 = vmul.f32 0.088388346, %v612_v31 }
 0x255   :  { %v614_v63 = vpop.f32.mrf.mxu0 }
 0x256   :  { %v13514_v26 = vpack.c.bf16 %v614_v63, %v610_v1  ;;  %v13545_v58 = vpack.c.bf16 %v1101_v57, %v1100_v22 }
 0x257   :  { %v618_v16 = vpop.f32.mrf.mxu0 }
 0x258   :  { %1472 = vrot.lane.b32.xlu1 %v13501_v5, %s13018_s25  ;;  %v1131_v28 = vsel %vm760_vm0, %v13514_v26, 0  ;;  %17671 = vst [vmem:[#allocation24_spill] sm:$0xff] %v13545_v58  ;;  %v1102_v49 = vmul.f32 0.088388346, %v618_v16 }
 0x259   :  { %v620_v17 = vpop.f32.mrf.mxu0  ;;  %11238 = vmatpush3.bf16.xpose.msra.mxu0 %v919_v39 }
 0x25b   :  { %v622_v7 = vpop.f32.mrf.mxu0 }
 0x25c   :  { %1476 = vrot.lane.b32.xlu1 %v13508_v20, %s13018_s25  ;;  %v1103_v45 = vmul.f32 0.088388346, %v622_v7 }
 0x25d   :  { %v624_v21 = vpop.f32.mrf.mxu0 }
 0x25e   :  { %v13512_v24 = vpack.c.bf16 %v624_v21, %v620_v17  ;;  %v13551_v50 = vpack.c.bf16 %v1103_v45, %v1102_v49 }
 0x260   :  { %11240 = vmatmul.mubr.msk.bf16.vlgmr.msra.gmra.mxu0 %vm760_vm0, %v13501_v5  ;;  %11951 = vmatprep.subr.msk.bf16.mxu1 %vm760_vm0, %v13512_v24  ;;  %v1134_v27 = vsel %vm760_vm0, %v13512_v24, 0  ;;  %17672 = vst [vmem:[#allocation25_spill] sm:$0xff] %v13551_v50 }
 0x261   :  { %11243 = vmatprep.mubr.msk.bf16.mxu0 %vm760_vm0, %v13481_v61  ;;  %11248 = vmatpush3.bf16.xpose.msra.mxu1 %v1134_v27 }
 0x262   :  { %11952 = vmatprep.subr.msk.bf16.mxu1 %vm760_vm0, %v13514_v26 }
 0x268   :  { %11244 = vmatmul.mubr.msk.bf16.gmra.mxu0 %vm760_vm0, %v13508_v20 }
 0x269   :  { %11250 = vmatpush3.bf16.xpose.msra.mxu1 %v1131_v28 }
 0x26a   :  { %11953 = vmatprep.subr.msk.bf16.mxu1 %vm760_vm0, %v13526_v12 }
 0x271   :  { %11252 = vmatpush3.bf16.xpose.msra.mxu1 %v1128_v34 }
 0x272   :  { %11954 = vmatprep.subr.msk.bf16.mxu1 %vm760_vm0, %v13535_v33 }
 0x279   :  { %11254 = vmatpush3.bf16.xpose.msra.mxu1 %v1125_v14 }
 0x27a   :  { %11263 = vmatprep.subr.bf16.mxu1 %v12056_v35 }
 0x280   :  { %11256 = vmatmul.mubr.msk.bf16.vlgmr.msra.gmra.mxu1 %vm760_vm0, %v13543_v41 }
 0x281   :  { %11259 = vmatprep.mubr.msk.bf16.mxu1 %vm760_vm0, %v13545_v58  ;;  %11264 = vmatpush3.bf16.msra.mxu1 %v12056_v35 }
 0x282   :  { %11265 = vmatprep.subr.bf16.mxu1 %v12057_v42 }
 0x285   :  { %11266 = vmatpush3.bf16.msra.mxu1 %v12057_v42 }
 0x288   :  { %11260 = vmatmul.mubr.msk.bf16.gmra.mxu1 %vm760_vm0, %v13551_v50 }
 0x29d   :  { %v1312_v52 = vpop.permute.xlu1 %1311 }
 0x29f   :  { %v1310_v51 = vpop.permute.xlu0 %1309 }
 0x2a0   :  { %11267 = vmatprep.mubr.msk.bf16.mxu1 %vm760_vm0, %v1310_v51 }
 0x2a1   :  { %11268 = vmatmul.mubr.msk.bf16.vlgmr.msra.gmra.mxu1 %vm760_vm0, %v1312_v52 }
 0x2a5   :  { %v1316_v18 = vpop.permute.xlu0 %1315 }
 0x2af   :  { %v1318_v55 = vpop.permute.xlu0 %1317 }
 0x2b2   :  { %v1489_v30 = vpop.permute.xlu1 %1488 }
 0x2b3   :  { %11955 = vmatprep.subr.msk.bf16.mxu1 %vm760_vm0, %v1489_v30  ;;  %v1512_v54 = vsel %vm760_vm0, %v1489_v30, 0  ;;  %v1485_v60 = vpop.permute.xlu0 %1484 }
 0x2b4   :  { %11284 = vmatpush3.bf16.xpose.msra.mxu1 %v1512_v54  ;;  %v1506_v25 = vsel %vm760_vm0, %v1485_v60, 0 }
 0x2b6   :  { %v1314_v56 = vpop.permute.xlu1 %1313 }
 0x2b7   :  { %11271 = vmatprep.mubr.msk.bf16.mxu1 %vm760_vm0, %v1314_v56  ;;  %v1324_v62 = vpop.permute.xlu0 %1323 }
 0x2b8   :  { %11272 = vmatmul.mubr.msk.bf16.gmra.mxu1 %vm760_vm0, %v1316_v18 }
 0x2b9   :  { %11275 = vmatprep.mubr.msk.bf16.mxu1 %vm760_vm0, %v1318_v55 }
 0x2ba   :  { %v1487_v59 = vpop.permute.xlu1 %1486 }
 0x2bb   :  { %11956 = vmatprep.subr.msk.bf16.mxu1 %vm760_vm0, %v1487_v59  ;;  %v1509_v19 = vsel %vm760_vm0, %v1487_v59, 0  ;;  %v1471_v1 = vpop.permute.xlu0 %1470 }
 0x2bc   :  { %11286 = vmatpush3.bf16.xpose.msra.mxu1 %v1509_v19 }
 0x2bd   :  { %11957 = vmatprep.subr.msk.bf16.mxu1 %vm760_vm0, %v1485_v60 }
 0x2be   :  { %v1320_v29 = vpop.permute.xlu1 %1319 }
 0x2bf   :  { %v1475_v38 = vpop.permute.xlu0 %1474 }
 0x2c0   :  { %11276 = vmatmul.mubr.msk.bf16.gmra.mxu1 %vm760_vm0, %v1320_v29 }
 0x2c2   :  { %v1322_v32 = vpop.permute.xlu1 %1321 }
 0x2c3   :  { %11279 = vmatprep.mubr.msk.bf16.mxu1 %vm760_vm0, %v1322_v32 }
 0x2c4   :  { %11288 = vmatpush3.bf16.xpose.msra.mxu1 %v1506_v25 }
 0x2c6   :  { %v1483_v0 = vpop.permute.xlu1 %1482 }
 0x2c7   :  { %11958 = vmatprep.subr.msk.bf16.mxu1 %vm760_vm0, %v1483_v0  ;;  %v1503_v2 = vsel %vm760_vm0, %v1483_v0, 0 }
 0x2c8   :  { %11280 = vmatmul.mubr.msk.bf16.gmra.mxu1 %vm760_vm0, %v1324_v62 }
 0x2c9   :  { %11291 = vmatprep.mubr.msk.bf16.mxu1 %vm760_vm0, %v1471_v1 }
 0x2ca   :  { %v1473_v31 = vpop.permute.xlu1 %1472 }
 0x2cc   :  { %11290 = vmatpush3.bf16.xpose.msra.mxu1 %v1503_v2 }
 0x2ce   :  { %v1477_v63 = vpop.permute.xlu1 %1476 }
 0x2d3   :  { %11292 = vmatmul.mubr.msk.bf16.vlgmr.msra.gmra.mxu1 %vm760_vm0, %v1473_v31 }
 0x2d4   :  { %11295 = vmatprep.mubr.msk.bf16.mxu1 %vm760_vm0, %v1475_v38 }
 0x2db   :  { %11296 = vmatmul.mubr.msk.bf16.gmra.mxu1 %vm760_vm0, %v1477_v63 }
 0x2ee   :  { %v11217_v8 = vpop.f32.mrf.mxu1 }
 0x2f0   :  { %v819_v16 = vpop.f32.mrf.mxu1 }
 0x2f2   :  { %v11218_v10 = vpop.f32.mrf.mxu1 }
 0x2f3   :  { %v883_v47 = vpack.c.bf16 %v11218_v10, %v11217_v8 }
 0x2f4   :  { %v822_v39 = vpop.f32.mrf.mxu1 }
 0x2f5   :  { %v882_v42 = vpack.c.bf16 %v822_v39, %v819_v16 }
 0x2f6   :  { %v11221_v17 = vpop.f32.mrf.mxu1 }
 0x2f8   :  { %v835_v7 = vpop.f32.mrf.mxu1 }
 0x2fa   :  { %v11222_v21 = vpop.f32.mrf.mxu1 }
 0x2fb   :  { %v885_v27 = vpack.c.bf16 %v11222_v21, %v11221_v17 }
 0x2fc   :  { %v838_v28 = vpop.f32.mrf.mxu1 }
 0x2fd   :  { %v884_v34 = vpack.c.bf16 %v838_v28, %v835_v7  ;;  %11315 = vmatprep.subr.bf16.mxu1 %v885_v27 }
 0x2fe   :  { %v11225_v35 = vpop.f32.mrf.mxu1  ;;  %11316 = vmatpush3.bf16.msra.mxu1 %v885_v27 }
 0x2ff   :  { %11317 = vmatprep.subr.bf16.mxu1 %v884_v34 }
 0x300   :  { %v13575_v14 = vpop.f32.mrf.mxu1 }
 0x301   :  { %17673 = vst [vmem:[#allocation26_spill] sm:$0xff] %v13575_v14 }
 0x302   :  { %v11226_v57 = vpop.f32.mrf.mxu1  ;;  %11318 = vmatpush3.bf16.msra.mxu1 %v884_v34 }
 0x303   :  { %v13577_v15 = vpack.c.bf16 %v11226_v57, %v11225_v35  ;;  %11319 = vmatprep.subr.bf16.mxu1 %v883_v47  ;;  %v104_v35 = vlaneseq }
 0x304   :  { %v13579_v22 = vpop.f32.mrf.mxu1 }
 0x305   :  { %17674 = vst [vmem:[#allocation27_spill] sm:$0xff] %v13577_v15  ;;  %17675 = vst [vmem:[#allocation28_spill] sm:$0xff] %v13579_v22 }
 0x306   :  { %v11229_v45 = vpop.f32.mrf.mxu1  ;;  %11320 = vmatpush3.bf16.msra.mxu1 %v883_v47 }
 0x307   :  { %11321 = vmatprep.subr.bf16.mxu1 %v882_v42 }
 0x308   :  { %v13581_v49 = vpop.f32.mrf.mxu1 }
 0x309   :  { %17676 = vst [vmem:[#allocation29_spill] sm:$0xff] %v13581_v49 }
 0x30a   :  { %v11230_v51 = vpop.f32.mrf.mxu1  ;;  %11322 = vmatpush3.bf16.msra.mxu1 %v882_v42  ;;  %v13613_v42 = vshrl.u32 %v104_v35, 7 }
 0x30b   :  { %v13583_v52 = vpack.c.bf16 %v11230_v51, %v11229_v45 }
 0x30c   :  { %v13585_v18 = vpop.f32.mrf.mxu1  ;;  %17678 = vst [vmem:[#allocation31_spill] sm:$0xff] %v13613_v42  ;;  %v107_v51 = vadd.s32 16, %v13613_v42  ;;  %v112_v48 = vadd.s32 56, %v13613_v42 }
 0x30d   :  { %17677 = vst [vmem:[#allocation30_spill] sm:$0xff] %v13585_v18 }
 0x340   :  { %v13587_v30 = vpop.f32.mrf.mxu1 }
 0x342   :  { %v13589_v54 = vpop.f32.mrf.mxu1 }
 0x344   :  { %v13591_v55 = vpop.f32.mrf.mxu1 }
 0x346   :  { %v13593_v56 = vpop.f32.mrf.mxu1 }
 0x348   :  { %v13595_v59 = vpop.f32.mrf.mxu1 }
 0x34a   :  { %v13597_v19 = vpop.f32.mrf.mxu1 }
 0x34c   :  { %v13599_v60 = vpop.f32.mrf.mxu1 }
 0x34e   :  { %v13601_v29 = vpop.f32.mrf.mxu1 }
 0x361   :  { %v11269_v62 = vpop.f32.mrf.mxu1 }
 0x363   :  { %v1395_v32 = vpop.f32.mrf.mxu1 }
 0x365   :  { %v11270_v25 = vpop.f32.mrf.mxu1 }
 0x366   :  { %v1459_v39 = vpack.c.bf16 %v11270_v25, %v11269_v62  ;;  %v114_v62 = vand.u32 127, %v104_v35  ;;  %v17679_v25 = vmov 0  ;;  %v109_v35 = vadd.s32 32, %v13613_v42 }
 0x367   :  { %v1398_v0 = vpop.f32.mrf.mxu1 }
 0x368   :  { %v1458_v27 = vpack.c.bf16 %v1398_v0, %v1395_v32  ;;  %vm13620_vm1 = vcmp.ge.s32.totalorder %v13613_v42, %v114_v62  ;;  %vm13627_vm3 = vcmp.ge.s32.totalorder %v107_v51, %v114_v62  ;;  %vm13652_vm6 = vcmp.ge.s32.totalorder %v109_v35, %v114_v62 }
 0x369   :  { %v17680_v25 = vsel %vm13620_vm1, 4294967295, %v17679_v25  ;;  %vm13672_vm9 = vcmp.ge.s32.totalorder %v112_v48, %v114_v62 }
 0x36a   :  { %17681 = vst [vmem:[#allocation32_spill] sm:$0xff] %v17680_v25 }
 0x378   :  { %v11273_v1 = vpop.f32.mrf.mxu1 }
 0x37a   :  { %v1411_v2 = vpop.f32.mrf.mxu1 }
 0x37c   :  { %v11274_v31 = vpop.f32.mrf.mxu1 }
 0x37d   :  { %v1461_v38 = vpack.c.bf16 %v11274_v31, %v11273_v1  ;;  %v106_v1 = vadd.s32 8, %v13613_v42  ;;  %v17682_v31 = vmov 0 }
 0x37e   :  { %v1414_v63 = vpop.f32.mrf.mxu1  ;;  %v17683_v31 = vsel %vm13627_vm3, 4294967295, %v17682_v31 }
 0x37f   :  { %v1460_v8 = vpack.c.bf16 %v1414_v63, %v1411_v2  ;;  %11299 = vmatprep.subr.bf16.mxu0 %v1461_v38  ;;  %17684 = vst [vmem:[#allocation33_spill] sm:$0xff] %v17683_v31  ;;  %vm13635_vm4 = vcmp.ge.s32.totalorder %v106_v1, %v114_v62 }
 0x380   :  { %v11277_v16 = vpop.f32.mrf.mxu1  ;;  %11300 = vmatpush3.bf16.msra.mxu0 %v1461_v38  ;;  %v108_v38 = vadd.s32 24, %v13613_v42 }
 0x381   :  { %11301 = vmatprep.subr.bf16.mxu0 %v1460_v8 }
 0x382   :  { %v13603_v10 = vpop.f32.mrf.mxu1  ;;  %vm13641_vm5 = vcmp.ge.s32.totalorder %v108_v38, %v114_v62  ;;  %v111_v38 = vadd.s32 48, %v13613_v42 }
 0x384   :  { %v11278_v17 = vpop.f32.mrf.mxu1  ;;  %11302 = vmatpush3.bf16.msra.mxu0 %v1460_v8  ;;  %vm13668_vm8 = vcmp.ge.s32.totalorder %v111_v38, %v114_v62 }
 0x385   :  { %v13605_v7 = vpack.c.bf16 %v11278_v17, %v11277_v16  ;;  %11303 = vmatprep.subr.bf16.mxu0 %v1459_v39  ;;  %v17685_v17 = vmov 0 }
 0x386   :  { %v13607_v21 = vpop.f32.mrf.mxu1  ;;  %v17686_v17 = vsel %vm13635_vm4, 4294967295, %v17685_v17 }
 0x387   :  { %17687 = vst [vmem:[#allocation34_spill] sm:$0xff] %v17686_v17 }
 0x388   :  { %v11281_v28 = vpop.f32.mrf.mxu1  ;;  %11304 = vmatpush3.bf16.msra.mxu0 %v1459_v39 }
 0x389   :  { %11305 = vmatprep.subr.bf16.mxu0 %v1458_v27 }
 0x38a   :  { %v13609_v34 = vpop.f32.mrf.mxu1 }
 0x38c   :  { %v11282_v47 = vpop.f32.mrf.mxu1  ;;  %11306 = vmatpush3.bf16.msra.mxu0 %v1458_v27 }
 0x38d   :  { %v13611_v57 = vpack.c.bf16 %v11282_v47, %v11281_v28  ;;  %v17688_v28 = vmov 0 }
 0x38e   :  { %v13616_v45 = vpop.f32.mrf.mxu1  ;;  %v17689_v28 = vsel %vm13641_vm5, 4294967295, %v17688_v28 }
 0x38f   :  { %11347 = vmatprep.subr.bf16.mxu1 %v13611_v57  ;;  %17690 = vst [vmem:[#allocation35_spill] sm:$0xff] %v17689_v28 }
 0x393   :  { %v11293_v32 = vpop.f32.mrf.mxu1 }
 0x394   :  { %v1581_v16 = vsel %vm13627_vm3, %v11293_v32, -1e+30 }
 0x395   :  { %v1548_v0 = vpop.f32.mrf.mxu1  ;;  %v1593_v51 = vsel %vm1003_vm2, %v1581_v16, -inf }
 0x396   :  { %v1579_v2 = vsel %vm13620_vm1, %v1548_v0, -1e+30 }
 0x397   :  { %v11294_v63 = vpop.f32.mrf.mxu1  ;;  %v1587_v8 = vsel %vm1003_vm2, %v1579_v2, -inf }
 0x398   :  { %1588 = vmax.xlane.f32.xlu0 %v1587_v8  ;;  %v1582_v0 = vsel %vm13641_vm5, %v11294_v63, -1e+30  ;;  %v110_v8 = vadd.s32 40, %v13613_v42  ;;  %v17700_v42 = vmov 0 }
 0x399   :  { %v1551_v39 = vpop.f32.mrf.mxu1  ;;  %v1596_v14 = vsel %vm1003_vm2, %v1582_v0, -inf  ;;  %v17701_v42 = vsel %vm13672_vm9, 4294967295, %v17700_v42 }
 0x39a   :  { %v1580_v27 = vsel %vm13635_vm4, %v1551_v39, -1e+30  ;;  %v17691_v39 = vmov 0  ;;  %vm13660_vm7 = vcmp.ge.s32.totalorder %v110_v8, %v114_v62  ;;  %17702 = vst [vmem:[#allocation39_spill] sm:$0xff] %v17701_v42 }
 0x39b   :  { %v11297_v47 = vpop.f32.mrf.mxu1  ;;  %v1590_v32 = vsel %vm1003_vm2, %v1580_v27, -inf  ;;  %v17692_v39 = vsel %vm13652_vm6, 4294967295, %v17691_v39 }
 0x39c   :  { %1594 = vmax.xlane.f32.xlu0 %v1593_v51  ;;  %1591 = vmax.xlane.f32.xlu1 %v1590_v32  ;;  %17693 = vst [vmem:[#allocation36_spill] sm:$0xff] %v17692_v39  ;;  %v17694_v51 = vmov 0  ;;  %v17697_v32 = vmov 0  ;;  %v1585_v8 = vsel %vm13668_vm8, %v11297_v47, -1e+30 }
 0x39d   :  { %v1564_v1 = vpop.f32.mrf.mxu1  ;;  %v17695_v51 = vsel %vm13660_vm7, 4294967295, %v17694_v51  ;;  %v17698_v32 = vsel %vm13668_vm8, 4294967295, %v17697_v32  ;;  %v1605_v38 = vsel %vm1003_vm2, %v1585_v8, -inf }
 0x39e   :  { %v1583_v15 = vsel %vm13652_vm6, %v1564_v1, -1e+30  ;;  %17696 = vst [vmem:[#allocation37_spill] sm:$0xff] %v17695_v51  ;;  %17699 = vst [vmem:[#allocation38_spill] sm:$0xff] %v17698_v32 }
 0x39f   :  { %v11298_v22 = vpop.f32.mrf.mxu1  ;;  %v1599_v1 = vsel %vm1003_vm2, %v1583_v15, -inf }
 0x3a0   :  { %1597 = vmax.xlane.f32.xlu0 %v1596_v14 }
 0x3a1   :  { %v1567_v63 = vpop.f32.mrf.mxu1 }
 0x3a2   :  { %v13666_v35 = vsel %vm13660_vm7, %v1567_v63, -1e+30  ;;  %v1586_v63 = vsel %vm13672_vm9, %v11298_v22, -1e+30 }
 0x3a3   :  { %v1602_v14 = vsel %vm1003_vm2, %v13666_v35, -inf  ;;  %v1608_v48 = vsel %vm1003_vm2, %v1586_v63, -inf }
 0x3a4   :  { %1600 = vmax.xlane.f32.xlu0 %v1599_v1  ;;  %1603 = vmax.xlane.f32.xlu1 %v1602_v14 }
 0x3a8   :  { %1606 = vmax.xlane.f32.xlu0 %v1605_v38  ;;  %1609 = vmax.xlane.f32.xlu1 %v1608_v48 }
 0x421   :  { %v1589_v62 = vpop.xlane.xlu0 %1588 }
 0x422   :  { %v1611_v18 = vsub.f32 %v1579_v2, %v1589_v62 }
 0x424   :  { %v1619_v37 = vmul.f32 1.442695, %v1611_v18 }
 0x425   :  { %v1592_v49 = vpop.xlane.xlu1 %1591  ;;  %v1595_v53 = vpop.xlane.xlu0 %1594 }
 0x426   :  { %v1613_v40 = vsub.f32 %v1581_v16, %v1595_v53  ;;  %v1612_v4 = vsub.f32 %v1580_v27, %v1592_v49 }
 0x428   :  { %v1623_v46 = vmul.f32 1.442695, %v1613_v40  ;;  %v1621_v22 = vmul.f32 1.442695, %v1612_v4 }
 0x429   :  { %v1598_v47 = vpop.xlane.xlu0 %1597 }
 0x42a   :  { %v1614_v9 = vsub.f32 %v1582_v0, %v1598_v47  ;;  %12302 = vpow2.f32 %v1623_v46 }
 0x42b   :  { %12304 = vpow2.f32 %v1619_v37 }
 0x42c   :  { %v1625_v1 = vmul.f32 1.442695, %v1614_v9 }
 0x42d   :  { %v1601_v14 = vpop.xlane.xlu0 %1600  ;;  %v1604_v16 = vpop.xlane.xlu1 %1603 }
 0x42e   :  { %12306 = vpow2.f32 %v1625_v1  ;;  %v1615_v13 = vsub.f32 %v1583_v15, %v1601_v14  ;;  %v11241_v14 = vpop.f32.mrf.mxu0 }
 0x42f   :  { %12308 = vpow2.f32 %v1621_v22 }
 0x430   :  { %v1627_v2 = vmul.f32 1.442695, %v1615_v13 }
 0x431   :  { %v1607_v38 = vpop.xlane.xlu0 %1606  ;;  %v1610_v27 = vpop.xlane.xlu1 %1609 }
 0x432   :  { %v1617_v48 = vsub.f32 %v1585_v8, %v1607_v38  ;;  %v1618_v0 = vsub.f32 %v1586_v63, %v1610_v27  ;;  %v1616_v8 = vsub.f32 %v13666_v35, %v1604_v16  ;;  %v964_v63 = vpop.f32.mrf.mxu0 }
 0x434   :  { %v1631_v11 = vmul.f32 1.442695, %v1617_v48  ;;  %v1633_v47 = vmul.f32 1.442695, %v1618_v0  ;;  %v1629_v22 = vmul.f32 1.442695, %v1616_v8 }
 0x436   :  { %12310 = vpow2.f32 %v1631_v11 }
 0x437   :  { %v13685_v62 = vpop.eup %12302  ;;  %12312 = vpow2.f32 %v1627_v2  ;;  %v11242_v2 = vpop.f32.mrf.mxu0 }
 0x438   :  { %v1641_v40 = vsel %vm1003_vm2, %v13685_v62, 0.0  ;;  %v13689_v53 = vpop.eup %12304  ;;  %12314 = vpow2.f32 %v1633_v47  ;;  %v13742_v16 = vsel %vm13641_vm5, %v11242_v2, -1e+30 }
 0x439   :  { %1642 = vadd.xlane.f32.xlu0 %v1641_v40  ;;  %v1635_v13 = vsel %vm1003_vm2, %v13689_v53, 0.0  ;;  %12316 = vpow2.f32 %v1629_v22  ;;  %v13730_v40 = vsel %vm13620_vm1, %v964_v63, -1e+30  ;;  %v1013_v0 = vsel %vm1003_vm2, %v13742_v16, -inf }
 0x43b   :  { %v13691_v9 = vpop.eup %12306 }
 0x43c   :  { %v1644_v46 = vsel %vm1003_vm2, %v13691_v9, 0.0  ;;  %v13695_v37 = vpop.eup %12308 }
 0x43d   :  { %1645 = vadd.xlane.f32.xlu1 %v1644_v46  ;;  %1636 = vadd.xlane.f32.xlu0 %v1635_v13  ;;  %v1638_v11 = vsel %vm1003_vm2, %v13695_v37, 0.0  ;;  %v967_v46 = vpop.f32.mrf.mxu0  ;;  %v1004_v13 = vsel %vm1003_vm2, %v13730_v40, -inf }
 0x43e   :  { %v13766_v63 = vsel %vm13635_vm4, %v967_v46, -1e+30 }
 0x43f   :  { %v1007_v2 = vsel %vm1003_vm2, %v13766_v63, -inf }
 0x441   :  { %1639 = vadd.xlane.f32.xlu1 %v1638_v11  ;;  %v13736_v11 = vsel %vm13627_vm3, %v11241_v14, -1e+30 }
 0x443   :  { %v13701_v4 = vpop.eup %12310 }
 0x444   :  { %v1653_v15 = vsel %vm1003_vm2, %v13701_v4, 0.0  ;;  %v13705_v49 = vpop.eup %12312 }
 0x445   :  { %1654 = vadd.xlane.f32.xlu0 %v1653_v15  ;;  %v1647_v18 = vsel %vm1003_vm2, %v13705_v49, 0.0  ;;  %v13720_v1 = vpop.eup %12314  ;;  %v11245_v15 = vpop.f32.mrf.mxu0 }
 0x446   :  { %v1656_v38 = vsel %vm1003_vm2, %v13720_v1, 0.0  ;;  %v13724_v48 = vpop.eup %12316  ;;  %v13756_v22 = vsel %vm13668_vm8, %v11245_v15, -1e+30 }
 0x447   :  { %v1650_v35 = vsel %vm1003_vm2, %v13724_v48, 0.0  ;;  %v980_v27 = vpop.f32.mrf.mxu0  ;;  %v1022_v14 = vsel %vm1003_vm2, %v13756_v22, -inf }
 0x448   :  { %v13748_v8 = vsel %vm13652_vm6, %v980_v27, -1e+30 }
 0x449   :  { %1648 = vadd.xlane.f32.xlu0 %v1647_v18  ;;  %v1010_v18 = vsel %vm1003_vm2, %v13736_v11, -inf  ;;  %v1016_v47 = vsel %vm1003_vm2, %v13748_v8, -inf }
 0x452   :  { %1853 = vrot.lane.b32.xlu1 %v13514_v26, %s13018_s25 }
 0x456   :  { %1851 = vrot.lane.b32.xlu1 %v13526_v12, %s13018_s25 }
 0x45f   :  { %1855 = vrot.lane.b32.xlu0 %v13512_v24, %s13018_s25 }
 0x463   :  { %1837 = vrot.lane.b32.xlu0 %v13467_v23, %s13018_s25 }
 0x467   :  { %1841 = vrot.lane.b32.xlu0 %v13545_v58, %s13018_s25 }
 0x47a   :  { %1657 = vadd.xlane.f32.xlu1 %v1656_v38  ;;  %v11246_v38 = vpop.f32.mrf.mxu0 }
 0x47e   :  { %1651 = vadd.xlane.f32.xlu1 %v1650_v35  ;;  %v983_v35 = vpop.f32.mrf.mxu0 }
 0x486   :  { %1005 = vmax.xlane.f32.xlu0 %v1004_v13  ;;  %v13772_v13 = vsel %vm13660_vm7, %v983_v35, -1e+30 }
 0x487   :  { %v1019_v15 = vsel %vm1003_vm2, %v13772_v13, -inf }
 0x48a   :  { %1011 = vmax.xlane.f32.xlu0 %v1010_v18  ;;  %v13778_v18 = vsel %vm13672_vm9, %v11246_v38, -1e+30 }
 0x48b   :  { %v1025_v46 = vsel %vm1003_vm2, %v13778_v18, -inf }
 0x48e   :  { %1014 = vmax.xlane.f32.xlu0 %v1013_v0 }
 0x48f   :  { %1849 = vrot.lane.b32.xlu1 %v13535_v33, %s13018_s25 }
 0x492   :  { %1017 = vmax.xlane.f32.xlu0 %v1016_v47 }
 0x493   :  { %1839 = vrot.lane.b32.xlu1 %v13543_v41, %s13018_s25 }
 0x496   :  { %1023 = vmax.xlane.f32.xlu0 %v1022_v14 }
 0x497   :  { %1843 = vrot.lane.b32.xlu1 %v13551_v50, %s13018_s25 }
 0x4bb   :  { %1008 = vmax.xlane.f32.xlu1 %v1007_v2 }
 0x4bf   :  { %1020 = vmax.xlane.f32.xlu1 %v1019_v15 }
 0x4c2   :  { %v1643_v27 = vpop.xlane.xlu0 %1642 }
 0x4c3   :  { %1026 = vmax.xlane.f32.xlu1 %v1025_v46 }
 0x4c6   :  { %v1646_v0 = vpop.xlane.xlu1 %1645  ;;  %v1637_v47 = vpop.xlane.xlu0 %1636 }
 0x4c7   :  { %12318 = vrcp.f32 %v1646_v0 }
 0x4c8   :  { %12320 = vrcp.f32 %v1637_v47 }
 0x4c9   :  { %12322 = vrcp.f32 %v1643_v27 }
 0x4ca   :  { %v1640_v14 = vpop.xlane.xlu1 %1639 }
 0x4cb   :  { %12324 = vrcp.f32 %v1640_v14 }
 0x4ce   :  { %v1655_v35 = vpop.xlane.xlu0 %1654  ;;  %v1854_v61 = vpop.permute.xlu1 %1853 }
 0x4d2   :  { %v1649_v2 = vpop.xlane.xlu0 %1648 }
 0x4d4   :  { %v12319_v50 = vpop.eup %12318 }
 0x4d5   :  { %v12321_v41 = vpop.eup %12320  ;;  %v1670_v15 = vmul.f32 %v12319_v50, %v13691_v9  ;;  %v1876_v50 = vsel %vm760_vm0, %v1854_v61, 0  ;;  %v1852_v9 = vpop.permute.xlu1 %1851 }
 0x4d6   :  { %v12323_v58 = vpop.eup %12322  ;;  %v1856_v38 = vpop.permute.xlu0 %1855  ;;  %v1667_v46 = vmul.f32 %v12321_v41, %v13689_v53 }
 0x4d7   :  { %11959 = vmatprep.subr.msk.bf16.mxu0 %vm760_vm0, %v1856_v38  ;;  %v1669_v0 = vmul.f32 %v12323_v58, %v13685_v62  ;;  %v1879_v14 = vsel %vm760_vm0, %v1856_v38, 0 }
 0x4d8   :  { %v12325_v33 = vpop.eup %12324 }
 0x4d9   :  { %v1668_v23 = vmul.f32 %v12325_v33, %v13695_v37  ;;  %v1676_v47 = vpack.c.bf16 %v1670_v15, %v1669_v0  ;;  %v1873_v33 = vsel %vm760_vm0, %v1852_v9, 0 }
 0x4db   :  { %v1675_v27 = vpack.c.bf16 %v1668_v23, %v1667_v46 }
 0x4dd   :  { %11307 = vmatprep.mubr.msk.bf16.mxu0 %vm1003_vm2, %v1675_v27 }
 0x4de   :  { %11308 = vmatmul.mubr.msk.bf16.vlgmr.msra.gmra.mxu0 %vm1003_vm2, %v1676_v47  ;;  %v1838_v47 = vpop.permute.xlu0 %1837 }
 0x4df   :  { %11332 = vmatpush3.bf16.xpose.msra.mxu0 %v1879_v14 }
 0x4e0   :  { %11960 = vmatprep.subr.msk.bf16.mxu0 %vm760_vm0, %v1854_v61 }
 0x4e7   :  { %11334 = vmatpush3.bf16.xpose.msra.mxu0 %v1876_v50  ;;  %v1842_v50 = vpop.permute.xlu0 %1841 }
 0x4e8   :  { %11961 = vmatprep.subr.msk.bf16.mxu0 %vm760_vm0, %v1852_v9 }
 0x4ef   :  { %11336 = vmatpush3.bf16.xpose.msra.mxu0 %v1873_v33 }
 0x503   :  { %v1658_v23 = vpop.xlane.xlu1 %1657 }
 0x504   :  { %12326 = vrcp.f32 %v1658_v23 }
 0x505   :  { %12328 = vrcp.f32 %v1649_v2 }
 0x506   :  { %12330 = vrcp.f32 %v1655_v35 }
 0x507   :  { %v1652_v41 = vpop.xlane.xlu1 %1651 }
 0x508   :  { %12332 = vrcp.f32 %v1652_v41 }
 0x50b   :  { %v1850_v58 = vpop.permute.xlu1 %1849 }
 0x50c   :  { %11962 = vmatprep.subr.msk.bf16.mxu0 %vm760_vm0, %v1850_v58  ;;  %v1870_v62 = vsel %vm760_vm0, %v1850_v58, 0 }
 0x50d   :  { %11338 = vmatpush3.bf16.xpose.msra.mxu0 %v1870_v62 }
 0x50f   :  { %v1840_v14 = vpop.permute.xlu1 %1839  ;;  %v1006_v41 = vpop.xlane.xlu0 %1005 }
 0x511   :  { %v12327_v61 = vpop.eup %12326 }
 0x512   :  { %v12329_v53 = vpop.eup %12328  ;;  %v1674_v15 = vmul.f32 %v12327_v61, %v13720_v1 }
 0x513   :  { %v12331_v37 = vpop.eup %12330  ;;  %v1671_v46 = vmul.f32 %v12329_v53, %v13705_v49  ;;  %v1844_v49 = vpop.permute.xlu1 %1843 }
 0x514   :  { %v1673_v35 = vmul.f32 %v12331_v37, %v13701_v4  ;;  %v1012_v53 = vpop.xlane.xlu0 %1011 }
 0x515   :  { %v12333_v38 = vpop.eup %12332 }
 0x516   :  { %v1672_v0 = vmul.f32 %v12333_v38, %v13724_v48  ;;  %v1678_v27 = vpack.c.bf16 %v1674_v15, %v1673_v35 }
 0x518   :  { %v1677_v2 = vpack.c.bf16 %v1672_v0, %v1671_v46 }
 0x51a   :  { %11311 = vmatprep.mubr.msk.bf16.mxu0 %vm1003_vm2, %v1677_v2 }
 0x51b   :  { %11312 = vmatmul.mubr.msk.bf16.gmra.mxu0 %vm1003_vm2, %v1678_v27  ;;  %v1015_v27 = vpop.xlane.xlu0 %1014 }
 0x51c   :  { %11339 = vmatprep.mubr.msk.bf16.mxu0 %vm760_vm0, %v1838_v47 }
 0x523   :  { %11340 = vmatmul.mubr.msk.bf16.vlgmr.msra.gmra.mxu0 %vm760_vm0, %v1840_v14 }
 0x524   :  { %11343 = vmatprep.mubr.msk.bf16.mxu0 %vm760_vm0, %v1842_v50 }
 0x52b   :  { %11344 = vmatmul.mubr.msk.bf16.gmra.mxu0 %vm760_vm0, %v1844_v49 }
 0x59e   :  { %v13806_v1 = vpop.f32.mrf.mxu0 }
 0x59f   :  { %17703 = vst [vmem:[#allocation40_spill] sm:$0xff] %v13806_v1 }
 0x5a0   :  { %v13808_v4 = vpop.f32.mrf.mxu0 }
 0x5a1   :  { %17704 = vst [vmem:[#allocation41_spill] sm:$0xff] %v13808_v4 }
 0x5a2   :  { %v13810_v48 = vpop.f32.mrf.mxu0 }
 0x5a3   :  { %17705 = vst [vmem:[#allocation42_spill] sm:$0xff] %v13810_v48 }
 0x5a4   :  { %v13812_v9 = vpop.f32.mrf.mxu0 }
 0x5a5   :  { %17706 = vst [vmem:[#allocation43_spill] sm:$0xff] %v13812_v9 }
 0x5db   :  { %v13814_v33 = vpop.f32.mrf.mxu0 }
 0x5dc   :  { %17707 = vst [vmem:[#allocation44_spill] sm:$0xff] %v13814_v33 }
 0x5dd   :  { %v13816_v23 = vpop.f32.mrf.mxu0 }
 0x5de   :  { %17708 = vst [vmem:[#allocation45_spill] sm:$0xff] %v13816_v23 }
 0x5df   :  { %v13818_v58 = vpop.f32.mrf.mxu0 }
 0x5e0   :  { %17709 = vst [vmem:[#allocation46_spill] sm:$0xff] %v13818_v58  ;;  %v1009_v58 = vpop.xlane.xlu1 %1008 }
 0x5e1   :  { %v13820_v62 = vpop.f32.mrf.mxu0  ;;  %v1029_v33 = vsub.f32 %v13766_v63, %v1009_v58  ;;  %v1031_v63 = vsub.f32 %v13742_v16, %v1015_v27 }
 0x5e2   :  { %17710 = vst [vmem:[#allocation47_spill] sm:$0xff] %v13820_v62 }
 0x5e3   :  { %v11341_v61 = vpop.f32.mrf.mxu0 }
 0x5e4   :  { %v13830_v0 = vsel %vm13627_vm3, %v11341_v61, -1e+30  ;;  %v1021_v58 = vpop.xlane.xlu1 %1020 }
 0x5e5   :  { %v1915_v37 = vpop.f32.mrf.mxu0  ;;  %v1960_v14 = vsel %vm1003_vm2, %v13830_v0, -inf }
 0x5e6   :  { %v13824_v38 = vsel %vm13620_vm1, %v1915_v37, -1e+30 }
 0x5e7   :  { %v11342_v15 = vpop.f32.mrf.mxu0  ;;  %v1954_v46 = vsel %vm1003_vm2, %v13824_v38, -inf }
 0x5e8   :  { %1955 = vmax.xlane.f32.xlu0 %v1954_v46  ;;  %v13842_v49 = vsel %vm13641_vm5, %v11342_v15, -1e+30  ;;  %v1028_v46 = vsub.f32 %v13730_v40, %v1006_v41  ;;  %v13860_v40 = vsel %vm13620_vm1, %v13589_v54, -1e+30  ;;  %v1030_v41 = vsub.f32 %v13736_v11, %v1012_v53 }
 0x5e9   :  { %v1918_v35 = vpop.f32.mrf.mxu0  ;;  %v1963_v62 = vsel %vm1003_vm2, %v13842_v49, -inf  ;;  %v13879_v54 = vsel %vm13627_vm3, %v13587_v30, -1e+30  ;;  %v1209_v53 = vsel %vm1003_vm2, %v13860_v40, -inf  ;;  %v13890_v30 = vsel %vm13635_vm4, %v13593_v56, -1e+30 }
 0x5ea   :  { %v13834_v2 = vsel %vm13635_vm4, %v1918_v35, -1e+30  ;;  %v1036_v23 = vmul.f32 1.442695, %v1028_v46  ;;  %v1040_v11 = vmul.f32 1.442695, %v1030_v41 }
 0x5eb   :  { %v11345_v47 = vpop.f32.mrf.mxu0  ;;  %v1957_v50 = vsel %vm1003_vm2, %v13834_v2, -inf  ;;  %v1215_v16 = vsel %vm1003_vm2, %v13879_v54, -inf  ;;  %v1212_v56 = vsel %vm1003_vm2, %v13890_v30, -inf  ;;  %v13906_v41 = vsel %vm13652_vm6, %v13597_v19, -1e+30 }
 0x5ec   :  { %1961 = vmax.xlane.f32.xlu0 %v1960_v14  ;;  %1958 = vmax.xlane.f32.xlu1 %v1957_v50  ;;  %v13855_v15 = vsel %vm13668_vm8, %v11345_v47, -1e+30  ;;  %v1018_v14 = vpop.xlane.xlu0 %1017  ;;  %12334 = vpow2.f32 %v1036_v23  ;;  %v13897_v23 = vsel %vm13641_vm5, %v13591_v55, -1e+30  ;;  %v13916_v19 = vsel %vm13668_vm8, %v13595_v59, -1e+30 }
 0x5ed   :  { %v1931_v61 = vpop.f32.mrf.mxu0  ;;  %v1032_v46 = vsub.f32 %v13748_v8, %v1018_v14  ;;  %12336 = vpow2.f32 %v1040_v11  ;;  %v1042_v8 = vmul.f32 1.442695, %v1031_v63  ;;  %v1033_v14 = vsub.f32 %v13772_v13, %v1021_v58 }
 0x5ee   :  { %v13846_v37 = vsel %vm13652_vm6, %v1931_v61, -1e+30  ;;  %v1221_v63 = vsel %vm1003_vm2, %v13906_v41, -inf  ;;  %v13921_v58 = vsel %vm13660_vm7, %v13601_v29, -1e+30 }
 0x5ef   :  { %v11346_v35 = vpop.f32.mrf.mxu0  ;;  %v1966_v9 = vsel %vm1003_vm2, %v13846_v37, -inf  ;;  %v1044_v27 = vmul.f32 1.442695, %v1032_v46  ;;  %v1046_v11 = vmul.f32 1.442695, %v1033_v14  ;;  %v1224_v46 = vsel %vm1003_vm2, %v13921_v58, -inf }
 0x5f0   :  { %1964 = vmax.xlane.f32.xlu1 %v1963_v62  ;;  %1967 = vmax.xlane.f32.xlu0 %v1966_v9  ;;  %v1972_v62 = vsel %vm1003_vm2, %v13855_v15, -inf  ;;  %v13874_v47 = vsel %vm13672_vm9, %v11346_v35, -1e+30  ;;  %v1038_v35 = vmul.f32 1.442695, %v1029_v33 }
 0x5f1   :  { %v1934_v50 = vpop.f32.mrf.mxu0  ;;  %v13932_v59 = vsel %vm13672_vm9, %v13599_v60, -1e+30 }
 0x5f2   :  { %v13865_v61 = vsel %vm13660_vm7, %v1934_v50, -1e+30  ;;  %v1024_v50 = vpop.xlane.xlu0 %1023  ;;  %12338 = vpow2.f32 %v1038_v35  ;;  %v1230_v35 = vsel %vm1003_vm2, %v13932_v59, -inf }
 0x5f3   :  { %v1969_v9 = vsel %vm1003_vm2, %v13865_v61, -inf  ;;  %v1034_v33 = vsub.f32 %v13756_v22, %v1024_v50  ;;  %12340 = vpow2.f32 %v1042_v8  ;;  %v1218_v22 = vsel %vm1003_vm2, %v13897_v23, -inf }
 0x5f4   :  { %1973 = vmax.xlane.f32.xlu0 %v1972_v62  ;;  %1970 = vmax.xlane.f32.xlu1 %v1969_v9  ;;  %v1975_v62 = vsel %vm1003_vm2, %v13874_v47, -inf  ;;  %v1027_v9 = vpop.xlane.xlu1 %1026  ;;  %12342 = vpow2.f32 %v1044_v27 }
 0x5f5   :  { %v1048_v55 = vmul.f32 1.442695, %v1034_v33  ;;  %v1035_v13 = vsub.f32 %v13778_v18, %v1027_v9  ;;  %v1227_v18 = vsel %vm1003_vm2, %v13916_v19, -inf }
 0x5f7   :  { %12344 = vpow2.f32 %v1048_v55 }
 0x5f8   :  { %1210 = vmax.xlane.f32.xlu0 %v1209_v53  ;;  %1976 = vmax.xlane.f32.xlu1 %v1975_v62  ;;  %12346 = vpow2.f32 %v1046_v11  ;;  %v1050_v53 = vmul.f32 1.442695, %v1035_v13 }
 0x5f9   :  { %v13927_v50 = vpop.eup %12334 }
 0x5fa   :  { %v13934_v29 = vpop.eup %12336  ;;  %12348 = vpow2.f32 %v1050_v53  ;;  %v1052_v62 = vsel %vm1003_vm2, %v13927_v50, 0.0 }
 0x5fb   :  { %v1058_v33 = vsel %vm1003_vm2, %v13934_v29, 0.0 }
 0x5fc   :  { %1216 = vmax.xlane.f32.xlu0 %v1215_v16  ;;  %1213 = vmax.xlane.f32.xlu1 %v1212_v56 }
 0x5ff   :  { %v13940_v16 = vpop.eup %12338 }
 0x600   :  { %1222 = vmax.xlane.f32.xlu0 %v1221_v63  ;;  %1219 = vmax.xlane.f32.xlu1 %v1218_v22  ;;  %v13942_v8 = vpop.eup %12340  ;;  %v1055_v60 = vsel %vm1003_vm2, %v13940_v16, 0.0 }
 0x601   :  { %v13948_v27 = vpop.eup %12342  ;;  %v1061_v56 = vsel %vm1003_vm2, %v13942_v8, 0.0 }
 0x602   :  { %v1064_v9 = vsel %vm1003_vm2, %v13948_v27, 0.0 }
 0x604   :  { %1228 = vmax.xlane.f32.xlu0 %v1227_v18  ;;  %1225 = vmax.xlane.f32.xlu1 %v1224_v46  ;;  %v13950_v14 = vpop.eup %12344 }
 0x605   :  { %v13956_v55 = vpop.eup %12346  ;;  %v1070_v11 = vsel %vm1003_vm2, %v13950_v14, 0.0 }
 0x606   :  { %v1067_v22 = vsel %vm1003_vm2, %v13956_v55, 0.0 }
 0x607   :  { %v13962_v13 = vpop.eup %12348 }
 0x608   :  { %1231 = vmax.xlane.f32.xlu1 %v1230_v35  ;;  %1053 = vadd.xlane.f32.xlu0 %v1052_v62  ;;  %v1073_v63 = vsel %vm1003_vm2, %v13962_v13, 0.0 }
 0x60c   :  { %1056 = vadd.xlane.f32.xlu1 %v1055_v60  ;;  %1059 = vadd.xlane.f32.xlu0 %v1058_v33 }
 0x610   :  { %1062 = vadd.xlane.f32.xlu1 %v1061_v56  ;;  %1065 = vadd.xlane.f32.xlu0 %v1064_v9 }
 0x614   :  { %1068 = vadd.xlane.f32.xlu1 %v1067_v22  ;;  %1071 = vadd.xlane.f32.xlu0 %v1070_v11 }
 0x618   :  { %1074 = vadd.xlane.f32.xlu1 %v1073_v63 }
 0x671   :  { %v1956_v53 = vpop.xlane.xlu0 %1955 }
 0x672   :  { %v1978_v25 = vsub.f32 %v13824_v38, %v1956_v53 }
 0x675   :  { %v1959_v18 = vpop.xlane.xlu1 %1958  ;;  %v1962_v46 = vpop.xlane.xlu0 %1961 }
 0x676   :  { %v1980_v22 = vsub.f32 %v13830_v0, %v1962_v46  ;;  %v1979_v39 = vsub.f32 %v13834_v2, %v1959_v18 }
 0x678   :  { %v1988_v0 = vmul.f32 1.442695, %v1979_v39 }
 0x679   :  { %v1965_v35 = vpop.xlane.xlu1 %1964  ;;  %v1968_v62 = vpop.xlane.xlu0 %1967 }
 0x67a   :  { %v1981_v4 = vsub.f32 %v13842_v49, %v1965_v35 }
 0x67c   :  { %v1992_v32 = vmul.f32 1.442695, %v1981_v4 }
 0x67d   :  { %v1971_v60 = vpop.xlane.xlu1 %1970  ;;  %v1974_v33 = vpop.xlane.xlu0 %1973 }
 0x67e   :  { %v1983_v4 = vsub.f32 %v13865_v61, %v1971_v60 }
 0x681   :  { %v1977_v56 = vpop.xlane.xlu1 %1976  ;;  %v1211_v9 = vpop.xlane.xlu0 %1210 }
 0x682   :  { %v1233_v48 = vsub.f32 %v13860_v40, %v1211_v9  ;;  %v1990_v40 = vmul.f32 1.442695, %v1980_v22 }
 0x684   :  { %v1241_v1 = vmul.f32 1.442695, %v1233_v48  ;;  %v1984_v48 = vsub.f32 %v13855_v15, %v1974_v33  ;;  %v1996_v15 = vmul.f32 1.442695, %v1983_v4 }
 0x685   :  { %v1214_v11 = vpop.xlane.xlu1 %1213  ;;  %v1217_v51 = vpop.xlane.xlu0 %1216 }
 0x686   :  { %v1234_v63 = vsub.f32 %v13890_v30, %v1214_v11  ;;  %v1235_v42 = vsub.f32 %v13879_v54, %v1217_v51  ;;  %12350 = vpow2.f32 %v1241_v1  ;;  %v1985_v30 = vsub.f32 %v13874_v47, %v1977_v56 }
 0x687   :  { %v1986_v51 = vmul.f32 1.442695, %v1978_v25  ;;  %v1982_v54 = vsub.f32 %v13846_v37, %v1968_v62 }
 0x688   :  { %v1243_v17 = vmul.f32 1.442695, %v1234_v63  ;;  %v1245_v28 = vmul.f32 1.442695, %v1235_v42  ;;  %v1998_v42 = vmul.f32 1.442695, %v1984_v48 }
 0x689   :  { %v1220_v9 = vpop.xlane.xlu1 %1219  ;;  %v1223_v49 = vpop.xlane.xlu0 %1222  ;;  %v2000_v38 = vmul.f32 1.442695, %v1985_v30  ;;  %v1994_v25 = vmul.f32 1.442695, %v1982_v54 }
 0x68a   :  { %12352 = vpow2.f32 %v1243_v17 }
 0x68b   :  { %12354 = vpow2.f32 %v1245_v28  ;;  %v1236_v28 = vsub.f32 %v13897_v23, %v1220_v9 }
 0x68c   :  { %12356 = vpow2.f32 %v1992_v32  ;;  %v1237_v32 = vsub.f32 %v13906_v41, %v1223_v49 }
 0x68d   :  { %12358 = vpow2.f32 %v1990_v40  ;;  %v1226_v1 = vpop.xlane.xlu1 %1225  ;;  %v1229_v2 = vpop.xlane.xlu0 %1228  ;;  %v1247_v46 = vmul.f32 1.442695, %v1236_v28 }
 0x68e   :  { %12360 = vpow2.f32 %v1988_v0  ;;  %v1238_v35 = vsub.f32 %v13921_v58, %v1226_v1  ;;  %v1249_v60 = vmul.f32 1.442695, %v1237_v32  ;;  %v1239_v33 = vsub.f32 %v13916_v19, %v1229_v2 }
 0x68f   :  { %12362 = vpow2.f32 %v1986_v51 }
 0x690   :  { %12364 = vpow2.f32 %v1998_v42  ;;  %v1251_v63 = vmul.f32 1.442695, %v1238_v35  ;;  %v1253_v19 = vmul.f32 1.442695, %v1239_v33 }
 0x691   :  { %v1232_v17 = vpop.xlane.xlu1 %1231  ;;  %v1054_v53 = vpop.xlane.xlu0 %1053  ;;  %12366 = vpow2.f32 %v2000_v38 }
 0x692   :  { %12368 = vrcp.f32 %v1054_v53  ;;  %v1240_v40 = vsub.f32 %v13932_v59, %v1232_v17 }
 0x693   :  { %v13978_v39 = vpop.eup %12350  ;;  %12370 = vpow2.f32 %v1996_v15 }
 0x694   :  { %v1257_v47 = vsel %vm1003_vm2, %v13978_v39, 0.0  ;;  %v1255_v1 = vmul.f32 1.442695, %v1240_v40 }
 0x695   :  { %v1057_v61 = vpop.xlane.xlu1 %1056  ;;  %v1060_v18 = vpop.xlane.xlu0 %1059  ;;  %1258 = vadd.xlane.f32.xlu0 %v1257_v47 }
 0x696   :  { %12372 = vrcp.f32 %v1057_v61 }
 0x697   :  { %v13983_v37 = vpop.eup %12352  ;;  %12374 = vrcp.f32 %v1060_v18 }
 0x698   :  { %v13986_v23 = vpop.eup %12354  ;;  %v1260_v41 = vsel %vm1003_vm2, %v13983_v37, 0.0  ;;  %12376 = vpow2.f32 %v1994_v25 }
 0x699   :  { %v13990_v62 = vpop.eup %12356  ;;  %1261 = vadd.xlane.f32.xlu1 %v1260_v41  ;;  %v1063_v56 = vpop.xlane.xlu1 %1062  ;;  %v1263_v22 = vsel %vm1003_vm2, %v13986_v23, 0.0 }
 0x69a   :  { %v1066_v11 = vpop.xlane.xlu0 %1065  ;;  %v13995_v58 = vpop.eup %12358  ;;  %12378 = vrcp.f32 %v1063_v56  ;;  %1264 = vadd.xlane.f32.xlu0 %v1263_v22  ;;  %v2011_v9 = vsel %vm1003_vm2, %v13990_v62, 0.0 }
 0x69b   :  { %12380 = vpow2.f32 %v1247_v46  ;;  %v14000_v49 = vpop.eup %12360  ;;  %v2008_v0 = vsel %vm1003_vm2, %v13995_v58, 0.0 }
 0x69c   :  { %12382 = vrcp.f32 %v1066_v11  ;;  %v14004_v51 = vpop.eup %12362  ;;  %v2005_v2 = vsel %vm1003_vm2, %v14000_v49, 0.0 }
 0x69d   :  { %12384 = vpow2.f32 %v1249_v60  ;;  %2012 = vadd.xlane.f32.xlu1 %v2011_v9  ;;  %v1069_v48 = vpop.xlane.xlu1 %1068  ;;  %v14006_v59 = vpop.eup %12364  ;;  %v2002_v38 = vsel %vm1003_vm2, %v14004_v51, 0.0 }
 0x69e   :  { %v1072_v30 = vpop.xlane.xlu0 %1071  ;;  %12386 = vrcp.f32 %v1069_v48  ;;  %2009 = vadd.xlane.f32.xlu0 %v2008_v0  ;;  %v14010_v4 = vpop.eup %12366  ;;  %v2020_v25 = vsel %vm1003_vm2, %v14006_v59, 0.0 }
 0x69f   :  { %12388 = vpow2.f32 %v1251_v63  ;;  %v12369_v54 = vpop.eup %12368  ;;  %v2023_v15 = vsel %vm1003_vm2, %v14010_v4, 0.0 }
 0x6a0   :  { %12390 = vrcp.f32 %v1072_v30  ;;  %v14014_v17 = vpop.eup %12370  ;;  %v1084_v32 = vmul.f32 %v12369_v54, %v13927_v50  ;;  %v17715_v54 = vld [vmem:[#allocation23_spill] sm:$0xff] }
 0x6a1   :  { %12392 = vpow2.f32 %v1253_v19  ;;  %2006 = vadd.xlane.f32.xlu1 %v2005_v2  ;;  %v1075_v42 = vpop.xlane.xlu1 %1074  ;;  %v2017_v33 = vsel %vm1003_vm2, %v14014_v17, 0.0 }
 0x6a2   :  { %12394 = vrcp.f32 %v1075_v42  ;;  %2003 = vadd.xlane.f32.xlu0 %v2002_v38  ;;  %v1462_v42 = vpack.c.bf16 %v13607_v21, %v13603_v10  ;;  %v17711_v10 = vld [vmem:[#allocation21_spill] sm:$0xff]  ;;  %v17713_v21 = vld [vmem:[#allocation22_spill] sm:$0xff]  ;;  %v17714_v38 = vld [vmem:[#allocation24_spill] sm:$0xff] }
 0x6a3   :  { %v12373_v53 = vpop.eup %12372  ;;  %12396 = vpow2.f32 %v1255_v1 }
 0x6a4   :  { %v12375_v28 = vpop.eup %12374  ;;  %v1085_v61 = vmul.f32 %v12373_v53, %v13940_v16  ;;  %v12059_v53 = vld [vmem:[#allocation2 + $0x20] sm:$0xff]  }
 0x6a5   :  { %2024 = vadd.xlane.f32.xlu1 %v2023_v15  ;;  %v14022_v47 = vpop.eup %12376  ;;  %v1086_v41 = vmul.f32 %v12375_v28, %v13934_v29  ;;  %v1464_v29 = vpack.c.bf16 %v13616_v45, %v13609_v34  ;;  %v17716_v15 = vld [vmem:[#allocation13_spill] sm:$0xff] }
 0x6a6   :  { %2021 = vadd.xlane.f32.xlu0 %v2020_v25  ;;  %v1092_v46 = vpack.c.bf16 %v1085_v61, %v1084_v32  ;;  %v2014_v50 = vsel %vm1003_vm2, %v14022_v47, 0.0  ;;  %v17717_v28 = vld [vmem:[#allocation25_spill] sm:$0xff]  ;;  %v17718_v25 = vld [vmem:[#allocation15_spill] sm:$0xff]  ;;  %v17719_v32 = vld [vmem:[#allocation12_spill] sm:$0xff] }
 0x6a7   :  { %v12379_v18 = vpop.eup %12378  ;;  %v17720_v61 = vld [vmem:[#allocation16_spill] sm:$0xff] }
 0x6a8   :  { %v14024_v35 = vpop.eup %12380  ;;  %v1087_v60 = vmul.f32 %v12379_v18, %v13942_v8  ;;  %11323 = vmatprep.mubr.msk.bf16.mxu1 %vm1003_vm2, %v1092_v46  ;;  %v17721_v18 = vld [vmem:[#allocation14_spill] sm:$0xff]  ;;  %v17722_v46 = vld [vmem:[#allocation19_spill] sm:$0xff] }
 0x6a9   :  { %v12383_v56 = vpop.eup %12382  ;;  %2018 = vadd.xlane.f32.xlu1 %v2017_v33  ;;  %v1266_v8 = vsel %vm1003_vm2, %v14024_v35, 0.0 }
 0x6aa   :  { %v14033_v16 = vpop.eup %12384  ;;  %2015 = vadd.xlane.f32.xlu0 %v2014_v50  ;;  %v1093_v22 = vpack.c.bf16 %v1087_v60, %v1086_v41  ;;  %v1088_v40 = vmul.f32 %v12383_v56, %v13948_v27  ;;  %v17723_v41 = vld [vmem:[#allocation17_spill] sm:$0xff]  ;;  %v17724_v60 = vld [vmem:[#allocation18_spill] sm:$0xff] }
 0x6ab   :  { %v12387_v11 = vpop.eup %12386  ;;  %v1269_v48 = vsel %vm1003_vm2, %v14033_v16, 0.0 }
 0x6ac   :  { %v14035_v63 = vpop.eup %12388  ;;  %11324 = vmatmul.mubr.msk.bf16.vlgmr.msra.gmra.mxu1 %vm1003_vm2, %v1093_v22  ;;  %v1089_v9 = vmul.f32 %v12387_v11, %v13956_v55 }
 0x6ad   :  { %v12391_v19 = vpop.eup %12390  ;;  %11348 = vmatpush3.bf16.msra.mxu1 %v13611_v57  ;;  %1267 = vadd.xlane.f32.xlu1 %v1266_v8  ;;  %v1272_v27 = vsel %vm1003_vm2, %v14035_v63, 0.0 }
 0x6ae   :  { %v14047_v0 = vpop.eup %12392  ;;  %1270 = vadd.xlane.f32.xlu0 %v1269_v48  ;;  %11349 = vmatprep.subr.bf16.mxu1 %v1464_v29  ;;  %v1094_v34 = vpack.c.bf16 %v1089_v9, %v1088_v40  ;;  %v1090_v55 = vmul.f32 %v12391_v19, %v13950_v14 }
 0x6af   :  { %v12395_v45 = vpop.eup %12394  ;;  %v1275_v1 = vsel %vm1003_vm2, %v14047_v0, 0.0 }
 0x6b0   :  { %11327 = vmatprep.mubr.msk.bf16.mxu1 %vm1003_vm2, %v1094_v34  ;;  %v1091_v30 = vmul.f32 %v12395_v45, %v13962_v13  ;;  %v14054_v57 = vpop.eup %12396  ;;  %v12058_v13 = vld [vmem:[#allocation2 + $0x28] sm:$0xff]  }
 0x6b1   :  { %11350 = vmatpush3.bf16.msra.mxu1 %v1464_v29  ;;  %1273 = vadd.xlane.f32.xlu1 %v1272_v27  ;;  %v1278_v14 = vsel %vm1003_vm2, %v14054_v57, 0.0 }
 0x6b2   :  { %1276 = vadd.xlane.f32.xlu0 %v1275_v1  ;;  %11351 = vmatprep.subr.bf16.mxu1 %v13605_v7  ;;  %v1095_v2 = vpack.c.bf16 %v1091_v30, %v1090_v55 }
 0x6b3   :  { %11379 = vmatprep.subr.bf16.mxu0 %v12058_v13 }
 0x6b4   :  { %11328 = vmatmul.mubr.msk.bf16.gmra.mxu1 %vm1003_vm2, %v1095_v2  ;;  %11380 = vmatpush3.bf16.msra.mxu0 %v12058_v13 }
 0x6b5   :  { %11352 = vmatpush3.bf16.msra.mxu1 %v13605_v7  ;;  %1279 = vadd.xlane.f32.xlu1 %v1278_v14  ;;  %v17712_v7 = vld [vmem:[#allocation20_spill] sm:$0xff]  ;;  %v17726_v14 = vld [vmem:[#allocation30_spill] sm:$0xff] }
 0x6b6   :  { %11353 = vmatprep.subr.bf16.mxu1 %v1462_v42  ;;  %11381 = vmatprep.subr.bf16.mxu0 %v12059_v53 }
 0x6b8   :  { %11382 = vmatpush3.bf16.msra.mxu0 %v12059_v53 }
 0x6b9   :  { %11354 = vmatpush3.bf16.msra.mxu1 %v1462_v42 }
 0x6ba   :  { %11363 = vmatprep.subr.bf16.mxu1 %v13583_v52 }
 0x6c6   :  { %2369 = vrot.lane.b32.xlu1 %v13443_v3, %s13014_s18 }
 0x6c8   :  { %2371 = vrot.lane.b32.xlu0 %v13437_v43, %s13014_s18 }
 0x6ca   :  { %2367 = vrot.lane.b32.xlu1 %v13441_v44, %s13014_s18 }
 0x6cc   :  { %2357 = vrot.lane.b32.xlu0 %v13397_v6, %s13014_s18 }
 0x6ce   :  { %2365 = vrot.lane.b32.xlu1 %v13489_v36, %s13014_s18 }
 0x6d0   :  { %2359 = vrot.lane.b32.xlu0 %v13501_v5, %s13014_s18 }
 0x6d2   :  { %2661 = vrot.lane.b32.xlu1 %v13512_v24, %s13014_s18 }
 0x6d4   :  { %2657 = vrot.lane.b32.xlu0 %v13526_v12, %s13014_s18 }
 0x6d6   :  { %2659 = vrot.lane.b32.xlu1 %v13514_v26, %s13014_s18 }
 0x6d8   :  { %2363 = vrot.lane.b32.xlu0 %v13508_v20, %s13014_s18 }
 0x6da   :  { %2361 = vrot.lane.b32.xlu1 %v17711_v10, %s13014_s18 }
 0x6dc   :  { %2647 = vrot.lane.b32.xlu0 %v17712_v7, %s13014_s18 }
 0x6de   :  { %2655 = vrot.lane.b32.xlu1 %v17713_v21, %s13014_s18 }
 0x6e0   :  { %2651 = vrot.lane.b32.xlu0 %v17714_v38, %s13014_s18 }
 0x6e2   :  { %2649 = vrot.lane.b32.xlu1 %v17715_v54, %s13014_s18 }
 0x6e4   :  { %2200 = vrot.lane.b32.xlu0 %v17716_v15, %s13014_s18 }
 0x6e6   :  { %2653 = vrot.lane.b32.xlu1 %v17717_v28, %s13014_s18 }
 0x6e8   :  { %2204 = vrot.lane.b32.xlu0 %v17718_v25, %s13014_s18 }
 0x6ea   :  { %2202 = vrot.lane.b32.xlu1 %v17719_v32, %s13014_s18 }
 0x6ec   :  { %2208 = vrot.lane.b32.xlu0 %v17720_v61, %s13014_s18 }
 0x6ee   :  { %2206 = vrot.lane.b32.xlu1 %v17721_v18, %s13014_s18 }
 0x6f0   :  { %2212 = vrot.lane.b32.xlu0 %v17722_v46, %s13014_s18 }
 0x6f2   :  { %2210 = vrot.lane.b32.xlu1 %v17723_v41, %s13014_s18 }
 0x6f4   :  { %3108 = vrot.lane.b32.xlu0 %v13437_v43, %s13019_s26 }
 0x6f6   :  { %2214 = vrot.lane.b32.xlu1 %v17724_v60, %s13014_s18 }
 0x6f8   :  { %3104 = vrot.lane.b32.xlu0 %v13441_v44, %s13019_s26 }
 0x6fa   :  { %3106 = vrot.lane.b32.xlu1 %v13443_v3, %s13019_s26 }
 0x6fc   :  { %3094 = vrot.lane.b32.xlu0 %v13397_v6, %s13019_s26 }
 0x6fe   :  { %3102 = vrot.lane.b32.xlu1 %v13489_v36, %s13019_s26 }
 0x700   :  { %3398 = vrot.lane.b32.xlu0 %v13512_v24, %s13019_s26 }
 0x702   :  { %3096 = vrot.lane.b32.xlu1 %v13501_v5, %s13019_s26 }
 0x704   :  { %3100 = vrot.lane.b32.xlu0 %v13508_v20, %s13019_s26 }
 0x706   :  { %3396 = vrot.lane.b32.xlu1 %v13514_v26, %s13019_s26 }
 0x70a   :  { %3098 = vrot.lane.b32.xlu1 %v17711_v10, %s13019_s26 }
 0x70e   :  { %3394 = vrot.lane.b32.xlu1 %v13526_v12, %s13019_s26 }
 0x712   :  { %3392 = vrot.lane.b32.xlu1 %v17713_v21, %s13019_s26 }
 0x716   :  { %3384 = vrot.lane.b32.xlu1 %v17712_v7, %s13019_s26 }
 0x71e   :  { %v1259_v6 = vpop.xlane.xlu0 %1258 }
 0x722   :  { %v1262_v43 = vpop.xlane.xlu1 %1261 }
 0x723   :  { %v1265_v44 = vpop.xlane.xlu0 %1264 }
 0x726   :  { %v2013_v3 = vpop.xlane.xlu1 %2012 }
 0x727   :  { %v2010_v36 = vpop.xlane.xlu0 %2009  ;;  %12398 = vrcp.f32 %v2013_v3 }
 0x728   :  { %12400 = vrcp.f32 %v2010_v36 }
 0x72a   :  { %v2007_v5 = vpop.xlane.xlu1 %2006 }
 0x72b   :  { %12402 = vrcp.f32 %v2007_v5  ;;  %v2004_v20 = vpop.xlane.xlu0 %2003  ;;  %v17727_v5 = vld [vmem:[#allocation27_spill] sm:$0xff] }
 0x72c   :  { %12404 = vrcp.f32 %v2004_v20 }
 0x72d   :  { %12406 = vrcp.f32 %v1259_v6 }
 0x72e   :  { %v2025_v24 = vpop.xlane.xlu1 %2024 }
 0x72f   :  { %v2022_v26 = vpop.xlane.xlu0 %2021  ;;  %12408 = vrcp.f32 %v2025_v24 }
 0x730   :  { %12410 = vrcp.f32 %v2022_v26  ;;  %v17728_v26 = vld [vmem:[#allocation26_spill] sm:$0xff] }
 0x731   :  { %12412 = vrcp.f32 %v1262_v43 }
 0x732   :  { %v2019_v12 = vpop.xlane.xlu1 %2018 }
 0x733   :  { %12414 = vrcp.f32 %v2019_v12  ;;  %v2016_v33 = vpop.xlane.xlu0 %2015  ;;  %v17729_v12 = vld [vmem:[#allocation28_spill] sm:$0xff] }
 0x734   :  { %12416 = vrcp.f32 %v2016_v33  ;;  %v12399_v56 = vpop.eup %12398 }
 0x735   :  { %v12401_v50 = vpop.eup %12400  ;;  %v2037_v40 = vmul.f32 %v12399_v56, %v13990_v62 }
 0x736   :  { %v1268_v22 = vpop.xlane.xlu1 %1267  ;;  %v2036_v9 = vmul.f32 %v12401_v50, %v13995_v58  ;;  %v17725_v58 = vld [vmem:[#allocation29_spill] sm:$0xff] }
 0x737   :  { %v1271_v11 = vpop.xlane.xlu0 %1270  ;;  %12418 = vrcp.f32 %v1268_v22  ;;  %v888_v10 = vpack.c.bf16 %v17726_v14, %v17725_v58 }
 0x738   :  { %v12403_v29 = vpop.eup %12402  ;;  %12420 = vrcp.f32 %v1265_v44  ;;  %v2043_v1 = vpack.c.bf16 %v2037_v40, %v2036_v9 }
 0x739   :  { %v12405_v8 = vpop.eup %12404  ;;  %v2035_v19 = vmul.f32 %v12403_v29, %v14000_v49 }
 0x73a   :  { %v1274_v48 = vpop.xlane.xlu1 %1273  ;;  %v2034_v34 = vmul.f32 %v12405_v8, %v14004_v51  ;;  %v12407_v27 = vpop.eup %12406 }
 0x73b   :  { %12422 = vrcp.f32 %v1274_v48  ;;  %v1277_v45 = vpop.xlane.xlu0 %1276 }
 0x73c   :  { %12424 = vrcp.f32 %v1271_v11  ;;  %v2042_v55 = vpack.c.bf16 %v2035_v19, %v2034_v34  ;;  %v12409_v30 = vpop.eup %12408 }
 0x73d   :  { %v12411_v2 = vpop.eup %12410  ;;  %v2041_v53 = vmul.f32 %v12409_v30, %v14010_v4 }
 0x73e   :  { %11355 = vmatprep.mubr.msk.bf16.mxu1 %vm1003_vm2, %v2042_v55  ;;  %v1280_v62 = vpop.xlane.xlu1 %1279  ;;  %v12413_v42 = vpop.eup %12412  ;;  %v2040_v13 = vmul.f32 %v12411_v2, %v14006_v59 }
 0x73f   :  { %11356 = vmatmul.mubr.msk.bf16.vlgmr.msra.gmra.mxu1 %vm1003_vm2, %v2043_v1  ;;  %v2372_v49 = vpop.permute.xlu0 %2371  ;;  %12426 = vrcp.f32 %v1280_v62  ;;  %v1290_v44 = vmul.f32 %v12413_v42, %v13983_v37 }
 0x740   :  { %v12415_v7 = vpop.eup %12414  ;;  %11364 = vmatpush3.bf16.msra.mxu1 %v13583_v52  ;;  %12428 = vrcp.f32 %v1277_v45  ;;  %v1289_v52 = vmul.f32 %v12407_v27, %v13978_v39  ;;  %v2045_v20 = vpack.c.bf16 %v2041_v53, %v2040_v13 }
 0x741   :  { %v12417_v51 = vpop.eup %12416  ;;  %11365 = vmatprep.subr.bf16.mxu1 %v888_v10  ;;  %v2039_v21 = vmul.f32 %v12415_v7, %v14014_v17 }
 0x742   :  { %v2370_v6 = vpop.permute.xlu1 %2369  ;;  %v2038_v43 = vmul.f32 %v12417_v51, %v14022_v47  ;;  %v1297_v17 = vpack.c.bf16 %v1290_v44, %v1289_v52  ;;  %v886_v47 = vpack.c.bf16 %v17729_v12, %v17728_v26 }
 0x743   :  { %v2358_v3 = vpop.permute.xlu0 %2357  ;;  %v2392_v1 = vsel %vm760_vm0, %v2370_v6, 0 }
 0x744   :  { %11366 = vmatpush3.bf16.msra.mxu1 %v888_v10  ;;  %v2044_v36 = vpack.c.bf16 %v2039_v21, %v2038_v43  ;;  %v12419_v24 = vpop.eup %12418 }
 0x745   :  { %11367 = vmatprep.subr.bf16.mxu1 %v17727_v5  ;;  %v12421_v4 = vpop.eup %12420  ;;  %v1292_v56 = vmul.f32 %v12419_v24, %v14024_v35  ;;  %v2395_v35 = vsel %vm760_vm0, %v2372_v49, 0 }
 0x746   :  { %11359 = vmatprep.mubr.msk.bf16.mxu1 %vm1003_vm2, %v2044_v36  ;;  %v2368_v59 = vpop.permute.xlu1 %2367  ;;  %v1291_v11 = vmul.f32 %v12421_v4, %v13986_v23 }
 0x747   :  { %11360 = vmatmul.mubr.msk.bf16.gmra.mxu1 %vm1003_vm2, %v2045_v20  ;;  %v2360_v37 = vpop.permute.xlu0 %2359  ;;  %v2389_v58 = vsel %vm760_vm0, %v2368_v59, 0 }
 0x748   :  { %v12423_v33 = vpop.eup %12422  ;;  %11368 = vmatpush3.bf16.msra.mxu1 %v17727_v5  ;;  %11371 = vmatprep.mubr.msk.bf16.mxu1 %vm1003_vm2, %v1297_v17  ;;  %v1298_v40 = vpack.c.bf16 %v1292_v56, %v1291_v11 }
 0x749   :  { %v12425_v39 = vpop.eup %12424  ;;  %11369 = vmatprep.subr.bf16.mxu1 %v886_v47  ;;  %v1294_v22 = vmul.f32 %v12423_v33, %v14035_v63 }
 0x74a   :  { %v2366_v50 = vpop.permute.xlu1 %2365  ;;  %v1293_v8 = vmul.f32 %v12425_v39, %v14033_v16 }
 0x74b   :  { %v2658_v29 = vpop.permute.xlu0 %2657 }
 0x74c   :  { %11370 = vmatpush3.bf16.msra.mxu1 %v886_v47  ;;  %v12427_v9 = vpop.eup %12426  ;;  %v1299_v48 = vpack.c.bf16 %v1294_v22, %v1293_v8  ;;  %v2679_v44 = vsel %vm760_vm0, %v2658_v29, 0 }
 0x74d   :  { %11963 = vmatprep.subr.msk.bf16.mxu1 %vm760_vm0, %v2372_v49  ;;  %v12429_v45 = vpop.eup %12428  ;;  %v1296_v23 = vmul.f32 %v12427_v9, %v14054_v57  ;;  %v2386_v49 = vsel %vm760_vm0, %v2366_v50, 0 }
 0x74e   :  { %v2662_v19 = vpop.permute.xlu1 %2661  ;;  %v1295_v27 = vmul.f32 %v12429_v45, %v14047_v0 }
 0x74f   :  { %11372 = vmatmul.mubr.msk.bf16.vlgmr.msra.gmra.mxu1 %vm1003_vm2, %v1298_v40  ;;  %v2364_v34 = vpop.permute.xlu0 %2363  ;;  %v2685_v51 = vsel %vm760_vm0, %v2662_v19, 0 }
 0x750   :  { %11400 = vmatpush3.bf16.xpose.msra.mxu1 %v2395_v35  ;;  %11375 = vmatprep.mubr.msk.bf16.mxu1 %vm1003_vm2, %v1299_v48  ;;  %v1300_v55 = vpack.c.bf16 %v1296_v23, %v1295_v27 }
 0x751   :  { %11964 = vmatprep.subr.msk.bf16.mxu1 %vm760_vm0, %v2370_v6 }
 0x752   :  { %v2660_v16 = vpop.permute.xlu1 %2659 }
 0x753   :  { %v2648_v63 = vpop.permute.xlu0 %2647  ;;  %v2682_v53 = vsel %vm760_vm0, %v2660_v16, 0 }
 0x756   :  { %v2362_v30 = vpop.permute.xlu1 %2361 }
 0x757   :  { %11376 = vmatmul.mubr.msk.bf16.gmra.mxu1 %vm1003_vm2, %v1300_v55  ;;  %v2652_v2 = vpop.permute.xlu0 %2651 }
 0x758   :  { %11402 = vmatpush3.bf16.xpose.msra.mxu1 %v2392_v1  ;;  %11407 = vmatprep.mubr.msk.bf16.mxu1 %vm760_vm0, %v2358_v3 }
 0x759   :  { %11965 = vmatprep.subr.msk.bf16.mxu1 %vm760_vm0, %v2368_v59 }
 0x75a   :  { %v2656_v62 = vpop.permute.xlu1 %2655 }
 0x75b   :  { %v2201_v42 = vpop.permute.xlu0 %2200  ;;  %v2676_v3 = vsel %vm760_vm0, %v2656_v62, 0 }
 0x75c   :  { %11383 = vmatprep.mubr.msk.bf16.mxu0 %vm760_vm0, %v2201_v42 }
 0x75e   :  { %v2650_v57 = vpop.permute.xlu1 %2649 }
 0x75f   :  { %v2205_v10 = vpop.permute.xlu0 %2204 }
 0x760   :  { %11404 = vmatpush3.bf16.xpose.msra.mxu1 %v2389_v58 }
 0x761   :  { %11966 = vmatprep.subr.msk.bf16.mxu1 %vm760_vm0, %v2366_v50 }
 0x762   :  { %v2654_v0 = vpop.permute.xlu1 %2653 }
 0x763   :  { %v2209_v21 = vpop.permute.xlu0 %2208 }
 0x766   :  { %v2203_v14 = vpop.permute.xlu1 %2202 }
 0x767   :  { %11384 = vmatmul.mubr.msk.bf16.vlgmr.msra.gmra.mxu0 %vm760_vm0, %v2203_v14  ;;  %v2213_v6 = vpop.permute.xlu0 %2212 }
 0x768   :  { %11406 = vmatpush3.bf16.xpose.msra.mxu1 %v2386_v49  ;;  %11387 = vmatprep.mubr.msk.bf16.mxu0 %vm760_vm0, %v2205_v10 }
 0x769   :  { %11967 = vmatprep.subr.msk.bf16.mxu1 %vm760_vm0, %v2662_v19 }
 0x76a   :  { %v2207_v7 = vpop.permute.xlu1 %2206 }
 0x76b   :  { %v3109_v36 = vpop.permute.xlu0 %3108 }
 0x76c   :  { %v3132_v5 = vsel %vm760_vm0, %v3109_v36, 0  ;;  %v14224_v9 = vpop.f32.mrf.mxu1 }
 0x76e   :  { %v2211_v13 = vpop.permute.xlu1 %2210  ;;  %v14226_v19 = vpop.f32.mrf.mxu1 }
 0x76f   :  { %11408 = vmatmul.mubr.msk.bf16.vlgmr.msra.gmra.mxu1 %vm760_vm0, %v2360_v37  ;;  %11388 = vmatmul.mubr.msk.bf16.gmra.mxu0 %vm760_vm0, %v2207_v7  ;;  %v3105_v20 = vpop.permute.xlu0 %3104 }
 0x770   :  { %11411 = vmatprep.mubr.msk.bf16.mxu1 %vm760_vm0, %v2362_v30  ;;  %11432 = vmatpush3.bf16.xpose.msra.mxu1 %v2685_v51  ;;  %v3126_v12 = vsel %vm760_vm0, %v3105_v20, 0  ;;  %v14228_v48 = vpop.f32.mrf.mxu1 }
 0x771   :  { %11968 = vmatprep.subr.msk.bf16.mxu1 %vm760_vm0, %v2660_v16  ;;  %11391 = vmatprep.mubr.msk.bf16.mxu0 %vm760_vm0, %v2209_v21 }
 0x772   :  { %v2215_v43 = vpop.permute.xlu1 %2214  ;;  %v14230_v35 = vpop.f32.mrf.mxu1 }
 0x773   :  { %v3095_v59 = vpop.permute.xlu0 %3094  ;;  %17730 = vst [vmem:[#allocation21_spill] sm:$0xff] %v14230_v35 }
 0x776   :  { %v3107_v52 = vpop.permute.xlu1 %3106 }
 0x777   :  { %11412 = vmatmul.mubr.msk.bf16.gmra.mxu1 %vm760_vm0, %v2364_v34  ;;  %11392 = vmatmul.mubr.msk.bf16.gmra.mxu0 %vm760_vm0, %v2211_v13  ;;  %v3129_v17 = vsel %vm760_vm0, %v3107_v52, 0  ;;  %v3399_v33 = vpop.permute.xlu0 %3398  ;;  %v14232_v34 = vpop.f32.mrf.mxu1 }
 0x778   :  { %11434 = vmatpush3.bf16.xpose.msra.mxu1 %v2682_v53  ;;  %11439 = vmatprep.mubr.msk.bf16.mxu1 %vm760_vm0, %v2648_v63  ;;  %v3422_v56 = vsel %vm760_vm0, %v3399_v33, 0 }
 0x779   :  { %11969 = vmatprep.subr.msk.bf16.mxu1 %vm760_vm0, %v2658_v29  ;;  %11395 = vmatprep.mubr.msk.bf16.mxu0 %vm760_vm0, %v2213_v6  ;;  %v14234_v45 = vpop.f32.mrf.mxu1 }
 0x77a   :  { %v3103_v24 = vpop.permute.xlu1 %3102 }
 0x77b   :  { %v3123_v37 = vsel %vm760_vm0, %v3103_v24, 0  ;;  %v3101_v22 = vpop.permute.xlu0 %3100  ;;  %v14236_v23 = vpop.f32.mrf.mxu1 }
 0x77d   :  { %v14238_v16 = vpop.f32.mrf.mxu1 }
 0x77e   :  { %v3097_v4 = vpop.permute.xlu1 %3096  ;;  %17731 = vst [vmem:[#allocation20_spill] sm:$0xff] %v14238_v16 }
 0x77f   :  { %11396 = vmatmul.mubr.msk.bf16.gmra.mxu0 %vm760_vm0, %v2215_v43 }
 0x780   :  { %11436 = vmatpush3.bf16.xpose.msra.mxu1 %v2679_v44 }
 0x781   :  { %11970 = vmatprep.subr.msk.bf16.mxu1 %vm760_vm0, %v2656_v62 }
 0x782   :  { %v3397_v26 = vpop.permute.xlu1 %3396 }
 0x783   :  { %v3419_v29 = vsel %vm760_vm0, %v3397_v26, 0 }
 0x786   :  { %v3099_v47 = vpop.permute.xlu1 %3098 }
 0x788   :  { %11438 = vmatpush3.bf16.xpose.msra.mxu1 %v2676_v3 }
 0x789   :  { %11971 = vmatprep.subr.msk.bf16.mxu1 %vm760_vm0, %v3109_v36 }
 0x78a   :  { %v3395_v39 = vpop.permute.xlu1 %3394 }
 0x78b   :  { %v3416_v8 = vsel %vm760_vm0, %v3395_v39, 0 }
 0x78e   :  { %v3393_v50 = vpop.permute.xlu1 %3392 }
 0x78f   :  { %11440 = vmatmul.mubr.msk.bf16.vlgmr.msra.gmra.mxu1 %vm760_vm0, %v2650_v57  ;;  %v3413_v40 = vsel %vm760_vm0, %v3393_v50, 0 }
 0x790   :  { %11443 = vmatprep.mubr.msk.bf16.mxu1 %vm760_vm0, %v2652_v2  ;;  %11484 = vmatpush3.bf16.xpose.msra.mxu1 %v3132_v5 }
 0x791   :  { %11972 = vmatprep.subr.msk.bf16.mxu1 %vm760_vm0, %v3107_v52 }
 0x792   :  { %v3385_v11 = vpop.permute.xlu1 %3384 }
 0x797   :  { %11444 = vmatmul.mubr.msk.bf16.gmra.mxu1 %vm760_vm0, %v2654_v0 }
 0x798   :  { %11486 = vmatpush3.bf16.xpose.msra.mxu1 %v3129_v17  ;;  %11491 = vmatprep.mubr.msk.bf16.mxu1 %vm760_vm0, %v3095_v59 }
 0x799   :  { %11973 = vmatprep.subr.msk.bf16.mxu1 %vm760_vm0, %v3105_v20 }
 0x7a0   :  { %11488 = vmatpush3.bf16.xpose.msra.mxu1 %v3126_v12 }
 0x7a1   :  { %11974 = vmatprep.subr.msk.bf16.mxu1 %vm760_vm0, %v3103_v24 }
 0x7a8   :  { %11490 = vmatpush3.bf16.xpose.msra.mxu1 %v3123_v37 }
 0x7a9   :  { %11975 = vmatprep.subr.msk.bf16.mxu1 %vm760_vm0, %v3399_v33 }
 0x7af   :  { %11492 = vmatmul.mubr.msk.bf16.vlgmr.msra.gmra.mxu1 %vm760_vm0, %v3097_v4 }
 0x7b0   :  { %11495 = vmatprep.mubr.msk.bf16.mxu1 %vm760_vm0, %v3099_v47  ;;  %11516 = vmatpush3.bf16.xpose.msra.mxu1 %v3422_v56 }
 0x7b1   :  { %11976 = vmatprep.subr.msk.bf16.mxu1 %vm760_vm0, %v3397_v26 }
 0x7b7   :  { %11496 = vmatmul.mubr.msk.bf16.gmra.mxu1 %vm760_vm0, %v3101_v22 }
 0x7b8   :  { %11518 = vmatpush3.bf16.xpose.msra.mxu1 %v3419_v29  ;;  %11523 = vmatprep.mubr.msk.bf16.mxu1 %vm760_vm0, %v3385_v11 }
 0x7b9   :  { %11977 = vmatprep.subr.msk.bf16.mxu1 %vm760_vm0, %v3395_v39 }
 0x7c0   :  { %11520 = vmatpush3.bf16.xpose.msra.mxu1 %v3416_v8 }
 0x7c1   :  { %11978 = vmatprep.subr.msk.bf16.mxu1 %vm760_vm0, %v3393_v50 }
 0x7c8   :  { %11522 = vmatpush3.bf16.xpose.msra.mxu1 %v3413_v40 }
 0x7ff   :  { %v11357_v63 = vpop.f32.mrf.mxu1 }
 0x801   :  { %v2092_v27 = vpop.f32.mrf.mxu1 }
 0x803   :  { %v11358_v55 = vpop.f32.mrf.mxu1 }
 0x805   :  { %v14240_v30 = vpop.f32.mrf.mxu1 }
 0x806   :  { %17732 = vst [vmem:[#allocation22_spill] sm:$0xff] %v14240_v30 }
 0x807   :  { %v11361_v1 = vpop.f32.mrf.mxu1 }
 0x809   :  { %v2108_v2 = vpop.f32.mrf.mxu1 }
 0x80b   :  { %v11362_v62 = vpop.f32.mrf.mxu1 }
 0x80d   :  { %v14242_v42 = vpop.f32.mrf.mxu1 }
 0x80e   :  { %17733 = vst [vmem:[#allocation24_spill] sm:$0xff] %v14242_v42 }
 0x80f   :  { %v11373_v57 = vpop.f32.mrf.mxu1 }
 0x810   :  { %v14244_v58 = vadd.f32 %v11373_v57, %v11357_v63 }
 0x811   :  { %v2169_v0 = vpop.f32.mrf.mxu1 }
 0x812   :  { %v14246_v14 = vadd.f32 %v2169_v0, %v2092_v27 }
 0x813   :  { %v11374_v10 = vpop.f32.mrf.mxu1 }
 0x814   :  { %v14248_v49 = vadd.f32 %v11374_v10, %v11358_v55 }
 0x815   :  { %v14250_v7 = vpop.f32.mrf.mxu1 }
 0x816   :  { %17734 = vst [vmem:[#allocation23_spill] sm:$0xff] %v14250_v7 }
 0x817   :  { %v11377_v51 = vpop.f32.mrf.mxu1 }
 0x818   :  { %v14252_v21 = vadd.f32 %v11377_v51, %v11361_v1 }
 0x819   :  { %v2185_v13 = vpop.f32.mrf.mxu1 }
 0x81a   :  { %v14254_v53 = vadd.f32 %v2185_v13, %v2108_v2 }
 0x81b   :  { %v11378_v6 = vpop.f32.mrf.mxu1 }
 0x81c   :  { %v14256_v43 = vadd.f32 %v11378_v6, %v11362_v62 }
 0x81d   :  { %v14258_v52 = vpop.f32.mrf.mxu1 }
 0x81e   :  { %17735 = vst [vmem:[#allocation13_spill] sm:$0xff] %v14258_v52 }
 0x827   :  { %v11385_v44 = vpop.f32.mrf.mxu0 }
 0x829   :  { %v2286_v3 = vpop.f32.mrf.mxu0 }
 0x82b   :  { %v11386_v36 = vpop.f32.mrf.mxu0 }
 0x82c   :  { %v2350_v57 = vpack.c.bf16 %v11386_v36, %v11385_v44 }
 0x82d   :  { %v2289_v5 = vpop.f32.mrf.mxu0 }
 0x82f   :  { %v11409_v20 = vpop.f32.mrf.mxu1  ;;  %v11389_v24 = vpop.f32.mrf.mxu0 }
 0x830   :  { %v14262_v59 = vsel %vm13627_vm3, %v11409_v20, -1e+30 }
 0x831   :  { %v2476_v17 = vsel %vm1003_vm2, %v14262_v59, -inf  ;;  %v2431_v4 = vpop.f32.mrf.mxu1  ;;  %v2302_v26 = vpop.f32.mrf.mxu0 }
 0x832   :  { %v14268_v47 = vsel %vm13620_vm1, %v2431_v4, -1e+30  ;;  %2477 = vmax.xlane.f32.xlu0 %v2476_v17  ;;  %v2349_v17 = vpack.c.bf16 %v2289_v5, %v2286_v3 }
 0x833   :  { %v2470_v37 = vsel %vm1003_vm2, %v14268_v47, -inf  ;;  %v11410_v33 = vpop.f32.mrf.mxu1  ;;  %v11390_v39 = vpop.f32.mrf.mxu0 }
 0x834   :  { %v14274_v50 = vsel %vm13641_vm5, %v11410_v33, -1e+30  ;;  %2471 = vmax.xlane.f32.xlu1 %v2470_v37  ;;  %v2352_v22 = vpack.c.bf16 %v11390_v39, %v11389_v24 }
 0x835   :  { %v2479_v11 = vsel %vm1003_vm2, %v14274_v50, -inf  ;;  %v2434_v29 = vpop.f32.mrf.mxu1  ;;  %v2305_v8 = vpop.f32.mrf.mxu0 }
 0x836   :  { %v14280_v63 = vsel %vm13635_vm4, %v2434_v29, -1e+30  ;;  %2480 = vmax.xlane.f32.xlu0 %v2479_v11  ;;  %v2351_v27 = vpack.c.bf16 %v2305_v8, %v2302_v26  ;;  %11415 = vmatprep.subr.bf16.mxu0 %v2352_v22 }
 0x837   :  { %v11413_v55 = vpop.f32.mrf.mxu1  ;;  %v11393_v1 = vpop.f32.mrf.mxu0  ;;  %11416 = vmatpush3.bf16.msra.mxu0 %v2352_v22  ;;  %v2473_v2 = vsel %vm1003_vm2, %v14280_v63, -inf }
 0x838   :  { %11417 = vmatprep.subr.bf16.mxu0 %v2351_v27  ;;  %v14288_v10 = vsel %vm13668_vm8, %v11413_v55, -1e+30 }
 0x839   :  { %v14284_v62 = vpop.f32.mrf.mxu0  ;;  %v2447_v51 = vpop.f32.mrf.mxu1  ;;  %v2488_v20 = vsel %vm1003_vm2, %v14288_v10, -inf }
 0x83a   :  { %2474 = vmax.xlane.f32.xlu0 %v2473_v2  ;;  %v14298_v44 = vsel %vm13652_vm6, %v2447_v51, -1e+30 }
 0x83b   :  { %v11394_v13 = vpop.f32.mrf.mxu0  ;;  %11418 = vmatpush3.bf16.msra.mxu0 %v2351_v27  ;;  %v11414_v36 = vpop.f32.mrf.mxu1  ;;  %v2482_v37 = vsel %vm1003_vm2, %v14298_v44, -inf }
 0x83c   :  { %v14290_v6 = vpack.c.bf16 %v11394_v13, %v11393_v1  ;;  %11419 = vmatprep.subr.bf16.mxu0 %v2350_v57  ;;  %v14306_v22 = vsel %vm13672_vm9, %v11414_v36, -1e+30 }
 0x83d   :  { %v14294_v24 = vpop.f32.mrf.mxu0  ;;  %v2450_v3 = vpop.f32.mrf.mxu1  ;;  %v2491_v29 = vsel %vm1003_vm2, %v14306_v22, -inf }
 0x83e   :  { %2489 = vmax.xlane.f32.xlu0 %v2488_v20  ;;  %v14314_v27 = vsel %vm13660_vm7, %v2450_v3, -1e+30 }
 0x83f   :  { %v11397_v26 = vpop.f32.mrf.mxu0  ;;  %11420 = vmatpush3.bf16.msra.mxu0 %v2350_v57  ;;  %v2485_v55 = vsel %vm1003_vm2, %v14314_v27, -inf }
 0x840   :  { %11421 = vmatprep.subr.bf16.mxu0 %v2349_v17 }
 0x841   :  { %v14302_v33 = vpop.f32.mrf.mxu0 }
 0x842   :  { %2483 = vmax.xlane.f32.xlu0 %v2482_v37 }
 0x843   :  { %v11398_v5 = vpop.f32.mrf.mxu0  ;;  %11422 = vmatpush3.bf16.msra.mxu0 %v2349_v17 }
 0x844   :  { %v14308_v11 = vpack.c.bf16 %v11398_v5, %v11397_v26 }
 0x846   :  { %2492 = vmax.xlane.f32.xlu0 %v2491_v29  ;;  %11447 = vmatprep.subr.bf16.mxu0 %v14308_v11 }
 0x84a   :  { %2486 = vmax.xlane.f32.xlu0 %v2485_v55 }
 0x84f   :  { %v11441_v1 = vpop.f32.mrf.mxu1 }
 0x850   :  { %v14321_v2 = vsel %vm13627_vm3, %v11441_v1, -1e+30 }
 0x851   :  { %v2766_v57 = vsel %vm1003_vm2, %v14321_v2, -inf  ;;  %v2721_v51 = vpop.f32.mrf.mxu1 }
 0x852   :  { %v14327_v13 = vsel %vm13620_vm1, %v2721_v51, -1e+30  ;;  %2767 = vmax.xlane.f32.xlu1 %v2766_v57 }
 0x853   :  { %v11442_v20 = vpop.f32.mrf.mxu1  ;;  %v2760_v17 = vsel %vm1003_vm2, %v14327_v13, -inf }
 0x854   :  { %v14333_v26 = vsel %vm13641_vm5, %v11442_v20, -1e+30 }
 0x855   :  { %v2724_v36 = vpop.f32.mrf.mxu1  ;;  %v2769_v55 = vsel %vm1003_vm2, %v14333_v26, -inf }
 0x856   :  { %v14337_v37 = vsel %vm13635_vm4, %v2724_v36, -1e+30  ;;  %2761 = vmax.xlane.f32.xlu1 %v2760_v17 }
 0x857   :  { %v11445_v3 = vpop.f32.mrf.mxu1  ;;  %v2763_v5 = vsel %vm1003_vm2, %v14337_v37, -inf }
 0x858   :  { %v14343_v29 = vsel %vm13668_vm8, %v11445_v3, -1e+30  ;;  %2764 = vmax.xlane.f32.xlu0 %v2763_v5 }
 0x859   :  { %v2737_v1 = vpop.f32.mrf.mxu1  ;;  %v2778_v57 = vsel %vm1003_vm2, %v14343_v29, -inf }
 0x85a   :  { %2770 = vmax.xlane.f32.xlu1 %v2769_v55  ;;  %v14351_v51 = vsel %vm13652_vm6, %v2737_v1, -1e+30 }
 0x85b   :  { %v11446_v20 = vpop.f32.mrf.mxu1  ;;  %v2772_v17 = vsel %vm1003_vm2, %v14351_v51, -inf }
 0x85c   :  { %2779 = vmax.xlane.f32.xlu0 %v2778_v57  ;;  %v14357_v36 = vsel %vm13672_vm9, %v11446_v20, -1e+30 }
 0x85d   :  { %v2740_v3 = vpop.f32.mrf.mxu1  ;;  %v2781_v5 = vsel %vm1003_vm2, %v14357_v36, -inf }
 0x85e   :  { %v14363_v55 = vsel %vm13660_vm7, %v2740_v3, -1e+30 }
 0x85f   :  { %v2775_v1 = vsel %vm1003_vm2, %v14363_v55, -inf }
 0x860   :  { %2773 = vmax.xlane.f32.xlu0 %v2772_v17 }
 0x864   :  { %2782 = vmax.xlane.f32.xlu0 %v2781_v5 }
 0x868   :  { %2776 = vmax.xlane.f32.xlu0 %v2775_v1 }
 0x86b   :  { %3388 = vrot.lane.b32.xlu1 %v17714_v38, %s13019_s26 }
 0x86f   :  { %3390 = vrot.lane.b32.xlu1 %v17717_v28, %s13019_s26 }
 0x87e   :  { %3386 = vrot.lane.b32.xlu0 %v17715_v54, %s13019_s26 }
 0x8bb   :  { %v2478_v57 = vpop.xlane.xlu0 %2477 }
 0x8bc   :  { %v2496_v20 = vsub.f32 %v14262_v59, %v2478_v57 }
 0x8bd   :  { %v2472_v17 = vpop.xlane.xlu1 %2471 }
 0x8be   :  { %v2494_v3 = vsub.f32 %v14268_v47, %v2472_v17  ;;  %v2506_v52 = vmul.f32 1.442695, %v2496_v20 }
 0x8bf   :  { %v2481_v5 = vpop.xlane.xlu0 %2480 }
 0x8c0   :  { %v2502_v42 = vmul.f32 1.442695, %v2494_v3  ;;  %v2497_v1 = vsub.f32 %v14274_v50, %v2481_v5 }
 0x8c2   :  { %12430 = vpow2.f32 %v2502_v42  ;;  %v2508_v7 = vmul.f32 1.442695, %v2497_v1 }
 0x8c3   :  { %v2475_v38 = vpop.xlane.xlu0 %2474  ;;  %12432 = vpow2.f32 %v2506_v52 }
 0x8c4   :  { %v2495_v28 = vsub.f32 %v14280_v63, %v2475_v38  ;;  %12434 = vpow2.f32 %v2508_v7 }
 0x8c6   :  { %v2504_v30 = vmul.f32 1.442695, %v2495_v28 }
 0x8c7   :  { %v2490_v54 = vpop.xlane.xlu0 %2489 }
 0x8c8   :  { %12436 = vpow2.f32 %v2504_v30  ;;  %v2500_v59 = vsub.f32 %v14288_v10, %v2490_v54 }
 0x8ca   :  { %v2514_v17 = vmul.f32 1.442695, %v2500_v59 }
 0x8cb   :  { %v2484_v57 = vpop.xlane.xlu0 %2483 }
 0x8cc   :  { %v2498_v47 = vsub.f32 %v14298_v44, %v2484_v57 }
 0x8ce   :  { %v2510_v20 = vmul.f32 1.442695, %v2498_v47 }
 0x8cf   :  { %v14379_v3 = vpop.eup %12430  ;;  %v2493_v50 = vpop.xlane.xlu0 %2492 }
 0x8d0   :  { %12438 = vpow2.f32 %v2510_v20  ;;  %v2518_v42 = vsel %vm1003_vm2, %v14379_v3, 0.0  ;;  %v14383_v52 = vpop.eup %12432  ;;  %v2501_v30 = vsub.f32 %v14306_v22, %v2493_v50 }
 0x8d1   :  { %2519 = vadd.xlane.f32.xlu1 %v2518_v42  ;;  %12440 = vpow2.f32 %v2514_v17  ;;  %v14386_v63 = vpop.eup %12434  ;;  %v2524_v44 = vsel %vm1003_vm2, %v14383_v52, 0.0 }
 0x8d2   :  { %v2516_v1 = vmul.f32 1.442695, %v2501_v30  ;;  %v2527_v22 = vsel %vm1003_vm2, %v14386_v63, 0.0 }
 0x8d3   :  { %v2487_v7 = vpop.xlane.xlu0 %2486 }
 0x8d4   :  { %v2499_v10 = vsub.f32 %v14314_v27, %v2487_v7 }
 0x8d5   :  { %v14391_v5 = vpop.eup %12436  ;;  %2525 = vadd.xlane.f32.xlu1 %v2524_v44 }
 0x8d6   :  { %v2512_v38 = vmul.f32 1.442695, %v2499_v10  ;;  %v2521_v28 = vsel %vm1003_vm2, %v14391_v5, 0.0 }
 0x8d7   :  { %2522 = vadd.xlane.f32.xlu0 %v2521_v28 }
 0x8d8   :  { %12442 = vpow2.f32 %v2512_v38 }
 0x8d9   :  { %2528 = vadd.xlane.f32.xlu1 %v2527_v22  ;;  %12444 = vpow2.f32 %v2516_v1 }
 0x8db   :  { %v2768_v54 = vpop.xlane.xlu1 %2767 }
 0x8dc   :  { %v2786_v59 = vsub.f32 %v14321_v2, %v2768_v54 }
 0x8dd   :  { %v14397_v27 = vpop.eup %12438 }
 0x8de   :  { %v2530_v57 = vsel %vm1003_vm2, %v14397_v27, 0.0  ;;  %v14402_v47 = vpop.eup %12440  ;;  %v2796_v50 = vmul.f32 1.442695, %v2786_v59 }
 0x8df   :  { %v2762_v17 = vpop.xlane.xlu1 %2761  ;;  %2531 = vadd.xlane.f32.xlu0 %v2530_v57  ;;  %v2536_v10 = vsel %vm1003_vm2, %v14402_v47, 0.0 }
 0x8e0   :  { %v2784_v20 = vsub.f32 %v14327_v13, %v2762_v17 }
 0x8e1   :  { %v2765_v42 = vpop.xlane.xlu0 %2764 }
 0x8e2   :  { %v2792_v30 = vmul.f32 1.442695, %v2784_v20  ;;  %v2785_v7 = vsub.f32 %v14337_v37, %v2765_v42 }
 0x8e3   :  { %v2771_v44 = vpop.xlane.xlu1 %2770  ;;  %2537 = vadd.xlane.f32.xlu0 %v2536_v10 }
 0x8e4   :  { %12446 = vpow2.f32 %v2792_v30  ;;  %v2794_v2 = vmul.f32 1.442695, %v2785_v7  ;;  %v2787_v1 = vsub.f32 %v14333_v26, %v2771_v44 }
 0x8e5   :  { %v14409_v38 = vpop.eup %12442  ;;  %12448 = vpow2.f32 %v2796_v50  ;;  %v2780_v28 = vpop.xlane.xlu0 %2779 }
 0x8e6   :  { %12450 = vpow2.f32 %v2794_v2  ;;  %v2798_v13 = vmul.f32 1.442695, %v2787_v1  ;;  %v2533_v22 = vsel %vm1003_vm2, %v14409_v38, 0.0  ;;  %v14413_v54 = vpop.eup %12444  ;;  %v2790_v37 = vsub.f32 %v14343_v29, %v2780_v28 }
 0x8e7   :  { %2534 = vadd.xlane.f32.xlu1 %v2533_v22  ;;  %v2539_v26 = vsel %vm1003_vm2, %v14413_v54, 0.0  ;;  %v3389_v22 = vpop.permute.xlu1 %3388 }
 0x8e8   :  { %12452 = vpow2.f32 %v2798_v13  ;;  %v2804_v17 = vmul.f32 1.442695, %v2790_v37 }
 0x8e9   :  { %v2774_v59 = vpop.xlane.xlu0 %2773 }
 0x8ea   :  { %v2788_v57 = vsub.f32 %v14351_v51, %v2774_v59 }
 0x8eb   :  { %2540 = vadd.xlane.f32.xlu1 %v2539_v26 }
 0x8ec   :  { %v2800_v20 = vmul.f32 1.442695, %v2788_v57 }
 0x8ed   :  { %v2783_v50 = vpop.xlane.xlu0 %2782 }
 0x8ee   :  { %12454 = vpow2.f32 %v2800_v20  ;;  %v2791_v42 = vsub.f32 %v14357_v36, %v2783_v50  ;;  %v17743_v20 = vmov 0  }
 0x8ef   :  { %12456 = vpow2.f32 %v2804_v17  ;;  %v3391_v17 = vpop.permute.xlu1 %3390 }
 0x8f0   :  { %v2806_v2 = vmul.f32 1.442695, %v2791_v42 }
 0x8f1   :  { %v14420_v30 = vpop.eup %12446  ;;  %v2777_v7 = vpop.xlane.xlu0 %2776 }
 0x8f2   :  { %v14422_v10 = vpop.eup %12448  ;;  %v2789_v29 = vsub.f32 %v14363_v55, %v2777_v7  ;;  %v2808_v51 = vsel %vm1003_vm2, %v14420_v30, 0.0 }
 0x8f3   :  { %v14427_v44 = vpop.eup %12450  ;;  %2809 = vadd.xlane.f32.xlu0 %v2808_v51  ;;  %v2814_v55 = vsel %vm1003_vm2, %v14422_v10, 0.0 }
 0x8f4   :  { %v2802_v1 = vmul.f32 1.442695, %v2789_v29  ;;  %v2811_v28 = vsel %vm1003_vm2, %v14427_v44, 0.0 }
 0x8f5   :  { %v14431_v13 = vpop.eup %12452  ;;  %2812 = vadd.xlane.f32.xlu1 %v2811_v28  ;;  %v3387_v36 = vpop.permute.xlu0 %3386 }
 0x8f6   :  { %12458 = vpow2.f32 %v2802_v1  ;;  %11524 = vmatmul.mubr.msk.bf16.vlgmr.msra.gmra.mxu1 %vm760_vm0, %v3387_v36  ;;  %v2817_v37 = vsel %vm1003_vm2, %v14431_v13, 0.0 }
 0x8f7   :  { %2815 = vadd.xlane.f32.xlu0 %v2814_v55  ;;  %11527 = vmatprep.mubr.msk.bf16.mxu1 %vm760_vm0, %v3389_v22  ;;  %12460 = vpow2.f32 %v2806_v2 }
 0x8f9   :  { %2818 = vadd.xlane.f32.xlu1 %v2817_v37 }
 0x8fb   :  { %v14439_v59 = vpop.eup %12454 }
 0x8fc   :  { %v2820_v57 = vsel %vm1003_vm2, %v14439_v59, 0.0  ;;  %v14443_v26 = vpop.eup %12456 }
 0x8fd   :  { %2821 = vadd.xlane.f32.xlu0 %v2820_v57  ;;  %v2826_v50 = vsel %vm1003_vm2, %v14443_v26, 0.0 }
 0x8fe   :  { %11528 = vmatmul.mubr.msk.bf16.gmra.mxu1 %vm760_vm0, %v3391_v17 }
 0x8ff   :  { %4302 = vmatprep.mubr.bf16.mxu1 %v17743_v20 }
 0x901   :  { %2827 = vadd.xlane.f32.xlu0 %v2826_v50 }
 0x903   :  { %v14449_v42 = vpop.eup %12458 }
 0x904   :  { %v2823_v7 = vsel %vm1003_vm2, %v14449_v42, 0.0  ;;  %v14453_v29 = vpop.eup %12460 }
 0x905   :  { %2824 = vadd.xlane.f32.xlu1 %v2823_v7  ;;  %v2829_v51 = vsel %vm1003_vm2, %v14453_v29, 0.0 }
 0x909   :  { %2830 = vadd.xlane.f32.xlu1 %v2829_v51 }
 0x917   :  { %2937 = vrot.lane.b32.xlu0 %v17716_v15, %s13019_s26  ;;  %v11493_v15 = vpop.f32.mrf.mxu1 }
 0x91a   :  { %2939 = vrot.lane.b32.xlu1 %v17719_v32, %s13019_s26  ;;  %v3168_v32 = vpop.f32.mrf.mxu1 }
 0x91b   :  { %2945 = vrot.lane.b32.xlu0 %v17720_v61, %s13019_s26  ;;  %v14475_v61 = vsel %vm13620_vm1, %v3168_v32, -1e+30 }
 0x91c   :  { %v11494_v2 = vpop.f32.mrf.mxu1 }
 0x91d   :  { %v14487_v1 = vsel %vm13641_vm5, %v11494_v2, -1e+30 }
 0x91e   :  { %2941 = vrot.lane.b32.xlu1 %v17718_v25, %s13019_s26  ;;  %v3171_v25 = vpop.f32.mrf.mxu1  ;;  %v3216_v36 = vsel %vm1003_vm2, %v14487_v1, -inf }
 0x91f   :  { %2949 = vrot.lane.b32.xlu0 %v17722_v46, %s13019_s26  ;;  %v3207_v46 = vsel %vm1003_vm2, %v14475_v61, -inf  ;;  %v14499_v57 = vsel %vm13635_vm4, %v3171_v25, -1e+30 }
 0x920   :  { %v3210_v51 = vsel %vm1003_vm2, %v14499_v57, -inf }
 0x922   :  { %2943 = vrot.lane.b32.xlu1 %v17721_v18, %s13019_s26  ;;  %v14481_v18 = vsel %vm13627_vm3, %v11493_v15, -1e+30 }
 0x926   :  { %2947 = vrot.lane.b32.xlu1 %v17723_v41, %s13019_s26  ;;  %v11497_v41 = vpop.f32.mrf.mxu1 }
 0x927   :  { %v14503_v17 = vsel %vm13668_vm8, %v11497_v41, -1e+30 }
 0x928   :  { %v3184_v28 = vpop.f32.mrf.mxu1  ;;  %v3225_v7 = vsel %vm1003_vm2, %v14503_v17, -inf }
 0x929   :  { %v14493_v22 = vsel %vm13652_vm6, %v3184_v28, -1e+30 }
 0x92a   :  { %2951 = vrot.lane.b32.xlu1 %v17724_v60, %s13019_s26  ;;  %v3213_v60 = vsel %vm1003_vm2, %v14481_v18, -inf  ;;  %v11498_v55 = vpop.f32.mrf.mxu1  ;;  %v3219_v37 = vsel %vm1003_vm2, %v14493_v22, -inf }
 0x92b   :  { %v14517_v2 = vsel %vm13672_vm9, %v11498_v55, -1e+30 }
 0x92c   :  { %v3187_v50 = vpop.f32.mrf.mxu1  ;;  %v3228_v25 = vsel %vm1003_vm2, %v14517_v2, -inf }
 0x92d   :  { %v14511_v15 = vsel %vm13660_vm7, %v3187_v50, -1e+30 }
 0x92e   :  { %v3222_v32 = vsel %vm1003_vm2, %v14511_v15, -inf }
 0x93e   :  { %3208 = vmax.xlane.f32.xlu0 %v3207_v46 }
 0x942   :  { %3214 = vmax.xlane.f32.xlu0 %v3213_v60 }
 0x946   :  { %3217 = vmax.xlane.f32.xlu0 %v3216_v36 }
 0x94a   :  { %3220 = vmax.xlane.f32.xlu0 %v3219_v37 }
 0x94e   :  { %3226 = vmax.xlane.f32.xlu0 %v3225_v7  ;;  %3211 = vmax.xlane.f32.xlu1 %v3210_v51 }
 0x952   :  { %3223 = vmax.xlane.f32.xlu1 %v3222_v32 }
 0x956   :  { %3229 = vmax.xlane.f32.xlu1 %v3228_v25 }
 0x95a   :  { %v2520_v46 = vpop.xlane.xlu1 %2519 }
 0x95b   :  { %12462 = vrcp.f32 %v2520_v46 }
 0x95e   :  { %v2526_v41 = vpop.xlane.xlu1 %2525 }
 0x95f   :  { %12464 = vrcp.f32 %v2526_v41 }
 0x960   :  { %v2523_v60 = vpop.xlane.xlu0 %2522 }
 0x961   :  { %12466 = vrcp.f32 %v2523_v60  ;;  %v2337_v60 = vpop.f32.mrf.mxu0 }
 0x962   :  { %v2529_v28 = vpop.xlane.xlu1 %2528 }
 0x963   :  { %12468 = vrcp.f32 %v2529_v28 }
 0x968   :  { %v2532_v36 = vpop.xlane.xlu0 %2531  ;;  %v12463_v37 = vpop.eup %12462 }
 0x969   :  { %12470 = vrcp.f32 %v2532_v36  ;;  %v2550_v55 = vmul.f32 %v12463_v37, %v14379_v3  ;;  %v2355_v36 = vpack.c.bf16 %v2337_v60, %v14302_v33 }
 0x96c   :  { %v12465_v50 = vpop.eup %12464  ;;  %v2538_v16 = vpop.xlane.xlu0 %2537 }
 0x96d   :  { %v2552_v35 = vmul.f32 %v12465_v50, %v14383_v52 }
 0x96e   :  { %v12467_v7 = vpop.eup %12466 }
 0x96f   :  { %v2551_v51 = vmul.f32 %v12467_v7, %v14391_v5  ;;  %v12060_v5 = vld [vmem:[#allocation2 + $0x38] sm:$0xff]  }
 0x970   :  { %v12469_v32 = vpop.eup %12468  ;;  %v2535_v25 = vpop.xlane.xlu1 %2534 }
 0x971   :  { %v2553_v46 = vmul.f32 %v12469_v32, %v14386_v63  ;;  %12472 = vrcp.f32 %v2535_v25  ;;  %v2558_v41 = vpack.c.bf16 %v2551_v51, %v2550_v55 }
 0x972   :  { %12474 = vrcp.f32 %v2538_v16  ;;  %v2353_v16 = vpack.c.bf16 %v14294_v24, %v14284_v62 }
 0x973   :  { %11423 = vmatprep.mubr.msk.bf16.mxu0 %vm1003_vm2, %v2558_v41  ;;  %v2559_v28 = vpack.c.bf16 %v2553_v46, %v2552_v35 }
 0x974   :  { %v2541_v20 = vpop.xlane.xlu1 %2540 }
 0x975   :  { %12476 = vrcp.f32 %v2541_v20  ;;  %11424 = vmatmul.mubr.msk.bf16.vlgmr.msra.gmra.mxu0 %vm1003_vm2, %v2559_v28 }
 0x976   :  { %11448 = vmatpush3.bf16.msra.mxu0 %v14308_v11  ;;  %v12471_v3 = vpop.eup %12470 }
 0x977   :  { %11449 = vmatprep.subr.bf16.mxu0 %v2355_v36  ;;  %v2554_v33 = vmul.f32 %v12471_v3, %v14397_v27 }
 0x97a   :  { %11450 = vmatpush3.bf16.msra.mxu0 %v2355_v36 }
 0x97b   :  { %11451 = vmatprep.subr.bf16.mxu0 %v14290_v6 }
 0x97c   :  { %v2810_v52 = vpop.xlane.xlu0 %2809 }
 0x97d   :  { %12478 = vrcp.f32 %v2810_v52 }
 0x97e   :  { %v12473_v63 = vpop.eup %12472  ;;  %11452 = vmatpush3.bf16.msra.mxu0 %v14290_v6  ;;  %v2813_v35 = vpop.xlane.xlu1 %2812 }
 0x97f   :  { %12480 = vrcp.f32 %v2813_v35  ;;  %11453 = vmatprep.subr.bf16.mxu0 %v2353_v16  ;;  %v2555_v11 = vmul.f32 %v12473_v63, %v14409_v38  ;;  %v12475_v20 = vpop.eup %12474 }
 0x980   :  { %v2816_v37 = vpop.xlane.xlu0 %2815  ;;  %v2556_v62 = vmul.f32 %v12475_v20, %v14402_v47 }
 0x981   :  { %12482 = vrcp.f32 %v2816_v37  ;;  %v2560_v50 = vpack.c.bf16 %v2555_v11, %v2554_v33 }
 0x982   :  { %v12477_v7 = vpop.eup %12476  ;;  %11454 = vmatpush3.bf16.msra.mxu0 %v2353_v16  ;;  %v2819_v55 = vpop.xlane.xlu1 %2818  ;;  %v12061_v16 = vld [vmem:[#allocation2 + $0x30] sm:$0xff]  }
 0x983   :  { %12484 = vrcp.f32 %v2819_v55  ;;  %11427 = vmatprep.mubr.msk.bf16.mxu0 %vm1003_vm2, %v2560_v50  ;;  %v2557_v6 = vmul.f32 %v12477_v7, %v14413_v54  ;;  %11463 = vmatprep.subr.bf16.mxu0 %v12060_v5 }
 0x985   :  { %v2561_v24 = vpack.c.bf16 %v2557_v6, %v2556_v62 }
 0x986   :  { %v2822_v27 = vpop.xlane.xlu0 %2821 }
 0x987   :  { %11428 = vmatmul.mubr.msk.bf16.gmra.mxu0 %vm1003_vm2, %v2561_v24  ;;  %12486 = vrcp.f32 %v2822_v27 }
 0x98a   :  { %v12479_v38 = vpop.eup %12478  ;;  %v2828_v41 = vpop.xlane.xlu0 %2827 }
 0x98b   :  { %v2840_v32 = vmul.f32 %v12479_v38, %v14420_v30 }
 0x98c   :  { %v12481_v51 = vpop.eup %12480 }
 0x98d   :  { %v2841_v25 = vmul.f32 %v12481_v51, %v14427_v44 }
 0x98e   :  { %v12483_v46 = vpop.eup %12482  ;;  %v2825_v60 = vpop.xlane.xlu1 %2824 }
 0x98f   :  { %12488 = vrcp.f32 %v2825_v60  ;;  %v2848_v28 = vpack.c.bf16 %v2841_v25, %v2840_v32  ;;  %v2842_v54 = vmul.f32 %v12483_v46, %v14422_v10  ;;  %v2938_v50 = vpop.permute.xlu0 %2937 }
 0x990   :  { %v12485_v47 = vpop.eup %12484  ;;  %12490 = vrcp.f32 %v2828_v41 }
 0x991   :  { %v2843_v36 = vmul.f32 %v12485_v47, %v14431_v13  ;;  %11455 = vmatprep.mubr.msk.bf16.mxu0 %vm1003_vm2, %v2848_v28 }
 0x992   :  { %v2831_v3 = vpop.xlane.xlu1 %2830 }
 0x993   :  { %12492 = vrcp.f32 %v2831_v3  ;;  %v2849_v52 = vpack.c.bf16 %v2843_v36, %v2842_v54 }
 0x994   :  { %v12487_v30 = vpop.eup %12486 }
 0x995   :  { %11456 = vmatmul.mubr.msk.bf16.vlgmr.msra.gmra.mxu0 %vm1003_vm2, %v2849_v52  ;;  %v2844_v63 = vmul.f32 %v12487_v30, %v14439_v59 }
 0x996   :  { %11464 = vmatpush3.bf16.msra.mxu0 %v12060_v5  ;;  %v2940_v5 = vpop.permute.xlu1 %2939 }
 0x997   :  { %11465 = vmatprep.subr.bf16.mxu0 %v12061_v16 }
 0x99a   :  { %11466 = vmatpush3.bf16.msra.mxu0 %v12061_v16  ;;  %v2942_v7 = vpop.permute.xlu1 %2941 }
 0x99c   :  { %v12489_v44 = vpop.eup %12488 }
 0x99d   :  { %v2845_v10 = vmul.f32 %v12489_v44, %v14449_v42  ;;  %v12491_v35 = vpop.eup %12490  ;;  %v2946_v42 = vpop.permute.xlu0 %2945 }
 0x99e   :  { %v2846_v11 = vmul.f32 %v12491_v35, %v14443_v26  ;;  %v2944_v59 = vpop.permute.xlu1 %2943 }
 0x99f   :  { %v2850_v13 = vpack.c.bf16 %v2845_v10, %v2844_v63 }
 0x9a0   :  { %v12493_v33 = vpop.eup %12492 }
 0x9a1   :  { %11459 = vmatprep.mubr.msk.bf16.mxu0 %vm1003_vm2, %v2850_v13  ;;  %v2847_v20 = vmul.f32 %v12493_v33, %v14453_v29  ;;  %v2950_v51 = vpop.permute.xlu0 %2949 }
 0x9a2   :  { %v2948_v27 = vpop.permute.xlu1 %2947 }
 0x9a3   :  { %v2851_v37 = vpack.c.bf16 %v2847_v20, %v2846_v11 }
 0x9a5   :  { %11460 = vmatmul.mubr.msk.bf16.gmra.mxu0 %vm1003_vm2, %v2851_v37 }
 0x9a6   :  { %11467 = vmatprep.mubr.msk.bf16.mxu0 %vm760_vm0, %v2938_v50  ;;  %v2952_v16 = vpop.permute.xlu1 %2951 }
 0x9ad   :  { %11468 = vmatmul.mubr.msk.bf16.vlgmr.msra.gmra.mxu0 %vm760_vm0, %v2940_v5 }
 0x9ae   :  { %11471 = vmatprep.mubr.msk.bf16.mxu0 %vm760_vm0, %v2942_v7 }
 0x9b5   :  { %11472 = vmatmul.mubr.msk.bf16.gmra.mxu0 %vm760_vm0, %v2944_v59 }
 0x9b6   :  { %11475 = vmatprep.mubr.msk.bf16.mxu0 %vm760_vm0, %v2946_v42  ;;  %v11525_v26 = vpop.f32.mrf.mxu1 }
 0x9b7   :  { %v14564_v24 = vsel %vm13627_vm3, %v11525_v26, -1e+30 }
 0x9b8   :  { %v3458_v29 = vpop.f32.mrf.mxu1  ;;  %v3503_v25 = vsel %vm1003_vm2, %v14564_v24, -inf }
 0x9b9   :  { %v14558_v55 = vsel %vm13620_vm1, %v3458_v29, -1e+30 }
 0x9ba   :  { %v3497_v62 = vsel %vm1003_vm2, %v14558_v55, -inf  ;;  %v11526_v6 = vpop.f32.mrf.mxu1 }
 0x9bb   :  { %3498 = vmax.xlane.f32.xlu0 %v3497_v62  ;;  %v14578_v60 = vsel %vm13641_vm5, %v11526_v6, -1e+30 }
 0x9bc   :  { %v3461_v38 = vpop.f32.mrf.mxu1  ;;  %v3506_v54 = vsel %vm1003_vm2, %v14578_v60, -inf }
 0x9bd   :  { %v14568_v32 = vsel %vm13635_vm4, %v3461_v38, -1e+30  ;;  %11476 = vmatmul.mubr.msk.bf16.gmra.mxu0 %vm760_vm0, %v2948_v27 }
 0x9be   :  { %11479 = vmatprep.mubr.msk.bf16.mxu0 %vm760_vm0, %v2950_v51  ;;  %v11529_v46 = vpop.f32.mrf.mxu1  ;;  %v3500_v41 = vsel %vm1003_vm2, %v14568_v32, -inf }
 0x9bf   :  { %3504 = vmax.xlane.f32.xlu0 %v3503_v25  ;;  %3501 = vmax.xlane.f32.xlu1 %v3500_v41  ;;  %v14590_v52 = vsel %vm13668_vm8, %v11529_v46, -1e+30 }
 0x9c0   :  { %v3474_v28 = vpop.f32.mrf.mxu1  ;;  %v3515_v63 = vsel %vm1003_vm2, %v14590_v52, -inf }
 0x9c1   :  { %v14582_v47 = vsel %vm13652_vm6, %v3474_v28, -1e+30 }
 0x9c2   :  { %v3509_v36 = vsel %vm1003_vm2, %v14582_v47, -inf  ;;  %v11530_v3 = vpop.f32.mrf.mxu1 }
 0x9c3   :  { %3507 = vmax.xlane.f32.xlu1 %v3506_v54  ;;  %3510 = vmax.xlane.f32.xlu0 %v3509_v36  ;;  %v14603_v35 = vsel %vm13672_vm9, %v11530_v3, -1e+30 }
 0x9c4   :  { %v3477_v30 = vpop.f32.mrf.mxu1  ;;  %v3518_v11 = vsel %vm1003_vm2, %v14603_v35, -inf }
 0x9c5   :  { %v14594_v44 = vsel %vm13660_vm7, %v3477_v30, -1e+30  ;;  %11480 = vmatmul.mubr.msk.bf16.gmra.mxu0 %vm760_vm0, %v2952_v16 }
 0x9c6   :  { %v3512_v10 = vsel %vm1003_vm2, %v14594_v44, -inf }
 0x9c7   :  { %3516 = vmax.xlane.f32.xlu0 %v3515_v63  ;;  %3513 = vmax.xlane.f32.xlu1 %v3512_v10  ;;  %v3209_v13 = vpop.xlane.xlu0 %3208 }
 0x9c8   :  { %v3231_v33 = vsub.f32 %v14475_v61, %v3209_v13 }
 0x9ca   :  { %v3239_v20 = vmul.f32 1.442695, %v3231_v33 }
 0x9cb   :  { %3519 = vmax.xlane.f32.xlu1 %v3518_v11  ;;  %v3215_v37 = vpop.xlane.xlu0 %3214 }
 0x9cc   :  { %12494 = vpow2.f32 %v3239_v20  ;;  %v3233_v50 = vsub.f32 %v14481_v18, %v3215_v37 }
 0x9ce   :  { %v3243_v5 = vmul.f32 1.442695, %v3233_v50  ;;  %v17744_v50 = vld [vmem:[#allocation40_spill] sm:$0xff] }
 0x9cf   :  { %v3218_v7 = vpop.xlane.xlu0 %3217 }
 0x9d0   :  { %12496 = vpow2.f32 %v3243_v5  ;;  %v3234_v26 = vsub.f32 %v14487_v1, %v3218_v7  ;;  %v1811_v5 = vadd.f32 %v14224_v9, %v17744_v50 }
 0x9d2   :  { %v3245_v51 = vmul.f32 1.442695, %v3234_v26 }
 0x9d3   :  { %v3221_v59 = vpop.xlane.xlu0 %3220 }
 0x9d4   :  { %v3235_v42 = vsub.f32 %v14493_v22, %v3221_v59  ;;  %v17745_v59 = vld [vmem:[#allocation41_spill] sm:$0xff] }
 0x9d6   :  { %v3247_v29 = vmul.f32 1.442695, %v3235_v42  ;;  %v1803_v42 = vadd.f32 %v14226_v19, %v17745_v59 }
 0x9d7   :  { %v3212_v62 = vpop.xlane.xlu1 %3211  ;;  %v3227_v61 = vpop.xlane.xlu0 %3226 }
 0x9d8   :  { %12498 = vpow2.f32 %v3247_v29  ;;  %v3232_v6 = vsub.f32 %v14499_v57, %v3212_v62  ;;  %v3237_v27 = vsub.f32 %v14503_v17, %v3227_v61  ;;  %v17746_v62 = vld [vmem:[#allocation42_spill] sm:$0xff] }
 0x9d9   :  { %v14613_v38 = vpop.eup %12494  ;;  %v1814_v61 = vadd.f32 %v14228_v48, %v17746_v62 }
 0x9da   :  { %v3241_v18 = vmul.f32 1.442695, %v3232_v6  ;;  %v3251_v25 = vmul.f32 1.442695, %v3237_v27  ;;  %v3255_v46 = vsel %vm1003_vm2, %v14613_v38, 0.0 }
 0x9db   :  { %v3224_v41 = vpop.xlane.xlu1 %3223  ;;  %3256 = vadd.xlane.f32.xlu0 %v3255_v46  ;;  %v17747_v46 = vld [vmem:[#allocation44_spill] sm:$0xff] }
 0x9dc   :  { %12500 = vpow2.f32 %v3241_v18  ;;  %v3236_v1 = vsub.f32 %v14511_v15, %v3224_v41  ;;  %v1827_v41 = vadd.f32 %v14232_v34, %v17747_v46 }
 0x9dd   :  { %v14618_v22 = vpop.eup %12496  ;;  %12502 = vpow2.f32 %v3251_v25 }
 0x9de   :  { %12504 = vpow2.f32 %v3245_v51  ;;  %v3249_v57 = vmul.f32 1.442695, %v3236_v1  ;;  %v3261_v17 = vsel %vm1003_vm2, %v14618_v22, 0.0 }
 0x9df   :  { %v3230_v28 = vpop.xlane.xlu1 %3229  ;;  %3262 = vadd.xlane.f32.xlu0 %v3261_v17 }
 0x9e0   :  { %v3238_v54 = vsub.f32 %v14517_v2, %v3230_v28  ;;  %12506 = vpow2.f32 %v3249_v57  ;;  %v17748_v57 = vld [vmem:[#allocation45_spill] sm:$0xff] }
 0x9e1   :  { %v1819_v17 = vadd.f32 %v14234_v45, %v17748_v57 }
 0x9e2   :  { %v3253_v36 = vmul.f32 1.442695, %v3238_v54 }
 0x9e4   :  { %12508 = vpow2.f32 %v3253_v36 }
 0x9e5   :  { %v14623_v3 = vpop.eup %12498 }
 0x9e6   :  { %v3267_v15 = vsel %vm1003_vm2, %v14623_v3, 0.0 }
 0x9e7   :  { %3268 = vadd.xlane.f32.xlu0 %v3267_v15 }
 0x9e9   :  { %v14627_v16 = vpop.eup %12500 }
 0x9ea   :  { %v14629_v30 = vpop.eup %12502  ;;  %v3258_v63 = vsel %vm1003_vm2, %v14627_v16, 0.0 }
 0x9eb   :  { %v14633_v10 = vpop.eup %12504  ;;  %3259 = vadd.xlane.f32.xlu1 %v3258_v63  ;;  %v3273_v2 = vsel %vm1003_vm2, %v14629_v30, 0.0 }
 0x9ec   :  { %3274 = vadd.xlane.f32.xlu0 %v3273_v2  ;;  %v3264_v13 = vsel %vm1003_vm2, %v14633_v10, 0.0  ;;  %v17749_v2 = vld [vmem:[#allocation46_spill] sm:$0xff] }
 0x9ed   :  { %v14639_v33 = vpop.eup %12506 }
 0x9ee   :  { %v3270_v11 = vsel %vm1003_vm2, %v14639_v33, 0.0 }
 0x9ef   :  { %3265 = vadd.xlane.f32.xlu1 %v3264_v13 }
 0x9f1   :  { %v14643_v20 = vpop.eup %12508 }
 0x9f2   :  { %v3276_v37 = vsel %vm1003_vm2, %v14643_v20, 0.0 }
 0x9f3   :  { %3271 = vadd.xlane.f32.xlu1 %v3270_v11 }
 0x9f7   :  { %3277 = vadd.xlane.f32.xlu1 %v3276_v37 }
 0xa35   :  { %v11425_v7 = vpop.f32.mrf.mxu0 }
 0xa36   :  { %v14651_v26 = vadd.f32 %v11425_v7, %v1811_v5 }
 0xa37   :  { %v2608_v29 = vpop.f32.mrf.mxu0 }
 0xa38   :  { %v14655_v6 = vadd.f32 %v2608_v29, %v1803_v42 }
 0xa39   :  { %v11426_v27 = vpop.f32.mrf.mxu0 }
 0xa3a   :  { %v14657_v51 = vadd.f32 %v11426_v27, %v1814_v61 }
 0xa3b   :  { %v14659_v25 = vpop.f32.mrf.mxu0 }
 0xa44   :  { %v3499_v18 = vpop.xlane.xlu0 %3498 }
 0xa45   :  { %v3521_v9 = vsub.f32 %v14558_v55, %v3499_v18  ;;  %v1830_v55 = vadd.f32 %v14236_v23, %v17749_v2 }
 0xa47   :  { %v3529_v19 = vmul.f32 1.442695, %v3521_v9  ;;  %v11429_v1 = vpop.f32.mrf.mxu0 }
 0xa48   :  { %v14666_v28 = vadd.f32 %v11429_v1, %v1827_v41  ;;  %v3502_v48 = vpop.xlane.xlu1 %3501  ;;  %v3505_v54 = vpop.xlane.xlu0 %3504 }
 0xa49   :  { %12510 = vpow2.f32 %v3529_v19  ;;  %v3522_v36 = vsub.f32 %v14568_v32, %v3502_v48  ;;  %v3523_v15 = vsub.f32 %v14564_v24, %v3505_v54  ;;  %v2624_v63 = vpop.f32.mrf.mxu0 }
 0xa4a   :  { %v14672_v13 = vadd.f32 %v2624_v63, %v1819_v17 }
 0xa4b   :  { %v3531_v34 = vmul.f32 1.442695, %v3522_v36  ;;  %v3533_v11 = vmul.f32 1.442695, %v3523_v15  ;;  %v11430_v37 = vpop.f32.mrf.mxu0 }
 0xa4c   :  { %v14674_v50 = vadd.f32 %v11430_v37, %v1830_v55  ;;  %v3508_v45 = vpop.xlane.xlu1 %3507  ;;  %v3511_v5 = vpop.xlane.xlu0 %3510 }
 0xa4d   :  { %12512 = vpow2.f32 %v3531_v34  ;;  %v3524_v7 = vsub.f32 %v14578_v60, %v3508_v45  ;;  %v3525_v32 = vsub.f32 %v14582_v47, %v3511_v5  ;;  %v14680_v61 = vpop.f32.mrf.mxu0 }
 0xa4e   :  { %12514 = vpow2.f32 %v3533_v11 }
 0xa4f   :  { %v3535_v24 = vmul.f32 1.442695, %v3524_v7  ;;  %v3537_v59 = vmul.f32 1.442695, %v3525_v32 }
 0xa50   :  { %v3514_v42 = vpop.xlane.xlu1 %3513  ;;  %v3517_v29 = vpop.xlane.xlu0 %3516 }
 0xa51   :  { %12516 = vpow2.f32 %v3535_v24  ;;  %v3526_v23 = vsub.f32 %v14594_v44, %v3514_v42  ;;  %v3527_v62 = vsub.f32 %v14590_v52, %v3517_v29 }
 0xa52   :  { %12518 = vpow2.f32 %v3537_v59 }
 0xa53   :  { %v3539_v27 = vmul.f32 1.442695, %v3526_v23  ;;  %v3541_v18 = vmul.f32 1.442695, %v3527_v62 }
 0xa54   :  { %v3520_v9 = vpop.xlane.xlu1 %3519 }
 0xa55   :  { %12520 = vpow2.f32 %v3539_v27  ;;  %v3528_v60 = vsub.f32 %v14603_v35, %v3520_v9  ;;  %v11457_v47 = vpop.f32.mrf.mxu0 }
 0xa56   :  { %v14683_v46 = vpop.eup %12510  ;;  %12522 = vpow2.f32 %v3541_v18  ;;  %v14686_v41 = vadd.f32 %v11457_v47, %v14244_v58 }
 0xa57   :  { %v3543_v19 = vmul.f32 1.442695, %v3528_v60  ;;  %v2898_v44 = vpop.f32.mrf.mxu0  ;;  %v3545_v52 = vsel %vm1003_vm2, %v14683_v46, 0.0 }
 0xa58   :  { %v14691_v1 = vadd.f32 %v2898_v44, %v14246_v14  ;;  %3546 = vadd.xlane.f32.xlu0 %v3545_v52 }
 0xa59   :  { %12524 = vpow2.f32 %v3543_v19  ;;  %v11458_v57 = vpop.f32.mrf.mxu0 }
 0xa5a   :  { %v14693_v17 = vpop.eup %12512  ;;  %v14696_v35 = vadd.f32 %v11458_v57, %v14248_v49 }
 0xa5b   :  { %v14698_v48 = vpop.eup %12514  ;;  %v3548_v58 = vsel %vm1003_vm2, %v14693_v17, 0.0  ;;  %v14716_v55 = vpop.f32.mrf.mxu0 }
 0xa5c   :  { %3549 = vadd.xlane.f32.xlu1 %v3548_v58  ;;  %v3551_v54 = vsel %vm1003_vm2, %v14698_v48, 0.0 }
 0xa5d   :  { %3552 = vadd.xlane.f32.xlu0 %v3551_v54 }
 0xa5e   :  { %v14704_v14 = vpop.eup %12516 }
 0xa5f   :  { %v14706_v36 = vpop.eup %12518  ;;  %v3554_v15 = vsel %vm1003_vm2, %v14704_v14, 0.0 }
 0xa60   :  { %3555 = vadd.xlane.f32.xlu1 %v3554_v15  ;;  %v3557_v49 = vsel %vm1003_vm2, %v14706_v36, 0.0 }
 0xa61   :  { %3558 = vadd.xlane.f32.xlu0 %v3557_v49 }
 0xa62   :  { %v14712_v63 = vpop.eup %12520 }
 0xa63   :  { %v14714_v2 = vpop.eup %12522  ;;  %v3560_v34 = vsel %vm1003_vm2, %v14712_v63, 0.0 }
 0xa64   :  { %3561 = vadd.xlane.f32.xlu1 %v3560_v34  ;;  %v3563_v11 = vsel %vm1003_vm2, %v14714_v2, 0.0  ;;  %v3257_v23 = vpop.xlane.xlu0 %3256 }
 0xa65   :  { %3564 = vadd.xlane.f32.xlu0 %v3563_v11  ;;  %v11461_v37 = vpop.f32.mrf.mxu0  ;;  %12526 = vrcp.f32 %v3257_v23 }
 0xa66   :  { %v14722_v45 = vpop.eup %12524  ;;  %v14725_v5 = vadd.f32 %v11461_v37, %v14252_v21 }
 0xa67   :  { %v2914_v7 = vpop.f32.mrf.mxu0  ;;  %v3566_v32 = vsel %vm1003_vm2, %v14722_v45, 0.0 }
 0xa68   :  { %v14730_v24 = vadd.f32 %v2914_v7, %v14254_v53  ;;  %3567 = vadd.xlane.f32.xlu1 %v3566_v32  ;;  %v3263_v21 = vpop.xlane.xlu0 %3262 }
 0xa69   :  { %v11462_v59 = vpop.f32.mrf.mxu0 }
 0xa6a   :  { %v14733_v42 = vadd.f32 %v11462_v59, %v14256_v43 }
 0xa6b   :  { %v14735_v29 = vpop.f32.mrf.mxu0 }
 0xa6d   :  { %v11469_v62 = vpop.f32.mrf.mxu0 }
 0xa6f   :  { %v3023_v27 = vpop.f32.mrf.mxu0 }
 0xa70   :  { %v3269_v19 = vpop.xlane.xlu0 %3268 }
 0xa71   :  { %v11470_v18 = vpop.f32.mrf.mxu0 }
 0xa72   :  { %v12527_v11 = vpop.eup %12526  ;;  %v3087_v37 = vpack.c.bf16 %v11470_v18, %v11469_v62 }
 0xa73   :  { %v3026_v9 = vpop.f32.mrf.mxu0 }
 0xa74   :  { %v3260_v60 = vpop.xlane.xlu1 %3259 }
 0xa75   :  { %12528 = vrcp.f32 %v3260_v60  ;;  %v11473_v47 = vpop.f32.mrf.mxu0  ;;  %v3275_v58 = vpop.xlane.xlu0 %3274 }
 0xa76   :  { %12530 = vrcp.f32 %v3263_v21  ;;  %v3287_v21 = vmul.f32 %v12527_v11, %v14613_v38 }
 0xa77   :  { %v3039_v53 = vpop.f32.mrf.mxu0 }
 0xa78   :  { %v3266_v44 = vpop.xlane.xlu1 %3265 }
 0xa79   :  { %12532 = vrcp.f32 %v3266_v44  ;;  %v11474_v52 = vpop.f32.mrf.mxu0 }
 0xa7a   :  { %v3089_v43 = vpack.c.bf16 %v11474_v52, %v11473_v47  ;;  %12534 = vrcp.f32 %v3269_v19  ;;  %v3086_v19 = vpack.c.bf16 %v3026_v9, %v3023_v27 }
 0xa7b   :  { %v3042_v57 = vpop.f32.mrf.mxu0 }
 0xa7c   :  { %v3088_v54 = vpack.c.bf16 %v3042_v57, %v3039_v53  ;;  %11499 = vmatprep.subr.bf16.mxu0 %v3089_v43  ;;  %v3272_v15 = vpop.xlane.xlu1 %3271 }
 0xa7d   :  { %12536 = vrcp.f32 %v3272_v15  ;;  %v11477_v49 = vpop.f32.mrf.mxu0  ;;  %11500 = vmatpush3.bf16.msra.mxu0 %v3089_v43 }
 0xa7e   :  { %11501 = vmatprep.subr.bf16.mxu0 %v3088_v54  ;;  %12538 = vrcp.f32 %v3275_v58 }
 0xa7f   :  { %v3055_v34 = vpop.f32.mrf.mxu0 }
 0xa80   :  { %v3278_v7 = vpop.xlane.xlu1 %3277 }
 0xa81   :  { %12540 = vrcp.f32 %v3278_v7  ;;  %v11478_v32 = vpop.f32.mrf.mxu0  ;;  %11502 = vmatpush3.bf16.msra.mxu0 %v3088_v54 }
 0xa82   :  { %v12529_v59 = vpop.eup %12528  ;;  %11503 = vmatprep.subr.bf16.mxu0 %v3087_v37 }
 0xa83   :  { %v3058_v23 = vpop.f32.mrf.mxu0  ;;  %v3288_v60 = vmul.f32 %v12529_v59, %v14627_v16  ;;  %v12531_v47 = vpop.eup %12530 }
 0xa84   :  { %v3289_v62 = vmul.f32 %v12531_v47, %v14618_v22 }
 0xa85   :  { %v11481_v53 = vpop.f32.mrf.mxu0  ;;  %11504 = vmatpush3.bf16.msra.mxu0 %v3087_v37  ;;  %v3295_v44 = vpack.c.bf16 %v3288_v60, %v3287_v21  ;;  %v3091_v21 = vpack.c.bf16 %v11478_v32, %v11477_v49 }
 0xa86   :  { %v12533_v52 = vpop.eup %12532  ;;  %11505 = vmatprep.subr.bf16.mxu0 %v3086_v19 }
 0xa87   :  { %v3290_v18 = vmul.f32 %v12533_v52, %v14633_v10  ;;  %v3071_v43 = vpop.f32.mrf.mxu0  ;;  %11507 = vmatprep.mubr.msk.bf16.mxu0 %vm1003_vm2, %v3295_v44  ;;  %v12535_v57 = vpop.eup %12534 }
 0xa88   :  { %v3291_v27 = vmul.f32 %v12535_v57, %v14623_v3 }
 0xa89   :  { %v11482_v58 = vpop.f32.mrf.mxu0  ;;  %11506 = vmatpush3.bf16.msra.mxu0 %v3086_v19  ;;  %v3296_v38 = vpack.c.bf16 %v3290_v18, %v3289_v62 }
 0xa8a   :  { %v12537_v54 = vpop.eup %12536  ;;  %v3093_v16 = vpack.c.bf16 %v11482_v58, %v11481_v53 }
 0xa8b   :  { %v3074_v15 = vpop.f32.mrf.mxu0  ;;  %v3292_v9 = vmul.f32 %v12537_v54, %v14639_v33  ;;  %v12539_v11 = vpop.eup %12538  ;;  %v3090_v33 = vpack.c.bf16 %v3058_v23, %v3055_v34 }
 0xa8c   :  { %v3092_v37 = vpack.c.bf16 %v3074_v15, %v3071_v43  ;;  %11508 = vmatmul.mubr.msk.bf16.vlgmr.msra.gmra.mxu0 %vm1003_vm2, %v3296_v38  ;;  %11531 = vmatprep.subr.bf16.mxu0 %v3093_v16  ;;  %v3293_v7 = vmul.f32 %v12539_v11, %v14629_v30 }
 0xa8d   :  { %11532 = vmatpush3.bf16.msra.mxu0 %v3093_v16  ;;  %v3297_v22 = vpack.c.bf16 %v3292_v9, %v3291_v27 }
 0xa8e   :  { %v12541_v10 = vpop.eup %12540  ;;  %11533 = vmatprep.subr.bf16.mxu0 %v3092_v37 }
 0xa8f   :  { %11511 = vmatprep.mubr.msk.bf16.mxu0 %vm1003_vm2, %v3297_v22  ;;  %v3294_v59 = vmul.f32 %v12541_v10, %v14643_v20 }
 0xa91   :  { %11534 = vmatpush3.bf16.msra.mxu0 %v3092_v37  ;;  %v3298_v3 = vpack.c.bf16 %v3294_v59, %v3293_v7  ;;  %v17750_v37 = vmov 0   ;;  %v17751_v7 = vld [vmem:[#allocation43_spill] sm:$0xff] }
 0xa92   :  { %11535 = vmatprep.subr.bf16.mxu0 %v3091_v21 }
 0xa94   :  { %11512 = vmatmul.mubr.msk.bf16.gmra.mxu0 %vm1003_vm2, %v3298_v3 }
 0xa95   :  { %11536 = vmatpush3.bf16.msra.mxu0 %v3091_v21 }
 0xa96   :  { %11537 = vmatprep.subr.bf16.mxu0 %v3090_v33 }
 0xa99   :  { %11538 = vmatpush3.bf16.msra.mxu0 %v3090_v33 }
 0xae1   :  { %v3547_v60 = vpop.xlane.xlu0 %3546 }
 0xae2   :  { %12542 = vrcp.f32 %v3547_v60 }
 0xae5   :  { %v3550_v47 = vpop.xlane.xlu1 %3549 }
 0xae6   :  { %12544 = vrcp.f32 %v3550_v47  ;;  %v3553_v19 = vpop.xlane.xlu0 %3552 }
 0xae7   :  { %12546 = vrcp.f32 %v3553_v19  ;;  %v14774_v19 = vld [vmem:[%s17544_s5] ss:$0 sm:$0xff] }
 0xae9   :  { %v3556_v53 = vpop.xlane.xlu1 %3555 }
 0xaea   :  { %12548 = vrcp.f32 %v3556_v53  ;;  %v3559_v30 = vpop.xlane.xlu0 %3558 }
 0xaeb   :  { %12550 = vrcp.f32 %v3559_v30 }
 0xaed   :  { %v3562_v20 = vpop.xlane.xlu1 %3561 }
 0xaee   :  { %12552 = vrcp.f32 %v3562_v20  ;;  %v3565_v49 = vpop.xlane.xlu0 %3564 }
 0xaef   :  { %12554 = vrcp.f32 %v3565_v49  ;;  %v12543_v34 = vpop.eup %12542  ;;  %v17753_v49 = vld [vmem:[#allocation47_spill] sm:$0xff] }
 0xaf0   :  { %v3577_v44 = vmul.f32 %v12543_v34, %v14683_v46  ;;  %v17754_v34 = vld [vmem:[#allocation20_spill] sm:$0xff] }
 0xaf1   :  { %v3568_v32 = vpop.xlane.xlu1 %3567 }
 0xaf2   :  { %12556 = vrcp.f32 %v3568_v32  ;;  %v1822_v32 = vadd.f32 %v17754_v34, %v17753_v49  ;;  %v17757_v49 = vld [vmem:[#allocation24_spill] sm:$0xff] }
 0xaf3   :  { %v12545_v23 = vpop.eup %12544 }
 0xaf4   :  { %v3578_v52 = vmul.f32 %v12545_v23, %v14693_v17  ;;  %v12547_v62 = vpop.eup %12546  ;;  %v12913_v23 = vld [vmem:[%s17539_s0 + $0x18] sm:$0xff] }
 0xaf5   :  { %v3579_v57 = vmul.f32 %v12547_v62, %v14698_v48 }
 0xaf6   :  { %v3585_v18 = vpack.c.bf16 %v3578_v52, %v3577_v44 }
 0xaf7   :  { %v12549_v43 = vpop.eup %12548 }
 0xaf8   :  { %v3580_v58 = vmul.f32 %v12549_v43, %v14704_v14  ;;  %11539 = vmatprep.mubr.msk.bf16.mxu0 %vm1003_vm2, %v3585_v18  ;;  %v12551_v38 = vpop.eup %12550 }
 0xaf9   :  { %v3581_v15 = vmul.f32 %v12551_v38, %v14706_v36  ;;  %v17752_v36 = vld [vmem:[#allocation21_spill] sm:$0xff]  ;;  %v2644_v38 = vadd.f32 %v14680_v61, %v1822_v32  ;;  %v12921_v32 = vld [vmem:[%s17539_s0 + $0x58] sm:$0xff] }
 0xafa   :  { %v3586_v54 = vpack.c.bf16 %v3580_v58, %v3579_v57  ;;  %v1806_v59 = vadd.f32 %v17752_v36, %v17751_v7 }
 0xafb   :  { %v12553_v16 = vpop.eup %12552 }
 0xafc   :  { %11540 = vmatmul.mubr.msk.bf16.vlgmr.msra.gmra.mxu0 %vm1003_vm2, %v3586_v54  ;;  %v3582_v46 = vmul.f32 %v12553_v16, %v14712_v63  ;;  %v12555_v27 = vpop.eup %12554  ;;  %v2640_v33 = vadd.f32 %v14659_v25, %v1806_v59  ;;  %v12914_v54 = vld [vmem:[%s17539_s0 + $0x20] sm:$0xff]  ;;  %v17755_v59 = vld [vmem:[#allocation22_spill] sm:$0xff] }
 0xafd   :  { %v3583_v48 = vmul.f32 %v12555_v27, %v14714_v2  ;;  %v12910_v2 = vld [vmem:[%s17539_s0] sm:$0xff] }
 0xafe   :  { %v3587_v17 = vpack.c.bf16 %v3582_v46, %v3581_v15  ;;  %v12915_v15 = vld [vmem:[%s17539_s0 + $0x30] sm:$0xff] }
 0xaff   :  { %v12557_v9 = vpop.eup %12556 }
 0xb00   :  { %11543 = vmatprep.mubr.msk.bf16.mxu0 %vm1003_vm2, %v3587_v17  ;;  %v3584_v14 = vmul.f32 %v12557_v9, %v14722_v45  ;;  %v12916_v9 = vld [vmem:[%s17539_s0 + $0x28] sm:$0xff] }
 0xb02   :  { %v3588_v11 = vpack.c.bf16 %v3584_v14, %v3583_v48  ;;  %v12917_v14 = vld [vmem:[%s17539_s0 + $0x38] sm:$0xff] }
 0xb04   :  { %11544 = vmatmul.mubr.msk.bf16.gmra.mxu0 %vm1003_vm2, %v3588_v11 }
 0xb05   :  { %4189 = vmatprep.mubr.bf16.mxu0 %v17750_v37 }
 0xb4c   :  { %v11509_v22 = vpop.f32.mrf.mxu0 }
 0xb4d   :  { %v3378_v63 = vadd.f32 %v11509_v22, %v14651_v26  ;;  %v12911_v26 = vld [vmem:[%s17539_s0 + $0x10] sm:$0xff] }
 0xb4e   :  { %v3345_v10 = vpop.f32.mrf.mxu0 }
 0xb4f   :  { %v3376_v21 = vadd.f32 %v3345_v10, %v14655_v6  ;;  %v3676_v6 = vadd.f32 %v12911_v26, %v3378_v63  ;;  %v17756_v63 = vld [vmem:[#allocation23_spill] sm:$0xff] }
 0xb50   :  { %v11510_v3 = vpop.f32.mrf.mxu0 }
 0xb51   :  { %v3674_v45 = vadd.f32 %v12910_v2, %v3376_v21  ;;  %v3379_v60 = vadd.f32 %v11510_v3, %v14657_v51  ;;  %v12912_v51 = vld [vmem:[%s17539_s0 + $0x8] sm:$0xff]  ;;  %v14794_v43 = vadd.f32 %v14774_v19, %v3676_v6  ;;  %v2173_v21 = vadd.f32 %v17756_v63, %v17755_v59 }
 0xb52   :  { %v3348_v47 = vpop.f32.mrf.mxu0 }
 0xb53   :  { %v3377_v53 = vadd.f32 %v3348_v47, %v2640_v33  ;;  %v14780_v25 = vadd.f32 %v14774_v19, %v3674_v45  ;;  %v3677_v44 = vadd.f32 %v12913_v23, %v3379_v60  ;;  %v2930_v45 = vadd.f32 %v14716_v55, %v2173_v21  ;;  %v12918_v60 = vld [vmem:[%s17539_s0 + $0x40] sm:$0xff]  ;;  %v12920_v55 = vld [vmem:[%s17539_s0 + $0x48] sm:$0xff] }
 0xb54   :  { %v11513_v30 = vpop.f32.mrf.mxu0 }
 0xb55   :  { %v3675_v20 = vadd.f32 %v12912_v51, %v3377_v53  ;;  %3715 = vadd.xlane.f32.xlu0 %v14780_v25  ;;  %v3382_v62 = vadd.f32 %v11513_v30, %v14666_v28  ;;  %v12919_v53 = vld [vmem:[%s17539_s0 + $0x50] sm:$0xff] }
 0xb56   :  { %v3361_v52 = vpop.f32.mrf.mxu0 }
 0xb57   :  { %v3380_v18 = vadd.f32 %v3361_v52, %v14672_v13  ;;  %v14797_v57 = vadd.f32 %v14774_v19, %v3675_v20  ;;  %v14806_v13 = vadd.f32 %v14774_v19, %v3677_v44  ;;  %v3680_v46 = vadd.f32 %v12915_v15, %v3382_v62  ;;  %v12923_v15 = vld [vmem:[%s17539_s0 + $0x70] sm:$0xff] }
 0xb58   :  { %v11514_v58 = vpop.f32.mrf.mxu0 }
 0xb59   :  { %v3678_v16 = vadd.f32 %v12914_v54, %v3380_v18  ;;  %3719 = vadd.xlane.f32.xlu0 %v14794_v43  ;;  %3717 = vadd.xlane.f32.xlu1 %v14797_v57  ;;  %v3383_v61 = vadd.f32 %v11514_v58, %v14674_v50  ;;  %v14824_v50 = vadd.f32 %v14774_v19, %v3680_v46 }
 0xb5a   :  { %v3364_v28 = vpop.f32.mrf.mxu0 }
 0xb5b   :  { %v3381_v27 = vadd.f32 %v3364_v28, %v2644_v38  ;;  %v14813_v17 = vadd.f32 %v14774_v19, %v3678_v16  ;;  %v3681_v11 = vadd.f32 %v12917_v14, %v3383_v61  ;;  %v12922_v16 = vld [vmem:[%s17539_s0 + $0x60] sm:$0xff]  ;;  %v12925_v14 = vld [vmem:[%s17539_s0 + $0x78] sm:$0xff] }
 0xb5d   :  { %v3679_v48 = vadd.f32 %v12916_v9, %v3381_v27  ;;  %3721 = vadd.xlane.f32.xlu1 %v14806_v13  ;;  %3723 = vadd.xlane.f32.xlu0 %v14813_v17  ;;  %v14832_v10 = vadd.f32 %v14774_v19, %v3681_v11  ;;  %v12924_v9 = vld [vmem:[%s17539_s0 + $0x68] sm:$0xff] }
 0xb5f   :  { %v14827_v22 = vadd.f32 %v14774_v19, %v3679_v48 }
 0xb61   :  { %3727 = vadd.xlane.f32.xlu0 %v14824_v50  ;;  %3725 = vadd.xlane.f32.xlu1 %v14827_v22 }
 0xb65   :  { %3729 = vadd.xlane.f32.xlu1 %v14832_v10 }
 0xbbc   :  { %v11541_v7 = vpop.f32.mrf.mxu0 }
 0xbbd   :  { %v3668_v3 = vadd.f32 %v11541_v7, %v14686_v41 }
 0xbbe   :  { %v3635_v36 = vpop.f32.mrf.mxu0 }
 0xbbf   :  { %v3666_v33 = vadd.f32 %v3635_v36, %v14691_v1  ;;  %v3684_v30 = vadd.f32 %v12919_v53, %v3668_v3 }
 0xbc0   :  { %v11542_v2 = vpop.f32.mrf.mxu0 }
 0xbc1   :  { %v3682_v47 = vadd.f32 %v12918_v60, %v3666_v33  ;;  %v3669_v26 = vadd.f32 %v11542_v2, %v14696_v35  ;;  %v17758_v35 = vld [vmem:[#allocation13_spill] sm:$0xff]  ;;  %v14862_v18 = vadd.f32 %v14774_v19, %v3684_v30 }
 0xbc2   :  { %v3638_v6 = vpop.f32.mrf.mxu0  ;;  %v2189_v34 = vadd.f32 %v17758_v35, %v17757_v49 }
 0xbc3   :  { %v3667_v51 = vadd.f32 %v3638_v6, %v2930_v45  ;;  %v14848_v41 = vadd.f32 %v14774_v19, %v3682_v47  ;;  %v3685_v23 = vadd.f32 %v12921_v32, %v3669_v26  ;;  %v12062_v26 = vld [vmem:[%s17547_s8 + $0xe0] ss:$16 sps:$4 sm:$0xff]   ;;  %v12064_v6 = vld [vmem:[%s17547_s8 + $0xe4] ss:$16 sps:$4 sm:$0xff]  }
 0xbc4   :  { %v11545_v1 = vpop.f32.mrf.mxu0  ;;  %v2934_v54 = vadd.f32 %v14735_v29, %v2189_v34  ;;  %4157 = vmatprep.subr.bf16.mxu0 %v12064_v6  ;;  %v12083_v6 = vld [vmem:[%s17547_s8 + $0x88] ss:$16 sps:$4 sm:$0xff]  }
 0xbc5   :  { %v3683_v20 = vadd.f32 %v12920_v55, %v3667_v51  ;;  %3731 = vadd.xlane.f32.xlu0 %v14848_v41  ;;  %v3672_v52 = vadd.f32 %v11545_v1, %v14725_v5  ;;  %v12065_v51 = vld [vmem:[%s17547_s8 + $0xe8] ss:$16 sps:$4 sm:$0xff]   ;;  %v12067_v1 = vld [vmem:[%s17547_s8 + $0xec] ss:$16 sps:$4 sm:$0xff]   ;;  %4158 = vmatpush1.bf16.msra.mxu0 %v12062_v26  ;;  %v12080_v26 = vld [vmem:[%s17547_s8 + $0x80] ss:$16 sps:$4 sm:$0xff]  }
 0xbc6   :  { %v3651_v44 = vpop.f32.mrf.mxu0  ;;  %4270 = vmatprep.subr.bf16.mxu1 %v12067_v1  ;;  %v12089_v1 = vld [vmem:[%s17547_s8 + $0x68] ss:$16 sps:$4 sm:$0xff]  }
 0xbc7   :  { %v3670_v62 = vadd.f32 %v3651_v44, %v14730_v24  ;;  %v14865_v58 = vadd.f32 %v14774_v19, %v3683_v20  ;;  %v14874_v24 = vadd.f32 %v14774_v19, %v3685_v23  ;;  %v3688_v46 = vadd.f32 %v12923_v15, %v3672_v52  ;;  %4271 = vmatpush1.bf16.msra.mxu1 %v12065_v51  ;;  %v12086_v51 = vld [vmem:[%s17547_s8 + $0x60] ss:$16 sps:$4 sm:$0xff]  }
 0xbc8   :  { %v11546_v38 = vpop.f32.mrf.mxu0 }
 0xbc9   :  { %v3686_v28 = vadd.f32 %v12922_v16, %v3670_v62  ;;  %3735 = vadd.xlane.f32.xlu0 %v14862_v18  ;;  %3733 = vadd.xlane.f32.xlu1 %v14865_v58  ;;  %v3673_v29 = vadd.f32 %v11546_v38, %v14733_v42  ;;  %v14892_v42 = vadd.f32 %v14774_v19, %v3688_v46 }
 0xbca   :  { %v3654_v5 = vpop.f32.mrf.mxu0 }
 0xbcb   :  { %v3671_v61 = vadd.f32 %v3654_v5, %v2934_v54  ;;  %v14881_v27 = vadd.f32 %v14774_v19, %v3686_v28  ;;  %v3689_v11 = vadd.f32 %v12925_v14, %v3673_v29  ;;  %v12068_v14 = vld [vmem:[%s17547_s8 + $0xc0] ss:$16 sps:$4 sm:$0xff]  }
 0xbcd   :  { %v3687_v48 = vadd.f32 %v12924_v9, %v3671_v61  ;;  %3737 = vadd.xlane.f32.xlu1 %v14874_v24  ;;  %3739 = vadd.xlane.f32.xlu0 %v14881_v27  ;;  %v14900_v36 = vadd.f32 %v14774_v19, %v3689_v11  ;;  %v12070_v61 = vld [vmem:[%s17547_s8 + $0xc4] ss:$16 sps:$4 sm:$0xff]   ;;  %v12073_v9 = vld [vmem:[%s17547_s8 + $0xcc] ss:$16 sps:$4 sm:$0xff]   ;;  %v12071_v11 = vld [vmem:[%s17547_s8 + $0xc8] ss:$16 sps:$4 sm:$0xff]  }
 0xbce   :  { %4159 = vmatprep.subr.bf16.mxu0 %v12070_v61  ;;  %4272 = vmatprep.subr.bf16.mxu1 %v12073_v9 }
 0xbcf   :  { %v14895_v7 = vadd.f32 %v14774_v19, %v3687_v48  ;;  %4160 = vmatpush1.bf16.msra.mxu0 %v12068_v14  ;;  %4273 = vmatpush1.bf16.msra.mxu1 %v12071_v11 }
 0xbd1   :  { %3743 = vadd.xlane.f32.xlu0 %v14892_v42  ;;  %3741 = vadd.xlane.f32.xlu1 %v14895_v7 }
 0xbd5   :  { %3745 = vadd.xlane.f32.xlu1 %v14900_v36 }
 0xbde   :  { %v3716_v59 = vpop.xlane.xlu0 %3715 }
 0xbdf   :  { %v3747_v63 = vmul.f32 0.0078125, %v3716_v59 }
 0xbe1   :  { %v14904_v21 = vsub.f32 %v14780_v25, %v3747_v63  ;;  %v12076_v63 = vld [vmem:[%s17547_s8 + $0xa4] ss:$16 sps:$4 sm:$0xff]  }
 0xbe2   :  { %v3718_v3 = vpop.xlane.xlu1 %3717  ;;  %v3720_v33 = vpop.xlane.xlu0 %3719  ;;  %4161 = vmatprep.subr.bf16.mxu0 %v12076_v63 }
 0xbe3   :  { %v3748_v2 = vmul.f32 0.0078125, %v3718_v3  ;;  %v3749_v45 = vmul.f32 0.0078125, %v3720_v33  ;;  %v3779_v60 = vmul.f32 %v14904_v21, %v14904_v21  ;;  %v12079_v3 = vld [vmem:[%s17547_s8 + $0xac] ss:$16 sps:$4 sm:$0xff]   ;;  %v12074_v33 = vld [vmem:[%s17547_s8 + $0xa0] ss:$16 sps:$4 sm:$0xff]  }
 0xbe4   :  { %4274 = vmatprep.subr.bf16.mxu1 %v12079_v3  ;;  %4162 = vmatpush1.bf16.msra.mxu0 %v12074_v33 }
 0xbe5   :  { %v14909_v47 = vsub.f32 %v14797_v57, %v3748_v2  ;;  %v14912_v19 = vsub.f32 %v14794_v43, %v3749_v45  ;;  %3795 = vadd.xlane.f32.xlu0 %v3779_v60  ;;  %v12077_v2 = vld [vmem:[%s17547_s8 + $0xa8] ss:$16 sps:$4 sm:$0xff]   ;;  %v12082_v45 = vld [vmem:[%s17547_s8 + $0x84] ss:$16 sps:$4 sm:$0xff]   ;;  %v12085_v60 = vld [vmem:[%s17547_s8 + $0x8c] ss:$16 sps:$4 sm:$0xff]  }
 0xbe6   :  { %v3722_v53 = vpop.xlane.xlu1 %3721  ;;  %v3724_v30 = vpop.xlane.xlu0 %3723  ;;  %4275 = vmatpush1.bf16.msra.mxu1 %v12077_v2  ;;  %4163 = vmatprep.subr.bf16.mxu0 %v12082_v45 }
 0xbe7   :  { %v3750_v55 = vmul.f32 0.0078125, %v3722_v53  ;;  %v3751_v20 = vmul.f32 0.0078125, %v3724_v30  ;;  %v3780_v49 = vmul.f32 %v14909_v47, %v14909_v47  ;;  %v3781_v35 = vmul.f32 %v14912_v19, %v14912_v19  ;;  %4276 = vmatprep.subr.bf16.mxu1 %v12085_v60  ;;  %v12088_v53 = vld [vmem:[%s17547_s8 + $0x64] ss:$16 sps:$4 sm:$0xff]   ;;  %v12091_v30 = vld [vmem:[%s17547_s8 + $0x6c] ss:$16 sps:$4 sm:$0xff]  }
 0xbe8   :  { %4164 = vmatpush1.bf16.msra.mxu0 %v12080_v26 }
 0xbe9   :  { %v14931_v34 = vsub.f32 %v14806_v13, %v3750_v55  ;;  %v14934_v32 = vsub.f32 %v14813_v17, %v3751_v20  ;;  %3797 = vadd.xlane.f32.xlu1 %v3780_v49  ;;  %3799 = vadd.xlane.f32.xlu0 %v3781_v35  ;;  %v12094_v55 = vld [vmem:[%s17547_s8 + $0x44] ss:$16 sps:$4 sm:$0xff]   ;;  %v12097_v20 = vld [vmem:[%s17547_s8 + $0x4c] ss:$16 sps:$4 sm:$0xff]   ;;  %v12092_v49 = vld [vmem:[%s17547_s8 + $0x40] ss:$16 sps:$4 sm:$0xff]  }
 0xbea   :  { %v3726_v23 = vpop.xlane.xlu1 %3725  ;;  %v3728_v44 = vpop.xlane.xlu0 %3727  ;;  %4277 = vmatpush1.bf16.msra.mxu1 %v12083_v6  ;;  %4165 = vmatprep.subr.bf16.mxu0 %v12088_v53  ;;  %v12095_v35 = vld [vmem:[%s17547_s8 + $0x48] ss:$16 sps:$4 sm:$0xff]  }
 0xbeb   :  { %v3752_v52 = vmul.f32 0.0078125, %v3726_v23  ;;  %v3753_v62 = vmul.f32 0.0078125, %v3728_v44  ;;  %v3782_v38 = vmul.f32 %v14931_v34, %v14931_v34  ;;  %v3783_v54 = vmul.f32 %v14934_v32, %v14934_v32  ;;  %4278 = vmatprep.subr.bf16.mxu1 %v12091_v30  ;;  %v12100_v23 = vld [vmem:[%s17547_s8 + $0x24] ss:$16 sps:$4 sm:$0xff]   ;;  %v12103_v44 = vld [vmem:[%s17547_s8 + $0x2c] ss:$16 sps:$4 sm:$0xff]  }
 0xbec   :  { %4166 = vmatpush1.bf16.msra.mxu0 %v12086_v51 }
 0xbed   :  { %v14941_v16 = vsub.f32 %v14827_v22, %v3752_v52  ;;  %v14944_v28 = vsub.f32 %v14824_v50, %v3753_v62  ;;  %3801 = vadd.xlane.f32.xlu1 %v3782_v38  ;;  %3803 = vadd.xlane.f32.xlu0 %v3783_v54  ;;  %v12098_v52 = vld [vmem:[%s17547_s8 + $0x20] ss:$16 sps:$4 sm:$0xff]   ;;  %v12101_v62 = vld [vmem:[%s17547_s8 + $0x28] ss:$16 sps:$4 sm:$0xff]   ;;  %v12106_v54 = vld [vmem:[%s17547_s8 + $0x4] ss:$16 sps:$4 sm:$0xff]  }
 0xbee   :  { %v3730_v5 = vpop.xlane.xlu1 %3729  ;;  %4279 = vmatpush1.bf16.msra.mxu1 %v12089_v1  ;;  %4167 = vmatprep.subr.bf16.mxu0 %v12094_v55  ;;  %v12104_v38 = vld [vmem:[%s17547_s8] ss:$16 sps:$4 sm:$0xff]  }
 0xbef   :  { %v3754_v15 = vmul.f32 0.0078125, %v3730_v5  ;;  %v3784_v46 = vmul.f32 %v14941_v16, %v14941_v16  ;;  %v3785_v29 = vmul.f32 %v14944_v28, %v14944_v28  ;;  %4280 = vmatprep.subr.bf16.mxu1 %v12097_v20  ;;  %v12107_v5 = vld [vmem:[%s17547_s8 + $0x8] ss:$16 sps:$4 sm:$0xff]  }
 0xbf0   :  { %4168 = vmatpush1.bf16.msra.mxu0 %v12092_v49 }
 0xbf1   :  { %v14957_v48 = vsub.f32 %v14832_v10, %v3754_v15  ;;  %3805 = vadd.xlane.f32.xlu1 %v3784_v46  ;;  %3807 = vadd.xlane.f32.xlu0 %v3785_v29  ;;  %v12109_v15 = vld [vmem:[%s17547_s8 + $0xc] ss:$16 sps:$4 sm:$0xff]  }
 0xbf2   :  { %4281 = vmatpush1.bf16.msra.mxu1 %v12095_v35  ;;  %4169 = vmatprep.subr.bf16.mxu0 %v12100_v23 }
 0xbf3   :  { %v3786_v59 = vmul.f32 %v14957_v48, %v14957_v48  ;;  %4282 = vmatprep.subr.bf16.mxu1 %v12103_v44 }
 0xbf4   :  { %4170 = vmatpush1.bf16.msra.mxu0 %v12098_v52 }
 0xbf5   :  { %3809 = vadd.xlane.f32.xlu1 %v3786_v59  ;;  %4171 = vmatprep.subr.bf16.mxu0 %v12106_v54 }
 0xbf6   :  { %4283 = vmatpush1.bf16.msra.mxu1 %v12101_v62 }
 0xbf7   :  { %4284 = vmatprep.subr.bf16.mxu1 %v12109_v15 }
 0xbf8   :  { %4172 = vmatpush1.bf16.msra.mxu0 %v12104_v38 }
 0xbfa   :  { %4285 = vmatpush1.bf16.msra.mxu1 %v12107_v5 }
 0xc4e   :  { %v3732_v46 = vpop.xlane.xlu0 %3731 }
 0xc4f   :  { %v3755_v29 = vmul.f32 0.0078125, %v3732_v46 }
 0xc51   :  { %v15040_v61 = vsub.f32 %v14848_v41, %v3755_v29 }
 0xc52   :  { %v3734_v9 = vpop.xlane.xlu1 %3733  ;;  %v3736_v14 = vpop.xlane.xlu0 %3735 }
 0xc53   :  { %v3756_v11 = vmul.f32 0.0078125, %v3734_v9  ;;  %v3757_v59 = vmul.f32 0.0078125, %v3736_v14  ;;  %v3787_v63 = vmul.f32 %v15040_v61, %v15040_v61 }
 0xc55   :  { %v15045_v3 = vsub.f32 %v14865_v58, %v3756_v11  ;;  %v15048_v33 = vsub.f32 %v14862_v18, %v3757_v59  ;;  %3811 = vadd.xlane.f32.xlu0 %v3787_v63 }
 0xc56   :  { %v3738_v2 = vpop.xlane.xlu1 %3737  ;;  %v3740_v45 = vpop.xlane.xlu0 %3739 }
 0xc57   :  { %v3758_v60 = vmul.f32 0.0078125, %v3738_v2  ;;  %v3759_v26 = vmul.f32 0.0078125, %v3740_v45  ;;  %v3788_v6 = vmul.f32 %v15045_v3, %v15045_v3  ;;  %v3789_v53 = vmul.f32 %v15048_v33, %v15048_v33 }
 0xc59   :  { %v15055_v30 = vsub.f32 %v14874_v24, %v3758_v60  ;;  %v15058_v51 = vsub.f32 %v14881_v27, %v3759_v26  ;;  %3813 = vadd.xlane.f32.xlu1 %v3788_v6  ;;  %3815 = vadd.xlane.f32.xlu0 %v3789_v53 }
 0xc5a   :  { %v3742_v1 = vpop.xlane.xlu1 %3741  ;;  %v3744_v55 = vpop.xlane.xlu0 %3743 }
 0xc5b   :  { %v3760_v20 = vmul.f32 0.0078125, %v3742_v1  ;;  %v3761_v49 = vmul.f32 0.0078125, %v3744_v55  ;;  %v3790_v35 = vmul.f32 %v15055_v30, %v15055_v30  ;;  %v3791_v23 = vmul.f32 %v15058_v51, %v15058_v51 }
 0xc5d   :  { %v15065_v44 = vsub.f32 %v14895_v7, %v3760_v20  ;;  %v15068_v52 = vsub.f32 %v14892_v42, %v3761_v49  ;;  %3817 = vadd.xlane.f32.xlu1 %v3790_v35  ;;  %3819 = vadd.xlane.f32.xlu0 %v3791_v23 }
 0xc5e   :  { %v3746_v62 = vpop.xlane.xlu1 %3745 }
 0xc5f   :  { %v3762_v38 = vmul.f32 0.0078125, %v3746_v62  ;;  %v3792_v54 = vmul.f32 %v15065_v44, %v15065_v44  ;;  %v3793_v5 = vmul.f32 %v15068_v52, %v15068_v52 }
 0xc61   :  { %v15075_v15 = vsub.f32 %v14900_v36, %v3762_v38  ;;  %3821 = vadd.xlane.f32.xlu1 %v3792_v54  ;;  %3823 = vadd.xlane.f32.xlu0 %v3793_v5 }
 0xc63   :  { %v3794_v46 = vmul.f32 %v15075_v15, %v15075_v15 }
 0xc65   :  { %3825 = vadd.xlane.f32.xlu1 %v3794_v46 }
 0xc6e   :  { %v3796_v29 = vpop.xlane.xlu0 %3795 }
 0xc6f   :  { %v3827_v9 = vmul.f32 0.0078125, %v3796_v29 }
 0xc71   :  { %v3843_v14 = vadd.f32 1e-05, %v3827_v9  ;;  %v15083_v9 = vld [vmem:[%s17545_s6] ss:$0 sm:$0xff] }
 0xc72   :  { %v3798_v11 = vpop.xlane.xlu1 %3797  ;;  %v3800_v59 = vpop.xlane.xlu0 %3799 }
 0xc73   :  { %12558 = vrsqrt.f32 %v3843_v14  ;;  %v3828_v63 = vmul.f32 0.0078125, %v3798_v11  ;;  %v3829_v2 = vmul.f32 0.0078125, %v3800_v59 }
 0xc75   :  { %v3844_v45 = vadd.f32 1e-05, %v3828_v63  ;;  %v3845_v60 = vadd.f32 1e-05, %v3829_v2 }
 0xc76   :  { %v3802_v26 = vpop.xlane.xlu1 %3801  ;;  %v3804_v6 = vpop.xlane.xlu0 %3803 }
 0xc77   :  { %12560 = vrsqrt.f32 %v3844_v45  ;;  %v3830_v53 = vmul.f32 0.0078125, %v3802_v26  ;;  %v3831_v55 = vmul.f32 0.0078125, %v3804_v6 }
 0xc78   :  { %12562 = vrsqrt.f32 %v3845_v60  ;;  %v15090_v60 = vld [vmem:[%s17546_s7] ss:$0 sm:$0xff] }
 0xc79   :  { %v3846_v1 = vadd.f32 1e-05, %v3830_v53  ;;  %v3847_v35 = vadd.f32 1e-05, %v3831_v55 }
 0xc7a   :  { %v3806_v20 = vpop.xlane.xlu1 %3805  ;;  %v3808_v62 = vpop.xlane.xlu0 %3807 }
 0xc7b   :  { %12564 = vrsqrt.f32 %v3846_v1  ;;  %v3832_v49 = vmul.f32 0.0078125, %v3806_v20  ;;  %v3833_v46 = vmul.f32 0.0078125, %v3808_v62 }
 0xc7d   :  { %v3848_v23 = vadd.f32 1e-05, %v3832_v49  ;;  %v3849_v59 = vadd.f32 1e-05, %v3833_v46 }
 0xc7e   :  { %v3810_v38 = vpop.xlane.xlu1 %3809 }
 0xc7f   :  { %12566 = vrsqrt.f32 %v3848_v23  ;;  %v3834_v54 = vmul.f32 0.0078125, %v3810_v38 }
 0xc80   :  { %v12559_v5 = vpop.eup %12558  ;;  %12568 = vrsqrt.f32 %v3847_v35 }
 0xc81   :  { %v3875_v29 = vmul.f32 %v12559_v5, %v14904_v21  ;;  %v3850_v14 = vadd.f32 1e-05, %v3834_v54 }
 0xc83   :  { %v3897_v63 = vmul.f32 %v15083_v9, %v3875_v29  ;;  %12570 = vrsqrt.f32 %v3850_v14 }
 0xc84   :  { %v12561_v11 = vpop.eup %12560  ;;  %12572 = vrsqrt.f32 %v3849_v59  ;;  %v12113_v59 = vld [vmem:[%s17549_s10 + $0xb8] sm:$0xff]  }
 0xc85   :  { %v3876_v2 = vmul.f32 %v12561_v11, %v14909_v47  ;;  %v12563_v45 = vpop.eup %12562  ;;  %v3919_v6 = vadd.f32 %v15090_v60, %v3897_v63  ;;  %v12110_v11 = vld [vmem:[%s17549_s10 + $0x78] sm:$0xff]   ;;  %v12114_v63 = vld [vmem:[%s17549_s10 + $0x70] sm:$0xff]  }
 0xc86   :  { %v3877_v1 = vmul.f32 %v12563_v45, %v14912_v19  ;;  %10723 = vmatprep.subr.bf16.mxu0 %v12110_v11  ;;  %v12129_v11 = vld [vmem:[%s17549_s10 + $0x98] sm:$0xff]  }
 0xc87   :  { %v3898_v21 = vmul.f32 %v15083_v9, %v3876_v2  ;;  %v12115_v2 = vld [vmem:[%s17549_s10 + $0xf0] sm:$0xff]  }
 0xc88   :  { %v12565_v26 = vpop.eup %12564  ;;  %v3899_v35 = vmul.f32 %v15083_v9, %v3877_v1 }
 0xc89   :  { %v3920_v53 = vadd.f32 %v15090_v60, %v3898_v21  ;;  %v3878_v55 = vmul.f32 %v12565_v26, %v14931_v34  ;;  %v12116_v26 = vld [vmem:[%s17549_s10 + $0x30] sm:$0xff]  }
 0xc8a   :  { %v3921_v19 = vadd.f32 %v15090_v60, %v3899_v35 }
 0xc8b   :  { %v3935_v47 = vpack.c.bf16 %v3920_v53, %v3919_v6  ;;  %v3900_v20 = vmul.f32 %v15083_v9, %v3878_v55  ;;  %v12117_v6 = vld [vmem:[%s17549_s10 + $0xb0] sm:$0xff]  }
 0xc8c   :  { %v12567_v49 = vpop.eup %12566 }
 0xc8d   :  { %4190 = vmatmul.mubr.bf16.vlgmr.msra.gmra.mxu0 %v3935_v47  ;;  %4303 = vmatmul.mubr.bf16.vlgmr.msra.gmra.mxu1 %v3935_v47  ;;  %v12569_v23 = vpop.eup %12568  ;;  %v3922_v62 = vadd.f32 %v15090_v60, %v3900_v20  ;;  %v3880_v38 = vmul.f32 %v12567_v49, %v14941_v16  ;;  %v12111_v16 = vld [vmem:[%s17549_s10 + $0x38] sm:$0xff]   ;;  %v12118_v47 = vld [vmem:[%s17549_s10 + $0x68] sm:$0xff]  }
 0xc8e   :  { %4199 = vmatprep.mubr.bf16.mxu0 %v17750_v37  ;;  %4312 = vmatprep.mubr.bf16.mxu1 %v17750_v37  ;;  %v3879_v34 = vmul.f32 %v12569_v23, %v14934_v32  ;;  %v12112_v32 = vld [vmem:[%s17549_s10 + $0xf8] sm:$0xff]   ;;  %v12119_v20 = vld [vmem:[%s17549_s10 + $0xe8] sm:$0xff]   ;;  %v12122_v23 = vld [vmem:[%s17549_s10 + $0x60] sm:$0xff]  }
 0xc8f   :  { %v3936_v54 = vpack.c.bf16 %v3922_v62, %v3921_v19  ;;  %v3902_v5 = vmul.f32 %v15083_v9, %v3880_v38  ;;  %10787 = vmatprep.subr.bf16.mxu1 %v12112_v32  ;;  %10724 = vmatpush3.bf16.msra.mxu0 %v12111_v16  ;;  %v12120_v49 = vld [vmem:[%s17549_s10 + $0x28] sm:$0xff]   ;;  %v12123_v62 = vld [vmem:[%s17549_s10 + $0xe0] sm:$0xff]   ;;  %v12130_v16 = vld [vmem:[%s17549_s10 + $0x50] sm:$0xff]  }
 0xc90   :  { %v12571_v46 = vpop.eup %12570  ;;  %v3901_v14 = vmul.f32 %v15083_v9, %v3879_v34  ;;  %10788 = vmatpush3.bf16.msra.mxu1 %v12113_v59  ;;  %10725 = vmatprep.subr.bf16.mxu0 %v12114_v63  ;;  %v12124_v19 = vld [vmem:[%s17549_s10 + $0x20] sm:$0xff]   ;;  %v12131_v32 = vld [vmem:[%s17549_s10 + $0xd0] sm:$0xff]  }
 0xc91   :  { %v12573_v29 = vpop.eup %12572  ;;  %v3924_v45 = vadd.f32 %v15090_v60, %v3902_v5  ;;  %v3882_v21 = vmul.f32 %v12571_v46, %v14957_v48  ;;  %10789 = vmatprep.subr.bf16.mxu1 %v12115_v2  ;;  %v12125_v34 = vld [vmem:[%s17549_s10 + $0xa0] sm:$0xff]   ;;  %v12126_v46 = vld [vmem:[%s17549_s10 + $0x58] sm:$0xff]   ;;  %v12132_v59 = vld [vmem:[%s17549_s10 + $0x10] sm:$0xff]  }
 0xc92   :  { %v3923_v53 = vadd.f32 %v15090_v60, %v3901_v14  ;;  %v3881_v1 = vmul.f32 %v12573_v29, %v14944_v28  ;;  %v12121_v28 = vld [vmem:[%s17549_s10 + $0xa8] sm:$0xff]   ;;  %v12127_v29 = vld [vmem:[%s17549_s10 + $0xd8] sm:$0xff]   ;;  %v12133_v63 = vld [vmem:[%s17549_s10 + $0x90] sm:$0xff]  }
 0xc93   :  { %v3904_v48 = vmul.f32 %v15083_v9, %v3882_v21  ;;  %10726 = vmatpush3.bf16.msra.mxu0 %v12116_v26  ;;  %v12128_v14 = vld [vmem:[%s17549_s10 + $0x18] sm:$0xff]   ;;  %v12134_v2 = vld [vmem:[%s17549_s10 + $0x48] sm:$0xff]  }
 0xc94   :  { %v3937_v55 = vpack.c.bf16 %v3924_v45, %v3923_v53  ;;  %10790 = vmatpush3.bf16.msra.mxu1 %v12117_v6  ;;  %v3903_v35 = vmul.f32 %v15083_v9, %v3881_v1  ;;  %10727 = vmatprep.subr.bf16.mxu0 %v12118_v47  ;;  %v12135_v45 = vld [vmem:[%s17549_s10 + $0xc8] sm:$0xff]   ;;  %v12138_v6 = vld [vmem:[%s17549_s10 + $0x40] sm:$0xff]  }
 0xc95   :  { %4200 = vmatmul.mubr.bf16.gmra.mxu0 %v3936_v54  ;;  %4313 = vmatmul.mubr.bf16.gmra.mxu1 %v3936_v54  ;;  %v3926_v38 = vadd.f32 %v15090_v60, %v3904_v48  ;;  %v12136_v21 = vld [vmem:[%s17549_s10 + $0x8] sm:$0xff]   ;;  %v12139_v53 = vld [vmem:[%s17549_s10 + $0xc0] sm:$0xff]  }
 0xc96   :  { %4209 = vmatprep.mubr.bf16.mxu0 %v17750_v37  ;;  %4322 = vmatprep.mubr.bf16.mxu1 %v17750_v37  ;;  %v3925_v54 = vadd.f32 %v15090_v60, %v3903_v35  ;;  %v12137_v26 = vld [vmem:[%s17549_s10 + $0x88] sm:$0xff]   ;;  %v12140_v1 = vld [vmem:[%s17549_s10] sm:$0xff]  }
 0xc97   :  { %10791 = vmatprep.subr.bf16.mxu1 %v12119_v20  ;;  %10728 = vmatpush3.bf16.msra.mxu0 %v12120_v49 }
 0xc98   :  { %10792 = vmatpush3.bf16.msra.mxu1 %v12121_v28  ;;  %10729 = vmatprep.subr.bf16.mxu0 %v12122_v23  ;;  %v3938_v5 = vpack.c.bf16 %v3926_v38, %v3925_v54 }
 0xc99   :  { %10793 = vmatprep.subr.bf16.mxu1 %v12123_v62 }
 0xc9b   :  { %10730 = vmatpush3.bf16.msra.mxu0 %v12124_v19 }
 0xc9c   :  { %10794 = vmatpush3.bf16.msra.mxu1 %v12125_v34  ;;  %10731 = vmatprep.subr.bf16.mxu0 %v12126_v46 }
 0xc9d   :  { %4210 = vmatmul.mubr.bf16.gmra.mxu0 %v3937_v55  ;;  %4323 = vmatmul.mubr.bf16.gmra.mxu1 %v3937_v55  ;;  %v12141_v55 = vld [vmem:[%s17549_s10 + $0x80] sm:$0xff]  }
 0xc9e   :  { %4219 = vmatprep.mubr.bf16.mxu0 %v17750_v37  ;;  %4332 = vmatprep.mubr.bf16.mxu1 %v17750_v37 }
 0xc9f   :  { %10795 = vmatprep.subr.bf16.mxu1 %v12127_v29  ;;  %10732 = vmatpush3.bf16.msra.mxu0 %v12128_v14 }
 0xca0   :  { %10796 = vmatpush3.bf16.msra.mxu1 %v12129_v11  ;;  %10733 = vmatprep.subr.bf16.mxu0 %v12130_v16 }
 0xca1   :  { %10797 = vmatprep.subr.bf16.mxu1 %v12131_v32 }
 0xca3   :  { %10734 = vmatpush3.bf16.msra.mxu0 %v12132_v59 }
 0xca4   :  { %10798 = vmatpush3.bf16.msra.mxu1 %v12133_v63  ;;  %10735 = vmatprep.subr.bf16.mxu0 %v12134_v2 }
 0xca5   :  { %4220 = vmatmul.mubr.bf16.gmra.mxu0 %v3938_v5  ;;  %4333 = vmatmul.mubr.bf16.gmra.mxu1 %v3938_v5 }
 0xca6   :  { %4229 = vmatprep.mubr.bf16.mxu0 %v17750_v37  ;;  %4342 = vmatprep.mubr.bf16.mxu1 %v17750_v37 }
 0xca7   :  { %10799 = vmatprep.subr.bf16.mxu1 %v12135_v45  ;;  %10736 = vmatpush3.bf16.msra.mxu0 %v12136_v21 }
 0xca8   :  { %10800 = vmatpush3.bf16.msra.mxu1 %v12137_v26  ;;  %10737 = vmatprep.subr.bf16.mxu0 %v12138_v6 }
 0xca9   :  { %10801 = vmatprep.subr.bf16.mxu1 %v12139_v53 }
 0xcab   :  { %10738 = vmatpush3.bf16.msra.mxu0 %v12140_v1 }
 0xcac   :  { %10802 = vmatpush3.bf16.msra.mxu1 %v12141_v55 }
 0xcde   :  { %v3812_v48 = vpop.xlane.xlu0 %3811 }
 0xcdf   :  { %v3835_v47 = vmul.f32 0.0078125, %v3812_v48 }
 0xce1   :  { %v3851_v20 = vadd.f32 1e-05, %v3835_v47 }
 0xce2   :  { %v3814_v49 = vpop.xlane.xlu1 %3813  ;;  %v3816_v28 = vpop.xlane.xlu0 %3815 }
 0xce3   :  { %12574 = vrsqrt.f32 %v3851_v20  ;;  %v3836_v35 = vmul.f32 0.0078125, %v3814_v49  ;;  %v3837_v23 = vmul.f32 0.0078125, %v3816_v28 }
 0xce5   :  { %v3852_v62 = vadd.f32 1e-05, %v3836_v35  ;;  %v3853_v38 = vadd.f32 1e-05, %v3837_v23 }
 0xce6   :  { %v3818_v19 = vpop.xlane.xlu1 %3817  ;;  %v3820_v34 = vpop.xlane.xlu0 %3819 }
 0xce7   :  { %12576 = vrsqrt.f32 %v3852_v62  ;;  %v3838_v54 = vmul.f32 0.0078125, %v3818_v19  ;;  %v3839_v46 = vmul.f32 0.0078125, %v3820_v34 }
 0xce8   :  { %12578 = vrsqrt.f32 %v3853_v38 }
 0xce9   :  { %v3854_v5 = vadd.f32 1e-05, %v3838_v54  ;;  %v3855_v11 = vadd.f32 1e-05, %v3839_v46 }
 0xcea   :  { %v3822_v29 = vpop.xlane.xlu1 %3821  ;;  %v3824_v32 = vpop.xlane.xlu0 %3823 }
 0xceb   :  { %12580 = vrsqrt.f32 %v3854_v5  ;;  %v3840_v14 = vmul.f32 0.0078125, %v3822_v29  ;;  %v3841_v45 = vmul.f32 0.0078125, %v3824_v32 }
 0xced   :  { %v3856_v16 = vadd.f32 1e-05, %v3840_v14  ;;  %v3857_v53 = vadd.f32 1e-05, %v3841_v45 }
 0xcee   :  { %v3826_v59 = vpop.xlane.xlu1 %3825 }
 0xcef   :  { %12582 = vrsqrt.f32 %v3856_v16  ;;  %v3842_v63 = vmul.f32 0.0078125, %v3826_v59 }
 0xcf0   :  { %v12575_v2 = vpop.eup %12574  ;;  %12584 = vrsqrt.f32 %v3855_v11 }
 0xcf1   :  { %v3883_v21 = vmul.f32 %v12575_v2, %v15040_v61  ;;  %v3858_v26 = vadd.f32 1e-05, %v3842_v63 }
 0xcf3   :  { %v3905_v55 = vmul.f32 %v15083_v9, %v3883_v21  ;;  %12586 = vrsqrt.f32 %v3858_v26  ;;  %v17759_v26 = vld [vmem:[#allocation31_spill] sm:$0xff] }
 0xcf4   :  { %v12577_v6 = vpop.eup %12576  ;;  %12588 = vrsqrt.f32 %v3857_v53  ;;  %v17602_v53 = vsub.s32 0, %v17759_v26 }
 0xcf5   :  { %v3884_v1 = vmul.f32 %v12577_v6, %v15045_v3  ;;  %v12579_v48 = vpop.eup %12578  ;;  %v3927_v49 = vadd.f32 %v15090_v60, %v3905_v55  ;;  %v17603_v6 = vsub.s32 3, %v17759_v26 }
 0xcf6   :  { %v3885_v35 = vmul.f32 %v12579_v48, %v15048_v33 }
 0xcf7   :  { %v3906_v47 = vmul.f32 %v15083_v9, %v3884_v1  ;;  %v17601_v1 = vsub.s32 2, %v17759_v26 }
 0xcf8   :  { %v12581_v20 = vpop.eup %12580  ;;  %v3907_v38 = vmul.f32 %v15083_v9, %v3885_v35 }
 0xcf9   :  { %v3928_v28 = vadd.f32 %v15090_v60, %v3906_v47  ;;  %v3886_v61 = vmul.f32 %v12581_v20, %v15055_v30 }
 0xcfa   :  { %v3929_v33 = vadd.f32 %v15090_v60, %v3907_v38 }
 0xcfb   :  { %v3939_v23 = vpack.c.bf16 %v3928_v28, %v3927_v49  ;;  %v3908_v62 = vmul.f32 %v15083_v9, %v3886_v61 }
 0xcfc   :  { %v12583_v3 = vpop.eup %12582 }
 0xcfd   :  { %4230 = vmatmul.mubr.bf16.gmra.mxu0 %v3939_v23  ;;  %4343 = vmatmul.mubr.bf16.gmra.mxu1 %v3939_v23  ;;  %v12585_v19 = vpop.eup %12584  ;;  %v3930_v34 = vadd.f32 %v15090_v60, %v3908_v62  ;;  %v3888_v54 = vmul.f32 %v12583_v3, %v15065_v44 }
 0xcfe   :  { %4239 = vmatprep.mubr.bf16.mxu0 %v17750_v37  ;;  %4352 = vmatprep.mubr.bf16.mxu1 %v17750_v37  ;;  %v3887_v30 = vmul.f32 %v12585_v19, %v15058_v51 }
 0xcff   :  { %v3940_v5 = vpack.c.bf16 %v3930_v34, %v3929_v33  ;;  %v3910_v46 = vmul.f32 %v15083_v9, %v3888_v54 }
 0xd00   :  { %v12587_v29 = vpop.eup %12586  ;;  %v3909_v11 = vmul.f32 %v15083_v9, %v3887_v30 }
 0xd01   :  { %v12589_v14 = vpop.eup %12588  ;;  %v3932_v16 = vadd.f32 %v15090_v60, %v3910_v46  ;;  %v3890_v44 = vmul.f32 %v12587_v29, %v15075_v15 }
 0xd02   :  { %v3931_v32 = vadd.f32 %v15090_v60, %v3909_v11  ;;  %v3889_v51 = vmul.f32 %v12589_v14, %v15068_v52  ;;  %v17604_v52 = vsub.s32 1, %v17759_v26 }
 0xd03   :  { %v3912_v63 = vmul.f32 %v15083_v9, %v3890_v44 }
 0xd04   :  { %v3941_v59 = vpack.c.bf16 %v3932_v16, %v3931_v32  ;;  %v3911_v2 = vmul.f32 %v15083_v9, %v3889_v51  ;;  %v3975_v9 = vld [vmem:[%s17548_s9] sm:$0xf] }
 0xd05   :  { %4240 = vmatmul.mubr.bf16.gmra.mxu0 %v3940_v5  ;;  %4353 = vmatmul.mubr.bf16.gmra.mxu1 %v3940_v5  ;;  %v3934_v45 = vadd.f32 %v15090_v60, %v3912_v63  ;;  %v15260_v47 = vrot.slane %v3975_v9, %v17603_v6  ;;  %v15264_v20 = vrot.slane %v3975_v9, %v17602_v53 }
 0xd06   :  { %4249 = vmatprep.mubr.bf16.mxu0 %v17750_v37  ;;  %4362 = vmatprep.mubr.bf16.mxu1 %v17750_v37  ;;  %v3933_v21 = vadd.f32 %v15090_v60, %v3911_v2  ;;  %v15256_v60 = vrot.slane %v3975_v9, %v17604_v52  ;;  %v15268_v49 = vrot.slane %v3975_v9, %v17601_v1 }
 0xd08   :  { %v3942_v15 = vpack.c.bf16 %v3934_v45, %v3933_v21 }
 0xd0d   :  { %4250 = vmatmul.mubr.bf16.gmra.mxu0 %v3941_v59  ;;  %4363 = vmatmul.mubr.bf16.gmra.mxu1 %v3941_v59 }
 0xd0e   :  { %4259 = vmatprep.mubr.bf16.mxu0 %v17750_v37  ;;  %4372 = vmatprep.mubr.bf16.mxu1 %v17750_v37 }
 0xd15   :  { %4260 = vmatmul.mubr.bf16.gmra.mxu0 %v3942_v15  ;;  %4373 = vmatmul.mubr.bf16.gmra.mxu1 %v3942_v15 }
 0xd4d   :  { %v4191_v55 = vpop.f32.mrf.mxu0  ;;  %v4304_v48 = vpop.f32.mrf.mxu1 }
 0xd4e   :  { %v4192_v34 = vadd.f32 %v4191_v55, %v15264_v20  ;;  %v4305_v54 = vadd.f32 %v4304_v48, %v15268_v49 }
 0xd4f   :  { %v4193_v28 = vpop.f32.mrf.mxu0  ;;  %v4306_v35 = vpop.f32.mrf.mxu1 }
 0xd50   :  { %v4194_v62 = vadd.f32 %v4193_v28, %v15256_v60  ;;  %v4307_v3 = vadd.f32 %v4306_v35, %v15260_v47  ;;  %v4383_v63 = vmax.f32 %v4192_v34, 0.0  ;;  %v4385_v2 = vmax.f32 %v4305_v54, 0.0 }
 0xd51   :  { %v4195_v61 = vpop.f32.mrf.mxu0  ;;  %v4308_v23 = vpop.f32.mrf.mxu1 }
 0xd52   :  { %v4196_v38 = vadd.f32 %v4195_v61, %v15264_v20  ;;  %v4309_v19 = vadd.f32 %v4308_v23, %v15268_v49  ;;  %v4384_v44 = vmax.f32 %v4194_v62, 0.0  ;;  %v4386_v32 = vmax.f32 %v4307_v3, 0.0 }
 0xd53   :  { %v4197_v33 = vpop.f32.mrf.mxu0  ;;  %v4310_v30 = vpop.f32.mrf.mxu1 }
 0xd54   :  { %v4198_v5 = vadd.f32 %v4197_v33, %v15256_v60  ;;  %v4311_v46 = vadd.f32 %v4310_v30, %v15260_v47  ;;  %v4387_v29 = vmax.f32 %v4196_v38, 0.0  ;;  %v4389_v14 = vmax.f32 %v4309_v19, 0.0 }
 0xd55   :  { %v4201_v11 = vpop.f32.mrf.mxu0  ;;  %v4314_v16 = vpop.f32.mrf.mxu1 }
 0xd56   :  { %v4388_v51 = vmax.f32 %v4198_v5, 0.0  ;;  %v4390_v59 = vmax.f32 %v4311_v46, 0.0  ;;  %v4447_v55 = vpack.c.bf16 %v4387_v29, %v4383_v63  ;;  %v4449_v48 = vpack.c.bf16 %v4389_v14, %v4385_v2 }
 0xd57   :  { %v4203_v45 = vpop.f32.mrf.mxu0  ;;  %v4316_v21 = vpop.f32.mrf.mxu1  ;;  %v4202_v3 = vadd.f32 %v4201_v11, %v15264_v20  ;;  %v4315_v19 = vadd.f32 %v4314_v16, %v15268_v49 }
 0xd58   :  { %v4448_v15 = vpack.c.bf16 %v4388_v51, %v4384_v44  ;;  %v4450_v9 = vpack.c.bf16 %v4390_v59, %v4386_v32  ;;  %v4204_v28 = vadd.f32 %v4203_v45, %v15256_v60  ;;  %v4317_v23 = vadd.f32 %v4316_v21, %v15260_v47 }
 0xd59   :  { %v4205_v35 = vpop.f32.mrf.mxu0  ;;  %v4318_v61 = vpop.f32.mrf.mxu1  ;;  %v4391_v63 = vmax.f32 %v4202_v3, 0.0  ;;  %v4393_v11 = vmax.f32 %v4315_v19, 0.0 }
 0xd5a   :  { %v4206_v38 = vadd.f32 %v4205_v35, %v15264_v20  ;;  %v4319_v62 = vadd.f32 %v4318_v61, %v15268_v49  ;;  %4774 = vmatprep.mubr.bf16.mxu0 %v4448_v15  ;;  %4871 = vmatprep.mubr.bf16.mxu1 %v4450_v9  ;;  %v4392_v44 = vmax.f32 %v4204_v28, 0.0  ;;  %v4394_v32 = vmax.f32 %v4317_v23, 0.0 }
 0xd5b   :  { %v4207_v34 = vpop.f32.mrf.mxu0  ;;  %v4320_v54 = vpop.f32.mrf.mxu1  ;;  %4775 = vmatmul.mubr.bf16.vlgmr.msra.gmra.mxu0 %v4447_v55  ;;  %4872 = vmatmul.mubr.bf16.vlgmr.msra.gmra.mxu1 %v4449_v48 }
 0xd5c   :  { %v4208_v33 = vadd.f32 %v4207_v34, %v15256_v60  ;;  %v4321_v30 = vadd.f32 %v4320_v54, %v15260_v47  ;;  %v4395_v5 = vmax.f32 %v4206_v38, 0.0  ;;  %v4397_v46 = vmax.f32 %v4319_v62, 0.0 }
 0xd5d   :  { %v4211_v29 = vpop.f32.mrf.mxu0  ;;  %v4324_v14 = vpop.f32.mrf.mxu1 }
 0xd5e   :  { %v4396_v51 = vmax.f32 %v4208_v33, 0.0  ;;  %v4398_v59 = vmax.f32 %v4321_v30, 0.0  ;;  %v4451_v15 = vpack.c.bf16 %v4395_v5, %v4391_v63  ;;  %v4453_v9 = vpack.c.bf16 %v4397_v46, %v4393_v11 }
 0xd5f   :  { %v4213_v2 = vpop.f32.mrf.mxu0  ;;  %v4326_v16 = vpop.f32.mrf.mxu1  ;;  %v4212_v23 = vadd.f32 %v4211_v29, %v15264_v20  ;;  %v4325_v62 = vadd.f32 %v4324_v14, %v15268_v49 }
 0xd60   :  { %v4452_v45 = vpack.c.bf16 %v4396_v51, %v4392_v44  ;;  %v4454_v21 = vpack.c.bf16 %v4398_v59, %v4394_v32  ;;  %v4214_v55 = vadd.f32 %v4213_v2, %v15256_v60  ;;  %v4327_v61 = vadd.f32 %v4326_v16, %v15260_v47 }
 0xd61   :  { %v4215_v48 = vpop.f32.mrf.mxu0  ;;  %v4328_v35 = vpop.f32.mrf.mxu1  ;;  %v4399_v63 = vmax.f32 %v4212_v23, 0.0  ;;  %v4401_v29 = vmax.f32 %v4325_v62, 0.0 }
 0xd62   :  { %v4216_v38 = vadd.f32 %v4215_v48, %v15264_v20  ;;  %v4329_v28 = vadd.f32 %v4328_v35, %v15268_v49  ;;  %4782 = vmatprep.mubr.bf16.mxu0 %v4452_v45  ;;  %4879 = vmatprep.mubr.bf16.mxu1 %v4454_v21  ;;  %v4400_v44 = vmax.f32 %v4214_v55, 0.0  ;;  %v4402_v32 = vmax.f32 %v4327_v61, 0.0 }
 0xd63   :  { %v4217_v3 = vpop.f32.mrf.mxu0  ;;  %v4330_v19 = vpop.f32.mrf.mxu1  ;;  %4783 = vmatmul.mubr.bf16.gmra.mxu0 %v4451_v15  ;;  %4880 = vmatmul.mubr.bf16.gmra.mxu1 %v4453_v9 }
 0xd64   :  { %v4218_v34 = vadd.f32 %v4217_v3, %v15256_v60  ;;  %v4331_v54 = vadd.f32 %v4330_v19, %v15260_v47  ;;  %v4403_v33 = vmax.f32 %v4216_v38, 0.0  ;;  %v4405_v30 = vmax.f32 %v4329_v28, 0.0 }
 0xd65   :  { %v4221_v5 = vpop.f32.mrf.mxu0  ;;  %v4334_v46 = vpop.f32.mrf.mxu1 }
 0xd66   :  { %v4404_v51 = vmax.f32 %v4218_v34, 0.0  ;;  %v4406_v59 = vmax.f32 %v4331_v54, 0.0  ;;  %v4455_v45 = vpack.c.bf16 %v4403_v33, %v4399_v63  ;;  %v4457_v21 = vpack.c.bf16 %v4405_v30, %v4401_v29 }
 0xd67   :  { %v4223_v11 = vpop.f32.mrf.mxu0  ;;  %v4336_v14 = vpop.f32.mrf.mxu1  ;;  %v4222_v61 = vadd.f32 %v4221_v5, %v15264_v20  ;;  %v4335_v28 = vadd.f32 %v4334_v46, %v15268_v49 }
 0xd68   :  { %v4456_v2 = vpack.c.bf16 %v4404_v51, %v4400_v44  ;;  %v4458_v16 = vpack.c.bf16 %v4406_v59, %v4402_v32  ;;  %v4224_v15 = vadd.f32 %v4223_v11, %v15256_v60  ;;  %v4337_v35 = vadd.f32 %v4336_v14, %v15260_v47 }
 0xd69   :  { %v4225_v9 = vpop.f32.mrf.mxu0  ;;  %v4338_v48 = vpop.f32.mrf.mxu1  ;;  %v4407_v51 = vmax.f32 %v4222_v61, 0.0  ;;  %v4409_v59 = vmax.f32 %v4335_v28, 0.0 }
 0xd6a   :  { %v4226_v38 = vadd.f32 %v4225_v9, %v15264_v20  ;;  %v4339_v55 = vadd.f32 %v4338_v48, %v15268_v49  ;;  %4790 = vmatprep.mubr.bf16.mxu0 %v4456_v2  ;;  %4887 = vmatprep.mubr.bf16.mxu1 %v4458_v16  ;;  %v4408_v33 = vmax.f32 %v4224_v15, 0.0  ;;  %v4410_v30 = vmax.f32 %v4337_v35, 0.0 }
 0xd6b   :  { %v4227_v23 = vpop.f32.mrf.mxu0  ;;  %v4340_v62 = vpop.f32.mrf.mxu1  ;;  %4791 = vmatmul.mubr.bf16.gmra.mxu0 %v4455_v45  ;;  %4888 = vmatmul.mubr.bf16.gmra.mxu1 %v4457_v21 }
 0xd6c   :  { %v4228_v3 = vadd.f32 %v4227_v23, %v15256_v60  ;;  %v4341_v19 = vadd.f32 %v4340_v62, %v15260_v47  ;;  %v4411_v34 = vmax.f32 %v4226_v38, 0.0  ;;  %v4413_v54 = vmax.f32 %v4339_v55, 0.0 }
 0xd6e   :  { %v4412_v44 = vmax.f32 %v4228_v3, 0.0  ;;  %v4414_v32 = vmax.f32 %v4341_v19, 0.0  ;;  %v4459_v29 = vpack.c.bf16 %v4411_v34, %v4407_v51  ;;  %v4461_v46 = vpack.c.bf16 %v4413_v54, %v4409_v59 }
 0xd70   :  { %v4460_v63 = vpack.c.bf16 %v4412_v44, %v4408_v33  ;;  %v4462_v5 = vpack.c.bf16 %v4414_v32, %v4410_v30 }
 0xd72   :  { %4798 = vmatprep.mubr.bf16.mxu0 %v4460_v63  ;;  %4895 = vmatprep.mubr.bf16.mxu1 %v4462_v5 }
 0xd73   :  { %4799 = vmatmul.mubr.bf16.gmra.mxu0 %v4459_v29  ;;  %4896 = vmatmul.mubr.bf16.gmra.mxu1 %v4461_v46 }
 0xdbd   :  { %v4231_v11 = vpop.f32.mrf.mxu0  ;;  %v4344_v14 = vpop.f32.mrf.mxu1 }
 0xdbe   :  { %v4232_v38 = vadd.f32 %v4231_v11, %v15264_v20  ;;  %v4345_v55 = vadd.f32 %v4344_v14, %v15268_v49 }
 0xdbf   :  { %v4233_v2 = vpop.f32.mrf.mxu0  ;;  %v4346_v16 = vpop.f32.mrf.mxu1 }
 0xdc0   :  { %v4234_v15 = vadd.f32 %v4233_v2, %v15256_v60  ;;  %v4347_v9 = vadd.f32 %v4346_v16, %v15260_v47  ;;  %v4415_v51 = vmax.f32 %v4232_v38, 0.0  ;;  %v4417_v59 = vmax.f32 %v4345_v55, 0.0 }
 0xdc1   :  { %v4235_v45 = vpop.f32.mrf.mxu0  ;;  %v4348_v21 = vpop.f32.mrf.mxu1 }
 0xdc2   :  { %v4236_v48 = vadd.f32 %v4235_v45, %v15264_v20  ;;  %v4349_v35 = vadd.f32 %v4348_v21, %v15268_v49  ;;  %v4416_v33 = vmax.f32 %v4234_v15, 0.0  ;;  %v4418_v30 = vmax.f32 %v4347_v9, 0.0 }
 0xdc3   :  { %v4237_v61 = vpop.f32.mrf.mxu0  ;;  %v4350_v28 = vpop.f32.mrf.mxu1 }
 0xdc4   :  { %v4238_v23 = vadd.f32 %v4237_v61, %v15256_v60  ;;  %v4351_v62 = vadd.f32 %v4350_v28, %v15260_v47  ;;  %v4419_v3 = vmax.f32 %v4236_v48, 0.0  ;;  %v4421_v19 = vmax.f32 %v4349_v35, 0.0 }
 0xdc5   :  { %v4241_v34 = vpop.f32.mrf.mxu0  ;;  %v4354_v54 = vpop.f32.mrf.mxu1 }
 0xdc6   :  { %v4420_v44 = vmax.f32 %v4238_v23, 0.0  ;;  %v4422_v32 = vmax.f32 %v4351_v62, 0.0  ;;  %v4463_v11 = vpack.c.bf16 %v4419_v3, %v4415_v51  ;;  %v4465_v14 = vpack.c.bf16 %v4421_v19, %v4417_v59 }
 0xdc7   :  { %v4243_v63 = vpop.f32.mrf.mxu0  ;;  %v4356_v5 = vpop.f32.mrf.mxu1  ;;  %v4242_v9 = vadd.f32 %v4241_v34, %v15264_v20  ;;  %v4355_v35 = vadd.f32 %v4354_v54, %v15268_v49 }
 0xdc8   :  { %v4464_v29 = vpack.c.bf16 %v4420_v44, %v4416_v33  ;;  %v4466_v46 = vpack.c.bf16 %v4422_v32, %v4418_v30  ;;  %v4244_v2 = vadd.f32 %v4243_v63, %v15256_v60  ;;  %v4357_v21 = vadd.f32 %v4356_v5, %v15260_v47 }
 0xdc9   :  { %v4245_v16 = vpop.f32.mrf.mxu0  ;;  %v4358_v45 = vpop.f32.mrf.mxu1  ;;  %v4423_v51 = vmax.f32 %v4242_v9, 0.0  ;;  %v4425_v34 = vmax.f32 %v4355_v35, 0.0 }
 0xdca   :  { %v4246_v48 = vadd.f32 %v4245_v16, %v15264_v20  ;;  %v4359_v15 = vadd.f32 %v4358_v45, %v15268_v49  ;;  %4806 = vmatprep.mubr.bf16.mxu0 %v4464_v29  ;;  %4903 = vmatprep.mubr.bf16.mxu1 %v4466_v46  ;;  %v4424_v33 = vmax.f32 %v4244_v2, 0.0  ;;  %v4426_v30 = vmax.f32 %v4357_v21, 0.0 }
 0xdcb   :  { %v4247_v38 = vpop.f32.mrf.mxu0  ;;  %v4360_v55 = vpop.f32.mrf.mxu1  ;;  %4807 = vmatmul.mubr.bf16.gmra.mxu0 %v4463_v11  ;;  %4904 = vmatmul.mubr.bf16.gmra.mxu1 %v4465_v14 }
 0xdcc   :  { %v4248_v61 = vadd.f32 %v4247_v38, %v15256_v60  ;;  %v4361_v28 = vadd.f32 %v4360_v55, %v15260_v47  ;;  %v4427_v23 = vmax.f32 %v4246_v48, 0.0  ;;  %v4429_v62 = vmax.f32 %v4359_v15, 0.0 }
 0xdcd   :  { %v4251_v3 = vpop.f32.mrf.mxu0  ;;  %v4364_v19 = vpop.f32.mrf.mxu1 }
 0xdce   :  { %v4428_v44 = vmax.f32 %v4248_v61, 0.0  ;;  %v4430_v32 = vmax.f32 %v4361_v28, 0.0  ;;  %v4467_v29 = vpack.c.bf16 %v4427_v23, %v4423_v51  ;;  %v4469_v46 = vpack.c.bf16 %v4429_v62, %v4425_v34 }
 0xdcf   :  { %v4253_v59 = vpop.f32.mrf.mxu0  ;;  %v4366_v54 = vpop.f32.mrf.mxu1  ;;  %v4252_v21 = vadd.f32 %v4251_v3, %v15264_v20  ;;  %v4365_v15 = vadd.f32 %v4364_v19, %v15268_v49 }
 0xdd0   :  { %v4468_v63 = vpack.c.bf16 %v4428_v44, %v4424_v33  ;;  %v4470_v5 = vpack.c.bf16 %v4430_v32, %v4426_v30  ;;  %v4254_v11 = vadd.f32 %v4253_v59, %v15256_v60  ;;  %v4367_v45 = vadd.f32 %v4366_v54, %v15260_v47 }
 0xdd1   :  { %v4255_v14 = vpop.f32.mrf.mxu0  ;;  %v4368_v16 = vpop.f32.mrf.mxu1  ;;  %v4431_v51 = vmax.f32 %v4252_v21, 0.0  ;;  %v4433_v3 = vmax.f32 %v4365_v15, 0.0 }
 0xdd2   :  { %v4256_v48 = vadd.f32 %v4255_v14, %v15264_v20  ;;  %v4369_v2 = vadd.f32 %v4368_v16, %v15268_v49  ;;  %4814 = vmatprep.mubr.bf16.mxu0 %v4468_v63  ;;  %4911 = vmatprep.mubr.bf16.mxu1 %v4470_v5  ;;  %v4432_v33 = vmax.f32 %v4254_v11, 0.0  ;;  %v4434_v30 = vmax.f32 %v4367_v45, 0.0 }
 0xdd3   :  { %v4257_v9 = vpop.f32.mrf.mxu0  ;;  %v4370_v35 = vpop.f32.mrf.mxu1  ;;  %4815 = vmatmul.mubr.bf16.gmra.mxu0 %v4467_v29  ;;  %4912 = vmatmul.mubr.bf16.gmra.mxu1 %v4469_v46 }
 0xdd4   :  { %v4258_v38 = vadd.f32 %v4257_v9, %v15256_v60  ;;  %v4371_v55 = vadd.f32 %v4370_v35, %v15260_v47  ;;  %v4435_v61 = vmax.f32 %v4256_v48, 0.0  ;;  %v4437_v28 = vmax.f32 %v4369_v2, 0.0 }
 0xdd5   :  { %v4261_v23 = vpop.f32.mrf.mxu0  ;;  %v4374_v62 = vpop.f32.mrf.mxu1 }
 0xdd6   :  { %v4436_v44 = vmax.f32 %v4258_v38, 0.0  ;;  %v4438_v32 = vmax.f32 %v4371_v55, 0.0  ;;  %v4471_v63 = vpack.c.bf16 %v4435_v61, %v4431_v51  ;;  %v4473_v5 = vpack.c.bf16 %v4437_v28, %v4433_v3 }
 0xdd7   :  { %v4263_v34 = vpop.f32.mrf.mxu0  ;;  %v4376_v19 = vpop.f32.mrf.mxu1  ;;  %v4262_v45 = vadd.f32 %v4261_v23, %v15264_v20  ;;  %v4375_v2 = vadd.f32 %v4374_v62, %v15268_v49  ;;  %v15338_v62 = vld [vmem:[%s17550_s11] ss:$0 sm:$0xff] }
 0xdd8   :  { %v4472_v59 = vpack.c.bf16 %v4436_v44, %v4432_v33  ;;  %v4474_v54 = vpack.c.bf16 %v4438_v32, %v4434_v30  ;;  %v4264_v29 = vadd.f32 %v4263_v34, %v15256_v60  ;;  %v4377_v16 = vadd.f32 %v4376_v19, %v15260_v47 }
 0xdd9   :  { %v4265_v46 = vpop.f32.mrf.mxu0  ;;  %v4378_v14 = vpop.f32.mrf.mxu1  ;;  %v4439_v44 = vmax.f32 %v4262_v45, 0.0  ;;  %v4441_v32 = vmax.f32 %v4375_v2, 0.0 }
 0xdda   :  { %v4266_v48 = vadd.f32 %v4265_v46, %v15264_v20  ;;  %v4379_v11 = vadd.f32 %v4378_v14, %v15268_v49  ;;  %4822 = vmatprep.mubr.bf16.mxu0 %v4472_v59  ;;  %4919 = vmatprep.mubr.bf16.mxu1 %v4474_v54  ;;  %v4440_v61 = vmax.f32 %v4264_v29, 0.0  ;;  %v4442_v28 = vmax.f32 %v4377_v16, 0.0 }
 0xddb   :  { %v4267_v21 = vpop.f32.mrf.mxu0  ;;  %v4380_v15 = vpop.f32.mrf.mxu1  ;;  %4823 = vmatmul.mubr.bf16.gmra.mxu0 %v4471_v63  ;;  %4920 = vmatmul.mubr.bf16.gmra.mxu1 %v4473_v5 }
 0xddc   :  { %v4268_v9 = vadd.f32 %v4267_v21, %v15256_v60  ;;  %v4381_v35 = vadd.f32 %v4380_v15, %v15260_v47  ;;  %v4443_v38 = vmax.f32 %v4266_v48, 0.0  ;;  %v4445_v55 = vmax.f32 %v4379_v11, 0.0 }
 0xdde   :  { %v4444_v33 = vmax.f32 %v4268_v9, 0.0  ;;  %v4446_v30 = vmax.f32 %v4381_v35, 0.0  ;;  %v4475_v23 = vpack.c.bf16 %v4443_v38, %v4439_v44  ;;  %v4477_v49 = vpack.c.bf16 %v4445_v55, %v4441_v32 }
 0xde0   :  { %v4476_v51 = vpack.c.bf16 %v4444_v33, %v4440_v61  ;;  %v4478_v20 = vpack.c.bf16 %v4446_v30, %v4442_v28 }
 0xde2   :  { %4830 = vmatprep.mubr.bf16.mxu0 %v4476_v51  ;;  %4927 = vmatprep.mubr.bf16.mxu1 %v4478_v20 }
 0xde3   :  { %4831 = vmatmul.mubr.bf16.gmra.mxu0 %v4475_v23  ;;  %4928 = vmatmul.mubr.bf16.gmra.mxu1 %v4477_v49 }
 0xde4   :  { %5377 = vmatprep.mubr.bf16.mxu0 %v17750_v37 }
 0xe1b   :  { %v10739_v60 = vpop.f32.mrf.mxu0  ;;  %v10803_v47 = vpop.f32.mrf.mxu1 }
 0xe1d   :  { %v10740_v3 = vpop.f32.mrf.mxu0  ;;  %v10804_v34 = vpop.f32.mrf.mxu1 }
 0xe1e   :  { %v10741_v19 = vadd.f32 %v10740_v3, %v10739_v60  ;;  %v10805_v5 = vadd.f32 %v10804_v34, %v10803_v47 }
 0xe1f   :  { %v10742_v59 = vpop.f32.mrf.mxu0  ;;  %v10806_v54 = vpop.f32.mrf.mxu1 }
 0xe20   :  { %v4777_v63 = vadd.f32 %v10741_v19, %v15338_v62 }
 0xe21   :  { %v10743_v29 = vpop.f32.mrf.mxu0  ;;  %v10807_v46 = vpop.f32.mrf.mxu1 }
 0xe22   :  { %v4874_v14 = vadd.f32 %v10805_v5, %v4777_v63  ;;  %v10744_v16 = vadd.f32 %v10743_v29, %v10742_v59  ;;  %v10808_v2 = vadd.f32 %v10807_v46, %v10806_v54 }
 0xe23   :  { %v10745_v48 = vpop.f32.mrf.mxu0  ;;  %v10809_v11 = vpop.f32.mrf.mxu1 }
 0xe24   :  { %v4780_v45 = vadd.f32 %v10744_v16, %v15338_v62  ;;  %v15343_v21 = vadd.f32 %v4874_v14, %v14780_v25 }
 0xe25   :  { %v10746_v15 = vpop.f32.mrf.mxu0  ;;  %v10810_v9 = vpop.f32.mrf.mxu1 }
 0xe26   :  { %17760 = vst [vmem:[#allocation25_spill] sm:$0xff] %v15343_v21  ;;  %v4877_v35 = vadd.f32 %v10808_v2, %v4780_v45  ;;  %v10747_v38 = vadd.f32 %v10746_v15, %v10745_v48  ;;  %4956 = vadd.xlane.f32.xlu0 %v15343_v21  ;;  %v10811_v33 = vadd.f32 %v10810_v9, %v10809_v11 }
 0xe27   :  { %v10748_v55 = vpop.f32.mrf.mxu0  ;;  %v10812_v61 = vpop.f32.mrf.mxu1 }
 0xe28   :  { %v4785_v28 = vadd.f32 %v10747_v38, %v15338_v62  ;;  %v15348_v30 = vadd.f32 %v4877_v35, %v14797_v57 }
 0xe29   :  { %v10749_v44 = vpop.f32.mrf.mxu0  ;;  %v10813_v32 = vpop.f32.mrf.mxu1 }
 0xe2a   :  { %17761 = vst [vmem:[#allocation15_spill] sm:$0xff] %v15348_v30  ;;  %v4882_v51 = vadd.f32 %v10811_v33, %v4785_v28  ;;  %v10750_v20 = vadd.f32 %v10749_v44, %v10748_v55  ;;  %4958 = vadd.xlane.f32.xlu1 %v15348_v30  ;;  %v10814_v60 = vadd.f32 %v10813_v32, %v10812_v61 }
 0xe2b   :  { %v10751_v25 = vpop.f32.mrf.mxu0  ;;  %v10815_v23 = vpop.f32.mrf.mxu1 }
 0xe2c   :  { %v4788_v49 = vadd.f32 %v10750_v20, %v15338_v62  ;;  %v15353_v47 = vadd.f32 %v4882_v51, %v14794_v43 }
 0xe2d   :  { %v10752_v3 = vpop.f32.mrf.mxu0  ;;  %v10816_v34 = vpop.f32.mrf.mxu1 }
 0xe2e   :  { %17762 = vst [vmem:[#allocation12_spill] sm:$0xff] %v15353_v47  ;;  %v4885_v19 = vadd.f32 %v10814_v60, %v4788_v49  ;;  %v10753_v59 = vadd.f32 %v10752_v3, %v10751_v25  ;;  %4960 = vadd.xlane.f32.xlu0 %v15353_v47  ;;  %v10817_v5 = vadd.f32 %v10816_v34, %v10815_v23 }
 0xe2f   :  { %v10754_v57 = vpop.f32.mrf.mxu0  ;;  %v10818_v54 = vpop.f32.mrf.mxu1 }
 0xe30   :  { %v4793_v63 = vadd.f32 %v10753_v59, %v15338_v62  ;;  %v15358_v29 = vadd.f32 %v4885_v19, %v14806_v13 }
 0xe31   :  { %v10755_v46 = vpop.f32.mrf.mxu0  ;;  %v10819_v14 = vpop.f32.mrf.mxu1 }
 0xe32   :  { %17763 = vst [vmem:[#allocation16_spill] sm:$0xff] %v15358_v29  ;;  %v4890_v16 = vadd.f32 %v10817_v5, %v4793_v63  ;;  %v10756_v48 = vadd.f32 %v10755_v46, %v10754_v57  ;;  %4962 = vadd.xlane.f32.xlu1 %v15358_v29  ;;  %v10820_v2 = vadd.f32 %v10819_v14, %v10818_v54 }
 0xe33   :  { %v10757_v43 = vpop.f32.mrf.mxu0  ;;  %v10821_v11 = vpop.f32.mrf.mxu1 }
 0xe34   :  { %v4796_v45 = vadd.f32 %v10756_v48, %v15338_v62  ;;  %v15363_v15 = vadd.f32 %v4890_v16, %v14813_v17 }
 0xe35   :  { %v10758_v9 = vpop.f32.mrf.mxu0  ;;  %v10822_v35 = vpop.f32.mrf.mxu1 }
 0xe36   :  { %17764 = vst [vmem:[#allocation14_spill] sm:$0xff] %v15363_v15  ;;  %v4893_v38 = vadd.f32 %v10820_v2, %v4796_v45  ;;  %v10759_v55 = vadd.f32 %v10758_v9, %v10757_v43  ;;  %4964 = vadd.xlane.f32.xlu0 %v15363_v15  ;;  %v10823_v33 = vadd.f32 %v10822_v35, %v10821_v11 }
 0xe37   :  { %v10760_v13 = vpop.f32.mrf.mxu0  ;;  %v10824_v61 = vpop.f32.mrf.mxu1 }
 0xe38   :  { %v4801_v28 = vadd.f32 %v10759_v55, %v15338_v62  ;;  %v15368_v44 = vadd.f32 %v4893_v38, %v14827_v22 }
 0xe39   :  { %v10761_v32 = vpop.f32.mrf.mxu0  ;;  %v10825_v51 = vpop.f32.mrf.mxu1 }
 0xe3a   :  { %17765 = vst [vmem:[#allocation19_spill] sm:$0xff] %v15368_v44  ;;  %v4898_v20 = vadd.f32 %v10823_v33, %v4801_v28  ;;  %v10762_v25 = vadd.f32 %v10761_v32, %v10760_v13  ;;  %4966 = vadd.xlane.f32.xlu1 %v15368_v44  ;;  %v10826_v23 = vadd.f32 %v10825_v51, %v10824_v61 }
 0xe3c   :  { %v4804_v17 = vadd.f32 %v10762_v25, %v15338_v62  ;;  %v15373_v49 = vadd.f32 %v4898_v20, %v14824_v50 }
 0xe3e   :  { %17766 = vst [vmem:[#allocation17_spill] sm:$0xff] %v15373_v49  ;;  %v4901_v60 = vadd.f32 %v10826_v23, %v4804_v17  ;;  %4968 = vadd.xlane.f32.xlu0 %v15373_v49 }
 0xe40   :  { %v15377_v3 = vadd.f32 %v4901_v60, %v14832_v10 }
 0xe42   :  { %17767 = vst [vmem:[#allocation18_spill] sm:$0xff] %v15377_v3  ;;  %4970 = vadd.xlane.f32.xlu1 %v15377_v3 }
 0xe8b   :  { %v10763_v22 = vpop.f32.mrf.mxu0  ;;  %v10827_v34 = vpop.f32.mrf.mxu1 }
 0xe8d   :  { %v10764_v19 = vpop.f32.mrf.mxu0  ;;  %v10828_v59 = vpop.f32.mrf.mxu1 }
 0xe8e   :  { %v10765_v57 = vadd.f32 %v10764_v19, %v10763_v22  ;;  %v10829_v46 = vadd.f32 %v10828_v59, %v10827_v34 }
 0xe8f   :  { %v10766_v54 = vpop.f32.mrf.mxu0  ;;  %v10830_v63 = vpop.f32.mrf.mxu1 }
 0xe90   :  { %v4809_v5 = vadd.f32 %v10765_v57, %v15338_v62 }
 0xe91   :  { %v10767_v50 = vpop.f32.mrf.mxu0  ;;  %v10831_v14 = vpop.f32.mrf.mxu1 }
 0xe92   :  { %v4906_v16 = vadd.f32 %v10829_v46, %v4809_v5  ;;  %v10768_v48 = vadd.f32 %v10767_v50, %v10766_v54  ;;  %v10832_v45 = vadd.f32 %v10831_v14, %v10830_v63 }
 0xe93   :  { %v10769_v43 = vpop.f32.mrf.mxu0  ;;  %v10833_v11 = vpop.f32.mrf.mxu1 }
 0xe94   :  { %v4812_v10 = vadd.f32 %v10768_v48, %v15338_v62  ;;  %v15383_v2 = vadd.f32 %v4906_v16, %v14848_v41 }
 0xe95   :  { %v10770_v9 = vpop.f32.mrf.mxu0  ;;  %v10834_v35 = vpop.f32.mrf.mxu1 }
 0xe96   :  { %17768 = vst [vmem:[#allocation29_spill] sm:$0xff] %v15383_v2  ;;  %v4909_v38 = vadd.f32 %v10832_v45, %v4812_v10  ;;  %v10771_v55 = vadd.f32 %v10770_v9, %v10769_v43  ;;  %4972 = vadd.xlane.f32.xlu0 %v15383_v2  ;;  %v10835_v33 = vadd.f32 %v10834_v35, %v10833_v11 }
 0xe97   :  { %v10772_v13 = vpop.f32.mrf.mxu0  ;;  %v10836_v61 = vpop.f32.mrf.mxu1 }
 0xe98   :  { %v4817_v28 = vadd.f32 %v10771_v55, %v15338_v62  ;;  %v15388_v32 = vadd.f32 %v4909_v38, %v14865_v58 }
 0xe99   :  { %v10773_v51 = vpop.f32.mrf.mxu0  ;;  %v10837_v20 = vpop.f32.mrf.mxu1 }
 0xe9a   :  { %17769 = vst [vmem:[#allocation30_spill] sm:$0xff] %v15388_v32  ;;  %v4914_v25 = vadd.f32 %v10835_v33, %v4817_v28  ;;  %v10774_v17 = vadd.f32 %v10773_v51, %v10772_v13  ;;  %4974 = vadd.xlane.f32.xlu1 %v15388_v32  ;;  %v10838_v22 = vadd.f32 %v10837_v20, %v10836_v61 }
 0xe9b   :  { %v10775_v41 = vpop.f32.mrf.mxu0  ;;  %v10839_v23 = vpop.f32.mrf.mxu1 }
 0xe9c   :  { %v4820_v60 = vadd.f32 %v10774_v17, %v15338_v62  ;;  %v15393_v34 = vadd.f32 %v4914_v25, %v14862_v18 }
 0xe9d   :  { %v10776_v19 = vpop.f32.mrf.mxu0  ;;  %v10840_v59 = vpop.f32.mrf.mxu1 }
 0xe9e   :  { %17770 = vst [vmem:[#allocation27_spill] sm:$0xff] %v15393_v34  ;;  %v4917_v57 = vadd.f32 %v10838_v22, %v4820_v60  ;;  %v10777_v54 = vadd.f32 %v10776_v19, %v10775_v41  ;;  %4976 = vadd.xlane.f32.xlu0 %v15393_v34  ;;  %v10841_v46 = vadd.f32 %v10840_v59, %v10839_v23 }
 0xe9f   :  { %v10778_v58 = vpop.f32.mrf.mxu0  ;;  %v10842_v63 = vpop.f32.mrf.mxu1 }
 0xea0   :  { %v4825_v5 = vadd.f32 %v10777_v54, %v15338_v62  ;;  %v15398_v50 = vadd.f32 %v4917_v57, %v14874_v24 }
 0xea1   :  { %v10779_v14 = vpop.f32.mrf.mxu0  ;;  %v10843_v16 = vpop.f32.mrf.mxu1 }
 0xea2   :  { %17771 = vst [vmem:[#allocation26_spill] sm:$0xff] %v15398_v50  ;;  %v4922_v48 = vadd.f32 %v10841_v46, %v4825_v5  ;;  %v10780_v43 = vadd.f32 %v10779_v14, %v10778_v58  ;;  %4978 = vadd.xlane.f32.xlu1 %v15398_v50  ;;  %v10844_v45 = vadd.f32 %v10843_v16, %v10842_v63  ;;  %v12142_v14 = vld [vmem:[%s17542_s3 + $0x168] ss:$12 sps:$4 sm:$0xff]   ;;  %v12144_v16 = vld [vmem:[%s17542_s3 + $0x16c] ss:$12 sps:$4 sm:$0xff]  }
 0xea3   :  { %v10781_v18 = vpop.f32.mrf.mxu0  ;;  %v10845_v11 = vpop.f32.mrf.mxu1  ;;  %5345 = vmatprep.subr.bf16.mxu0 %v12144_v16  ;;  %v12156_v16 = vld [vmem:[%s17542_s3 + $0x108] ss:$12 sps:$4 sm:$0xff]  }
 0xea4   :  { %v4828_v10 = vadd.f32 %v10780_v43, %v15338_v62  ;;  %v15403_v9 = vadd.f32 %v4922_v48, %v14881_v27  ;;  %5346 = vmatpush1.bf16.msra.mxu0 %v12142_v14 }
 0xea5   :  { %v10782_v35 = vpop.f32.mrf.mxu0  ;;  %v10846_v38 = vpop.f32.mrf.mxu1 }
 0xea6   :  { %17772 = vst [vmem:[#allocation28_spill] sm:$0xff] %v15403_v9  ;;  %v4925_v55 = vadd.f32 %v10844_v45, %v4828_v10  ;;  %v10783_v13 = vadd.f32 %v10782_v35, %v10781_v18  ;;  %4980 = vadd.xlane.f32.xlu0 %v15403_v9  ;;  %v10847_v33 = vadd.f32 %v10846_v38, %v10845_v11  ;;  %v12147_v38 = vld [vmem:[%s17542_s3 + $0x154] ss:$12 sps:$4 sm:$0xff]  }
 0xea7   :  { %v10784_v24 = vpop.f32.mrf.mxu0  ;;  %v10848_v61 = vpop.f32.mrf.mxu1  ;;  %5347 = vmatprep.subr.bf16.mxu0 %v12147_v38  ;;  %v12164_v38 = vld [vmem:[%s17542_s3 + $0xd8] ss:$12 sps:$4 sm:$0xff]  }
 0xea8   :  { %v4833_v28 = vadd.f32 %v10783_v13, %v15338_v62  ;;  %v15408_v51 = vadd.f32 %v4925_v55, %v14895_v7  ;;  %v12145_v13 = vld [vmem:[%s17542_s3 + $0x150] ss:$12 sps:$4 sm:$0xff]  }
 0xea9   :  { %v10785_v20 = vpop.f32.mrf.mxu0  ;;  %v10849_v25 = vpop.f32.mrf.mxu1  ;;  %5348 = vmatpush1.bf16.msra.mxu0 %v12145_v13  ;;  %v12170_v13 = vld [vmem:[%s17542_s3 + $0xc4] ss:$12 sps:$4 sm:$0xff]  }
 0xeaa   :  { %17773 = vst [vmem:[#allocation40_spill] sm:$0xff] %v15408_v51  ;;  %v4930_v17 = vadd.f32 %v10847_v33, %v4833_v28  ;;  %v10786_v41 = vadd.f32 %v10785_v20, %v10784_v24  ;;  %4982 = vadd.xlane.f32.xlu1 %v15408_v51  ;;  %v10850_v23 = vadd.f32 %v10849_v25, %v10848_v61  ;;  %v12150_v33 = vld [vmem:[%s17542_s3 + $0x13c] ss:$12 sps:$4 sm:$0xff]  }
 0xeab   :  { %v12151_v20 = vld [vmem:[%s17542_s3 + $0x170] ss:$12 sps:$4 sm:$0xff]   ;;  %5349 = vmatprep.subr.bf16.mxu0 %v12150_v33  ;;  %v12173_v33 = vld [vmem:[%s17542_s3 + $0xc8] ss:$12 sps:$4 sm:$0xff]  }
 0xeac   :  { %v4836_v27 = vadd.f32 %v10786_v41, %v15338_v62  ;;  %v15413_v60 = vadd.f32 %v4930_v17, %v14892_v42  ;;  %v12148_v17 = vld [vmem:[%s17542_s3 + $0x138] ss:$12 sps:$4 sm:$0xff]   ;;  %11547 = vmatprep.subr.bf16.mxu1 %v12151_v20 }
 0xead   :  { %5350 = vmatpush1.bf16.msra.mxu0 %v12148_v17  ;;  %11548 = vmatpush3.bf16.msra.mxu1 %v12151_v20 }
 0xeae   :  { %17774 = vst [vmem:[#allocation41_spill] sm:$0xff] %v15413_v60  ;;  %v4933_v22 = vadd.f32 %v10850_v23, %v4836_v27  ;;  %4984 = vadd.xlane.f32.xlu0 %v15413_v60 }
 0xeaf   :  { %v4957_v19 = vpop.xlane.xlu0 %4956 }
 0xeb0   :  { %v4988_v59 = vmul.f32 0.0078125, %v4957_v19  ;;  %v15417_v7 = vadd.f32 %v4933_v22, %v14900_v36  ;;  %v12154_v22 = vld [vmem:[%s17542_s3 + $0x124] ss:$12 sps:$4 sm:$0xff]  }
 0xeb1   :  { %v12155_v19 = vld [vmem:[%s17542_s3 + $0x158] ss:$12 sps:$4 sm:$0xff]   ;;  %5351 = vmatprep.subr.bf16.mxu0 %v12154_v22 }
 0xeb2   :  { %17775 = vst [vmem:[#allocation42_spill] sm:$0xff] %v15417_v7  ;;  %v15420_v57 = vsub.f32 %v15343_v21, %v4988_v59  ;;  %4986 = vadd.xlane.f32.xlu1 %v15417_v7  ;;  %11549 = vmatprep.subr.bf16.mxu1 %v12155_v19 }
 0xeb3   :  { %v4959_v54 = vpop.xlane.xlu1 %4958  ;;  %11550 = vmatpush3.bf16.msra.mxu1 %v12155_v19 }
 0xeb4   :  { %v4989_v58 = vmul.f32 0.0078125, %v4959_v54  ;;  %v5020_v62 = vmul.f32 %v15420_v57, %v15420_v57  ;;  %v12152_v54 = vld [vmem:[%s17542_s3 + $0x120] ss:$12 sps:$4 sm:$0xff]  }
 0xeb5   :  { %5352 = vmatpush1.bf16.msra.mxu0 %v12152_v54 }
 0xeb6   :  { %v15426_v42 = vsub.f32 %v15348_v30, %v4989_v58  ;;  %5036 = vadd.xlane.f32.xlu0 %v5020_v62 }
 0xeb7   :  { %v4961_v63 = vpop.xlane.xlu0 %4960 }
 0xeb8   :  { %v4990_v5 = vmul.f32 0.0078125, %v4961_v63  ;;  %v5021_v36 = vmul.f32 %v15426_v42, %v15426_v42 }
 0xeba   :  { %v15431_v46 = vsub.f32 %v15353_v47, %v4990_v5  ;;  %5038 = vadd.xlane.f32.xlu1 %v5021_v36  ;;  %v12158_v5 = vld [vmem:[%s17542_s3 + $0x10c] ss:$12 sps:$4 sm:$0xff]  }
 0xebb   :  { %v4963_v48 = vpop.xlane.xlu1 %4962  ;;  %v12159_v36 = vld [vmem:[%s17542_s3 + $0x140] ss:$12 sps:$4 sm:$0xff]   ;;  %5353 = vmatprep.subr.bf16.mxu0 %v12158_v5 }
 0xebc   :  { %v4991_v43 = vmul.f32 0.0078125, %v4963_v48  ;;  %v5022_v18 = vmul.f32 %v15431_v46, %v15431_v46  ;;  %11551 = vmatprep.subr.bf16.mxu1 %v12159_v36  ;;  %5354 = vmatpush1.bf16.msra.mxu0 %v12156_v16 }
 0xebd   :  { %11552 = vmatpush3.bf16.msra.mxu1 %v12159_v36 }
 0xebe   :  { %v15442_v11 = vsub.f32 %v15358_v29, %v4991_v43  ;;  %5040 = vadd.xlane.f32.xlu0 %v5022_v18  ;;  %v12162_v43 = vld [vmem:[%s17542_s3 + $0xf4] ss:$12 sps:$4 sm:$0xff]  }
 0xebf   :  { %v4965_v10 = vpop.xlane.xlu0 %4964  ;;  %v12163_v18 = vld [vmem:[%s17542_s3 + $0x128] ss:$12 sps:$4 sm:$0xff]   ;;  %5355 = vmatprep.subr.bf16.mxu0 %v12162_v43 }
 0xec0   :  { %v4992_v45 = vmul.f32 0.0078125, %v4965_v10  ;;  %v5023_v35 = vmul.f32 %v15442_v11, %v15442_v11  ;;  %v12160_v10 = vld [vmem:[%s17542_s3 + $0xf0] ss:$12 sps:$4 sm:$0xff]   ;;  %11553 = vmatprep.subr.bf16.mxu1 %v12163_v18 }
 0xec1   :  { %5356 = vmatpush1.bf16.msra.mxu0 %v12160_v10  ;;  %11554 = vmatpush3.bf16.msra.mxu1 %v12163_v18 }
 0xec2   :  { %v15450_v55 = vsub.f32 %v15363_v15, %v4992_v45  ;;  %5042 = vadd.xlane.f32.xlu1 %v5023_v35  ;;  %v12166_v45 = vld [vmem:[%s17542_s3 + $0xdc] ss:$12 sps:$4 sm:$0xff]  }
 0xec3   :  { %v4967_v24 = vpop.xlane.xlu1 %4966  ;;  %v12167_v35 = vld [vmem:[%s17542_s3 + $0x110] ss:$12 sps:$4 sm:$0xff]   ;;  %5357 = vmatprep.subr.bf16.mxu0 %v12166_v45 }
 0xec4   :  { %v4993_v61 = vmul.f32 0.0078125, %v4967_v24  ;;  %v5024_v28 = vmul.f32 %v15450_v55, %v15450_v55  ;;  %11555 = vmatprep.subr.bf16.mxu1 %v12167_v35  ;;  %v12171_v24 = vld [vmem:[%s17542_s3 + $0xf8] ss:$12 sps:$4 sm:$0xff]  }
 0xec5   :  { %5358 = vmatpush1.bf16.msra.mxu0 %v12164_v38  ;;  %11556 = vmatpush3.bf16.msra.mxu1 %v12167_v35 }
 0xec6   :  { %v15464_v25 = vsub.f32 %v15368_v44, %v4993_v61  ;;  %5044 = vadd.xlane.f32.xlu0 %v5024_v28  ;;  %v12168_v61 = vld [vmem:[%s17542_s3 + $0xc0] ss:$12 sps:$4 sm:$0xff]   ;;  %5359 = vmatprep.subr.bf16.mxu0 %v12170_v13 }
 0xec7   :  { %v4969_v41 = vpop.xlane.xlu0 %4968  ;;  %11557 = vmatprep.subr.bf16.mxu1 %v12171_v24  ;;  %v12172_v28 = vld [vmem:[%s17542_s3 + $0xe0] ss:$12 sps:$4 sm:$0xff]  }
 0xec8   :  { %v4994_v27 = vmul.f32 0.0078125, %v4969_v41  ;;  %v5025_v23 = vmul.f32 %v15464_v25, %v15464_v25 }
 0xec9   :  { %5360 = vmatpush1.bf16.msra.mxu0 %v12168_v61  ;;  %11558 = vmatpush3.bf16.msra.mxu1 %v12171_v24 }
 0xeca   :  { %v15478_v59 = vsub.f32 %v15373_v49, %v4994_v27  ;;  %5046 = vadd.xlane.f32.xlu1 %v5025_v23  ;;  %11559 = vmatprep.subr.bf16.mxu1 %v12172_v28 }
 0xecb   :  { %v4971_v58 = vpop.xlane.xlu1 %4970 }
 0xecc   :  { %v4995_v62 = vmul.f32 0.0078125, %v4971_v58  ;;  %v5026_v63 = vmul.f32 %v15478_v59, %v15478_v59 }
 0xecd   :  { %11560 = vmatpush3.bf16.msra.mxu1 %v12172_v28 }
 0xece   :  { %v15492_v14 = vsub.f32 %v15377_v3, %v4995_v62  ;;  %5048 = vadd.xlane.f32.xlu0 %v5026_v63  ;;  %11561 = vmatprep.subr.bf16.mxu1 %v12173_v33 }
 0xed0   :  { %v5027_v48 = vmul.f32 %v15492_v14, %v15492_v14 }
 0xed1   :  { %11562 = vmatpush3.bf16.msra.mxu1 %v12173_v33 }
 0xed2   :  { %5050 = vadd.xlane.f32.xlu1 %v5027_v48 }
 0xf1f   :  { %v4973_v20 = vpop.xlane.xlu0 %4972 }
 0xf20   :  { %v4996_v17 = vmul.f32 0.0078125, %v4973_v20 }
 0xf22   :  { %v15533_v41 = vsub.f32 %v15383_v2, %v4996_v17 }
 0xf23   :  { %v4975_v27 = vpop.xlane.xlu1 %4974 }
 0xf24   :  { %v4997_v23 = vmul.f32 0.0078125, %v4975_v27  ;;  %v5028_v22 = vmul.f32 %v15533_v41, %v15533_v41 }
 0xf26   :  { %v15538_v19 = vsub.f32 %v15388_v32, %v4997_v23  ;;  %5052 = vadd.xlane.f32.xlu0 %v5028_v22 }
 0xf27   :  { %v4977_v54 = vpop.xlane.xlu0 %4976 }
 0xf28   :  { %v4998_v58 = vmul.f32 0.0078125, %v4977_v54  ;;  %v5029_v62 = vmul.f32 %v15538_v19, %v15538_v19 }
 0xf2a   :  { %v15543_v63 = vsub.f32 %v15393_v34, %v4998_v58  ;;  %5054 = vadd.xlane.f32.xlu1 %v5029_v62 }
 0xf2b   :  { %v4979_v5 = vpop.xlane.xlu1 %4978 }
 0xf2c   :  { %v4999_v36 = vmul.f32 0.0078125, %v4979_v5  ;;  %v5030_v16 = vmul.f32 %v15543_v63, %v15543_v63 }
 0xf2e   :  { %v15548_v48 = vsub.f32 %v15398_v50, %v4999_v36  ;;  %5056 = vadd.xlane.f32.xlu0 %v5030_v16 }
 0xf2f   :  { %v4981_v43 = vpop.xlane.xlu0 %4980 }
 0xf30   :  { %v5000_v18 = vmul.f32 0.0078125, %v4981_v43  ;;  %v5031_v10 = vmul.f32 %v15548_v48, %v15548_v48 }
 0xf32   :  { %v15553_v45 = vsub.f32 %v15403_v9, %v5000_v18  ;;  %5058 = vadd.xlane.f32.xlu1 %v5031_v10 }
 0xf33   :  { %v4983_v35 = vpop.xlane.xlu1 %4982 }
 0xf34   :  { %v5001_v38 = vmul.f32 0.0078125, %v4983_v35  ;;  %v5032_v13 = vmul.f32 %v15553_v45, %v15553_v45 }
 0xf36   :  { %v15558_v24 = vsub.f32 %v15408_v51, %v5001_v38  ;;  %5060 = vadd.xlane.f32.xlu0 %v5032_v13 }
 0xf37   :  { %v4985_v61 = vpop.xlane.xlu0 %4984 }
 0xf38   :  { %v5002_v28 = vmul.f32 0.0078125, %v4985_v61  ;;  %v5033_v33 = vmul.f32 %v15558_v24, %v15558_v24 }
 0xf3a   :  { %v15563_v20 = vsub.f32 %v15413_v60, %v5002_v28  ;;  %5062 = vadd.xlane.f32.xlu1 %v5033_v33 }
 0xf3b   :  { %v4987_v17 = vpop.xlane.xlu1 %4986 }
 0xf3c   :  { %v5003_v27 = vmul.f32 0.0078125, %v4987_v17  ;;  %v5034_v23 = vmul.f32 %v15563_v20, %v15563_v20 }
 0xf3e   :  { %v15568_v22 = vsub.f32 %v15417_v7, %v5003_v27  ;;  %5064 = vadd.xlane.f32.xlu0 %v5034_v23 }
 0xf3f   :  { %v5037_v54 = vpop.xlane.xlu0 %5036 }
 0xf40   :  { %v5068_v58 = vmul.f32 0.0078125, %v5037_v54  ;;  %v5035_v62 = vmul.f32 %v15568_v22, %v15568_v22  ;;  %v15576_v54 = vld [vmem:[%s17540_s1 + $0x1] ss:$0 sm:$0xff] }
 0xf42   :  { %v5084_v5 = vadd.f32 1e-05, %v5068_v58  ;;  %5066 = vadd.xlane.f32.xlu1 %v5035_v62 }
 0xf43   :  { %v5039_v36 = vpop.xlane.xlu1 %5038 }
 0xf44   :  { %12590 = vrsqrt.f32 %v5084_v5  ;;  %v5069_v16 = vmul.f32 0.0078125, %v5039_v36 }
 0xf46   :  { %v5085_v43 = vadd.f32 1e-05, %v5069_v16 }
 0xf47   :  { %v5041_v18 = vpop.xlane.xlu0 %5040 }
 0xf48   :  { %12592 = vrsqrt.f32 %v5085_v43  ;;  %v5070_v10 = vmul.f32 0.0078125, %v5041_v18 }
 0xf4a   :  { %v5086_v35 = vadd.f32 1e-05, %v5070_v10 }
 0xf4b   :  { %v5043_v38 = vpop.xlane.xlu1 %5042 }
 0xf4c   :  { %12594 = vrsqrt.f32 %v5086_v35  ;;  %v5071_v13 = vmul.f32 0.0078125, %v5043_v38 }
 0xf4e   :  { %v5087_v61 = vadd.f32 1e-05, %v5071_v13 }
 0xf4f   :  { %v5045_v28 = vpop.xlane.xlu0 %5044 }
 0xf50   :  { %12596 = vrsqrt.f32 %v5087_v61  ;;  %v5072_v33 = vmul.f32 0.0078125, %v5045_v28 }
 0xf51   :  { %v12591_v17 = vpop.eup %12590 }
 0xf52   :  { %v5116_v27 = vmul.f32 %v12591_v17, %v15420_v57  ;;  %v5088_v23 = vadd.f32 1e-05, %v5072_v33  ;;  %v15583_v57 = vld [vmem:[%s17541_s2 + $0x1] ss:$0 sm:$0xff] }
 0xf53   :  { %v5047_v58 = vpop.xlane.xlu1 %5046 }
 0xf54   :  { %12598 = vrsqrt.f32 %v5088_v23  ;;  %v5073_v62 = vmul.f32 0.0078125, %v5047_v58  ;;  %v5138_v36 = vmul.f32 %v15576_v54, %v5116_v27 }
 0xf55   :  { %v12593_v5 = vpop.eup %12592 }
 0xf56   :  { %v5117_v16 = vmul.f32 %v12593_v5, %v15426_v42  ;;  %v5089_v43 = vadd.f32 1e-05, %v5073_v62  ;;  %v5160_v61 = vadd.f32 %v15583_v57, %v5138_v36 }
 0xf57   :  { %v5049_v18 = vpop.xlane.xlu0 %5048 }
 0xf58   :  { %v5139_v10 = vmul.f32 %v15576_v54, %v5117_v16  ;;  %12600 = vrsqrt.f32 %v5089_v43  ;;  %v5074_v35 = vmul.f32 0.0078125, %v5049_v18 }
 0xf59   :  { %v12595_v38 = vpop.eup %12594 }
 0xf5a   :  { %v5090_v13 = vadd.f32 1e-05, %v5074_v35  ;;  %v5161_v28 = vadd.f32 %v15583_v57, %v5139_v10  ;;  %v5118_v33 = vmul.f32 %v12595_v38, %v15431_v46 }
 0xf5b   :  { %v5051_v42 = vpop.xlane.xlu1 %5050 }
 0xf5c   :  { %12602 = vrsqrt.f32 %v5090_v13  ;;  %v5075_v17 = vmul.f32 0.0078125, %v5051_v42  ;;  %v5176_v27 = vpack.c.bf16 %v5161_v28, %v5160_v61  ;;  %v5140_v5 = vmul.f32 %v15576_v54, %v5118_v33 }
 0xf5d   :  { %v12597_v23 = vpop.eup %12596 }
 0xf5e   :  { %v5091_v58 = vadd.f32 1e-05, %v5075_v17  ;;  %5378 = vmatmul.mubr.bf16.vlgmr.msra.gmra.mxu0 %v5176_v27  ;;  %11563 = vmatprep.mubr.bf16.mxu1 %v5176_v27  ;;  %v5119_v62 = vmul.f32 %v12597_v23, %v15442_v11  ;;  %v5162_v46 = vadd.f32 %v15583_v57, %v5140_v5 }
 0xf5f   :  { %5387 = vmatprep.mubr.bf16.mxu0 %v17750_v37 }
 0xf60   :  { %12604 = vrsqrt.f32 %v5091_v58  ;;  %v5141_v36 = vmul.f32 %v15576_v54, %v5119_v62 }
 0xf61   :  { %v12599_v16 = vpop.eup %12598 }
 0xf62   :  { %v5163_v43 = vadd.f32 %v15583_v57, %v5141_v36  ;;  %v5120_v18 = vmul.f32 %v12599_v16, %v15450_v55  ;;  %v12175_v36 = vld [vmem:[#allocation2 + $0x40] sm:$0xff]  }
 0xf64   :  { %v5177_v10 = vpack.c.bf16 %v5163_v43, %v5162_v46  ;;  %v5142_v38 = vmul.f32 %v15576_v54, %v5120_v18 }
 0xf65   :  { %v12601_v35 = vpop.eup %12600 }
 0xf66   :  { %5388 = vmatmul.mubr.bf16.gmra.mxu0 %v5177_v10  ;;  %11564 = vmatmul.mubr.bf16.vlgmr.msra.gmra.mxu1 %v5177_v10  ;;  %v5121_v11 = vmul.f32 %v12601_v35, %v15464_v25  ;;  %v5164_v28 = vadd.f32 %v15583_v57, %v5142_v38 }
 0xf67   :  { %5397 = vmatprep.mubr.bf16.mxu0 %v17750_v37 }
 0xf68   :  { %v5143_v13 = vmul.f32 %v15576_v54, %v5121_v11 }
 0xf69   :  { %v12603_v61 = vpop.eup %12602 }
 0xf6a   :  { %v5165_v33 = vadd.f32 %v15583_v57, %v5143_v13  ;;  %v5122_v42 = vmul.f32 %v12603_v61, %v15478_v59  ;;  %v12174_v59 = vld [vmem:[#allocation2 + $0x48] sm:$0xff]  }
 0xf6b   :  { %11579 = vmatprep.subr.bf16.mxu1 %v12174_v59 }
 0xf6c   :  { %v5178_v55 = vpack.c.bf16 %v5165_v33, %v5164_v28  ;;  %v5144_v25 = vmul.f32 %v15576_v54, %v5122_v42  ;;  %11580 = vmatpush3.bf16.msra.mxu1 %v12174_v59 }
 0xf6d   :  { %v12605_v17 = vpop.eup %12604  ;;  %11581 = vmatprep.subr.bf16.mxu1 %v12175_v36 }
 0xf6e   :  { %5398 = vmatmul.mubr.bf16.gmra.mxu0 %v5178_v55  ;;  %11567 = vmatprep.mubr.bf16.mxu1 %v5178_v55  ;;  %v5123_v27 = vmul.f32 %v12605_v17, %v15492_v14  ;;  %v5166_v58 = vadd.f32 %v15583_v57, %v5144_v25 }
 0xf6f   :  { %5407 = vmatprep.mubr.bf16.mxu0 %v17750_v37 }
 0xf70   :  { %v5145_v23 = vmul.f32 %v15576_v54, %v5123_v27  ;;  %11582 = vmatpush3.bf16.msra.mxu1 %v12175_v36 }
 0xf72   :  { %v5167_v62 = vadd.f32 %v15583_v57, %v5145_v23 }
 0xf74   :  { %v5179_v5 = vpack.c.bf16 %v5167_v62, %v5166_v58 }
 0xf76   :  { %5408 = vmatmul.mubr.bf16.gmra.mxu0 %v5179_v5  ;;  %11568 = vmatmul.mubr.bf16.gmra.mxu1 %v5179_v5 }
 0xf77   :  { %5417 = vmatprep.mubr.bf16.mxu0 %v17750_v37 }
 0xfaf   :  { %v5053_v14 = vpop.xlane.xlu0 %5052 }
 0xfb0   :  { %v5076_v16 = vmul.f32 0.0078125, %v5053_v14 }
 0xfb2   :  { %v5092_v46 = vadd.f32 1e-05, %v5076_v16 }
 0xfb3   :  { %v5055_v43 = vpop.xlane.xlu1 %5054 }
 0xfb4   :  { %12606 = vrsqrt.f32 %v5092_v46  ;;  %v5077_v18 = vmul.f32 0.0078125, %v5055_v43 }
 0xfb6   :  { %v5093_v10 = vadd.f32 1e-05, %v5077_v18 }
 0xfb7   :  { %v5057_v35 = vpop.xlane.xlu0 %5056 }
 0xfb8   :  { %12608 = vrsqrt.f32 %v5093_v10  ;;  %v5078_v11 = vmul.f32 0.0078125, %v5057_v35 }
 0xfba   :  { %v5094_v38 = vadd.f32 1e-05, %v5078_v11 }
 0xfbb   :  { %v5059_v13 = vpop.xlane.xlu1 %5058 }
 0xfbc   :  { %12610 = vrsqrt.f32 %v5094_v38  ;;  %v5079_v61 = vmul.f32 0.0078125, %v5059_v13 }
 0xfbe   :  { %v5095_v28 = vadd.f32 1e-05, %v5079_v61 }
 0xfbf   :  { %v5061_v33 = vpop.xlane.xlu0 %5060 }
 0xfc0   :  { %12612 = vrsqrt.f32 %v5095_v28  ;;  %v5080_v42 = vmul.f32 0.0078125, %v5061_v33 }
 0xfc1   :  { %v12607_v55 = vpop.eup %12606 }
 0xfc2   :  { %v5096_v17 = vadd.f32 1e-05, %v5080_v42  ;;  %v5124_v27 = vmul.f32 %v12607_v55, %v15533_v41 }
 0xfc3   :  { %v5063_v25 = vpop.xlane.xlu1 %5062 }
 0xfc4   :  { %12614 = vrsqrt.f32 %v5096_v17  ;;  %v5081_v23 = vmul.f32 0.0078125, %v5063_v25  ;;  %v5146_v59 = vmul.f32 %v15576_v54, %v5124_v27 }
 0xfc5   :  { %v12609_v58 = vpop.eup %12608 }
 0xfc6   :  { %v5097_v62 = vadd.f32 1e-05, %v5081_v23  ;;  %v5125_v5 = vmul.f32 %v12609_v58, %v15538_v19  ;;  %v5168_v18 = vadd.f32 %v15583_v57, %v5146_v59 }
 0xfc7   :  { %v5065_v36 = vpop.xlane.xlu0 %5064 }
 0xfc8   :  { %12616 = vrsqrt.f32 %v5097_v62  ;;  %v5082_v14 = vmul.f32 0.0078125, %v5065_v36  ;;  %v5147_v16 = vmul.f32 %v15576_v54, %v5125_v5 }
 0xfc9   :  { %v12611_v46 = vpop.eup %12610 }
 0xfca   :  { %v5098_v43 = vadd.f32 1e-05, %v5082_v14  ;;  %v5169_v41 = vadd.f32 %v15583_v57, %v5147_v16  ;;  %v5126_v10 = vmul.f32 %v12611_v46, %v15543_v63 }
 0xfcb   :  { %v5067_v35 = vpop.xlane.xlu1 %5066 }
 0xfcc   :  { %12618 = vrsqrt.f32 %v5098_v43  ;;  %v5083_v11 = vmul.f32 0.0078125, %v5067_v35  ;;  %v5180_v38 = vpack.c.bf16 %v5169_v41, %v5168_v18  ;;  %v5148_v28 = vmul.f32 %v15576_v54, %v5126_v10 }
 0xfcd   :  { %v12613_v19 = vpop.eup %12612 }
 0xfce   :  { %v5099_v13 = vadd.f32 1e-05, %v5083_v11  ;;  %5418 = vmatmul.mubr.bf16.gmra.mxu0 %v5180_v38  ;;  %11571 = vmatprep.mubr.bf16.mxu1 %v5180_v38  ;;  %v5127_v61 = vmul.f32 %v12613_v19, %v15548_v48  ;;  %v5170_v63 = vadd.f32 %v15583_v57, %v5148_v28 }
 0xfcf   :  { %5427 = vmatprep.mubr.bf16.mxu0 %v17750_v37 }
 0xfd0   :  { %12620 = vrsqrt.f32 %v5099_v13  ;;  %v5149_v33 = vmul.f32 %v15576_v54, %v5127_v61 }
 0xfd1   :  { %v12615_v42 = vpop.eup %12614 }
 0xfd2   :  { %v5171_v55 = vadd.f32 %v15583_v57, %v5149_v33  ;;  %v5128_v17 = vmul.f32 %v12615_v42, %v15553_v45 }
 0xfd4   :  { %v5181_v27 = vpack.c.bf16 %v5171_v55, %v5170_v63  ;;  %v5150_v23 = vmul.f32 %v15576_v54, %v5128_v17 }
 0xfd5   :  { %v12617_v25 = vpop.eup %12616 }
 0xfd6   :  { %5428 = vmatmul.mubr.bf16.gmra.mxu0 %v5181_v27  ;;  %11572 = vmatmul.mubr.bf16.gmra.mxu1 %v5181_v27  ;;  %v5129_v48 = vmul.f32 %v12617_v25, %v15558_v24  ;;  %v5172_v5 = vadd.f32 %v15583_v57, %v5150_v23 }
 0xfd7   :  { %5437 = vmatprep.mubr.bf16.mxu0 %v17750_v37 }
 0xfd8   :  { %v5151_v58 = vmul.f32 %v15576_v54, %v5129_v48 }
 0xfd9   :  { %v12619_v62 = vpop.eup %12618 }
 0xfda   :  { %v5173_v59 = vadd.f32 %v15583_v57, %v5151_v58  ;;  %v5130_v36 = vmul.f32 %v12619_v62, %v15563_v20 }
 0xfdc   :  { %v5182_v45 = vpack.c.bf16 %v5173_v59, %v5172_v5  ;;  %v5152_v24 = vmul.f32 %v15576_v54, %v5130_v36 }
 0xfdd   :  { %v12621_v14 = vpop.eup %12620 }
 0xfde   :  { %5438 = vmatmul.mubr.bf16.gmra.mxu0 %v5182_v45  ;;  %11575 = vmatprep.mubr.bf16.mxu1 %v5182_v45  ;;  %v5131_v16 = vmul.f32 %v12621_v14, %v15568_v22  ;;  %v5174_v43 = vadd.f32 %v15583_v57, %v5152_v24 }
 0xfdf   :  { %5447 = vmatprep.mubr.bf16.mxu0 %v17750_v37 }
 0xfe0   :  { %v5153_v46 = vmul.f32 %v15576_v54, %v5131_v16 }
 0xfe2   :  { %v5175_v18 = vadd.f32 %v15583_v57, %v5153_v46 }
 0xfe4   :  { %v5183_v41 = vpack.c.bf16 %v5175_v18, %v5174_v43 }
 0xfe6   :  { %5448 = vmatmul.mubr.bf16.gmra.mxu0 %v5183_v41  ;;  %11576 = vmatmul.mubr.bf16.gmra.mxu1 %v5183_v41 }
0x101e   :  { %v5379_v20 = vpop.f32.mrf.mxu0 }
0x101f   :  { %v5721_v11 = vmul.f32 0.088388346, %v5379_v20 }
0x1020   :  { %v5381_v10 = vpop.f32.mrf.mxu0 }
0x1022   :  { %v5383_v35 = vpop.f32.mrf.mxu0 }
0x1023   :  { %v5722_v38 = vmul.f32 0.088388346, %v5383_v35 }
0x1024   :  { %v5385_v19 = vpop.f32.mrf.mxu0 }
0x1025   :  { %v15637_v22 = vpack.c.bf16 %v5722_v38, %v5721_v11  ;;  %v15657_v43 = vpack.c.bf16 %v5385_v19, %v5381_v10 }
0x1026   :  { %v5389_v13 = vpop.f32.mrf.mxu0  ;;  %v11565_v61 = vpop.f32.mrf.mxu1 }
0x1027   :  { %11607 = vmatprep.mubr.msk.bf16.mxu0 %vm760_vm0, %v15637_v22  ;;  %v5723_v35 = vmul.f32 0.088388346, %v5389_v13 }
0x1028   :  { %v5391_v54 = vpop.f32.mrf.mxu0  ;;  %v5492_v28 = vpop.f32.mrf.mxu1 }
0x102a   :  { %v5393_v33 = vpop.f32.mrf.mxu0  ;;  %v11566_v57 = vpop.f32.mrf.mxu1 }
0x102b   :  { %v15643_v17 = vpack.c.bf16 %v11566_v57, %v11565_v61  ;;  %v5724_v18 = vmul.f32 0.088388346, %v5393_v33 }
0x102c   :  { %v5395_v42 = vpop.f32.mrf.mxu0  ;;  %v5495_v63 = vpop.f32.mrf.mxu1 }
0x102d   :  { %v15641_v55 = vpack.c.bf16 %v5495_v63, %v5492_v28  ;;  %17777 = vst [vmem:[#allocation45_spill] sm:$0xff] %v15643_v17  ;;  %v15653_v45 = vpack.c.bf16 %v5395_v42, %v5391_v54  ;;  %v15675_v10 = vpack.c.bf16 %v5724_v18, %v5723_v35  ;;  %v12176_v63 = vld [vmem:[#allocation2 + $0x58] sm:$0xff]  }
0x102e   :  { %v5399_v27 = vpop.f32.mrf.mxu0 }
0x102f   :  { %17776 = vst [vmem:[#allocation44_spill] sm:$0xff] %v15641_v55  ;;  %11583 = vmatprep.mubr.msk.bf16.mxu1 %vm760_vm0, %v15641_v55  ;;  %v5725_v61 = vmul.f32 0.088388346, %v5399_v27  ;;  %v5753_v42 = vsel %vm760_vm0, %v15653_v45, 0  ;;  %v5750_v27 = vsel %vm760_vm0, %v15657_v43, 0 }
0x1030   :  { %v5401_v25 = vpop.f32.mrf.mxu0  ;;  %11584 = vmatmul.mubr.msk.bf16.vlgmr.msra.gmra.mxu1 %vm760_vm0, %v15643_v17 }
0x1032   :  { %v5403_v48 = vpop.f32.mrf.mxu0 }
0x1033   :  { %v5726_v19 = vmul.f32 0.088388346, %v5403_v48 }
0x1034   :  { %v5405_v23 = vpop.f32.mrf.mxu0 }
0x1035   :  { %v15649_v58 = vpack.c.bf16 %v5405_v23, %v5401_v25  ;;  %v15685_v28 = vpack.c.bf16 %v5726_v19, %v5725_v61  ;;  %v12177_v25 = vld [vmem:[#allocation2 + $0x50] sm:$0xff]  }
0x1036   :  { %v5409_v62 = vpop.f32.mrf.mxu0  ;;  %v11569_v5 = vpop.f32.mrf.mxu1 }
0x1037   :  { %6316 = vrot.lane.b32.xlu1 %v15649_v58, %s13018_s25  ;;  %v5727_v54 = vmul.f32 0.088388346, %v5409_v62  ;;  %17780 = vst [vmem:[#allocation21_spill] sm:$0xff] %v15685_v28  ;;  %v5756_v57 = vsel %vm760_vm0, %v15649_v58, 0 }
0x1038   :  { %v5411_v59 = vpop.f32.mrf.mxu0  ;;  %v5508_v36 = vpop.f32.mrf.mxu1 }
0x103a   :  { %v5413_v14 = vpop.f32.mrf.mxu0  ;;  %v11570_v16 = vpop.f32.mrf.mxu1 }
0x103b   :  { %6314 = vrot.lane.b32.xlu1 %v15653_v45, %s13018_s25  ;;  %v15663_v11 = vpack.c.bf16 %v11570_v16, %v11569_v5  ;;  %v5728_v13 = vmul.f32 0.088388346, %v5413_v14 }
0x103c   :  { %v5415_v24 = vpop.f32.mrf.mxu0  ;;  %v5511_v46 = vpop.f32.mrf.mxu1 }
0x103d   :  { %v15659_v41 = vpack.c.bf16 %v5415_v24, %v5411_v59  ;;  %v15661_v20 = vpack.c.bf16 %v5511_v46, %v5508_v36  ;;  %17779 = vst [vmem:[#allocation43_spill] sm:$0xff] %v15663_v11  ;;  %v15687_v33 = vpack.c.bf16 %v5728_v13, %v5727_v54 }
0x103f   :  { %17778 = vst [vmem:[#allocation46_spill] sm:$0xff] %v15661_v20  ;;  %6312 = vrot.lane.b32.xlu1 %v15657_v43, %s13018_s25  ;;  %6318 = vrot.lane.b32.xlu0 %v15659_v41, %s13018_s25  ;;  %v5759_v38 = vsel %vm760_vm0, %v15659_v41, 0  ;;  %17781 = vst [vmem:[#allocation47_spill] sm:$0xff] %v15687_v33 }
0x1040   :  { %11587 = vmatprep.mubr.msk.bf16.mxu1 %vm760_vm0, %v15661_v20  ;;  %11979 = vmatprep.subr.msk.bf16.mxu0 %vm760_vm0, %v15659_v41 }
0x1041   :  { %11588 = vmatmul.mubr.msk.bf16.gmra.mxu1 %vm760_vm0, %v15663_v11  ;;  %11600 = vmatpush3.bf16.xpose.msra.mxu0 %v5759_v38 }
0x1042   :  { %11980 = vmatprep.subr.msk.bf16.mxu0 %vm760_vm0, %v15649_v58 }
0x1043   :  { %6302 = vrot.lane.b32.xlu1 %v15675_v10, %s13018_s25  ;;  %6300 = vrot.lane.b32.xlu0 %v15637_v22, %s13018_s25 }
0x1047   :  { %6306 = vrot.lane.b32.xlu1 %v15687_v33, %s13018_s25  ;;  %6304 = vrot.lane.b32.xlu0 %v15685_v28, %s13018_s25 }
0x1049   :  { %11602 = vmatpush3.bf16.xpose.msra.mxu0 %v5756_v57 }
0x104a   :  { %11981 = vmatprep.subr.msk.bf16.mxu0 %vm760_vm0, %v15653_v45 }
0x104b   :  { %6141 = vrot.lane.b32.xlu1 %v15643_v17, %s13018_s25  ;;  %6139 = vrot.lane.b32.xlu0 %v15641_v55, %s13018_s25 }
0x104f   :  { %6145 = vrot.lane.b32.xlu1 %v15663_v11, %s13018_s25  ;;  %6143 = vrot.lane.b32.xlu0 %v15661_v20, %s13018_s25 }
0x1051   :  { %11604 = vmatpush3.bf16.xpose.msra.mxu0 %v5753_v42 }
0x1052   :  { %11982 = vmatprep.subr.msk.bf16.mxu0 %vm760_vm0, %v15657_v43 }
0x1059   :  { %11606 = vmatpush3.bf16.xpose.msra.mxu0 %v5750_v27 }
0x105a   :  { %11631 = vmatprep.subr.bf16.mxu0 %v12176_v63 }
0x1060   :  { %11608 = vmatmul.mubr.msk.bf16.vlgmr.msra.gmra.mxu0 %vm760_vm0, %v15675_v10 }
0x1061   :  { %11611 = vmatprep.mubr.msk.bf16.mxu0 %vm760_vm0, %v15685_v28  ;;  %11632 = vmatpush3.bf16.msra.mxu0 %v12176_v63 }
0x1062   :  { %11633 = vmatprep.subr.bf16.mxu0 %v12177_v25 }
0x1065   :  { %11634 = vmatpush3.bf16.msra.mxu0 %v12177_v25 }
0x1068   :  { %11612 = vmatmul.mubr.msk.bf16.gmra.mxu0 %vm760_vm0, %v15687_v33 }
0x108e   :  { %v5419_v48 = vpop.f32.mrf.mxu0 }
0x108f   :  { %v5926_v6 = vmul.f32 0.088388346, %v5419_v48 }
0x1090   :  { %v5421_v23 = vpop.f32.mrf.mxu0 }
0x1092   :  { %v5423_v62 = vpop.f32.mrf.mxu0 }
0x1094   :  { %v5425_v5 = vpop.f32.mrf.mxu0 }
0x1096   :  { %v15717_v59 = vpop.f32.mrf.mxu0  ;;  %v11573_v36 = vpop.f32.mrf.mxu1 }
0x1098   :  { %v5431_v14 = vpop.f32.mrf.mxu0  ;;  %v5524_v16 = vpop.f32.mrf.mxu1 }
0x109a   :  { %v5433_v24 = vpop.f32.mrf.mxu0  ;;  %v11574_v46 = vpop.f32.mrf.mxu1 }
0x109b   :  { %v15721_v19 = vpack.c.bf16 %v11574_v46, %v11573_v36 }
0x109c   :  { %v5435_v18 = vpop.f32.mrf.mxu0  ;;  %v5527_v35 = vpop.f32.mrf.mxu1 }
0x109d   :  { %v15719_v38 = vpack.c.bf16 %v5527_v35, %v5524_v16  ;;  %17783 = vst [vmem:[#allocation22_spill] sm:$0xff] %v15721_v19  ;;  %v5927_v35 = vmul.f32 0.088388346, %v5423_v62 }
0x109e   :  { %v5439_v13 = vpop.f32.mrf.mxu0 }
0x109f   :  { %17782 = vst [vmem:[#allocation20_spill] sm:$0xff] %v15719_v38  ;;  %11591 = vmatprep.mubr.msk.bf16.mxu1 %vm760_vm0, %v15719_v38  ;;  %v15733_v60 = vpack.c.bf16 %v5927_v35, %v5926_v6 }
0x10a0   :  { %v5441_v61 = vpop.f32.mrf.mxu0  ;;  %11592 = vmatmul.mubr.msk.bf16.gmra.mxu1 %vm760_vm0, %v15721_v19 }
0x10a2   :  { %v5443_v54 = vpop.f32.mrf.mxu0 }
0x10a4   :  { %v5445_v57 = vpop.f32.mrf.mxu0 }
0x10a5   :  { %v15741_v9 = vpack.c.bf16 %v5445_v57, %v5441_v61 }
0x10a6   :  { %v5449_v42 = vpop.f32.mrf.mxu0  ;;  %v11577_v63 = vpop.f32.mrf.mxu1 }
0x10a7   :  { %v5961_v61 = vsel %vm760_vm0, %v15741_v9, 0 }
0x10a8   :  { %v5451_v27 = vpop.f32.mrf.mxu0  ;;  %v5540_v25 = vpop.f32.mrf.mxu1 }
0x10a9   :  { %v6317_v1 = vpop.permute.xlu1 %6316 }
0x10aa   :  { %v5453_v53 = vpop.f32.mrf.mxu0  ;;  %v11578_v16 = vpop.f32.mrf.mxu1 }
0x10ab   :  { %v15731_v51 = vpack.c.bf16 %v11578_v16, %v11577_v63 }
0x10ac   :  { %v5455_v36 = vpop.f32.mrf.mxu0  ;;  %v5543_v46 = vpop.f32.mrf.mxu1 }
0x10ad   :  { %v15727_v52 = vpack.c.bf16 %v5455_v36, %v5451_v27  ;;  %v15729_v26 = vpack.c.bf16 %v5543_v46, %v5540_v25  ;;  %v6315_v7 = vpop.permute.xlu1 %6314  ;;  %17785 = vst [vmem:[#allocation24_spill] sm:$0xff] %v15731_v51  ;;  %v15749_v25 = vpack.c.bf16 %v5435_v18, %v5431_v14  ;;  %v15757_v46 = vpack.c.bf16 %v5425_v5, %v5421_v23 }
0x10ae   :  { %v5931_v23 = vmul.f32 0.088388346, %v5443_v54  ;;  %v5928_v5 = vmul.f32 0.088388346, %v15717_v59  ;;  %v5932_v54 = vmul.f32 0.088388346, %v5449_v42 }
0x10af   :  { %17784 = vst [vmem:[#allocation23_spill] sm:$0xff] %v15729_v26  ;;  %11595 = vmatprep.mubr.msk.bf16.mxu1 %vm760_vm0, %v15729_v26  ;;  %11983 = vmatprep.subr.msk.bf16.mxu1 %vm760_vm0, %v15727_v52  ;;  %v5964_v62 = vsel %vm760_vm0, %v15727_v52, 0  ;;  %v5958_v14 = vsel %vm760_vm0, %v15749_v25, 0  ;;  %v6339_v59 = vsel %vm760_vm0, %v6317_v1, 0 }
0x10b0   :  { %11596 = vmatmul.mubr.msk.bf16.gmra.mxu1 %vm760_vm0, %v15731_v51 }
0x10b1   :  { %11616 = vmatpush3.bf16.xpose.msra.mxu1 %v5964_v62  ;;  %v6313_v48 = vpop.permute.xlu1 %6312  ;;  %11623 = vmatprep.mubr.msk.bf16.mxu1 %vm760_vm0, %v15733_v60  ;;  %v6319_v6 = vpop.permute.xlu0 %6318 }
0x10b2   :  { %11984 = vmatprep.subr.msk.bf16.mxu1 %vm760_vm0, %v15741_v9 }
0x10b5   :  { %v6303_v63 = vpop.permute.xlu1 %6302  ;;  %v6301_v27 = vpop.permute.xlu0 %6300 }
0x10b9   :  { %11618 = vmatpush3.bf16.xpose.msra.mxu1 %v5961_v61  ;;  %v6307_v57 = vpop.permute.xlu1 %6306  ;;  %v6305_v16 = vpop.permute.xlu0 %6304  ;;  %v5955_v61 = vsel %vm760_vm0, %v15757_v46, 0 }
0x10ba   :  { %11985 = vmatprep.subr.msk.bf16.mxu1 %vm760_vm0, %v15749_v25 }
0x10bd   :  { %v6142_v35 = vpop.permute.xlu1 %6141  ;;  %v6140_v36 = vpop.permute.xlu0 %6139 }
0x10be   :  { %11635 = vmatprep.mubr.msk.bf16.mxu0 %vm760_vm0, %v6140_v36  ;;  %v5930_v36 = vmul.f32 0.088388346, %v5439_v13  ;;  %v6336_v13 = vsel %vm760_vm0, %v6315_v7, 0 }
0x10bf   :  { %11636 = vmatmul.mubr.msk.bf16.vlgmr.msra.gmra.mxu0 %vm760_vm0, %v6142_v35  ;;  %v5929_v35 = vmul.f32 0.088388346, %v5433_v24  ;;  %v5933_v24 = vmul.f32 0.088388346, %v5453_v53  ;;  %v6333_v53 = vsel %vm760_vm0, %v6313_v48, 0 }
0x10c0   :  { %v15771_v50 = vpack.c.bf16 %v5931_v23, %v5930_v36 }
0x10c1   :  { %11620 = vmatpush3.bf16.xpose.msra.mxu1 %v5958_v14  ;;  %v6144_v18 = vpop.permute.xlu0 %6143  ;;  %v6146_v62 = vpop.permute.xlu1 %6145  ;;  %v15769_v14 = vpack.c.bf16 %v5929_v35, %v5928_v5 }
0x10c2   :  { %11986 = vmatprep.subr.msk.bf16.mxu1 %vm760_vm0, %v15757_v46  ;;  %11639 = vmatprep.mubr.msk.bf16.mxu0 %vm760_vm0, %v6144_v18  ;;  %17787 = vst [vmem:[#allocation48_spill] sm:$0xff] %v15771_v50  ;;  %v6342_v18 = vsel %vm760_vm0, %v6319_v6, 0 }
0x10c3   :  { %17786 = vst [vmem:[#allocation13_spill] sm:$0xff] %v15769_v14 }
0x10c7   :  { %11640 = vmatmul.mubr.msk.bf16.gmra.mxu0 %vm760_vm0, %v6146_v62  ;;  %v15779_v62 = vpack.c.bf16 %v5933_v24, %v5932_v54 }
0x10c9   :  { %11622 = vmatpush3.bf16.xpose.msra.mxu1 %v5955_v61  ;;  %17788 = vst [vmem:[#allocation49_spill] sm:$0xff] %v15779_v62 }
0x10ca   :  { %11987 = vmatprep.subr.msk.bf16.mxu1 %vm760_vm0, %v6319_v6 }
0x10d0   :  { %11624 = vmatmul.mubr.msk.bf16.vlgmr.msra.gmra.mxu1 %vm760_vm0, %v15769_v14 }
0x10d1   :  { %11627 = vmatprep.mubr.msk.bf16.mxu1 %vm760_vm0, %v15771_v50  ;;  %11652 = vmatpush3.bf16.xpose.msra.mxu1 %v6342_v18 }
0x10d2   :  { %11988 = vmatprep.subr.msk.bf16.mxu1 %vm760_vm0, %v6317_v1 }
0x10d8   :  { %11628 = vmatmul.mubr.msk.bf16.gmra.mxu1 %vm760_vm0, %v15779_v62 }
0x10d9   :  { %11654 = vmatpush3.bf16.xpose.msra.mxu1 %v6339_v59  ;;  %11659 = vmatprep.mubr.msk.bf16.mxu1 %vm760_vm0, %v6301_v27 }
0x10da   :  { %11989 = vmatprep.subr.msk.bf16.mxu1 %vm760_vm0, %v6315_v7 }
0x10e1   :  { %11656 = vmatpush3.bf16.xpose.msra.mxu1 %v6336_v13 }
0x10e2   :  { %11990 = vmatprep.subr.msk.bf16.mxu1 %vm760_vm0, %v6313_v48 }
0x10e9   :  { %11658 = vmatpush3.bf16.xpose.msra.mxu1 %v6333_v53 }
0x10f0   :  { %11660 = vmatmul.mubr.msk.bf16.vlgmr.msra.gmra.mxu1 %vm760_vm0, %v6303_v63  ;;  %v11585_v42 = vpop.f32.mrf.mxu1 }
0x10f1   :  { %11663 = vmatprep.mubr.msk.bf16.mxu1 %vm760_vm0, %v6305_v16 }
0x10f2   :  { %v5650_v6 = vpop.f32.mrf.mxu1 }
0x10f4   :  { %v11586_v1 = vpop.f32.mrf.mxu1 }
0x10f5   :  { %v5714_v48 = vpack.c.bf16 %v11586_v1, %v11585_v42 }
0x10f6   :  { %v5653_v27 = vpop.f32.mrf.mxu1 }
0x10f7   :  { %v5713_v63 = vpack.c.bf16 %v5653_v27, %v5650_v6 }
0x10f8   :  { %11664 = vmatmul.mubr.msk.bf16.gmra.mxu1 %vm760_vm0, %v6307_v57 }
0x1101   :  { %v11589_v61 = vpop.f32.mrf.mxu1 }
0x1103   :  { %v5666_v35 = vpop.f32.mrf.mxu1 }
0x1105   :  { %v11590_v23 = vpop.f32.mrf.mxu1 }
0x1106   :  { %v5716_v7 = vpack.c.bf16 %v11590_v23, %v11589_v61 }
0x1107   :  { %v5669_v5 = vpop.f32.mrf.mxu1 }
0x1108   :  { %v5715_v36 = vpack.c.bf16 %v5669_v5, %v5666_v35  ;;  %11683 = vmatprep.subr.bf16.mxu1 %v5716_v7 }
0x1109   :  { %11684 = vmatpush3.bf16.msra.mxu1 %v5716_v7 }
0x110a   :  { %11685 = vmatprep.subr.bf16.mxu1 %v5715_v36 }
0x110d   :  { %11686 = vmatpush3.bf16.msra.mxu1 %v5715_v36 }
0x110e   :  { %11687 = vmatprep.subr.bf16.mxu1 %v5714_v48 }
0x1111   :  { %11688 = vmatpush3.bf16.msra.mxu1 %v5714_v48 }
0x1112   :  { %11689 = vmatprep.subr.bf16.mxu1 %v5713_v63 }
0x1115   :  { %11690 = vmatpush3.bf16.msra.mxu1 %v5713_v63 }
0x1120   :  { %v15792_v57 = vpop.f32.mrf.mxu0 }
0x1122   :  { %v15796_v54 = vpop.f32.mrf.mxu0 }
0x1124   :  { %v15800_v13 = vpop.f32.mrf.mxu0 }
0x1126   :  { %v15802_v53 = vpop.f32.mrf.mxu0 }
0x1128   :  { %v15806_v1 = vpop.f32.mrf.mxu0 }
0x112a   :  { %v15810_v35 = vpop.f32.mrf.mxu0 }
0x112c   :  { %v15814_v7 = vpop.f32.mrf.mxu0 }
0x112e   :  { %v15816_v5 = vpop.f32.mrf.mxu0 }
0x1160   :  { %v11593_v16 = vpop.f32.mrf.mxu1 }
0x1162   :  { %v15794_v18 = vpop.f32.mrf.mxu1 }
0x1163   :  { %17789 = vst [vmem:[#allocation50_spill] sm:$0xff] %v15794_v18 }
0x1164   :  { %v11594_v24 = vpop.f32.mrf.mxu1 }
0x1165   :  { %v15798_v59 = vpack.c.bf16 %v11594_v24, %v11593_v16 }
0x1166   :  { %v15804_v42 = vpop.f32.mrf.mxu1 }
0x1167   :  { %17790 = vst [vmem:[#allocation51_spill] sm:$0xff] %v15798_v59  ;;  %17791 = vst [vmem:[#allocation52_spill] sm:$0xff] %v15804_v42 }
0x1170   :  { %v11597_v6 = vpop.f32.mrf.mxu1 }
0x1172   :  { %v15808_v27 = vpop.f32.mrf.mxu1 }
0x1173   :  { %17792 = vst [vmem:[#allocation53_spill] sm:$0xff] %v15808_v27 }
0x1174   :  { %v11598_v61 = vpop.f32.mrf.mxu1 }
0x1175   :  { %v15812_v23 = vpack.c.bf16 %v11598_v61, %v11597_v6 }
0x1176   :  { %v15818_v49 = vpop.f32.mrf.mxu1 }
0x1177   :  { %17793 = vst [vmem:[#allocation54_spill] sm:$0xff] %v15818_v49 }
0x117f   :  { %v11637_v36 = vpop.f32.mrf.mxu0 }
0x1181   :  { %v6225_v48 = vpop.f32.mrf.mxu0 }
0x1183   :  { %v11638_v63 = vpop.f32.mrf.mxu0 }
0x1184   :  { %v6289_v6 = vpack.c.bf16 %v11638_v63, %v11637_v36 }
0x1185   :  { %v6228_v16 = vpop.f32.mrf.mxu0 }
0x1186   :  { %v6288_v15 = vpack.c.bf16 %v6228_v16, %v6225_v48 }
0x1187   :  { %v11641_v24 = vpop.f32.mrf.mxu0 }
0x1189   :  { %v6241_v32 = vpop.f32.mrf.mxu0 }
0x118b   :  { %v11642_v34 = vpop.f32.mrf.mxu0 }
0x118c   :  { %v6291_v2 = vpack.c.bf16 %v11642_v34, %v11641_v24 }
0x118d   :  { %v6244_v3 = vpop.f32.mrf.mxu0 }
0x118e   :  { %v6290_v44 = vpack.c.bf16 %v6244_v3, %v6241_v32  ;;  %11667 = vmatprep.subr.bf16.mxu0 %v6291_v2 }
0x118f   :  { %11668 = vmatpush3.bf16.msra.mxu0 %v6291_v2 }
0x1190   :  { %11669 = vmatprep.subr.bf16.mxu0 %v6290_v44  ;;  %v15820_v61 = vpop.f32.mrf.mxu1 }
0x1192   :  { %v15822_v29 = vpop.f32.mrf.mxu1 }
0x1193   :  { %11670 = vmatpush3.bf16.msra.mxu0 %v6290_v44 }
0x1194   :  { %11671 = vmatprep.subr.bf16.mxu0 %v6289_v6  ;;  %v15824_v30 = vpop.f32.mrf.mxu1 }
0x1196   :  { %v15826_v34 = vpop.f32.mrf.mxu1 }
0x1197   :  { %11672 = vmatpush3.bf16.msra.mxu0 %v6289_v6 }
0x1198   :  { %11673 = vmatprep.subr.bf16.mxu0 %v6288_v15  ;;  %v15828_v3 = vpop.f32.mrf.mxu1 }
0x119a   :  { %v15830_v2 = vpop.f32.mrf.mxu1 }
0x119b   :  { %11674 = vmatpush3.bf16.msra.mxu0 %v6288_v15 }
0x119c   :  { %v15832_v32 = vpop.f32.mrf.mxu1 }
0x119e   :  { %v15834_v36 = vpop.f32.mrf.mxu1 }
0x11b0   :  { %v11661_v44 = vpop.f32.mrf.mxu1 }
0x11b1   :  { %v6411_v48 = vsel %vm13627_vm3, %v11661_v44, -1e+30 }
0x11b2   :  { %v6423_v63 = vsel %vm1003_vm2, %v6411_v48, -inf  ;;  %v6378_v16 = vpop.f32.mrf.mxu1 }
0x11b3   :  { %v6409_v15 = vsel %vm13620_vm1, %v6378_v16, -1e+30  ;;  %6424 = vmax.xlane.f32.xlu0 %v6423_v63 }
0x11b4   :  { %v11662_v24 = vpop.f32.mrf.mxu1  ;;  %v6417_v6 = vsel %vm1003_vm2, %v6409_v15, -inf }
0x11b5   :  { %v6412_v21 = vsel %vm13641_vm5, %v11662_v24, -1e+30 }
0x11b6   :  { %v6381_v47 = vpop.f32.mrf.mxu1  ;;  %v6426_v18 = vsel %vm1003_vm2, %v6412_v21, -inf }
0x11b7   :  { %v6410_v37 = vsel %vm13635_vm4, %v6381_v47, -1e+30  ;;  %6418 = vmax.xlane.f32.xlu0 %v6417_v6 }
0x11b8   :  { %v11665_v42 = vpop.f32.mrf.mxu1  ;;  %v6420_v44 = vsel %vm1003_vm2, %v6410_v37, -inf }
0x11b9   :  { %6421 = vmax.xlane.f32.xlu1 %v6420_v44  ;;  %v6415_v63 = vsel %vm13668_vm8, %v11665_v42, -1e+30 }
0x11ba   :  { %v6394_v16 = vpop.f32.mrf.mxu1  ;;  %v6435_v59 = vsel %vm1003_vm2, %v6415_v63, -inf }
0x11bb   :  { %6427 = vmax.xlane.f32.xlu0 %v6426_v18  ;;  %v6413_v24 = vsel %vm13652_vm6, %v6394_v16, -1e+30 }
0x11bc   :  { %v6429_v47 = vsel %vm1003_vm2, %v6413_v24, -inf  ;;  %v11666_v18 = vpop.f32.mrf.mxu1 }
0x11bd   :  { %v6416_v42 = vsel %vm13672_vm9, %v11666_v18, -1e+30 }
0x11be   :  { %v6397_v6 = vpop.f32.mrf.mxu1  ;;  %v6438_v44 = vsel %vm1003_vm2, %v6416_v42, -inf }
0x11bf   :  { %6436 = vmax.xlane.f32.xlu0 %v6435_v59  ;;  %v6414_v59 = vsel %vm13660_vm7, %v6397_v6, -1e+30 }
0x11c0   :  { %v6432_v16 = vsel %vm1003_vm2, %v6414_v59, -inf }
0x11c3   :  { %6430 = vmax.xlane.f32.xlu0 %v6429_v47 }
0x11ca   :  { %6149 = vrot.lane.b32.xlu1 %v15721_v19, %s13018_s25 }
0x11ce   :  { %6151 = vrot.lane.b32.xlu1 %v15729_v26, %s13018_s25 }
0x11d9   :  { %6147 = vrot.lane.b32.xlu0 %v15719_v38, %s13018_s25 }
0x11f2   :  { %6439 = vmax.xlane.f32.xlu1 %v6438_v44 }
0x11f6   :  { %6433 = vmax.xlane.f32.xlu1 %v6432_v16 }
0x1207   :  { %6153 = vrot.lane.b32.xlu1 %v15731_v51, %s13018_s25 }
0x123c   :  { %v6425_v47 = vpop.xlane.xlu0 %6424 }
0x123d   :  { %v6443_v49 = vsub.f32 %v6411_v48, %v6425_v47 }
0x123f   :  { %v6453_v27 = vmul.f32 1.442695, %v6443_v49 }
0x1240   :  { %v6419_v19 = vpop.xlane.xlu0 %6418 }
0x1241   :  { %12622 = vpow2.f32 %v6453_v27  ;;  %v6441_v26 = vsub.f32 %v6409_v15, %v6419_v19 }
0x1242   :  { %v6422_v18 = vpop.xlane.xlu1 %6421 }
0x1243   :  { %v6449_v11 = vmul.f32 1.442695, %v6441_v26  ;;  %v6442_v38 = vsub.f32 %v6410_v37, %v6422_v18 }
0x1244   :  { %v6428_v17 = vpop.xlane.xlu0 %6427 }
0x1245   :  { %12624 = vpow2.f32 %v6449_v11  ;;  %v6444_v20 = vsub.f32 %v6412_v21, %v6428_v17  ;;  %v6451_v6 = vmul.f32 1.442695, %v6442_v38 }
0x1246   :  { %v6150_v51 = vpop.permute.xlu1 %6149 }
0x1247   :  { %v6455_v44 = vmul.f32 1.442695, %v6444_v20 }
0x1248   :  { %v6437_v55 = vpop.xlane.xlu0 %6436 }
0x1249   :  { %12626 = vpow2.f32 %v6455_v44  ;;  %v6447_v16 = vsub.f32 %v6415_v63, %v6437_v55 }
0x124a   :  { %12628 = vpow2.f32 %v6451_v6  ;;  %v6152_v55 = vpop.permute.xlu1 %6151 }
0x124b   :  { %v6461_v28 = vmul.f32 1.442695, %v6447_v16 }
0x124c   :  { %v6431_v33 = vpop.xlane.xlu0 %6430 }
0x124d   :  { %12630 = vpow2.f32 %v6461_v28  ;;  %v6445_v49 = vsub.f32 %v6413_v24, %v6431_v33 }
0x124e   :  { %v15868_v48 = vpop.eup %12622 }
0x124f   :  { %v6457_v19 = vmul.f32 1.442695, %v6445_v49  ;;  %v6471_v37 = vsel %vm1003_vm2, %v15868_v48, 0.0 }
0x1250   :  { %6472 = vadd.xlane.f32.xlu0 %v6471_v37  ;;  %v6148_v26 = vpop.permute.xlu0 %6147 }
0x1251   :  { %12632 = vpow2.f32 %v6457_v19  ;;  %11643 = vmatprep.mubr.msk.bf16.mxu0 %vm760_vm0, %v6148_v26 }
0x1252   :  { %v15873_v21 = vpop.eup %12624  ;;  %11644 = vmatmul.mubr.msk.bf16.gmra.mxu0 %vm760_vm0, %v6150_v51 }
0x1253   :  { %11647 = vmatprep.mubr.msk.bf16.mxu0 %vm760_vm0, %v6152_v55  ;;  %v6465_v17 = vsel %vm1003_vm2, %v15873_v21, 0.0  ;;  %v15930_v55 = vsel %vm13627_vm3, %v15792_v57, -1e+30  ;;  %v15949_v57 = vsel %vm13660_vm7, %v15816_v5, -1e+30 }
0x1254   :  { %6466 = vadd.xlane.f32.xlu0 %v6465_v17  ;;  %v15935_v17 = vsel %vm13635_vm4, %v15802_v53, -1e+30 }
0x1256   :  { %v15879_v20 = vpop.eup %12626 }
0x1257   :  { %v6474_v11 = vsel %vm1003_vm2, %v15879_v20, 0.0  ;;  %v15883_v28 = vpop.eup %12628 }
0x1258   :  { %6475 = vadd.xlane.f32.xlu1 %v6474_v11  ;;  %v6468_v38 = vsel %vm1003_vm2, %v15883_v28, 0.0  ;;  %v5840_v11 = vsel %vm1003_vm2, %v15930_v55, -inf }
0x125a   :  { %v15885_v33 = vpop.eup %12630 }
0x125b   :  { %v6483_v51 = vsel %vm1003_vm2, %v15885_v33, 0.0 }
0x125c   :  { %6469 = vadd.xlane.f32.xlu1 %v6468_v38  ;;  %6484 = vadd.xlane.f32.xlu0 %v6483_v51  ;;  %v5837_v38 = vsel %vm1003_vm2, %v15935_v17, -inf  ;;  %v15956_v51 = vsel %vm13652_vm6, %v15810_v35, -1e+30 }
0x125d   :  { %v5846_v5 = vsel %vm1003_vm2, %v15956_v51, -inf }
0x125e   :  { %v15891_v27 = vpop.eup %12632 }
0x125f   :  { %v6477_v15 = vsel %vm1003_vm2, %v15891_v27, 0.0 }
0x1260   :  { %6478 = vadd.xlane.f32.xlu0 %v6477_v15  ;;  %v15963_v15 = vsel %vm13672_vm9, %v15814_v7, -1e+30 }
0x1261   :  { %v5855_v35 = vsel %vm1003_vm2, %v15963_v15, -inf }
0x126d   :  { %6683 = vrot.lane.b32.xlu1 %v15741_v9, %s13018_s25 }
0x1271   :  { %6681 = vrot.lane.b32.xlu1 %v15749_v25, %s13018_s25 }
0x127b   :  { %v6440_v63 = vpop.xlane.xlu1 %6439 }
0x127c   :  { %v6448_v24 = vsub.f32 %v6416_v42, %v6440_v63  ;;  %v15970_v63 = vsel %vm13668_vm8, %v15806_v1, -1e+30 }
0x127e   :  { %v6463_v47 = vmul.f32 1.442695, %v6448_v24  ;;  %v5852_v24 = vsel %vm1003_vm2, %v15970_v63, -inf }
0x127f   :  { %v6434_v18 = vpop.xlane.xlu1 %6433 }
0x1280   :  { %12634 = vpow2.f32 %v6463_v47  ;;  %v6446_v6 = vsub.f32 %v6414_v59, %v6434_v18  ;;  %v15923_v59 = vsel %vm13620_vm1, %v15796_v54, -1e+30  ;;  %v15942_v54 = vsel %vm13641_vm5, %v15800_v13, -1e+30 }
0x1281   :  { %v5834_v26 = vsel %vm1003_vm2, %v15923_v59, -inf  ;;  %v5843_v53 = vsel %vm1003_vm2, %v15942_v54, -inf  ;;  %v5849_v13 = vsel %vm1003_vm2, %v15949_v57, -inf }
0x1282   :  { %v6459_v44 = vmul.f32 1.442695, %v6446_v6 }
0x1283   :  { %v6154_v16 = vpop.permute.xlu1 %6153 }
0x1284   :  { %12636 = vpow2.f32 %v6459_v44  ;;  %11648 = vmatmul.mubr.msk.bf16.gmra.mxu0 %vm760_vm0, %v6154_v16 }
0x128d   :  { %v15900_v49 = vpop.eup %12634 }
0x128e   :  { %v6486_v19 = vsel %vm1003_vm2, %v15900_v49, 0.0 }
0x128f   :  { %6487 = vadd.xlane.f32.xlu0 %v6486_v19 }
0x1291   :  { %v15904_v37 = vpop.eup %12636 }
0x1292   :  { %v6480_v42 = vsel %vm1003_vm2, %v15904_v37, 0.0 }
0x1295   :  { %6481 = vadd.xlane.f32.xlu1 %v6480_v42 }
0x12a5   :  { %6685 = vrot.lane.b32.xlu0 %v15727_v52, %s13018_s25 }
0x12a6   :  { %6679 = vrot.lane.b32.xlu1 %v15757_v46, %s13018_s25 }
0x12a9   :  { %6667 = vrot.lane.b32.xlu0 %v15733_v60, %s13018_s25 }
0x12aa   :  { %6669 = vrot.lane.b32.xlu1 %v15769_v14, %s13018_s25 }
0x12ad   :  { %6671 = vrot.lane.b32.xlu0 %v15771_v50, %s13018_s25 }
0x12ae   :  { %6673 = vrot.lane.b32.xlu1 %v15779_v62, %s13018_s25 }
0x12cc   :  { %5835 = vmax.xlane.f32.xlu0 %v5834_v26 }
0x12d0   :  { %5841 = vmax.xlane.f32.xlu0 %v5840_v11 }
0x12d2   :  { %5838 = vmax.xlane.f32.xlu1 %v5837_v38 }
0x12d4   :  { %5844 = vmax.xlane.f32.xlu0 %v5843_v53 }
0x12d6   :  { %5850 = vmax.xlane.f32.xlu1 %v5849_v13 }
0x12d8   :  { %5847 = vmax.xlane.f32.xlu0 %v5846_v5 }
0x12d9   :  { %v6473_v47 = vpop.xlane.xlu0 %6472 }
0x12da   :  { %5856 = vmax.xlane.f32.xlu1 %v5855_v35 }
0x12dc   :  { %5853 = vmax.xlane.f32.xlu0 %v5852_v24 }
0x12dd   :  { %v6467_v7 = vpop.xlane.xlu0 %6466 }
0x12e1   :  { %v6476_v18 = vpop.xlane.xlu1 %6475 }
0x12e2   :  { %12638 = vrcp.f32 %v6476_v18 }
0x12e3   :  { %12640 = vrcp.f32 %v6467_v7 }
0x12e4   :  { %12642 = vrcp.f32 %v6473_v47 }
0x12e5   :  { %v6470_v6 = vpop.xlane.xlu1 %6469  ;;  %v6485_v5 = vpop.xlane.xlu0 %6484 }
0x12e6   :  { %12644 = vrcp.f32 %v6470_v6 }
0x12e9   :  { %v6684_v24 = vpop.permute.xlu1 %6683  ;;  %v6479_v47 = vpop.xlane.xlu0 %6478 }
0x12ed   :  { %v6682_v6 = vpop.permute.xlu1 %6681 }
0x12ef   :  { %v12639_v44 = vpop.eup %12638 }
0x12f0   :  { %v12641_v1 = vpop.eup %12640  ;;  %v6500_v42 = vmul.f32 %v12639_v44, %v15879_v20 }
0x12f1   :  { %v12643_v16 = vpop.eup %12642  ;;  %v6497_v26 = vmul.f32 %v12641_v1, %v15873_v21  ;;  %v6706_v1 = vsel %vm760_vm0, %v6684_v24, 0 }
0x12f2   :  { %v6499_v38 = vmul.f32 %v12643_v16, %v15868_v48 }
0x12f3   :  { %v12645_v19 = vpop.eup %12644 }
0x12f4   :  { %v6498_v11 = vmul.f32 %v12645_v19, %v15883_v28  ;;  %v6506_v13 = vpack.c.bf16 %v6500_v42, %v6499_v38  ;;  %v6703_v38 = vsel %vm760_vm0, %v6682_v6, 0 }
0x12f6   :  { %v6505_v53 = vpack.c.bf16 %v6498_v11, %v6497_v26 }
0x12f8   :  { %11675 = vmatprep.mubr.msk.bf16.mxu0 %vm1003_vm2, %v6505_v53 }
0x12f9   :  { %11676 = vmatmul.mubr.msk.bf16.vlgmr.msra.gmra.mxu0 %vm1003_vm2, %v6506_v13 }
0x1312   :  { %v11645_v35 = vpop.f32.mrf.mxu0 }
0x1314   :  { %v15982_v7 = vpop.f32.mrf.mxu0 }
0x1316   :  { %v11646_v18 = vpop.f32.mrf.mxu0 }
0x1317   :  { %v15984_v20 = vpack.c.bf16 %v11646_v18, %v11645_v35 }
0x1318   :  { %v6488_v21 = vpop.xlane.xlu0 %6487 }
0x1319   :  { %12646 = vrcp.f32 %v6488_v21 }
0x131a   :  { %12648 = vrcp.f32 %v6479_v47 }
0x131b   :  { %12650 = vrcp.f32 %v6485_v5 }
0x131c   :  { %v6686_v28 = vpop.permute.xlu0 %6685 }
0x131d   :  { %11991 = vmatprep.subr.msk.bf16.mxu0 %vm760_vm0, %v6686_v28  ;;  %v6709_v48 = vsel %vm760_vm0, %v6686_v28, 0 }
0x131e   :  { %v6482_v44 = vpop.xlane.xlu1 %6481  ;;  %11700 = vmatpush3.bf16.xpose.msra.mxu0 %v6709_v48 }
0x131f   :  { %12652 = vrcp.f32 %v6482_v44  ;;  %11992 = vmatprep.subr.msk.bf16.mxu0 %vm760_vm0, %v6684_v24 }
0x1320   :  { %v6668_v18 = vpop.permute.xlu0 %6667 }
0x1322   :  { %v6680_v5 = vpop.permute.xlu1 %6679 }
0x1326   :  { %11702 = vmatpush3.bf16.xpose.msra.mxu0 %v6706_v1  ;;  %v12647_v16 = vpop.eup %12646 }
0x1327   :  { %11993 = vmatprep.subr.msk.bf16.mxu0 %vm760_vm0, %v6682_v6  ;;  %v12649_v19 = vpop.eup %12648  ;;  %v6504_v11 = vmul.f32 %v12647_v16, %v15900_v49  ;;  %v6700_v49 = vsel %vm760_vm0, %v6680_v5, 0 }
0x1328   :  { %v12651_v42 = vpop.eup %12650  ;;  %v6501_v53 = vmul.f32 %v12649_v19, %v15891_v27  ;;  %v6670_v27 = vpop.permute.xlu1 %6669 }
0x1329   :  { %v6503_v35 = vmul.f32 %v12651_v42, %v15885_v33  ;;  %v16003_v33 = vpop.f32.mrf.mxu0 }
0x132b   :  { %v6508_v47 = vpack.c.bf16 %v6504_v11, %v6503_v35 }
0x132c   :  { %v12653_v26 = vpop.eup %12652  ;;  %v6674_v21 = vpop.permute.xlu1 %6673 }
0x132d   :  { %v6502_v13 = vmul.f32 %v12653_v26, %v15904_v37  ;;  %v6672_v37 = vpop.permute.xlu0 %6671 }
0x132e   :  { %11704 = vmatpush3.bf16.xpose.msra.mxu0 %v6703_v38 }
0x132f   :  { %11994 = vmatprep.subr.msk.bf16.mxu0 %vm760_vm0, %v6680_v5  ;;  %v6507_v24 = vpack.c.bf16 %v6502_v13, %v6501_v53 }
0x1331   :  { %11679 = vmatprep.mubr.msk.bf16.mxu0 %vm1003_vm2, %v6507_v24 }
0x1332   :  { %11680 = vmatmul.mubr.msk.bf16.gmra.mxu0 %vm1003_vm2, %v6508_v47 }
0x1333   :  { %11707 = vmatprep.mubr.msk.bf16.mxu0 %vm760_vm0, %v6668_v18 }
0x1336   :  { %11706 = vmatpush3.bf16.xpose.msra.mxu0 %v6700_v49 }
0x133d   :  { %11708 = vmatmul.mubr.msk.bf16.vlgmr.msra.gmra.mxu0 %vm760_vm0, %v6670_v27 }
0x133e   :  { %11711 = vmatprep.mubr.msk.bf16.mxu0 %vm760_vm0, %v6672_v37 }
0x1344   :  { %v11649_v6 = vpop.f32.mrf.mxu0 }
0x1345   :  { %11712 = vmatmul.mubr.msk.bf16.gmra.mxu0 %vm760_vm0, %v6674_v21 }
0x1346   :  { %v16006_v28 = vpop.f32.mrf.mxu0 }
0x1348   :  { %v11650_v48 = vpop.f32.mrf.mxu0 }
0x1349   :  { %v16008_v44 = vpack.c.bf16 %v11650_v48, %v11649_v6 }
0x134a   :  { %v16011_v1 = vpop.f32.mrf.mxu0 }
0x134b   :  { %11715 = vmatprep.subr.bf16.mxu1 %v16008_v44 }
0x1355   :  { %v5836_v13 = vpop.xlane.xlu0 %5835 }
0x1359   :  { %v5842_v47 = vpop.xlane.xlu0 %5841 }
0x13b9   :  { %v16013_v16 = vpop.f32.mrf.mxu0 }
0x13ba   :  { %17794 = vst [vmem:[#allocation55_spill] sm:$0xff] %v16013_v16 }
0x13bb   :  { %v16015_v19 = vpop.f32.mrf.mxu0 }
0x13bc   :  { %17795 = vst [vmem:[#allocation56_spill] sm:$0xff] %v16015_v19  ;;  %v5839_v19 = vpop.xlane.xlu1 %5838 }
0x13bd   :  { %v16017_v42 = vpop.f32.mrf.mxu0  ;;  %v5859_v62 = vsub.f32 %v15935_v17, %v5839_v19 }
0x13be   :  { %17796 = vst [vmem:[#allocation57_spill] sm:$0xff] %v16017_v42 }
0x13bf   :  { %v16019_v26 = vpop.f32.mrf.mxu0 }
0x13c0   :  { %17797 = vst [vmem:[#allocation58_spill] sm:$0xff] %v16019_v26  ;;  %v5845_v26 = vpop.xlane.xlu0 %5844 }
0x13f2   :  { %v16021_v11 = vpop.f32.mrf.mxu0 }
0x13f3   :  { %17798 = vst [vmem:[#allocation59_spill] sm:$0xff] %v16021_v11 }
0x13f4   :  { %v16023_v38 = vpop.f32.mrf.mxu0 }
0x13f5   :  { %17799 = vst [vmem:[#allocation60_spill] sm:$0xff] %v16023_v38 }
0x13f6   :  { %v16025_v53 = vpop.f32.mrf.mxu0 }
0x13f7   :  { %17800 = vst [vmem:[#allocation61_spill] sm:$0xff] %v16025_v53 }
0x13f8   :  { %v16027_v5 = vpop.f32.mrf.mxu0 }
0x13f9   :  { %17801 = vst [vmem:[#allocation62_spill] sm:$0xff] %v16027_v5 }
0x13fd   :  { %v11709_v35 = vpop.f32.mrf.mxu0 }
0x13fe   :  { %v16037_v37 = vsel %vm13627_vm3, %v11709_v35, -1e+30 }
0x13ff   :  { %v6745_v24 = vpop.f32.mrf.mxu0  ;;  %v6790_v48 = vsel %vm1003_vm2, %v16037_v37, -inf }
0x1400   :  { %v16031_v18 = vsel %vm13620_vm1, %v6745_v24, -1e+30 }
0x1401   :  { %v6784_v49 = vsel %vm1003_vm2, %v16031_v18, -inf  ;;  %v11710_v27 = vpop.f32.mrf.mxu0 }
0x1402   :  { %6785 = vmax.xlane.f32.xlu0 %v6784_v49  ;;  %v16049_v53 = vsel %vm13641_vm5, %v11710_v27, -1e+30 }
0x1403   :  { %v6748_v21 = vpop.f32.mrf.mxu0  ;;  %v6793_v38 = vsel %vm1003_vm2, %v16049_v53, -inf }
0x1404   :  { %v16041_v6 = vsel %vm13635_vm4, %v6748_v21, -1e+30  ;;  %v5858_v21 = vsub.f32 %v15923_v59, %v5836_v13  ;;  %v5860_v59 = vsub.f32 %v15930_v55, %v5842_v47  ;;  %v5848_v13 = vpop.xlane.xlu0 %5847  ;;  %v16086_v55 = vsel %vm13627_vm3, %v15820_v61, -1e+30  ;;  %v5851_v47 = vpop.xlane.xlu1 %5850 }
0x1405   :  { %v11713_v5 = vpop.f32.mrf.mxu0  ;;  %v6787_v24 = vsel %vm1003_vm2, %v16041_v6, -inf }
0x1406   :  { %6791 = vmax.xlane.f32.xlu0 %v6790_v48  ;;  %6788 = vmax.xlane.f32.xlu1 %v6787_v24  ;;  %v16062_v27 = vsel %vm13668_vm8, %v11713_v5, -1e+30  ;;  %v16067_v24 = vsel %vm13620_vm1, %v15822_v29, -1e+30  ;;  %v5866_v16 = vmul.f32 1.442695, %v5858_v21  ;;  %v5861_v5 = vsub.f32 %v15942_v54, %v5845_v26 }
0x1407   :  { %v6761_v35 = vpop.f32.mrf.mxu0  ;;  %v6039_v17 = vsel %vm1003_vm2, %v16067_v24, -inf  ;;  %v5870_v19 = vmul.f32 1.442695, %v5860_v59  ;;  %v5868_v21 = vmul.f32 1.442695, %v5859_v62  ;;  %v6045_v59 = vsel %vm1003_vm2, %v16086_v55, -inf }
0x1408   :  { %v16053_v49 = vsel %vm13652_vm6, %v6761_v35, -1e+30  ;;  %12654 = vpow2.f32 %v5866_v16  ;;  %v5854_v61 = vpop.xlane.xlu0 %5853  ;;  %v16104_v62 = vsel %vm13641_vm5, %v15824_v30, -1e+30  ;;  %v5872_v54 = vmul.f32 1.442695, %v5861_v5 }
0x1409   :  { %v6796_v11 = vsel %vm1003_vm2, %v16053_v49, -inf  ;;  %v11714_v42 = vpop.f32.mrf.mxu0  ;;  %12656 = vpow2.f32 %v5870_v19  ;;  %v6048_v30 = vsel %vm1003_vm2, %v16104_v62, -inf  ;;  %v16128_v5 = vsel %vm13660_vm7, %v15834_v36, -1e+30 }
0x140a   :  { %6794 = vmax.xlane.f32.xlu1 %v6793_v38  ;;  %6797 = vmax.xlane.f32.xlu0 %v6796_v11  ;;  %v6802_v38 = vsel %vm1003_vm2, %v16062_v27, -inf  ;;  %v16081_v29 = vsel %vm13672_vm9, %v11714_v42, -1e+30  ;;  %12658 = vpow2.f32 %v5868_v21 }
0x140b   :  { %v6764_v48 = vpop.f32.mrf.mxu0  ;;  %v6805_v42 = vsel %vm1003_vm2, %v16081_v29, -inf  ;;  %12660 = vpow2.f32 %v5872_v54 }
0x140c   :  { %v16072_v35 = vsel %vm13660_vm7, %v6764_v48, -1e+30  ;;  %v5862_v48 = vsub.f32 %v15956_v51, %v5848_v13  ;;  %v5863_v51 = vsub.f32 %v15949_v57, %v5851_v47  ;;  %v16113_v13 = vsel %vm13652_vm6, %v15830_v2, -1e+30 }
0x140d   :  { %v6799_v11 = vsel %vm1003_vm2, %v16072_v35, -inf  ;;  %v16123_v2 = vsel %vm13668_vm8, %v15828_v3, -1e+30  ;;  %v16139_v3 = vsel %vm13672_vm9, %v15832_v32, -1e+30 }
0x140e   :  { %6803 = vmax.xlane.f32.xlu0 %v6802_v38  ;;  %6800 = vmax.xlane.f32.xlu1 %v6799_v11  ;;  %v16097_v38 = vsel %vm13635_vm4, %v15826_v34, -1e+30  ;;  %v5874_v16 = vmul.f32 1.442695, %v5862_v48  ;;  %v5864_v34 = vsub.f32 %v15970_v63, %v5854_v61  ;;  %v5857_v11 = vpop.xlane.xlu1 %5856  ;;  %v5876_v57 = vmul.f32 1.442695, %v5863_v51 }
0x140f   :  { %v6042_v26 = vsel %vm1003_vm2, %v16097_v38, -inf  ;;  %v5865_v63 = vsub.f32 %v15963_v15, %v5857_v11  ;;  %v6057_v47 = vsel %vm1003_vm2, %v16123_v2, -inf  ;;  %v6054_v15 = vsel %vm1003_vm2, %v16128_v5, -inf }
0x1410   :  { %12662 = vpow2.f32 %v5874_v16  ;;  %v5878_v19 = vmul.f32 1.442695, %v5864_v34 }
0x1411   :  { %12664 = vpow2.f32 %v5876_v57  ;;  %v5880_v21 = vmul.f32 1.442695, %v5865_v63 }
0x1412   :  { %6040 = vmax.xlane.f32.xlu0 %v6039_v17  ;;  %6806 = vmax.xlane.f32.xlu1 %v6805_v42  ;;  %v6051_v17 = vsel %vm1003_vm2, %v16113_v13, -inf  ;;  %12666 = vpow2.f32 %v5878_v19  ;;  %v6060_v42 = vsel %vm1003_vm2, %v16139_v3, -inf }
0x1413   :  { %12668 = vpow2.f32 %v5880_v21 }
0x1415   :  { %v16134_v48 = vpop.eup %12654 }
0x1416   :  { %6046 = vmax.xlane.f32.xlu0 %v6045_v59  ;;  %6043 = vmax.xlane.f32.xlu1 %v6042_v26  ;;  %v16141_v36 = vpop.eup %12656  ;;  %v5882_v61 = vsel %vm1003_vm2, %v16134_v48, 0.0 }
0x1417   :  { %v16147_v59 = vpop.eup %12658  ;;  %v5888_v51 = vsel %vm1003_vm2, %v16141_v36, 0.0 }
0x1418   :  { %v16149_v54 = vpop.eup %12660  ;;  %v5885_v32 = vsel %vm1003_vm2, %v16147_v59, 0.0 }
0x1419   :  { %v5891_v26 = vsel %vm1003_vm2, %v16149_v54, 0.0 }
0x141a   :  { %6052 = vmax.xlane.f32.xlu0 %v6051_v17  ;;  %6049 = vmax.xlane.f32.xlu1 %v6048_v30 }
0x141d   :  { %v16155_v16 = vpop.eup %12662 }
0x141e   :  { %6058 = vmax.xlane.f32.xlu0 %v6057_v47  ;;  %6055 = vmax.xlane.f32.xlu1 %v6054_v15  ;;  %v16157_v34 = vpop.eup %12664  ;;  %v5894_v11 = vsel %vm1003_vm2, %v16155_v16, 0.0 }
0x141f   :  { %v16163_v30 = vpop.eup %12666  ;;  %v5897_v57 = vsel %vm1003_vm2, %v16157_v34, 0.0 }
0x1420   :  { %v5900_v17 = vsel %vm1003_vm2, %v16163_v30, 0.0  ;;  %v16169_v63 = vpop.eup %12668 }
0x1421   :  { %v5903_v19 = vsel %vm1003_vm2, %v16169_v63, 0.0 }
0x1422   :  { %6061 = vmax.xlane.f32.xlu1 %v6060_v42  ;;  %5883 = vadd.xlane.f32.xlu0 %v5882_v61 }
0x1426   :  { %5886 = vadd.xlane.f32.xlu1 %v5885_v32  ;;  %5889 = vadd.xlane.f32.xlu0 %v5888_v51 }
0x142a   :  { %5892 = vadd.xlane.f32.xlu1 %v5891_v26  ;;  %5895 = vadd.xlane.f32.xlu0 %v5894_v11 }
0x142e   :  { %5898 = vadd.xlane.f32.xlu1 %v5897_v57  ;;  %5901 = vadd.xlane.f32.xlu0 %v5900_v17 }
0x1432   :  { %5904 = vadd.xlane.f32.xlu1 %v5903_v19 }
0x148b   :  { %v6786_v47 = vpop.xlane.xlu0 %6785 }
0x148c   :  { %v6808_v50 = vsub.f32 %v16031_v18, %v6786_v47 }
0x148f   :  { %v6789_v21 = vpop.xlane.xlu1 %6788  ;;  %v6792_v15 = vpop.xlane.xlu0 %6791 }
0x1490   :  { %v6810_v57 = vsub.f32 %v16037_v37, %v6792_v15  ;;  %v6809_v56 = vsub.f32 %v16041_v6, %v6789_v21 }
0x1492   :  { %v6818_v37 = vmul.f32 1.442695, %v6809_v56 }
0x1493   :  { %v6795_v42 = vpop.xlane.xlu1 %6794  ;;  %v6798_v61 = vpop.xlane.xlu0 %6797 }
0x1494   :  { %v6811_v39 = vsub.f32 %v16049_v53, %v6795_v42 }
0x1496   :  { %v6822_v12 = vmul.f32 1.442695, %v6811_v39 }
0x1497   :  { %v6801_v32 = vpop.xlane.xlu1 %6800  ;;  %v6804_v51 = vpop.xlane.xlu0 %6803 }
0x1498   :  { %v6813_v39 = vsub.f32 %v16072_v35, %v6801_v32 }
0x149b   :  { %v6807_v26 = vpop.xlane.xlu1 %6806  ;;  %v6041_v11 = vpop.xlane.xlu0 %6040 }
0x149c   :  { %v6063_v8 = vsub.f32 %v16067_v24, %v6041_v11  ;;  %v6820_v24 = vmul.f32 1.442695, %v6810_v57 }
0x149e   :  { %v6071_v4 = vmul.f32 1.442695, %v6063_v8  ;;  %v6814_v8 = vsub.f32 %v16062_v27, %v6804_v51  ;;  %v6826_v27 = vmul.f32 1.442695, %v6813_v39 }
0x149f   :  { %v6044_v17 = vpop.xlane.xlu1 %6043  ;;  %v6047_v0 = vpop.xlane.xlu0 %6046 }
0x14a0   :  { %v6064_v19 = vsub.f32 %v16097_v38, %v6044_v17  ;;  %v6065_v40 = vsub.f32 %v16086_v55, %v6047_v0  ;;  %12670 = vpow2.f32 %v6071_v4  ;;  %v6815_v38 = vsub.f32 %v16081_v29, %v6807_v26 }
0x14a1   :  { %v6816_v0 = vmul.f32 1.442695, %v6808_v50  ;;  %v6812_v55 = vsub.f32 %v16053_v49, %v6798_v61 }
0x14a2   :  { %v6073_v31 = vmul.f32 1.442695, %v6064_v19  ;;  %v6075_v14 = vmul.f32 1.442695, %v6065_v40  ;;  %v6828_v40 = vmul.f32 1.442695, %v6814_v8 }
0x14a3   :  { %v6050_v11 = vpop.xlane.xlu1 %6049  ;;  %v6053_v53 = vpop.xlane.xlu0 %6052  ;;  %v6830_v18 = vmul.f32 1.442695, %v6815_v38  ;;  %v6824_v50 = vmul.f32 1.442695, %v6812_v55 }
0x14a4   :  { %12672 = vpow2.f32 %v6073_v31 }
0x14a5   :  { %12674 = vpow2.f32 %v6075_v14  ;;  %v6067_v14 = vsub.f32 %v16113_v13, %v6053_v53 }
0x14a6   :  { %12676 = vpow2.f32 %v6822_v12  ;;  %v6066_v12 = vsub.f32 %v16104_v62, %v6050_v11 }
0x14a7   :  { %12678 = vpow2.f32 %v6820_v24  ;;  %v6056_v4 = vpop.xlane.xlu1 %6055  ;;  %v6059_v6 = vpop.xlane.xlu0 %6058  ;;  %v6079_v32 = vmul.f32 1.442695, %v6067_v14 }
0x14a8   :  { %12680 = vpow2.f32 %v6818_v37  ;;  %v6077_v15 = vmul.f32 1.442695, %v6066_v12  ;;  %v6068_v42 = vsub.f32 %v16128_v5, %v6056_v4  ;;  %v6069_v51 = vsub.f32 %v16123_v2, %v6059_v6 }
0x14a9   :  { %12682 = vpow2.f32 %v6816_v0 }
0x14aa   :  { %12684 = vpow2.f32 %v6828_v40  ;;  %v6081_v19 = vmul.f32 1.442695, %v6068_v42  ;;  %v6083_v2 = vmul.f32 1.442695, %v6069_v51 }
0x14ab   :  { %v6062_v31 = vpop.xlane.xlu1 %6061  ;;  %v5884_v47 = vpop.xlane.xlu0 %5883  ;;  %12686 = vpow2.f32 %v6830_v18 }
0x14ac   :  { %12688 = vrcp.f32 %v5884_v47  ;;  %v6070_v24 = vsub.f32 %v16139_v3, %v6062_v31 }
0x14ad   :  { %v16185_v56 = vpop.eup %12670  ;;  %12690 = vpow2.f32 %v6826_v27 }
0x14ae   :  { %v6087_v29 = vsel %vm1003_vm2, %v16185_v56, 0.0  ;;  %v6085_v4 = vmul.f32 1.442695, %v6070_v24 }
0x14af   :  { %v5887_v35 = vpop.xlane.xlu1 %5886  ;;  %v5890_v21 = vpop.xlane.xlu0 %5889  ;;  %6088 = vadd.xlane.f32.xlu0 %v6087_v29 }
0x14b0   :  { %12692 = vrcp.f32 %v5887_v35 }
0x14b1   :  { %v16190_v49 = vpop.eup %12672  ;;  %12694 = vrcp.f32 %v5890_v21 }
0x14b2   :  { %v16193_v62 = vpop.eup %12674  ;;  %v6090_v13 = vsel %vm1003_vm2, %v16190_v49, 0.0  ;;  %12696 = vpow2.f32 %v6824_v50 }
0x14b3   :  { %v16197_v61 = vpop.eup %12676  ;;  %6091 = vadd.xlane.f32.xlu1 %v6090_v13  ;;  %v5893_v26 = vpop.xlane.xlu1 %5892  ;;  %v6093_v57 = vsel %vm1003_vm2, %v16193_v62, 0.0 }
0x14b4   :  { %v5896_v17 = vpop.xlane.xlu0 %5895  ;;  %v16202_v5 = vpop.eup %12678  ;;  %12698 = vrcp.f32 %v5893_v26  ;;  %6094 = vadd.xlane.f32.xlu0 %v6093_v57  ;;  %v6841_v11 = vsel %vm1003_vm2, %v16197_v61, 0.0 }
0x14b5   :  { %12700 = vpow2.f32 %v6077_v15  ;;  %v16207_v53 = vpop.eup %12680  ;;  %v6838_v37 = vsel %vm1003_vm2, %v16202_v5, 0.0 }
0x14b6   :  { %12702 = vrcp.f32 %v5896_v17  ;;  %v16211_v0 = vpop.eup %12682  ;;  %v6835_v6 = vsel %vm1003_vm2, %v16207_v53, 0.0 }
0x14b7   :  { %12704 = vpow2.f32 %v6079_v32  ;;  %6842 = vadd.xlane.f32.xlu1 %v6841_v11  ;;  %v5899_v8 = vpop.xlane.xlu1 %5898  ;;  %v16213_v3 = vpop.eup %12684  ;;  %v6832_v18 = vsel %vm1003_vm2, %v16211_v0, 0.0 }
0x14b8   :  { %v5902_v38 = vpop.xlane.xlu0 %5901  ;;  %12706 = vrcp.f32 %v5899_v8  ;;  %6839 = vadd.xlane.f32.xlu0 %v6838_v37  ;;  %v16217_v39 = vpop.eup %12686  ;;  %v6850_v50 = vsel %vm1003_vm2, %v16213_v3, 0.0 }
0x14b9   :  { %12708 = vpow2.f32 %v6081_v19  ;;  %v12689_v55 = vpop.eup %12688  ;;  %v6853_v27 = vsel %vm1003_vm2, %v16217_v39, 0.0 }
0x14ba   :  { %12710 = vrcp.f32 %v5902_v38  ;;  %v16221_v31 = vpop.eup %12690  ;;  %v5914_v14 = vmul.f32 %v12689_v55, %v16134_v48  ;;  %v12179_v55 = vld [vmem:[#allocation2 + $0x60] sm:$0xff]  }
0x14bb   :  { %12712 = vpow2.f32 %v6083_v2  ;;  %6836 = vadd.xlane.f32.xlu1 %v6835_v6  ;;  %v5905_v40 = vpop.xlane.xlu1 %5904  ;;  %v6847_v51 = vsel %vm1003_vm2, %v16221_v31, 0.0 }
0x14bc   :  { %12714 = vrcp.f32 %v5905_v40  ;;  %6833 = vadd.xlane.f32.xlu0 %v6832_v18  ;;  %v6292_v40 = vpack.c.bf16 %v16003_v33, %v15982_v7  ;;  %v17802_v7 = vld [vmem:[#allocation47_spill] sm:$0xff]  ;;  %v12178_v33 = vld [vmem:[#allocation2 + $0x68] sm:$0xff]  }
0x14bd   :  { %v12693_v47 = vpop.eup %12692  ;;  %12716 = vpow2.f32 %v6085_v4  ;;  %11747 = vmatprep.subr.bf16.mxu0 %v12178_v33  ;;  %v17805_v18 = vld [vmem:[#allocation13_spill] sm:$0xff] }
0x14be   :  { %v12695_v12 = vpop.eup %12694  ;;  %v5915_v35 = vmul.f32 %v12693_v47, %v16147_v59  ;;  %11748 = vmatpush3.bf16.msra.mxu0 %v12178_v33  ;;  %v17806_v47 = vld [vmem:[#allocation44_spill] sm:$0xff] }
0x14bf   :  { %6854 = vadd.xlane.f32.xlu1 %v6853_v27  ;;  %v16229_v29 = vpop.eup %12696  ;;  %v5916_v13 = vmul.f32 %v12695_v12, %v16141_v36  ;;  %v6294_v36 = vpack.c.bf16 %v16011_v1, %v16006_v28  ;;  %11749 = vmatprep.subr.bf16.mxu0 %v12179_v55  ;;  %v17807_v27 = vld [vmem:[#allocation49_spill] sm:$0xff]  ;;  %v17808_v12 = vld [vmem:[#allocation46_spill] sm:$0xff] }
0x14c0   :  { %6851 = vadd.xlane.f32.xlu0 %v6850_v50  ;;  %v5922_v15 = vpack.c.bf16 %v5915_v35, %v5914_v14  ;;  %v6844_v48 = vsel %vm1003_vm2, %v16229_v29, 0.0  ;;  %v17809_v50 = vld [vmem:[#allocation45_spill] sm:$0xff]  ;;  %v17810_v14 = vld [vmem:[#allocation20_spill] sm:$0xff]  ;;  %v17811_v35 = vld [vmem:[#allocation43_spill] sm:$0xff] }
0x14c1   :  { %v12699_v21 = vpop.eup %12698 }
0x14c2   :  { %v16231_v42 = vpop.eup %12700  ;;  %v5917_v32 = vmul.f32 %v12699_v21, %v16149_v54  ;;  %11691 = vmatprep.mubr.msk.bf16.mxu1 %vm1003_vm2, %v5922_v15  ;;  %11750 = vmatpush3.bf16.msra.mxu0 %v12179_v55  ;;  %v17812_v21 = vld [vmem:[#allocation23_spill] sm:$0xff]  ;;  %v17813_v15 = vld [vmem:[#allocation22_spill] sm:$0xff] }
0x14c3   :  { %v12703_v26 = vpop.eup %12702  ;;  %6848 = vadd.xlane.f32.xlu1 %v6847_v51  ;;  %v6096_v54 = vsel %vm1003_vm2, %v16231_v42, 0.0 }
0x14c4   :  { %v16240_v59 = vpop.eup %12704  ;;  %v5923_v57 = vpack.c.bf16 %v5917_v32, %v5916_v13  ;;  %6845 = vadd.xlane.f32.xlu0 %v6844_v48  ;;  %v5918_v24 = vmul.f32 %v12703_v26, %v16155_v16  ;;  %v17814_v13 = vld [vmem:[#allocation24_spill] sm:$0xff] }
0x14c5   :  { %v12707_v17 = vpop.eup %12706  ;;  %v6099_v8 = vsel %vm1003_vm2, %v16240_v59, 0.0 }
0x14c6   :  { %v16242_v19 = vpop.eup %12708  ;;  %11692 = vmatmul.mubr.msk.bf16.vlgmr.msra.gmra.mxu1 %vm1003_vm2, %v5923_v57  ;;  %v5919_v11 = vmul.f32 %v12707_v17, %v16157_v34 }
0x14c7   :  { %v12711_v2 = vpop.eup %12710  ;;  %11716 = vmatpush3.bf16.msra.mxu1 %v16008_v44  ;;  %6097 = vadd.xlane.f32.xlu1 %v6096_v54  ;;  %v6102_v16 = vsel %vm1003_vm2, %v16242_v19, 0.0 }
0x14c8   :  { %v16254_v37 = vpop.eup %12712  ;;  %6100 = vadd.xlane.f32.xlu0 %v6099_v8  ;;  %11717 = vmatprep.subr.bf16.mxu1 %v6294_v36  ;;  %v5924_v28 = vpack.c.bf16 %v5919_v11, %v5918_v24  ;;  %v5920_v34 = vmul.f32 %v12711_v2, %v16163_v30 }
0x14c9   :  { %v12715_v1 = vpop.eup %12714  ;;  %v6105_v4 = vsel %vm1003_vm2, %v16254_v37, 0.0 }
0x14ca   :  { %11695 = vmatprep.mubr.msk.bf16.mxu1 %vm1003_vm2, %v5924_v28  ;;  %v5921_v38 = vmul.f32 %v12715_v1, %v16169_v63  ;;  %v16261_v44 = vpop.eup %12716  ;;  %v17804_v63 = vld [vmem:[#allocation48_spill] sm:$0xff] }
0x14cb   :  { %11718 = vmatpush3.bf16.msra.mxu1 %v6294_v36  ;;  %6103 = vadd.xlane.f32.xlu1 %v6102_v16  ;;  %v6108_v30 = vsel %vm1003_vm2, %v16261_v44, 0.0 }
0x14cc   :  { %6106 = vadd.xlane.f32.xlu0 %v6105_v4  ;;  %11719 = vmatprep.subr.bf16.mxu1 %v15984_v20  ;;  %v5925_v6 = vpack.c.bf16 %v5921_v38, %v5920_v34 }
0x14ce   :  { %11696 = vmatmul.mubr.msk.bf16.gmra.mxu1 %vm1003_vm2, %v5925_v6  ;;  %v17816_v6 = vld [vmem:[#allocation54_spill] sm:$0xff] }
0x14cf   :  { %11720 = vmatpush3.bf16.msra.mxu1 %v15984_v20  ;;  %6109 = vadd.xlane.f32.xlu1 %v6108_v30  ;;  %v17803_v20 = vld [vmem:[#allocation21_spill] sm:$0xff] }
0x14d0   :  { %11721 = vmatprep.subr.bf16.mxu1 %v6292_v40 }
0x14d3   :  { %11722 = vmatpush3.bf16.msra.mxu1 %v6292_v40 }
0x14d4   :  { %11731 = vmatprep.subr.bf16.mxu1 %v15812_v23 }
0x14e0   :  { %7199 = vrot.lane.b32.xlu1 %v15649_v58, %s13014_s18 }
0x14e2   :  { %7201 = vrot.lane.b32.xlu0 %v15659_v41, %s13014_s18 }
0x14e4   :  { %7197 = vrot.lane.b32.xlu1 %v15653_v45, %s13014_s18 }
0x14e6   :  { %7187 = vrot.lane.b32.xlu0 %v15637_v22, %s13014_s18 }
0x14e8   :  { %7195 = vrot.lane.b32.xlu1 %v15657_v43, %s13014_s18 }
0x14ea   :  { %7189 = vrot.lane.b32.xlu0 %v15675_v10, %s13014_s18 }
0x14ec   :  { %7491 = vrot.lane.b32.xlu1 %v15727_v52, %s13014_s18 }
0x14ee   :  { %7487 = vrot.lane.b32.xlu0 %v15749_v25, %s13014_s18 }
0x14f0   :  { %7489 = vrot.lane.b32.xlu1 %v15741_v9, %s13014_s18 }
0x14f2   :  { %7193 = vrot.lane.b32.xlu0 %v17802_v7, %s13014_s18 }
0x14f4   :  { %7191 = vrot.lane.b32.xlu1 %v17803_v20, %s13014_s18 }
0x14f6   :  { %7477 = vrot.lane.b32.xlu0 %v15733_v60, %s13014_s18 }
0x14f8   :  { %7485 = vrot.lane.b32.xlu1 %v15757_v46, %s13014_s18 }
0x14fa   :  { %7481 = vrot.lane.b32.xlu0 %v17804_v63, %s13014_s18 }
0x14fc   :  { %7479 = vrot.lane.b32.xlu1 %v17805_v18, %s13014_s18 }
0x14fe   :  { %7030 = vrot.lane.b32.xlu0 %v17806_v47, %s13014_s18 }
0x1500   :  { %7483 = vrot.lane.b32.xlu1 %v17807_v27, %s13014_s18 }
0x1502   :  { %7034 = vrot.lane.b32.xlu0 %v17808_v12, %s13014_s18 }
0x1504   :  { %7032 = vrot.lane.b32.xlu1 %v17809_v50, %s13014_s18 }
0x1506   :  { %7038 = vrot.lane.b32.xlu0 %v17810_v14, %s13014_s18 }
0x1508   :  { %7036 = vrot.lane.b32.xlu1 %v17811_v35, %s13014_s18 }
0x150a   :  { %7042 = vrot.lane.b32.xlu0 %v17812_v21, %s13014_s18 }
0x150c   :  { %7040 = vrot.lane.b32.xlu1 %v17813_v15, %s13014_s18 }
0x150e   :  { %7938 = vrot.lane.b32.xlu0 %v15659_v41, %s13019_s26 }
0x1510   :  { %7044 = vrot.lane.b32.xlu1 %v17814_v13, %s13014_s18 }
0x1512   :  { %7934 = vrot.lane.b32.xlu0 %v15653_v45, %s13019_s26 }
0x1514   :  { %7936 = vrot.lane.b32.xlu1 %v15649_v58, %s13019_s26 }
0x1516   :  { %7924 = vrot.lane.b32.xlu0 %v15637_v22, %s13019_s26 }
0x1518   :  { %7932 = vrot.lane.b32.xlu1 %v15657_v43, %s13019_s26 }
0x151a   :  { %8228 = vrot.lane.b32.xlu0 %v15727_v52, %s13019_s26 }
0x151c   :  { %7926 = vrot.lane.b32.xlu1 %v15675_v10, %s13019_s26 }
0x151e   :  { %7930 = vrot.lane.b32.xlu0 %v17802_v7, %s13019_s26 }
0x1520   :  { %8226 = vrot.lane.b32.xlu1 %v15741_v9, %s13019_s26 }
0x1524   :  { %7928 = vrot.lane.b32.xlu1 %v17803_v20, %s13019_s26 }
0x1528   :  { %8224 = vrot.lane.b32.xlu1 %v15749_v25, %s13019_s26 }
0x152c   :  { %8222 = vrot.lane.b32.xlu1 %v15757_v46, %s13019_s26 }
0x1530   :  { %8214 = vrot.lane.b32.xlu1 %v15733_v60, %s13019_s26 }
0x1538   :  { %v6089_v52 = vpop.xlane.xlu0 %6088 }
0x153c   :  { %v6092_v22 = vpop.xlane.xlu1 %6091 }
0x153d   :  { %v6095_v58 = vpop.xlane.xlu0 %6094 }
0x1540   :  { %v6843_v45 = vpop.xlane.xlu1 %6842 }
0x1541   :  { %v6840_v43 = vpop.xlane.xlu0 %6839  ;;  %12718 = vrcp.f32 %v6843_v45 }
0x1542   :  { %12720 = vrcp.f32 %v6840_v43  ;;  %v17817_v43 = vld [vmem:[#allocation51_spill] sm:$0xff] }
0x1544   :  { %v6837_v9 = vpop.xlane.xlu1 %6836 }
0x1545   :  { %12722 = vrcp.f32 %v6837_v9  ;;  %v6834_v41 = vpop.xlane.xlu0 %6833 }
0x1546   :  { %12724 = vrcp.f32 %v6834_v41 }
0x1547   :  { %12726 = vrcp.f32 %v6089_v52 }
0x1548   :  { %v6855_v10 = vpop.xlane.xlu1 %6854 }
0x1549   :  { %v6852_v25 = vpop.xlane.xlu0 %6851  ;;  %12728 = vrcp.f32 %v6855_v10  ;;  %v17818_v10 = vld [vmem:[#allocation50_spill] sm:$0xff] }
0x154a   :  { %12730 = vrcp.f32 %v6852_v25  ;;  %v17819_v25 = vld [vmem:[#allocation52_spill] sm:$0xff] }
0x154b   :  { %12732 = vrcp.f32 %v6092_v22 }
0x154c   :  { %v6849_v46 = vpop.xlane.xlu1 %6848 }
0x154d   :  { %12734 = vrcp.f32 %v6849_v46  ;;  %v6846_v60 = vpop.xlane.xlu0 %6845 }
0x154e   :  { %12736 = vrcp.f32 %v6846_v60  ;;  %v12719_v32 = vpop.eup %12718 }
0x154f   :  { %v12721_v51 = vpop.eup %12720  ;;  %v6867_v36 = vmul.f32 %v12719_v32, %v16197_v61 }
0x1550   :  { %v6098_v26 = vpop.xlane.xlu1 %6097  ;;  %v6866_v54 = vmul.f32 %v12721_v51, %v16202_v5  ;;  %v17815_v5 = vld [vmem:[#allocation53_spill] sm:$0xff] }
0x1551   :  { %v6101_v48 = vpop.xlane.xlu0 %6100  ;;  %12738 = vrcp.f32 %v6098_v26  ;;  %v5719_v40 = vpack.c.bf16 %v17816_v6, %v17815_v5 }
0x1552   :  { %v12723_v57 = vpop.eup %12722  ;;  %12740 = vrcp.f32 %v6095_v58  ;;  %v6873_v34 = vpack.c.bf16 %v6867_v36, %v6866_v54 }
0x1553   :  { %v12725_v17 = vpop.eup %12724  ;;  %v6865_v24 = vmul.f32 %v12723_v57, %v16207_v53 }
0x1554   :  { %v6104_v11 = vpop.xlane.xlu1 %6103  ;;  %v6864_v2 = vmul.f32 %v12725_v17, %v16211_v0  ;;  %v12727_v28 = vpop.eup %12726 }
0x1555   :  { %12742 = vrcp.f32 %v6104_v11  ;;  %v6107_v8 = vpop.xlane.xlu0 %6106 }
0x1556   :  { %12744 = vrcp.f32 %v6101_v48  ;;  %v6872_v1 = vpack.c.bf16 %v6865_v24, %v6864_v2  ;;  %v12729_v16 = vpop.eup %12728 }
0x1557   :  { %v12731_v38 = vpop.eup %12730  ;;  %v6871_v33 = vmul.f32 %v12729_v16, %v16217_v39 }
0x1558   :  { %11723 = vmatprep.mubr.msk.bf16.mxu1 %vm1003_vm2, %v6872_v1  ;;  %v6110_v61 = vpop.xlane.xlu1 %6109  ;;  %v12733_v4 = vpop.eup %12732  ;;  %v6870_v20 = vmul.f32 %v12731_v38, %v16213_v3 }
0x1559   :  { %11724 = vmatmul.mubr.msk.bf16.vlgmr.msra.gmra.mxu1 %vm1003_vm2, %v6873_v34  ;;  %v7202_v53 = vpop.permute.xlu0 %7201  ;;  %12746 = vrcp.f32 %v6110_v61  ;;  %v6120_v22 = vmul.f32 %v12733_v4, %v16190_v49 }
0x155a   :  { %v12735_v30 = vpop.eup %12734  ;;  %11732 = vmatpush3.bf16.msra.mxu1 %v15812_v23  ;;  %12748 = vrcp.f32 %v6107_v8  ;;  %v6119_v23 = vmul.f32 %v12727_v28, %v16185_v56  ;;  %v6875_v9 = vpack.c.bf16 %v6871_v33, %v6870_v20 }
0x155b   :  { %v12737_v0 = vpop.eup %12736  ;;  %11733 = vmatprep.subr.bf16.mxu1 %v5719_v40  ;;  %v6869_v7 = vmul.f32 %v12735_v30, %v16221_v31 }
0x155c   :  { %v7200_v55 = vpop.permute.xlu1 %7199  ;;  %v6868_v52 = vmul.f32 %v12737_v0, %v16229_v29  ;;  %v6127_v31 = vpack.c.bf16 %v6120_v22, %v6119_v23  ;;  %v5717_v29 = vpack.c.bf16 %v17819_v25, %v17818_v10 }
0x155d   :  { %v7188_v58 = vpop.permute.xlu0 %7187  ;;  %v7222_v16 = vsel %vm760_vm0, %v7200_v55, 0 }
0x155e   :  { %11734 = vmatpush3.bf16.msra.mxu1 %v5719_v40  ;;  %v6874_v45 = vpack.c.bf16 %v6869_v7, %v6868_v52  ;;  %v12739_v41 = vpop.eup %12738 }
0x155f   :  { %11735 = vmatprep.subr.bf16.mxu1 %v17817_v43  ;;  %v12741_v39 = vpop.eup %12740  ;;  %v6122_v60 = vmul.f32 %v12739_v41, %v16231_v42  ;;  %v7225_v42 = vsel %vm760_vm0, %v7202_v53, 0 }
0x1560   :  { %11727 = vmatprep.mubr.msk.bf16.mxu1 %vm1003_vm2, %v6874_v45  ;;  %v7198_v3 = vpop.permute.xlu1 %7197  ;;  %v6121_v26 = vmul.f32 %v12741_v39, %v16193_v62 }
0x1561   :  { %11728 = vmatmul.mubr.msk.bf16.gmra.mxu1 %vm1003_vm2, %v6875_v9  ;;  %v7190_v49 = vpop.permute.xlu0 %7189  ;;  %v7219_v4 = vsel %vm760_vm0, %v7198_v3, 0 }
0x1562   :  { %v12743_v46 = vpop.eup %12742  ;;  %11736 = vmatpush3.bf16.msra.mxu1 %v17817_v43  ;;  %11739 = vmatprep.mubr.msk.bf16.mxu1 %vm1003_vm2, %v6127_v31  ;;  %v6128_v17 = vpack.c.bf16 %v6122_v60, %v6121_v26 }
0x1563   :  { %v12745_v56 = vpop.eup %12744  ;;  %11737 = vmatprep.subr.bf16.mxu1 %v5717_v29  ;;  %v6124_v51 = vmul.f32 %v12743_v46, %v16242_v19 }
0x1564   :  { %v7196_v32 = vpop.permute.xlu1 %7195  ;;  %v6123_v57 = vmul.f32 %v12745_v56, %v16240_v59 }
0x1565   :  { %v7488_v48 = vpop.permute.xlu0 %7487  ;;  %v7216_v40 = vsel %vm760_vm0, %v7196_v32, 0 }
0x1566   :  { %11738 = vmatpush3.bf16.msra.mxu1 %v5717_v29  ;;  %v12747_v36 = vpop.eup %12746  ;;  %v6129_v24 = vpack.c.bf16 %v6124_v51, %v6123_v57  ;;  %v7509_v52 = vsel %vm760_vm0, %v7488_v48, 0 }
0x1567   :  { %11995 = vmatprep.subr.msk.bf16.mxu1 %vm760_vm0, %v7202_v53  ;;  %v12749_v2 = vpop.eup %12748  ;;  %v6126_v62 = vmul.f32 %v12747_v36, %v16261_v44 }
0x1568   :  { %v7492_v54 = vpop.permute.xlu1 %7491  ;;  %v6125_v8 = vmul.f32 %v12749_v2, %v16254_v37 }
0x1569   :  { %11740 = vmatmul.mubr.msk.bf16.vlgmr.msra.gmra.mxu1 %vm1003_vm2, %v6128_v17  ;;  %v7194_v11 = vpop.permute.xlu0 %7193  ;;  %v7515_v30 = vsel %vm760_vm0, %v7492_v54, 0 }
0x156a   :  { %11768 = vmatpush3.bf16.xpose.msra.mxu1 %v7225_v42  ;;  %11743 = vmatprep.mubr.msk.bf16.mxu1 %vm1003_vm2, %v6129_v24  ;;  %v6130_v28 = vpack.c.bf16 %v6126_v62, %v6125_v8 }
0x156b   :  { %11996 = vmatprep.subr.msk.bf16.mxu1 %vm760_vm0, %v7200_v55 }
0x156c   :  { %v7490_v59 = vpop.permute.xlu1 %7489 }
0x156d   :  { %v7478_v19 = vpop.permute.xlu0 %7477  ;;  %v7512_v20 = vsel %vm760_vm0, %v7490_v59, 0 }
0x1570   :  { %v7192_v1 = vpop.permute.xlu1 %7191 }
0x1571   :  { %11744 = vmatmul.mubr.msk.bf16.gmra.mxu1 %vm1003_vm2, %v6130_v28  ;;  %v7482_v34 = vpop.permute.xlu0 %7481 }
0x1572   :  { %11770 = vmatpush3.bf16.xpose.msra.mxu1 %v7222_v16  ;;  %11775 = vmatprep.mubr.msk.bf16.mxu1 %vm760_vm0, %v7188_v58 }
0x1573   :  { %11997 = vmatprep.subr.msk.bf16.mxu1 %vm760_vm0, %v7198_v3 }
0x1574   :  { %v7486_v38 = vpop.permute.xlu1 %7485 }
0x1575   :  { %v7031_v61 = vpop.permute.xlu0 %7030  ;;  %v7506_v22 = vsel %vm760_vm0, %v7486_v38, 0 }
0x1576   :  { %11751 = vmatprep.mubr.msk.bf16.mxu0 %vm760_vm0, %v7031_v61 }
0x1578   :  { %v7480_v44 = vpop.permute.xlu1 %7479 }
0x1579   :  { %v7035_v6 = vpop.permute.xlu0 %7034 }
0x157a   :  { %11772 = vmatpush3.bf16.xpose.msra.mxu1 %v7219_v4 }
0x157b   :  { %11998 = vmatprep.subr.msk.bf16.mxu1 %vm760_vm0, %v7196_v32 }
0x157c   :  { %v7484_v37 = vpop.permute.xlu1 %7483 }
0x157d   :  { %v7039_v0 = vpop.permute.xlu0 %7038 }
0x1580   :  { %v7033_v5 = vpop.permute.xlu1 %7032 }
0x1581   :  { %11752 = vmatmul.mubr.msk.bf16.vlgmr.msra.gmra.mxu0 %vm760_vm0, %v7033_v5  ;;  %v7043_v33 = vpop.permute.xlu0 %7042 }
0x1582   :  { %11774 = vmatpush3.bf16.xpose.msra.mxu1 %v7216_v40  ;;  %11755 = vmatprep.mubr.msk.bf16.mxu0 %vm760_vm0, %v7035_v6 }
0x1583   :  { %11999 = vmatprep.subr.msk.bf16.mxu1 %vm760_vm0, %v7492_v54 }
0x1584   :  { %v7037_v53 = vpop.permute.xlu1 %7036 }
0x1585   :  { %v7939_v58 = vpop.permute.xlu0 %7938 }
0x1586   :  { %v7962_v23 = vsel %vm760_vm0, %v7939_v58, 0  ;;  %v16431_v17 = vpop.f32.mrf.mxu1 }
0x1588   :  { %v7041_v7 = vpop.permute.xlu1 %7040  ;;  %v16433_v36 = vpop.f32.mrf.mxu1 }
0x1589   :  { %11776 = vmatmul.mubr.msk.bf16.vlgmr.msra.gmra.mxu1 %vm760_vm0, %v7190_v49  ;;  %11756 = vmatmul.mubr.msk.bf16.gmra.mxu0 %vm760_vm0, %v7037_v53  ;;  %v7935_v43 = vpop.permute.xlu0 %7934 }
0x158a   :  { %11779 = vmatprep.mubr.msk.bf16.mxu1 %vm760_vm0, %v7192_v1  ;;  %11800 = vmatpush3.bf16.xpose.msra.mxu1 %v7515_v30  ;;  %v7956_v10 = vsel %vm760_vm0, %v7935_v43, 0  ;;  %v16435_v54 = vpop.f32.mrf.mxu1 }
0x158b   :  { %12000 = vmatprep.subr.msk.bf16.mxu1 %vm760_vm0, %v7490_v59  ;;  %11759 = vmatprep.mubr.msk.bf16.mxu0 %vm760_vm0, %v7039_v0 }
0x158c   :  { %v7045_v55 = vpop.permute.xlu1 %7044  ;;  %v16437_v24 = vpop.f32.mrf.mxu1 }
0x158d   :  { %v7925_v41 = vpop.permute.xlu0 %7924  ;;  %17820 = vst [vmem:[#allocation47_spill] sm:$0xff] %v16437_v24 }
0x158e   :  { %v16439_v42 = vpop.f32.mrf.mxu1 }
0x1590   :  { %v7937_v45 = vpop.permute.xlu1 %7936 }
0x1591   :  { %11780 = vmatmul.mubr.msk.bf16.gmra.mxu1 %vm760_vm0, %v7194_v11  ;;  %11760 = vmatmul.mubr.msk.bf16.gmra.mxu0 %vm760_vm0, %v7041_v7  ;;  %v7959_v3 = vsel %vm760_vm0, %v7937_v45, 0  ;;  %v8229_v49 = vpop.permute.xlu0 %8228  ;;  %v16441_v11 = vpop.f32.mrf.mxu1 }
0x1592   :  { %11802 = vmatpush3.bf16.xpose.msra.mxu1 %v7512_v20  ;;  %11807 = vmatprep.mubr.msk.bf16.mxu1 %vm760_vm0, %v7478_v19  ;;  %v8252_v56 = vsel %vm760_vm0, %v8229_v49, 0 }
0x1593   :  { %12001 = vmatprep.subr.msk.bf16.mxu1 %vm760_vm0, %v7488_v48  ;;  %11763 = vmatprep.mubr.msk.bf16.mxu0 %vm760_vm0, %v7043_v33  ;;  %v16443_v2 = vpop.f32.mrf.mxu1 }
0x1594   :  { %v7933_v9 = vpop.permute.xlu1 %7932 }
0x1595   :  { %v7953_v29 = vsel %vm760_vm0, %v7933_v9, 0  ;;  %v7931_v32 = vpop.permute.xlu0 %7930  ;;  %v16445_v62 = vpop.f32.mrf.mxu1 }
0x1596   :  { %17821 = vst [vmem:[#allocation21_spill] sm:$0xff] %v16445_v62 }
0x1598   :  { %v7927_v31 = vpop.permute.xlu1 %7926 }
0x1599   :  { %11764 = vmatmul.mubr.msk.bf16.gmra.mxu0 %vm760_vm0, %v7045_v55 }
0x159a   :  { %11804 = vmatpush3.bf16.xpose.msra.mxu1 %v7509_v52 }
0x159b   :  { %12002 = vmatprep.subr.msk.bf16.mxu1 %vm760_vm0, %v7486_v38 }
0x159c   :  { %v8227_v39 = vpop.permute.xlu1 %8226 }
0x159d   :  { %v8249_v26 = vsel %vm760_vm0, %v8227_v39, 0 }
0x15a0   :  { %v7929_v25 = vpop.permute.xlu1 %7928 }
0x15a2   :  { %11806 = vmatpush3.bf16.xpose.msra.mxu1 %v7506_v22 }
0x15a3   :  { %12003 = vmatprep.subr.msk.bf16.mxu1 %vm760_vm0, %v7939_v58 }
0x15a4   :  { %v8225_v46 = vpop.permute.xlu1 %8224 }
0x15a5   :  { %v8246_v48 = vsel %vm760_vm0, %v8225_v46, 0 }
0x15a8   :  { %v8223_v60 = vpop.permute.xlu1 %8222 }
0x15a9   :  { %11808 = vmatmul.mubr.msk.bf16.vlgmr.msra.gmra.mxu1 %vm760_vm0, %v7480_v44  ;;  %v8243_v57 = vsel %vm760_vm0, %v8223_v60, 0 }
0x15aa   :  { %11811 = vmatprep.mubr.msk.bf16.mxu1 %vm760_vm0, %v7482_v34  ;;  %11852 = vmatpush3.bf16.xpose.msra.mxu1 %v7962_v23 }
0x15ab   :  { %12004 = vmatprep.subr.msk.bf16.mxu1 %vm760_vm0, %v7937_v45 }
0x15ac   :  { %v8215_v51 = vpop.permute.xlu1 %8214 }
0x15b1   :  { %11812 = vmatmul.mubr.msk.bf16.gmra.mxu1 %vm760_vm0, %v7484_v37 }
0x15b2   :  { %11854 = vmatpush3.bf16.xpose.msra.mxu1 %v7959_v3  ;;  %11859 = vmatprep.mubr.msk.bf16.mxu1 %vm760_vm0, %v7925_v41 }
0x15b3   :  { %12005 = vmatprep.subr.msk.bf16.mxu1 %vm760_vm0, %v7935_v43 }
0x15ba   :  { %11856 = vmatpush3.bf16.xpose.msra.mxu1 %v7956_v10 }
0x15bb   :  { %12006 = vmatprep.subr.msk.bf16.mxu1 %vm760_vm0, %v7933_v9 }
0x15c2   :  { %11858 = vmatpush3.bf16.xpose.msra.mxu1 %v7953_v29 }
0x15c3   :  { %12007 = vmatprep.subr.msk.bf16.mxu1 %vm760_vm0, %v8229_v49 }
0x15c9   :  { %11860 = vmatmul.mubr.msk.bf16.vlgmr.msra.gmra.mxu1 %vm760_vm0, %v7927_v31 }
0x15ca   :  { %11863 = vmatprep.mubr.msk.bf16.mxu1 %vm760_vm0, %v7929_v25  ;;  %11884 = vmatpush3.bf16.xpose.msra.mxu1 %v8252_v56 }
0x15cb   :  { %12008 = vmatprep.subr.msk.bf16.mxu1 %vm760_vm0, %v8227_v39 }
0x15d1   :  { %11864 = vmatmul.mubr.msk.bf16.gmra.mxu1 %vm760_vm0, %v7931_v32 }
0x15d2   :  { %11886 = vmatpush3.bf16.xpose.msra.mxu1 %v8249_v26  ;;  %11891 = vmatprep.mubr.msk.bf16.mxu1 %vm760_vm0, %v8215_v51 }
0x15d3   :  { %12009 = vmatprep.subr.msk.bf16.mxu1 %vm760_vm0, %v8225_v46 }
0x15da   :  { %11888 = vmatpush3.bf16.xpose.msra.mxu1 %v8246_v48 }
0x15db   :  { %12010 = vmatprep.subr.msk.bf16.mxu1 %vm760_vm0, %v8223_v60 }
0x15e2   :  { %11890 = vmatpush3.bf16.xpose.msra.mxu1 %v8243_v57 }
0x1619   :  { %v11725_v59 = vpop.f32.mrf.mxu1 }
0x161b   :  { %v6922_v19 = vpop.f32.mrf.mxu1 }
0x161d   :  { %v11726_v8 = vpop.f32.mrf.mxu1 }
0x161f   :  { %v6925_v28 = vpop.f32.mrf.mxu1 }
0x1621   :  { %v11729_v1 = vpop.f32.mrf.mxu1 }
0x1623   :  { %v6938_v16 = vpop.f32.mrf.mxu1 }
0x1625   :  { %v11730_v34 = vpop.f32.mrf.mxu1 }
0x1627   :  { %v6941_v38 = vpop.f32.mrf.mxu1 }
0x1629   :  { %v11741_v61 = vpop.f32.mrf.mxu1 }
0x162a   :  { %v16447_v44 = vadd.f32 %v11741_v61, %v11725_v59 }
0x162b   :  { %v6999_v4 = vpop.f32.mrf.mxu1 }
0x162c   :  { %v16449_v37 = vadd.f32 %v6999_v4, %v6922_v19 }
0x162d   :  { %v11742_v5 = vpop.f32.mrf.mxu1 }
0x162e   :  { %v16451_v6 = vadd.f32 %v11742_v5, %v11726_v8 }
0x162f   :  { %v7002_v40 = vpop.f32.mrf.mxu1 }
0x1630   :  { %v16453_v53 = vadd.f32 %v7002_v40, %v6925_v28 }
0x1631   :  { %v11745_v30 = vpop.f32.mrf.mxu1 }
0x1632   :  { %17822 = vst [vmem:[#allocation48_spill] sm:$0xff] %v16453_v53  ;;  %v16455_v0 = vadd.f32 %v11745_v30, %v11729_v1 }
0x1633   :  { %v7015_v7 = vpop.f32.mrf.mxu1 }
0x1634   :  { %v16457_v20 = vadd.f32 %v7015_v7, %v6938_v16 }
0x1635   :  { %v11746_v33 = vpop.f32.mrf.mxu1 }
0x1636   :  { %v16459_v55 = vadd.f32 %v11746_v33, %v11730_v34 }
0x1637   :  { %v7018_v52 = vpop.f32.mrf.mxu1 }
0x1638   :  { %v16461_v22 = vadd.f32 %v7018_v52, %v6941_v38 }
0x163a   :  { %17823 = vst [vmem:[#allocation13_spill] sm:$0xff] %v16461_v22 }
0x1641   :  { %v11753_v58 = vpop.f32.mrf.mxu0 }
0x1643   :  { %v7116_v45 = vpop.f32.mrf.mxu0 }
0x1645   :  { %v11754_v23 = vpop.f32.mrf.mxu0 }
0x1646   :  { %v7180_v61 = vpack.c.bf16 %v11754_v23, %v11753_v58 }
0x1647   :  { %v7119_v43 = vpop.f32.mrf.mxu0 }
0x1649   :  { %v11777_v9 = vpop.f32.mrf.mxu1  ;;  %v11757_v41 = vpop.f32.mrf.mxu0 }
0x164a   :  { %v16465_v31 = vsel %vm13627_vm3, %v11777_v9, -1e+30  ;;  %v7179_v9 = vpack.c.bf16 %v7119_v43, %v7116_v45 }
0x164b   :  { %v7306_v39 = vsel %vm1003_vm2, %v16465_v31, -inf  ;;  %v7261_v10 = vpop.f32.mrf.mxu1  ;;  %v7132_v25 = vpop.f32.mrf.mxu0 }
0x164c   :  { %v16471_v49 = vsel %vm13620_vm1, %v7261_v10, -1e+30  ;;  %7307 = vmax.xlane.f32.xlu0 %v7306_v39 }
0x164d   :  { %v7300_v46 = vsel %vm1003_vm2, %v16471_v49, -inf  ;;  %v11778_v56 = vpop.f32.mrf.mxu1  ;;  %v11758_v60 = vpop.f32.mrf.mxu0 }
0x164e   :  { %v16477_v51 = vsel %vm13641_vm5, %v11778_v56, -1e+30  ;;  %7301 = vmax.xlane.f32.xlu1 %v7300_v46  ;;  %v7182_v26 = vpack.c.bf16 %v11758_v60, %v11757_v41 }
0x164f   :  { %v7309_v48 = vsel %vm1003_vm2, %v16477_v51, -inf  ;;  %v7264_v57 = vpop.f32.mrf.mxu1  ;;  %v7135_v59 = vpop.f32.mrf.mxu0 }
0x1650   :  { %v16483_v8 = vsel %vm13635_vm4, %v7264_v57, -1e+30  ;;  %7310 = vmax.xlane.f32.xlu0 %v7309_v48  ;;  %v7181_v28 = vpack.c.bf16 %v7135_v59, %v7132_v25  ;;  %11783 = vmatprep.subr.bf16.mxu0 %v7182_v26 }
0x1651   :  { %v11781_v1 = vpop.f32.mrf.mxu1  ;;  %v11761_v16 = vpop.f32.mrf.mxu0  ;;  %11784 = vmatpush3.bf16.msra.mxu0 %v7182_v26  ;;  %v7303_v34 = vsel %vm1003_vm2, %v16483_v8, -inf }
0x1652   :  { %11785 = vmatprep.subr.bf16.mxu0 %v7181_v28  ;;  %v16491_v5 = vsel %vm13668_vm8, %v11781_v1, -1e+30 }
0x1653   :  { %v16487_v38 = vpop.f32.mrf.mxu0  ;;  %v7277_v40 = vpop.f32.mrf.mxu1  ;;  %v7318_v33 = vsel %vm1003_vm2, %v16491_v5, -inf }
0x1654   :  { %7304 = vmax.xlane.f32.xlu0 %v7303_v34  ;;  %v16501_v58 = vsel %vm13652_vm6, %v7277_v40, -1e+30 }
0x1655   :  { %v11762_v30 = vpop.f32.mrf.mxu0  ;;  %11786 = vmatpush3.bf16.msra.mxu0 %v7181_v28  ;;  %v11782_v23 = vpop.f32.mrf.mxu1  ;;  %v7312_v10 = vsel %vm1003_vm2, %v16501_v58, -inf }
0x1656   :  { %v16493_v7 = vpack.c.bf16 %v11762_v30, %v11761_v16  ;;  %11787 = vmatprep.subr.bf16.mxu0 %v7180_v61  ;;  %v16509_v56 = vsel %vm13672_vm9, %v11782_v23, -1e+30 }
0x1657   :  { %v16497_v52 = vpop.f32.mrf.mxu0  ;;  %v7280_v45 = vpop.f32.mrf.mxu1  ;;  %v7321_v26 = vsel %vm1003_vm2, %v16509_v56, -inf }
0x1658   :  { %7319 = vmax.xlane.f32.xlu0 %v7318_v33  ;;  %v16517_v57 = vsel %vm13660_vm7, %v7280_v45, -1e+30 }
0x1659   :  { %v11765_v39 = vpop.f32.mrf.mxu0  ;;  %11788 = vmatpush3.bf16.msra.mxu0 %v7180_v61  ;;  %v7315_v59 = vsel %vm1003_vm2, %v16517_v57, -inf }
0x165a   :  { %11789 = vmatprep.subr.bf16.mxu0 %v7179_v9 }
0x165b   :  { %v16505_v25 = vpop.f32.mrf.mxu0 }
0x165c   :  { %7313 = vmax.xlane.f32.xlu0 %v7312_v10 }
0x165d   :  { %v11766_v43 = vpop.f32.mrf.mxu0  ;;  %11790 = vmatpush3.bf16.msra.mxu0 %v7179_v9 }
0x165e   :  { %v16511_v60 = vpack.c.bf16 %v11766_v43, %v11765_v39 }
0x1660   :  { %7322 = vmax.xlane.f32.xlu0 %v7321_v26  ;;  %11815 = vmatprep.subr.bf16.mxu0 %v16511_v60 }
0x1664   :  { %7316 = vmax.xlane.f32.xlu0 %v7315_v59 }
0x1669   :  { %v11809_v28 = vpop.f32.mrf.mxu1 }
0x166a   :  { %v16524_v1 = vsel %vm13627_vm3, %v11809_v28, -1e+30 }
0x166b   :  { %v7596_v16 = vsel %vm1003_vm2, %v16524_v1, -inf  ;;  %v7551_v34 = vpop.f32.mrf.mxu1 }
0x166c   :  { %v16530_v61 = vsel %vm13620_vm1, %v7551_v34, -1e+30  ;;  %7597 = vmax.xlane.f32.xlu1 %v7596_v16 }
0x166d   :  { %v11810_v40 = vpop.f32.mrf.mxu1  ;;  %v7590_v30 = vsel %vm1003_vm2, %v16530_v61, -inf }
0x166e   :  { %v16536_v9 = vsel %vm13641_vm5, %v11810_v40, -1e+30 }
0x166f   :  { %v7554_v33 = vpop.f32.mrf.mxu1  ;;  %v7599_v43 = vsel %vm1003_vm2, %v16536_v9, -inf }
0x1670   :  { %v16540_v23 = vsel %vm13635_vm4, %v7554_v33, -1e+30  ;;  %7591 = vmax.xlane.f32.xlu1 %v7590_v30 }
0x1671   :  { %v7593_v39 = vsel %vm1003_vm2, %v16540_v23, -inf  ;;  %v11813_v10 = vpop.f32.mrf.mxu1 }
0x1672   :  { %v16546_v45 = vsel %vm13668_vm8, %v11813_v10, -1e+30  ;;  %7594 = vmax.xlane.f32.xlu0 %v7593_v39 }
0x1673   :  { %v7567_v26 = vpop.f32.mrf.mxu1  ;;  %v7608_v59 = vsel %vm1003_vm2, %v16546_v45, -inf }
0x1674   :  { %7600 = vmax.xlane.f32.xlu1 %v7599_v43  ;;  %v16554_v28 = vsel %vm13652_vm6, %v7567_v26, -1e+30 }
0x1675   :  { %v11814_v16 = vpop.f32.mrf.mxu1  ;;  %v7602_v34 = vsel %vm1003_vm2, %v16554_v28, -inf }
0x1676   :  { %7609 = vmax.xlane.f32.xlu0 %v7608_v59  ;;  %v16560_v40 = vsel %vm13672_vm9, %v11814_v16, -1e+30 }
0x1677   :  { %v7570_v30 = vpop.f32.mrf.mxu1  ;;  %v7611_v33 = vsel %vm1003_vm2, %v16560_v40, -inf }
0x1678   :  { %v16566_v39 = vsel %vm13660_vm7, %v7570_v30, -1e+30 }
0x1679   :  { %v7605_v10 = vsel %vm1003_vm2, %v16566_v39, -inf }
0x167a   :  { %7603 = vmax.xlane.f32.xlu0 %v7602_v34 }
0x167e   :  { %7612 = vmax.xlane.f32.xlu0 %v7611_v33 }
0x1682   :  { %7606 = vmax.xlane.f32.xlu0 %v7605_v10 }
0x1685   :  { %8218 = vrot.lane.b32.xlu1 %v17804_v63, %s13019_s26 }
0x1689   :  { %8220 = vrot.lane.b32.xlu1 %v17807_v27, %s13019_s26 }
0x1698   :  { %8216 = vrot.lane.b32.xlu0 %v17805_v18, %s13019_s26 }
0x16d5   :  { %v7308_v43 = vpop.xlane.xlu0 %7307 }
0x16d6   :  { %v7326_v26 = vsub.f32 %v16465_v31, %v7308_v43 }
0x16d7   :  { %v7302_v59 = vpop.xlane.xlu1 %7301 }
0x16d8   :  { %v7324_v16 = vsub.f32 %v16471_v49, %v7302_v59  ;;  %v7336_v30 = vmul.f32 1.442695, %v7326_v26 }
0x16d9   :  { %v7311_v34 = vpop.xlane.xlu0 %7310 }
0x16da   :  { %v7332_v33 = vmul.f32 1.442695, %v7324_v16  ;;  %v7327_v10 = vsub.f32 %v16477_v51, %v7311_v34 }
0x16dc   :  { %12750 = vpow2.f32 %v7332_v33  ;;  %v7338_v22 = vmul.f32 1.442695, %v7327_v10 }
0x16dd   :  { %v7305_v63 = vpop.xlane.xlu0 %7304  ;;  %12752 = vpow2.f32 %v7336_v30 }
0x16de   :  { %v7325_v27 = vsub.f32 %v16483_v8, %v7305_v63  ;;  %12754 = vpow2.f32 %v7338_v22 }
0x16e0   :  { %v7334_v53 = vmul.f32 1.442695, %v7325_v27 }
0x16e1   :  { %v7320_v18 = vpop.xlane.xlu0 %7319 }
0x16e2   :  { %12756 = vpow2.f32 %v7334_v53  ;;  %v7330_v31 = vsub.f32 %v16491_v5, %v7320_v18 }
0x16e4   :  { %v7344_v59 = vmul.f32 1.442695, %v7330_v31 }
0x16e5   :  { %v7314_v43 = vpop.xlane.xlu0 %7313 }
0x16e6   :  { %v7328_v49 = vsub.f32 %v16501_v58, %v7314_v43 }
0x16e8   :  { %v7340_v26 = vmul.f32 1.442695, %v7328_v49 }
0x16e9   :  { %v16582_v16 = vpop.eup %12750  ;;  %v7323_v51 = vpop.xlane.xlu0 %7322 }
0x16ea   :  { %12758 = vpow2.f32 %v7340_v26  ;;  %v7348_v34 = vsel %vm1003_vm2, %v16582_v16, 0.0  ;;  %v16586_v30 = vpop.eup %12752  ;;  %v7331_v53 = vsub.f32 %v16509_v56, %v7323_v51 }
0x16eb   :  { %7349 = vadd.xlane.f32.xlu1 %v7348_v34  ;;  %12760 = vpow2.f32 %v7344_v59  ;;  %v16589_v8 = vpop.eup %12754  ;;  %v7354_v58 = vsel %vm1003_vm2, %v16586_v30, 0.0 }
0x16ec   :  { %v7346_v10 = vmul.f32 1.442695, %v7331_v53  ;;  %v7357_v56 = vsel %vm1003_vm2, %v16589_v8, 0.0 }
0x16ed   :  { %v7317_v22 = vpop.xlane.xlu0 %7316 }
0x16ee   :  { %v7329_v5 = vsub.f32 %v16517_v57, %v7317_v22 }
0x16ef   :  { %v16594_v33 = vpop.eup %12756  ;;  %7355 = vadd.xlane.f32.xlu1 %v7354_v58 }
0x16f0   :  { %v7342_v63 = vmul.f32 1.442695, %v7329_v5  ;;  %v7351_v27 = vsel %vm1003_vm2, %v16594_v33, 0.0 }
0x16f1   :  { %7352 = vadd.xlane.f32.xlu0 %v7351_v27 }
0x16f2   :  { %12762 = vpow2.f32 %v7342_v63 }
0x16f3   :  { %7358 = vadd.xlane.f32.xlu1 %v7357_v56  ;;  %12764 = vpow2.f32 %v7346_v10 }
0x16f5   :  { %v7598_v18 = vpop.xlane.xlu1 %7597 }
0x16f6   :  { %v7616_v31 = vsub.f32 %v16524_v1, %v7598_v18 }
0x16f7   :  { %v16600_v57 = vpop.eup %12758 }
0x16f8   :  { %v7360_v43 = vsel %vm1003_vm2, %v16600_v57, 0.0  ;;  %v16605_v49 = vpop.eup %12760  ;;  %v7626_v51 = vmul.f32 1.442695, %v7616_v31 }
0x16f9   :  { %v7592_v59 = vpop.xlane.xlu1 %7591  ;;  %7361 = vadd.xlane.f32.xlu0 %v7360_v43  ;;  %v7366_v5 = vsel %vm1003_vm2, %v16605_v49, 0.0 }
0x16fa   :  { %v7614_v26 = vsub.f32 %v16530_v61, %v7592_v59 }
0x16fb   :  { %v7595_v34 = vpop.xlane.xlu0 %7594 }
0x16fc   :  { %v7622_v53 = vmul.f32 1.442695, %v7614_v26  ;;  %v7615_v22 = vsub.f32 %v16540_v23, %v7595_v34 }
0x16fd   :  { %v7601_v58 = vpop.xlane.xlu1 %7600  ;;  %7367 = vadd.xlane.f32.xlu0 %v7366_v5 }
0x16fe   :  { %12766 = vpow2.f32 %v7622_v53  ;;  %v7624_v1 = vmul.f32 1.442695, %v7615_v22  ;;  %v7617_v10 = vsub.f32 %v16536_v9, %v7601_v58 }
0x16ff   :  { %v16612_v63 = vpop.eup %12762  ;;  %12768 = vpow2.f32 %v7626_v51  ;;  %v7610_v27 = vpop.xlane.xlu0 %7609 }
0x1700   :  { %12770 = vpow2.f32 %v7624_v1  ;;  %v7628_v61 = vmul.f32 1.442695, %v7617_v10  ;;  %v7363_v56 = vsel %vm1003_vm2, %v16612_v63, 0.0  ;;  %v16616_v18 = vpop.eup %12764  ;;  %v7620_v23 = vsub.f32 %v16546_v45, %v7610_v27 }
0x1701   :  { %7364 = vadd.xlane.f32.xlu1 %v7363_v56  ;;  %v7369_v9 = vsel %vm1003_vm2, %v16616_v18, 0.0  ;;  %v8219_v56 = vpop.permute.xlu1 %8218 }
0x1702   :  { %12772 = vpow2.f32 %v7628_v61  ;;  %v7634_v59 = vmul.f32 1.442695, %v7620_v23 }
0x1703   :  { %v7604_v31 = vpop.xlane.xlu0 %7603 }
0x1704   :  { %v7618_v43 = vsub.f32 %v16554_v28, %v7604_v31 }
0x1705   :  { %7370 = vadd.xlane.f32.xlu1 %v7369_v9 }
0x1706   :  { %v7630_v26 = vmul.f32 1.442695, %v7618_v43 }
0x1707   :  { %v7613_v51 = vpop.xlane.xlu0 %7612 }
0x1708   :  { %12774 = vpow2.f32 %v7630_v26  ;;  %v7621_v34 = vsub.f32 %v16560_v40, %v7613_v51  ;;  %v17832_v26 = vmov 0  }
0x1709   :  { %12776 = vpow2.f32 %v7634_v59  ;;  %v8221_v59 = vpop.permute.xlu1 %8220 }
0x170a   :  { %v7636_v1 = vmul.f32 1.442695, %v7621_v34 }
0x170b   :  { %v16623_v53 = vpop.eup %12766  ;;  %v7607_v22 = vpop.xlane.xlu0 %7606 }
0x170c   :  { %v16625_v5 = vpop.eup %12768  ;;  %v7619_v45 = vsub.f32 %v16566_v39, %v7607_v22  ;;  %v7638_v28 = vsel %vm1003_vm2, %v16623_v53, 0.0 }
0x170d   :  { %v16630_v58 = vpop.eup %12770  ;;  %7639 = vadd.xlane.f32.xlu0 %v7638_v28  ;;  %v7644_v39 = vsel %vm1003_vm2, %v16625_v5, 0.0 }
0x170e   :  { %v7632_v10 = vmul.f32 1.442695, %v7619_v45  ;;  %v7641_v27 = vsel %vm1003_vm2, %v16630_v58, 0.0 }
0x170f   :  { %v16634_v61 = vpop.eup %12772  ;;  %7642 = vadd.xlane.f32.xlu1 %v7641_v27  ;;  %v8217_v40 = vpop.permute.xlu0 %8216 }
0x1710   :  { %12778 = vpow2.f32 %v7632_v10  ;;  %11892 = vmatmul.mubr.msk.bf16.vlgmr.msra.gmra.mxu1 %vm760_vm0, %v8217_v40  ;;  %v7647_v23 = vsel %vm1003_vm2, %v16634_v61, 0.0 }
0x1711   :  { %7645 = vadd.xlane.f32.xlu0 %v7644_v39  ;;  %11895 = vmatprep.mubr.msk.bf16.mxu1 %vm760_vm0, %v8219_v56  ;;  %12780 = vpow2.f32 %v7636_v1 }
0x1713   :  { %7648 = vadd.xlane.f32.xlu1 %v7647_v23 }
0x1715   :  { %v16642_v31 = vpop.eup %12774 }
0x1716   :  { %v7650_v43 = vsel %vm1003_vm2, %v16642_v31, 0.0  ;;  %v16646_v9 = vpop.eup %12776 }
0x1717   :  { %7651 = vadd.xlane.f32.xlu0 %v7650_v43  ;;  %v7656_v51 = vsel %vm1003_vm2, %v16646_v9, 0.0 }
0x1718   :  { %11896 = vmatmul.mubr.msk.bf16.gmra.mxu1 %vm760_vm0, %v8221_v59 }
0x1719   :  { %9137 = vmatprep.mubr.bf16.mxu1 %v17832_v26 }
0x171b   :  { %7657 = vadd.xlane.f32.xlu0 %v7656_v51 }
0x171d   :  { %v16652_v34 = vpop.eup %12778 }
0x171e   :  { %v7653_v22 = vsel %vm1003_vm2, %v16652_v34, 0.0  ;;  %v16656_v45 = vpop.eup %12780 }
0x171f   :  { %7654 = vadd.xlane.f32.xlu1 %v7653_v22  ;;  %v7659_v28 = vsel %vm1003_vm2, %v16656_v45, 0.0 }
0x1723   :  { %7660 = vadd.xlane.f32.xlu1 %v7659_v28 }
0x1731   :  { %7767 = vrot.lane.b32.xlu0 %v17806_v47, %s13019_s26  ;;  %v11861_v47 = vpop.f32.mrf.mxu1 }
0x1734   :  { %7769 = vrot.lane.b32.xlu1 %v17809_v50, %s13019_s26  ;;  %v7998_v50 = vpop.f32.mrf.mxu1 }
0x1735   :  { %7775 = vrot.lane.b32.xlu0 %v17810_v14, %s13019_s26  ;;  %v16678_v14 = vsel %vm13620_vm1, %v7998_v50, -1e+30 }
0x1736   :  { %v11862_v1 = vpop.f32.mrf.mxu1 }
0x1737   :  { %v16690_v10 = vsel %vm13641_vm5, %v11862_v1, -1e+30 }
0x1738   :  { %7771 = vrot.lane.b32.xlu1 %v17808_v12, %s13019_s26  ;;  %v8001_v12 = vpop.f32.mrf.mxu1  ;;  %v8046_v40 = vsel %vm1003_vm2, %v16690_v10, -inf }
0x1739   :  { %7779 = vrot.lane.b32.xlu0 %v17812_v21, %s13019_s26  ;;  %v8037_v21 = vsel %vm1003_vm2, %v16678_v14, -inf  ;;  %v16702_v43 = vsel %vm13635_vm4, %v8001_v12, -1e+30 }
0x173a   :  { %v8040_v22 = vsel %vm1003_vm2, %v16702_v43, -inf }
0x173c   :  { %7773 = vrot.lane.b32.xlu1 %v17811_v35, %s13019_s26  ;;  %v16684_v35 = vsel %vm13627_vm3, %v11861_v47, -1e+30 }
0x1740   :  { %7777 = vrot.lane.b32.xlu1 %v17813_v15, %s13019_s26  ;;  %v11865_v15 = vpop.f32.mrf.mxu1 }
0x1741   :  { %v16706_v59 = vsel %vm13668_vm8, %v11865_v15, -1e+30 }
0x1742   :  { %v8014_v27 = vpop.f32.mrf.mxu1  ;;  %v8055_v28 = vsel %vm1003_vm2, %v16706_v59, -inf }
0x1743   :  { %v16696_v56 = vsel %vm13652_vm6, %v8014_v27, -1e+30 }
0x1744   :  { %7781 = vrot.lane.b32.xlu1 %v17814_v13, %s13019_s26  ;;  %v8043_v13 = vsel %vm1003_vm2, %v16684_v35, -inf  ;;  %v11866_v39 = vpop.f32.mrf.mxu1  ;;  %v8049_v23 = vsel %vm1003_vm2, %v16696_v56, -inf }
0x1745   :  { %v16720_v1 = vsel %vm13672_vm9, %v11866_v39, -1e+30 }
0x1746   :  { %v8017_v51 = vpop.f32.mrf.mxu1  ;;  %v8058_v12 = vsel %vm1003_vm2, %v16720_v1, -inf }
0x1747   :  { %v16714_v47 = vsel %vm13660_vm7, %v8017_v51, -1e+30 }
0x1748   :  { %v8052_v50 = vsel %vm1003_vm2, %v16714_v47, -inf }
0x1758   :  { %8038 = vmax.xlane.f32.xlu0 %v8037_v21 }
0x175c   :  { %8044 = vmax.xlane.f32.xlu0 %v8043_v13 }
0x1760   :  { %8047 = vmax.xlane.f32.xlu0 %v8046_v40 }
0x1764   :  { %8050 = vmax.xlane.f32.xlu0 %v8049_v23 }
0x1768   :  { %8056 = vmax.xlane.f32.xlu0 %v8055_v28  ;;  %8041 = vmax.xlane.f32.xlu1 %v8040_v22 }
0x176c   :  { %8053 = vmax.xlane.f32.xlu1 %v8052_v50 }
0x1770   :  { %8059 = vmax.xlane.f32.xlu1 %v8058_v12 }
0x1774   :  { %v7350_v21 = vpop.xlane.xlu1 %7349 }
0x1775   :  { %12782 = vrcp.f32 %v7350_v21 }
0x1778   :  { %v7356_v15 = vpop.xlane.xlu1 %7355 }
0x1779   :  { %12784 = vrcp.f32 %v7356_v15 }
0x177a   :  { %v7353_v13 = vpop.xlane.xlu0 %7352 }
0x177b   :  { %12786 = vrcp.f32 %v7353_v13  ;;  %v7167_v13 = vpop.f32.mrf.mxu0 }
0x177c   :  { %v7359_v27 = vpop.xlane.xlu1 %7358 }
0x177d   :  { %12788 = vrcp.f32 %v7359_v27 }
0x1782   :  { %v7362_v40 = vpop.xlane.xlu0 %7361  ;;  %v12783_v23 = vpop.eup %12782 }
0x1783   :  { %12790 = vrcp.f32 %v7362_v40  ;;  %v7380_v39 = vmul.f32 %v12783_v23, %v16582_v16  ;;  %v7185_v40 = vpack.c.bf16 %v7167_v13, %v16505_v25 }
0x1786   :  { %v12785_v51 = vpop.eup %12784  ;;  %v7368_v62 = vpop.xlane.xlu0 %7367 }
0x1787   :  { %v7382_v24 = vmul.f32 %v12785_v51, %v16586_v30 }
0x1788   :  { %v12787_v22 = vpop.eup %12786 }
0x1789   :  { %v7381_v28 = vmul.f32 %v12787_v22, %v16594_v33  ;;  %v12180_v33 = vld [vmem:[#allocation2 + $0x78] sm:$0xff]  }
0x178a   :  { %v12789_v50 = vpop.eup %12788  ;;  %v7365_v12 = vpop.xlane.xlu1 %7364 }
0x178b   :  { %v7383_v21 = vmul.f32 %v12789_v50, %v16589_v8  ;;  %12792 = vrcp.f32 %v7365_v12  ;;  %v7388_v15 = vpack.c.bf16 %v7381_v28, %v7380_v39 }
0x178c   :  { %12794 = vrcp.f32 %v7368_v62 }
0x178d   :  { %v7389_v27 = vpack.c.bf16 %v7383_v21, %v7382_v24  ;;  %11791 = vmatprep.mubr.msk.bf16.mxu0 %vm1003_vm2, %v7388_v15  ;;  %v7183_v24 = vpack.c.bf16 %v16497_v52, %v16487_v38 }
0x178e   :  { %v7371_v26 = vpop.xlane.xlu1 %7370 }
0x178f   :  { %12796 = vrcp.f32 %v7371_v26  ;;  %11792 = vmatmul.mubr.msk.bf16.vlgmr.msra.gmra.mxu0 %vm1003_vm2, %v7389_v27 }
0x1790   :  { %11816 = vmatpush3.bf16.msra.mxu0 %v16511_v60  ;;  %v12791_v16 = vpop.eup %12790 }
0x1791   :  { %11817 = vmatprep.subr.bf16.mxu0 %v7185_v40  ;;  %v7384_v25 = vmul.f32 %v12791_v16, %v16600_v57 }
0x1794   :  { %11818 = vmatpush3.bf16.msra.mxu0 %v7185_v40 }
0x1795   :  { %11819 = vmatprep.subr.bf16.mxu0 %v16493_v7 }
0x1796   :  { %v7640_v30 = vpop.xlane.xlu0 %7639 }
0x1797   :  { %12798 = vrcp.f32 %v7640_v30 }
0x1798   :  { %v12793_v62 = vpop.eup %12792  ;;  %11820 = vmatpush3.bf16.msra.mxu0 %v16493_v7  ;;  %v7643_v8 = vpop.xlane.xlu1 %7642 }
0x1799   :  { %12800 = vrcp.f32 %v7643_v8  ;;  %11821 = vmatprep.subr.bf16.mxu0 %v7183_v24  ;;  %v7385_v60 = vmul.f32 %v12793_v62, %v16612_v63  ;;  %v12795_v26 = vpop.eup %12794 }
0x179a   :  { %v7646_v23 = vpop.xlane.xlu0 %7645  ;;  %v7386_v38 = vmul.f32 %v12795_v26, %v16605_v49 }
0x179b   :  { %12802 = vrcp.f32 %v7646_v23  ;;  %v7390_v51 = vpack.c.bf16 %v7385_v60, %v7384_v25 }
0x179c   :  { %v12797_v22 = vpop.eup %12796  ;;  %11822 = vmatpush3.bf16.msra.mxu0 %v7183_v24  ;;  %v7649_v39 = vpop.xlane.xlu1 %7648  ;;  %v12181_v24 = vld [vmem:[#allocation2 + $0x70] sm:$0xff]  }
0x179d   :  { %12804 = vrcp.f32 %v7649_v39  ;;  %11795 = vmatprep.mubr.msk.bf16.mxu0 %vm1003_vm2, %v7390_v51  ;;  %v7387_v7 = vmul.f32 %v12797_v22, %v16616_v18  ;;  %11831 = vmatprep.subr.bf16.mxu0 %v12180_v33 }
0x179f   :  { %v7391_v52 = vpack.c.bf16 %v7387_v7, %v7386_v38 }
0x17a0   :  { %v7652_v57 = vpop.xlane.xlu0 %7651 }
0x17a1   :  { %11796 = vmatmul.mubr.msk.bf16.gmra.mxu0 %vm1003_vm2, %v7391_v52  ;;  %12806 = vrcp.f32 %v7652_v57 }
0x17a4   :  { %v12799_v63 = vpop.eup %12798  ;;  %v7658_v15 = vpop.xlane.xlu0 %7657 }
0x17a5   :  { %v7670_v50 = vmul.f32 %v12799_v63, %v16623_v53 }
0x17a6   :  { %v12801_v28 = vpop.eup %12800 }
0x17a7   :  { %v7671_v12 = vmul.f32 %v12801_v28, %v16630_v58 }
0x17a8   :  { %v12803_v21 = vpop.eup %12802  ;;  %v7655_v13 = vpop.xlane.xlu1 %7654 }
0x17a9   :  { %12808 = vrcp.f32 %v7655_v13  ;;  %v7678_v27 = vpack.c.bf16 %v7671_v12, %v7670_v50  ;;  %v7672_v18 = vmul.f32 %v12803_v21, %v16625_v5  ;;  %v7768_v51 = vpop.permute.xlu0 %7767 }
0x17aa   :  { %v12805_v49 = vpop.eup %12804  ;;  %12810 = vrcp.f32 %v7658_v15 }
0x17ab   :  { %v7673_v40 = vmul.f32 %v12805_v49, %v16634_v61  ;;  %11823 = vmatprep.mubr.msk.bf16.mxu0 %vm1003_vm2, %v7678_v27 }
0x17ac   :  { %v7661_v16 = vpop.xlane.xlu1 %7660 }
0x17ad   :  { %v7679_v30 = vpack.c.bf16 %v7673_v40, %v7672_v18  ;;  %12812 = vrcp.f32 %v7661_v16 }
0x17ae   :  { %v12807_v53 = vpop.eup %12806 }
0x17af   :  { %11824 = vmatmul.mubr.msk.bf16.vlgmr.msra.gmra.mxu0 %vm1003_vm2, %v7679_v30  ;;  %v7674_v62 = vmul.f32 %v12807_v53, %v16642_v31 }
0x17b0   :  { %11832 = vmatpush3.bf16.msra.mxu0 %v12180_v33  ;;  %v7770_v33 = vpop.permute.xlu1 %7769 }
0x17b1   :  { %11833 = vmatprep.subr.bf16.mxu0 %v12181_v24 }
0x17b4   :  { %11834 = vmatpush3.bf16.msra.mxu0 %v12181_v24  ;;  %v7772_v22 = vpop.permute.xlu1 %7771 }
0x17b6   :  { %v12809_v58 = vpop.eup %12808 }
0x17b7   :  { %v7675_v5 = vmul.f32 %v12809_v58, %v16652_v34  ;;  %v12811_v8 = vpop.eup %12810  ;;  %v7776_v34 = vpop.permute.xlu0 %7775 }
0x17b8   :  { %v7676_v60 = vmul.f32 %v12811_v8, %v16646_v9  ;;  %v7774_v31 = vpop.permute.xlu1 %7773 }
0x17b9   :  { %v7680_v61 = vpack.c.bf16 %v7675_v5, %v7674_v62 }
0x17ba   :  { %v12813_v25 = vpop.eup %12812 }
0x17bb   :  { %11827 = vmatprep.mubr.msk.bf16.mxu0 %vm1003_vm2, %v7680_v61  ;;  %v7677_v26 = vmul.f32 %v12813_v25, %v16656_v45  ;;  %v7780_v28 = vpop.permute.xlu0 %7779 }
0x17bc   :  { %v7778_v57 = vpop.permute.xlu1 %7777 }
0x17bd   :  { %v7681_v23 = vpack.c.bf16 %v7677_v26, %v7676_v60 }
0x17bf   :  { %11828 = vmatmul.mubr.msk.bf16.gmra.mxu0 %vm1003_vm2, %v7681_v23 }
0x17c0   :  { %11835 = vmatprep.mubr.msk.bf16.mxu0 %vm760_vm0, %v7768_v51  ;;  %v7782_v32 = vpop.permute.xlu1 %7781 }
0x17c7   :  { %11836 = vmatmul.mubr.msk.bf16.vlgmr.msra.gmra.mxu0 %vm760_vm0, %v7770_v33 }
0x17c8   :  { %11839 = vmatprep.mubr.msk.bf16.mxu0 %vm760_vm0, %v7772_v22 }
0x17cf   :  { %11840 = vmatmul.mubr.msk.bf16.gmra.mxu0 %vm760_vm0, %v7774_v31 }
0x17d0   :  { %11843 = vmatprep.mubr.msk.bf16.mxu0 %vm760_vm0, %v7776_v34  ;;  %v11893_v9 = vpop.f32.mrf.mxu1 }
0x17d1   :  { %v16767_v52 = vsel %vm13627_vm3, %v11893_v9, -1e+30 }
0x17d2   :  { %v8288_v45 = vpop.f32.mrf.mxu1  ;;  %v8333_v29 = vsel %vm1003_vm2, %v16767_v52, -inf }
0x17d3   :  { %v16761_v39 = vsel %vm13620_vm1, %v8288_v45, -1e+30 }
0x17d4   :  { %v8327_v38 = vsel %vm1003_vm2, %v16761_v39, -inf  ;;  %v11894_v7 = vpop.f32.mrf.mxu1 }
0x17d5   :  { %8328 = vmax.xlane.f32.xlu0 %v8327_v38  ;;  %v16781_v21 = vsel %vm13641_vm5, %v11894_v7, -1e+30 }
0x17d6   :  { %v8291_v63 = vpop.f32.mrf.mxu1  ;;  %v8336_v13 = vsel %vm1003_vm2, %v16781_v21, -inf }
0x17d7   :  { %v16771_v50 = vsel %vm13635_vm4, %v8291_v63, -1e+30  ;;  %11844 = vmatmul.mubr.msk.bf16.gmra.mxu0 %vm760_vm0, %v7778_v57 }
0x17d8   :  { %v8330_v12 = vsel %vm1003_vm2, %v16771_v50, -inf  ;;  %11847 = vmatprep.mubr.msk.bf16.mxu0 %vm760_vm0, %v7780_v28  ;;  %v11897_v3 = vpop.f32.mrf.mxu1 }
0x17d9   :  { %8334 = vmax.xlane.f32.xlu0 %v8333_v29  ;;  %8331 = vmax.xlane.f32.xlu1 %v8330_v12  ;;  %v16793_v18 = vsel %vm13668_vm8, %v11897_v3, -1e+30 }
0x17da   :  { %v8304_v19 = vpop.f32.mrf.mxu1  ;;  %v8345_v16 = vsel %vm1003_vm2, %v16793_v18, -inf }
0x17db   :  { %v16785_v15 = vsel %vm13652_vm6, %v8304_v19, -1e+30 }
0x17dc   :  { %v8339_v27 = vsel %vm1003_vm2, %v16785_v15, -inf  ;;  %v11898_v49 = vpop.f32.mrf.mxu1 }
0x17dd   :  { %8337 = vmax.xlane.f32.xlu1 %v8336_v13  ;;  %8340 = vmax.xlane.f32.xlu0 %v8339_v27  ;;  %v16806_v4 = vsel %vm13672_vm9, %v11898_v49, -1e+30 }
0x17de   :  { %v8307_v40 = vpop.f32.mrf.mxu1  ;;  %v8348_v48 = vsel %vm1003_vm2, %v16806_v4, -inf }
0x17df   :  { %v16797_v41 = vsel %vm13660_vm7, %v8307_v40, -1e+30  ;;  %11848 = vmatmul.mubr.msk.bf16.gmra.mxu0 %vm760_vm0, %v7782_v32  ;;  %v17833_v40 = vld [vmem:[#allocation55_spill] sm:$0xff] }
0x17e0   :  { %v8342_v30 = vsel %vm1003_vm2, %v16797_v41, -inf }
0x17e1   :  { %8346 = vmax.xlane.f32.xlu0 %v8345_v16  ;;  %8343 = vmax.xlane.f32.xlu1 %v8342_v30  ;;  %v8039_v24 = vpop.xlane.xlu0 %8038  ;;  %v6641_v16 = vadd.f32 %v16431_v17, %v17833_v40 }
0x17e2   :  { %v8061_v53 = vsub.f32 %v16678_v14, %v8039_v24  ;;  %v17834_v24 = vld [vmem:[#allocation56_spill] sm:$0xff] }
0x17e4   :  { %v8069_v58 = vmul.f32 1.442695, %v8061_v53  ;;  %v6633_v53 = vadd.f32 %v16433_v36, %v17834_v24 }
0x17e5   :  { %8349 = vmax.xlane.f32.xlu1 %v8348_v48  ;;  %v8045_v62 = vpop.xlane.xlu0 %8044 }
0x17e6   :  { %12814 = vpow2.f32 %v8069_v58  ;;  %v8063_v5 = vsub.f32 %v16684_v35, %v8045_v62  ;;  %v17835_v62 = vld [vmem:[#allocation57_spill] sm:$0xff] }
0x17e8   :  { %v8073_v8 = vmul.f32 1.442695, %v8063_v5  ;;  %v6644_v5 = vadd.f32 %v16435_v54, %v17835_v62 }
0x17e9   :  { %v8048_v61 = vpop.xlane.xlu0 %8047 }
0x17ea   :  { %12816 = vpow2.f32 %v8073_v8  ;;  %v8064_v60 = vsub.f32 %v16690_v10, %v8048_v61 }
0x17ec   :  { %v8075_v31 = vmul.f32 1.442695, %v8064_v60 }
0x17ed   :  { %v8051_v46 = vpop.xlane.xlu0 %8050 }
0x17ee   :  { %v8065_v25 = vsub.f32 %v16696_v56, %v8051_v46 }
0x17f0   :  { %v8077_v26 = vmul.f32 1.442695, %v8065_v25 }
0x17f1   :  { %v8042_v23 = vpop.xlane.xlu1 %8041  ;;  %v8057_v14 = vpop.xlane.xlu0 %8056 }
0x17f2   :  { %12818 = vpow2.f32 %v8077_v26  ;;  %v8062_v51 = vsub.f32 %v16702_v43, %v8042_v23  ;;  %v8067_v33 = vsub.f32 %v16706_v59, %v8057_v14  ;;  %v17836_v26 = vld [vmem:[#allocation59_spill] sm:$0xff] }
0x17f3   :  { %v16816_v22 = vpop.eup %12814  ;;  %v6657_v23 = vadd.f32 %v16439_v42, %v17836_v26 }
0x17f4   :  { %v8071_v35 = vmul.f32 1.442695, %v8062_v51  ;;  %v8081_v34 = vmul.f32 1.442695, %v8067_v33  ;;  %v8085_v9 = vsel %vm1003_vm2, %v16816_v22, 0.0  ;;  %v17837_v51 = vld [vmem:[#allocation60_spill] sm:$0xff] }
0x17f5   :  { %v8054_v45 = vpop.xlane.xlu1 %8053  ;;  %8086 = vadd.xlane.f32.xlu0 %v8085_v9  ;;  %v6649_v33 = vadd.f32 %v16441_v11, %v17837_v51 }
0x17f6   :  { %12820 = vpow2.f32 %v8071_v35  ;;  %v8066_v10 = vsub.f32 %v16714_v47, %v8054_v45 }
0x17f7   :  { %v16821_v56 = vpop.eup %12816  ;;  %12822 = vpow2.f32 %v8081_v34 }
0x17f8   :  { %12824 = vpow2.f32 %v8075_v31  ;;  %v8079_v43 = vmul.f32 1.442695, %v8066_v10  ;;  %v8091_v59 = vsel %vm1003_vm2, %v16821_v56, 0.0  ;;  %v17838_v10 = vld [vmem:[#allocation61_spill] sm:$0xff] }
0x17f9   :  { %v8060_v38 = vpop.xlane.xlu1 %8059  ;;  %8092 = vadd.xlane.f32.xlu0 %v8091_v59 }
0x17fa   :  { %v8068_v7 = vsub.f32 %v16720_v1, %v8060_v38  ;;  %12826 = vpow2.f32 %v8079_v43 }
0x17fc   :  { %v8083_v57 = vmul.f32 1.442695, %v8068_v7 }
0x17fe   :  { %12828 = vpow2.f32 %v8083_v57 }
0x17ff   :  { %v16826_v63 = vpop.eup %12818 }
0x1800   :  { %v8097_v47 = vsel %vm1003_vm2, %v16826_v63, 0.0 }
0x1801   :  { %8098 = vadd.xlane.f32.xlu0 %v8097_v47 }
0x1803   :  { %v16830_v28 = vpop.eup %12820 }
0x1804   :  { %v16832_v29 = vpop.eup %12822  ;;  %v8088_v12 = vsel %vm1003_vm2, %v16830_v28, 0.0 }
0x1805   :  { %v16836_v3 = vpop.eup %12824  ;;  %8089 = vadd.xlane.f32.xlu1 %v8088_v12  ;;  %v8103_v1 = vsel %vm1003_vm2, %v16832_v29, 0.0 }
0x1806   :  { %8104 = vadd.xlane.f32.xlu0 %v8103_v1  ;;  %v8094_v19 = vsel %vm1003_vm2, %v16836_v3, 0.0 }
0x1807   :  { %v16842_v13 = vpop.eup %12826 }
0x1808   :  { %v8100_v27 = vsel %vm1003_vm2, %v16842_v13, 0.0 }
0x1809   :  { %8095 = vadd.xlane.f32.xlu1 %v8094_v19 }
0x180b   :  { %v16846_v49 = vpop.eup %12828 }
0x180c   :  { %v8106_v32 = vsel %vm1003_vm2, %v16846_v49, 0.0 }
0x180d   :  { %8101 = vadd.xlane.f32.xlu1 %v8100_v27 }
0x1811   :  { %8107 = vadd.xlane.f32.xlu1 %v8106_v32 }
0x184f   :  { %v11793_v30 = vpop.f32.mrf.mxu0 }
0x1850   :  { %v16854_v48 = vadd.f32 %v11793_v30, %v6641_v16 }
0x1851   :  { %v7438_v58 = vpop.f32.mrf.mxu0 }
0x1852   :  { %v16858_v8 = vadd.f32 %v7438_v58, %v6633_v53 }
0x1853   :  { %v11794_v61 = vpop.f32.mrf.mxu0 }
0x1854   :  { %v16860_v46 = vadd.f32 %v11794_v61, %v6644_v5 }
0x1855   :  { %v16862_v60 = vpop.f32.mrf.mxu0 }
0x185e   :  { %v8329_v25 = vpop.xlane.xlu0 %8328 }
0x185f   :  { %v8351_v17 = vsub.f32 %v16761_v39, %v8329_v25  ;;  %v6660_v39 = vadd.f32 %v16443_v2, %v17838_v10 }
0x1861   :  { %v8359_v36 = vmul.f32 1.442695, %v8351_v17  ;;  %v11797_v14 = vpop.f32.mrf.mxu0 }
0x1862   :  { %v16869_v31 = vadd.f32 %v11797_v14, %v6657_v23  ;;  %v8332_v54 = vpop.xlane.xlu1 %8331  ;;  %v8335_v35 = vpop.xlane.xlu0 %8334 }
0x1863   :  { %12830 = vpow2.f32 %v8359_v36  ;;  %v8352_v34 = vsub.f32 %v16771_v50, %v8332_v54  ;;  %v8353_v9 = vsub.f32 %v16767_v52, %v8335_v35  ;;  %v7454_v45 = vpop.f32.mrf.mxu0 }
0x1864   :  { %v16875_v43 = vadd.f32 %v7454_v45, %v6649_v33 }
0x1865   :  { %v8361_v42 = vmul.f32 1.442695, %v8352_v34  ;;  %v8363_v59 = vmul.f32 1.442695, %v8353_v9  ;;  %v11798_v38 = vpop.f32.mrf.mxu0 }
0x1866   :  { %v16877_v7 = vadd.f32 %v11798_v38, %v6660_v39  ;;  %v8338_v11 = vpop.xlane.xlu1 %8337  ;;  %v8341_v57 = vpop.xlane.xlu0 %8340 }
0x1867   :  { %12832 = vpow2.f32 %v8361_v42  ;;  %v8354_v47 = vsub.f32 %v16781_v21, %v8338_v11  ;;  %v8355_v50 = vsub.f32 %v16785_v15, %v8341_v57  ;;  %v16883_v32 = vpop.f32.mrf.mxu0 }
0x1868   :  { %12834 = vpow2.f32 %v8363_v59 }
0x1869   :  { %v8365_v52 = vmul.f32 1.442695, %v8354_v47  ;;  %v8367_v12 = vmul.f32 1.442695, %v8355_v50 }
0x186a   :  { %v8344_v1 = vpop.xlane.xlu1 %8343  ;;  %v8347_v19 = vpop.xlane.xlu0 %8346 }
0x186b   :  { %12836 = vpow2.f32 %v8365_v52  ;;  %v8356_v2 = vsub.f32 %v16797_v41, %v8344_v1  ;;  %v8357_v27 = vsub.f32 %v16793_v18, %v8347_v19 }
0x186c   :  { %12838 = vpow2.f32 %v8367_v12 }
0x186d   :  { %v8369_v40 = vmul.f32 1.442695, %v8356_v2  ;;  %v8371_v16 = vmul.f32 1.442695, %v8357_v27 }
0x186e   :  { %v8350_v30 = vpop.xlane.xlu1 %8349 }
0x186f   :  { %12840 = vpow2.f32 %v8369_v40  ;;  %v8358_v21 = vsub.f32 %v16806_v4, %v8350_v30  ;;  %v11825_v15 = vpop.f32.mrf.mxu0 }
0x1870   :  { %v16886_v24 = vpop.eup %12830  ;;  %12842 = vpow2.f32 %v8371_v16  ;;  %v16889_v53 = vadd.f32 %v11825_v15, %v16447_v44 }
0x1871   :  { %v8373_v58 = vmul.f32 1.442695, %v8358_v21  ;;  %v7728_v41 = vpop.f32.mrf.mxu0  ;;  %v8375_v18 = vsel %vm1003_vm2, %v16886_v24, 0.0 }
0x1872   :  { %v16894_v62 = vadd.f32 %v7728_v41, %v16449_v37  ;;  %8376 = vadd.xlane.f32.xlu0 %v8375_v18 }
0x1873   :  { %12844 = vpow2.f32 %v8373_v58  ;;  %v11826_v5 = vpop.f32.mrf.mxu0 }
0x1874   :  { %v16896_v61 = vpop.eup %12832  ;;  %v16899_v4 = vadd.f32 %v11826_v5, %v16451_v6 }
0x1875   :  { %v16901_v25 = vpop.eup %12834  ;;  %v8378_v44 = vsel %vm1003_vm2, %v16896_v61, 0.0  ;;  %v16919_v51 = vpop.f32.mrf.mxu0 }
0x1876   :  { %8379 = vadd.xlane.f32.xlu1 %v8378_v44  ;;  %v8381_v17 = vsel %vm1003_vm2, %v16901_v25, 0.0 }
0x1877   :  { %8382 = vadd.xlane.f32.xlu0 %v8381_v17 }
0x1878   :  { %v16907_v37 = vpop.eup %12836 }
0x1879   :  { %v16909_v26 = vpop.eup %12838  ;;  %v8384_v23 = vsel %vm1003_vm2, %v16907_v37, 0.0 }
0x187a   :  { %8385 = vadd.xlane.f32.xlu1 %v8384_v23  ;;  %v8387_v6 = vsel %vm1003_vm2, %v16909_v26, 0.0 }
0x187b   :  { %8388 = vadd.xlane.f32.xlu0 %v8387_v6 }
0x187c   :  { %v16915_v36 = vpop.eup %12840 }
0x187d   :  { %v16917_v14 = vpop.eup %12842  ;;  %v8390_v33 = vsel %vm1003_vm2, %v16915_v36, 0.0 }
0x187e   :  { %8391 = vadd.xlane.f32.xlu1 %v8390_v33  ;;  %v8393_v54 = vsel %vm1003_vm2, %v16917_v14, 0.0  ;;  %v8087_v11 = vpop.xlane.xlu0 %8086 }
0x187f   :  { %8394 = vadd.xlane.f32.xlu0 %v8393_v54  ;;  %v11829_v35 = vpop.f32.mrf.mxu0  ;;  %12846 = vrcp.f32 %v8087_v11 }
0x1880   :  { %v16925_v34 = vpop.eup %12844  ;;  %v16928_v9 = vadd.f32 %v11829_v35, %v16455_v0 }
0x1881   :  { %v7744_v45 = vpop.f32.mrf.mxu0  ;;  %v8396_v10 = vsel %vm1003_vm2, %v16925_v34, 0.0 }
0x1882   :  { %v16933_v39 = vadd.f32 %v7744_v45, %v16457_v20  ;;  %8397 = vadd.xlane.f32.xlu1 %v8396_v10  ;;  %v8093_v0 = vpop.xlane.xlu0 %8092 }
0x1883   :  { %v11830_v42 = vpop.f32.mrf.mxu0 }
0x1884   :  { %v16936_v59 = vadd.f32 %v11830_v42, %v16459_v55 }
0x1885   :  { %v16938_v38 = vpop.f32.mrf.mxu0 }
0x1887   :  { %v11837_v57 = vpop.f32.mrf.mxu0 }
0x1889   :  { %v7853_v47 = vpop.f32.mrf.mxu0 }
0x188a   :  { %v8099_v19 = vpop.xlane.xlu0 %8098 }
0x188b   :  { %v11838_v50 = vpop.f32.mrf.mxu0 }
0x188c   :  { %v12847_v41 = vpop.eup %12846  ;;  %v7917_v18 = vpack.c.bf16 %v11838_v50, %v11837_v57 }
0x188d   :  { %v7856_v52 = vpop.f32.mrf.mxu0  ;;  %v8117_v6 = vmul.f32 %v12847_v41, %v16816_v22 }
0x188e   :  { %v8090_v12 = vpop.xlane.xlu1 %8089  ;;  %v7916_v35 = vpack.c.bf16 %v7856_v52, %v7853_v47 }
0x188f   :  { %12848 = vrcp.f32 %v8090_v12  ;;  %v11841_v1 = vpop.f32.mrf.mxu0  ;;  %v8105_v16 = vpop.xlane.xlu0 %8104 }
0x1890   :  { %12850 = vrcp.f32 %v8093_v0 }
0x1891   :  { %v7869_v20 = vpop.f32.mrf.mxu0 }
0x1892   :  { %v8096_v2 = vpop.xlane.xlu1 %8095 }
0x1893   :  { %12852 = vrcp.f32 %v8096_v2  ;;  %v11842_v27 = vpop.f32.mrf.mxu0 }
0x1894   :  { %v7919_v55 = vpack.c.bf16 %v11842_v27, %v11841_v1  ;;  %12854 = vrcp.f32 %v8099_v19 }
0x1895   :  { %v7872_v40 = vpop.f32.mrf.mxu0 }
0x1896   :  { %v7918_v30 = vpack.c.bf16 %v7872_v40, %v7869_v20  ;;  %11867 = vmatprep.subr.bf16.mxu0 %v7919_v55  ;;  %v8102_v21 = vpop.xlane.xlu1 %8101 }
0x1897   :  { %12856 = vrcp.f32 %v8102_v21  ;;  %v11845_v15 = vpop.f32.mrf.mxu0  ;;  %11868 = vmatpush3.bf16.msra.mxu0 %v7919_v55 }
0x1898   :  { %11869 = vmatprep.subr.bf16.mxu0 %v7918_v30  ;;  %12858 = vrcp.f32 %v8105_v16 }
0x1899   :  { %v7885_v58 = vpop.f32.mrf.mxu0 }
0x189a   :  { %v8108_v5 = vpop.xlane.xlu1 %8107 }
0x189b   :  { %12860 = vrcp.f32 %v8108_v5  ;;  %v11846_v44 = vpop.f32.mrf.mxu0  ;;  %11870 = vmatpush3.bf16.msra.mxu0 %v7918_v30 }
0x189c   :  { %v12849_v17 = vpop.eup %12848  ;;  %11871 = vmatprep.subr.bf16.mxu0 %v7917_v18  ;;  %v7921_v40 = vpack.c.bf16 %v11846_v44, %v11845_v15 }
0x189d   :  { %v7888_v23 = vpop.f32.mrf.mxu0  ;;  %v8118_v33 = vmul.f32 %v12849_v17, %v16830_v28  ;;  %v12851_v54 = vpop.eup %12850 }
0x189e   :  { %v8119_v11 = vmul.f32 %v12851_v54, %v16821_v56 }
0x189f   :  { %v11849_v45 = vpop.f32.mrf.mxu0  ;;  %11872 = vmatpush3.bf16.msra.mxu0 %v7917_v18  ;;  %v8125_v10 = vpack.c.bf16 %v8118_v33, %v8117_v6 }
0x18a0   :  { %v12853_v42 = vpop.eup %12852  ;;  %11873 = vmatprep.subr.bf16.mxu0 %v7916_v35 }
0x18a1   :  { %v8120_v57 = vmul.f32 %v12853_v42, %v16836_v3  ;;  %v7901_v50 = vpop.f32.mrf.mxu0  ;;  %11875 = vmatprep.mubr.msk.bf16.mxu0 %vm1003_vm2, %v8125_v10  ;;  %v12855_v0 = vpop.eup %12854 }
0x18a2   :  { %v8121_v47 = vmul.f32 %v12855_v0, %v16826_v63 }
0x18a3   :  { %v8126_v12 = vpack.c.bf16 %v8120_v57, %v8119_v11  ;;  %v11850_v1 = vpop.f32.mrf.mxu0  ;;  %11874 = vmatpush3.bf16.msra.mxu0 %v7916_v35 }
0x18a4   :  { %v12857_v22 = vpop.eup %12856  ;;  %v7923_v28 = vpack.c.bf16 %v11850_v1, %v11849_v45 }
0x18a5   :  { %v7904_v19 = vpop.f32.mrf.mxu0  ;;  %v8122_v52 = vmul.f32 %v12857_v22, %v16842_v13  ;;  %v12859_v20 = vpop.eup %12858  ;;  %v7920_v13 = vpack.c.bf16 %v7888_v23, %v7885_v58 }
0x18a6   :  { %v7922_v2 = vpack.c.bf16 %v7904_v19, %v7901_v50  ;;  %11876 = vmatmul.mubr.msk.bf16.vlgmr.msra.gmra.mxu0 %vm1003_vm2, %v8126_v12  ;;  %11899 = vmatprep.subr.bf16.mxu0 %v7923_v28  ;;  %v8123_v27 = vmul.f32 %v12859_v20, %v16832_v29  ;;  %v17839_v12 = vmov 0  }
0x18a7   :  { %11900 = vmatpush3.bf16.msra.mxu0 %v7923_v28  ;;  %v8127_v56 = vpack.c.bf16 %v8122_v52, %v8121_v47  ;;  %v17840_v28 = vld [vmem:[#allocation58_spill] sm:$0xff] }
0x18a8   :  { %v12861_v3 = vpop.eup %12860  ;;  %11901 = vmatprep.subr.bf16.mxu0 %v7922_v2 }
0x18a9   :  { %11879 = vmatprep.mubr.msk.bf16.mxu0 %vm1003_vm2, %v8127_v56  ;;  %v8124_v55 = vmul.f32 %v12861_v3, %v16846_v49  ;;  %v16975_v3 = vld [vmem:[%s17544_s5 + $0x1] ss:$0 sm:$0xff] }
0x18ab   :  { %11902 = vmatpush3.bf16.msra.mxu0 %v7922_v2  ;;  %v8128_v63 = vpack.c.bf16 %v8124_v55, %v8123_v27  ;;  %v17843_v27 = vld [vmem:[#allocation12_spill] sm:$0xff] }
0x18ac   :  { %11903 = vmatprep.subr.bf16.mxu0 %v7921_v40 }
0x18ae   :  { %11880 = vmatmul.mubr.msk.bf16.gmra.mxu0 %vm1003_vm2, %v8128_v63  ;;  %v17844_v63 = vld [vmem:[#allocation15_spill] sm:$0xff] }
0x18af   :  { %11904 = vmatpush3.bf16.msra.mxu0 %v7921_v40 }
0x18b0   :  { %11905 = vmatprep.subr.bf16.mxu0 %v7920_v13 }
0x18b3   :  { %11906 = vmatpush3.bf16.msra.mxu0 %v7920_v13 }
0x18fb   :  { %v8377_v16 = vpop.xlane.xlu0 %8376 }
0x18fc   :  { %12862 = vrcp.f32 %v8377_v16  ;;  %v17846_v16 = vld [vmem:[#allocation21_spill] sm:$0xff] }
0x18ff   :  { %v8380_v30 = vpop.xlane.xlu1 %8379 }
0x1900   :  { %12864 = vrcp.f32 %v8380_v30  ;;  %v8383_v21 = vpop.xlane.xlu0 %8382  ;;  %v17847_v30 = vld [vmem:[#allocation16_spill] sm:$0xff] }
0x1901   :  { %12866 = vrcp.f32 %v8383_v21 }
0x1903   :  { %v8386_v41 = vpop.xlane.xlu1 %8385 }
0x1904   :  { %12868 = vrcp.f32 %v8386_v41  ;;  %v8389_v29 = vpop.xlane.xlu0 %8388 }
0x1905   :  { %12870 = vrcp.f32 %v8389_v29 }
0x1907   :  { %v8392_v49 = vpop.xlane.xlu1 %8391 }
0x1908   :  { %12872 = vrcp.f32 %v8392_v49  ;;  %v8395_v15 = vpop.xlane.xlu0 %8394 }
0x1909   :  { %12874 = vrcp.f32 %v8395_v15  ;;  %v12863_v58 = vpop.eup %12862 }
0x190a   :  { %v8407_v44 = vmul.f32 %v12863_v58, %v16886_v24 }
0x190b   :  { %v8398_v18 = vpop.xlane.xlu1 %8397 }
0x190c   :  { %12876 = vrcp.f32 %v8398_v18 }
0x190d   :  { %v12865_v5 = vpop.eup %12864 }
0x190e   :  { %v8408_v17 = vmul.f32 %v12865_v5, %v16896_v61  ;;  %v12867_v23 = vpop.eup %12866 }
0x190f   :  { %v8409_v54 = vmul.f32 %v12867_v23, %v16901_v25 }
0x1910   :  { %v8415_v6 = vpack.c.bf16 %v8408_v17, %v8407_v44  ;;  %v17848_v44 = vld [vmem:[#allocation14_spill] sm:$0xff] }
0x1911   :  { %v12869_v33 = vpop.eup %12868 }
0x1912   :  { %v8410_v35 = vmul.f32 %v12869_v33, %v16907_v37  ;;  %11907 = vmatprep.mubr.msk.bf16.mxu0 %vm1003_vm2, %v8415_v6  ;;  %v12871_v45 = vpop.eup %12870 }
0x1913   :  { %v8411_v11 = vmul.f32 %v12871_v45, %v16909_v26  ;;  %v17841_v26 = vld [vmem:[#allocation47_spill] sm:$0xff] }
0x1914   :  { %v8416_v10 = vpack.c.bf16 %v8410_v35, %v8409_v54  ;;  %v6636_v19 = vadd.f32 %v17841_v26, %v17840_v28  ;;  %v17850_v45 = vld [vmem:[#allocation19_spill] sm:$0xff] }
0x1915   :  { %v12873_v42 = vpop.eup %12872 }
0x1916   :  { %11908 = vmatmul.mubr.msk.bf16.vlgmr.msra.gmra.mxu0 %vm1003_vm2, %v8416_v10  ;;  %v8412_v24 = vmul.f32 %v12873_v42, %v16915_v36  ;;  %v12875_v57 = vpop.eup %12874  ;;  %v7470_v20 = vadd.f32 %v16862_v60, %v6636_v19  ;;  %v17845_v60 = vld [vmem:[#allocation62_spill] sm:$0xff] }
0x1917   :  { %v8413_v25 = vmul.f32 %v12875_v57, %v16917_v14  ;;  %v17842_v14 = vld [vmem:[#allocation25_spill] sm:$0xff]  ;;  %v17851_v10 = vld [vmem:[#allocation18_spill] sm:$0xff] }
0x1918   :  { %v8417_v61 = vpack.c.bf16 %v8412_v24, %v8411_v11 }
0x1919   :  { %v12877_v50 = vpop.eup %12876 }
0x191a   :  { %11911 = vmatprep.mubr.msk.bf16.mxu0 %vm1003_vm2, %v8417_v61  ;;  %v8414_v37 = vmul.f32 %v12877_v50, %v16925_v34 }
0x191c   :  { %v8418_v0 = vpack.c.bf16 %v8414_v37, %v8413_v25 }
0x191e   :  { %11912 = vmatmul.mubr.msk.bf16.gmra.mxu0 %vm1003_vm2, %v8418_v0  ;;  %v17852_v0 = vld [vmem:[#allocation48_spill] sm:$0xff] }
0x191f   :  { %9024 = vmatprep.mubr.bf16.mxu0 %v17839_v12 }
0x1966   :  { %v11877_v1 = vpop.f32.mrf.mxu0 }
0x1967   :  { %v8208_v36 = vadd.f32 %v11877_v1, %v16854_v48  ;;  %v7760_v1 = vadd.f32 %v16919_v51, %v17852_v0 }
0x1968   :  { %v8175_v22 = vpop.f32.mrf.mxu0 }
0x1969   :  { %v8206_v47 = vadd.f32 %v8175_v22, %v16858_v8  ;;  %v8506_v55 = vadd.f32 %v8208_v36, %v17843_v27  ;;  %v17853_v22 = vld [vmem:[#allocation29_spill] sm:$0xff]  ;;  %v17854_v36 = vld [vmem:[#allocation27_spill] sm:$0xff] }
0x196a   :  { %v11878_v52 = vpop.f32.mrf.mxu0 }
0x196b   :  { %v8504_v2 = vadd.f32 %v8206_v47, %v17842_v14  ;;  %v8209_v34 = vadd.f32 %v11878_v52, %v16860_v46  ;;  %v6652_v46 = vadd.f32 %v17846_v16, %v17845_v60  ;;  %v16989_v15 = vadd.f32 %v16975_v3, %v8506_v55 }
0x196c   :  { %v8178_v56 = vpop.f32.mrf.mxu0 }
0x196d   :  { %v8207_v40 = vadd.f32 %v8178_v56, %v7470_v20  ;;  %v16979_v48 = vadd.f32 %v16975_v3, %v8504_v2  ;;  %v8507_v21 = vadd.f32 %v8209_v34, %v17847_v30  ;;  %v7474_v5 = vadd.f32 %v16883_v32, %v6652_v46  ;;  %v17855_v2 = vld [vmem:[#allocation30_spill] sm:$0xff] }
0x196e   :  { %v11881_v8 = vpop.f32.mrf.mxu0 }
0x196f   :  { %v8505_v13 = vadd.f32 %v8207_v40, %v17844_v63  ;;  %8548 = vadd.xlane.f32.xlu0 %v16979_v48  ;;  %v8212_v29 = vadd.f32 %v11881_v8, %v16869_v31  ;;  %v16999_v31 = vadd.f32 %v16975_v3, %v8507_v21  ;;  %v17857_v8 = vld [vmem:[#allocation13_spill] sm:$0xff] }
0x1970   :  { %v8191_v41 = vpop.f32.mrf.mxu0  ;;  %v7764_v63 = vadd.f32 %v16938_v38, %v17857_v8  ;;  %v12190_v8 = vld [vmem:[%s17547_s8 + $0x1c4] ss:$16 sps:$4 sm:$0xff]  }
0x1971   :  { %v8210_v49 = vadd.f32 %v8191_v41, %v16875_v43  ;;  %v16992_v58 = vadd.f32 %v16975_v3, %v8505_v13  ;;  %v17849_v43 = vld [vmem:[#allocation17_spill] sm:$0xff]  ;;  %v17858_v13 = vld [vmem:[#allocation28_spill] sm:$0xff] }
0x1972   :  { %v11882_v18 = vpop.f32.mrf.mxu0  ;;  %v8510_v6 = vadd.f32 %v8212_v29, %v17849_v43  ;;  %v17860_v29 = vld [vmem:[#allocation40_spill] sm:$0xff] }
0x1973   :  { %v8508_v17 = vadd.f32 %v8210_v49, %v17848_v44  ;;  %8552 = vadd.xlane.f32.xlu0 %v16989_v15  ;;  %8550 = vadd.xlane.f32.xlu1 %v16992_v58  ;;  %v8213_v33 = vadd.f32 %v11882_v18, %v16877_v7  ;;  %v17861_v49 = vld [vmem:[#allocation42_spill] sm:$0xff] }
0x1974   :  { %v8194_v23 = vpop.f32.mrf.mxu0  ;;  %v17011_v11 = vadd.f32 %v16975_v3, %v8510_v6 }
0x1975   :  { %v8211_v54 = vadd.f32 %v8194_v23, %v7474_v5  ;;  %v17004_v35 = vadd.f32 %v16975_v3, %v8508_v17  ;;  %v8511_v42 = vadd.f32 %v8213_v33, %v17851_v10 }
0x1977   :  { %v8509_v32 = vadd.f32 %v8211_v54, %v17850_v45  ;;  %8554 = vadd.xlane.f32.xlu1 %v16999_v31  ;;  %8556 = vadd.xlane.f32.xlu0 %v17004_v35  ;;  %v17019_v7 = vadd.f32 %v16975_v3, %v8511_v42  ;;  %v12182_v42 = vld [vmem:[%s17547_s8 + $0x1e0] ss:$16 sps:$4 sm:$0xff]  }
0x1979   :  { %v17014_v24 = vadd.f32 %v16975_v3, %v8509_v32 }
0x197b   :  { %8560 = vadd.xlane.f32.xlu0 %v17011_v11  ;;  %8558 = vadd.xlane.f32.xlu1 %v17014_v24 }
0x197f   :  { %8562 = vadd.xlane.f32.xlu1 %v17019_v7 }
0x19d6   :  { %v11909_v57 = vpop.f32.mrf.mxu0 }
0x19d7   :  { %v8498_v50 = vadd.f32 %v11909_v57, %v16889_v53  ;;  %v12184_v57 = vld [vmem:[%s17547_s8 + $0x1e4] ss:$16 sps:$4 sm:$0xff]  }
0x19d8   :  { %v8465_v61 = vpop.f32.mrf.mxu0  ;;  %8992 = vmatprep.subr.bf16.mxu0 %v12184_v57  ;;  %v12215_v57 = vld [vmem:[%s17547_s8 + $0x148] ss:$16 sps:$4 sm:$0xff]  }
0x19d9   :  { %v8496_v25 = vadd.f32 %v8465_v61, %v16894_v62  ;;  %v8514_v47 = vadd.f32 %v8498_v50, %v17854_v36  ;;  %v17856_v62 = vld [vmem:[#allocation26_spill] sm:$0xff]  ;;  %8993 = vmatpush1.bf16.msra.mxu0 %v12182_v42 }
0x19da   :  { %v11910_v37 = vpop.f32.mrf.mxu0  ;;  %8994 = vmatprep.subr.bf16.mxu0 %v12190_v8  ;;  %v12212_v42 = vld [vmem:[%s17547_s8 + $0x140] ss:$16 sps:$4 sm:$0xff]  }
0x19db   :  { %v8512_v28 = vadd.f32 %v8496_v25, %v17853_v22  ;;  %v8499_v26 = vadd.f32 %v11910_v37, %v16899_v4  ;;  %v17038_v4 = vadd.f32 %v16975_v3, %v8514_v47  ;;  %v12185_v25 = vld [vmem:[%s17547_s8 + $0x1e8] ss:$16 sps:$4 sm:$0xff]   ;;  %v12187_v37 = vld [vmem:[%s17547_s8 + $0x1ec] ss:$16 sps:$4 sm:$0xff]  }
0x19dc   :  { %v8468_v19 = vpop.f32.mrf.mxu0  ;;  %9105 = vmatprep.subr.bf16.mxu1 %v12187_v37  ;;  %v12221_v37 = vld [vmem:[%s17547_s8 + $0x128] ss:$16 sps:$4 sm:$0xff]  }
0x19dd   :  { %v8497_v52 = vadd.f32 %v8468_v19, %v7760_v1  ;;  %v17030_v20 = vadd.f32 %v16975_v3, %v8512_v28  ;;  %v8515_v34 = vadd.f32 %v8499_v26, %v17856_v62  ;;  %9106 = vmatpush1.bf16.msra.mxu1 %v12185_v25  ;;  %v12218_v25 = vld [vmem:[%s17547_s8 + $0x120] ss:$16 sps:$4 sm:$0xff]  }
0x19de   :  { %v11913_v14 = vpop.f32.mrf.mxu0 }
0x19df   :  { %v8513_v53 = vadd.f32 %v8497_v52, %v17855_v2  ;;  %8564 = vadd.xlane.f32.xlu0 %v17030_v20  ;;  %v8502_v51 = vadd.f32 %v11913_v14, %v16928_v9  ;;  %v17049_v9 = vadd.f32 %v16975_v3, %v8515_v34 }
0x19e0   :  { %v8481_v56 = vpop.f32.mrf.mxu0 }
0x19e1   :  { %v8500_v27 = vadd.f32 %v8481_v56, %v16933_v39  ;;  %v17041_v55 = vadd.f32 %v16975_v3, %v8513_v53  ;;  %v17859_v39 = vld [vmem:[#allocation41_spill] sm:$0xff] }
0x19e2   :  { %v11914_v40 = vpop.f32.mrf.mxu0  ;;  %v8518_v46 = vadd.f32 %v8502_v51, %v17859_v39 }
0x19e3   :  { %v8516_v60 = vadd.f32 %v8500_v27, %v17858_v13  ;;  %8568 = vadd.xlane.f32.xlu0 %v17038_v4  ;;  %8566 = vadd.xlane.f32.xlu1 %v17041_v55  ;;  %v8503_v30 = vadd.f32 %v11914_v40, %v16936_v59 }
0x19e4   :  { %v8484_v16 = vpop.f32.mrf.mxu0  ;;  %v17061_v5 = vadd.f32 %v16975_v3, %v8518_v46  ;;  %v12196_v46 = vld [vmem:[%s17547_s8 + $0x1a4] ss:$16 sps:$4 sm:$0xff]  }
0x19e5   :  { %v8501_v21 = vadd.f32 %v8484_v16, %v7764_v63  ;;  %v17054_v41 = vadd.f32 %v16975_v3, %v8516_v60  ;;  %v8519_v18 = vadd.f32 %v8503_v30, %v17861_v49  ;;  %v12193_v63 = vld [vmem:[%s17547_s8 + $0x1cc] ss:$16 sps:$4 sm:$0xff]   ;;  %v12188_v60 = vld [vmem:[%s17547_s8 + $0x1c0] ss:$16 sps:$4 sm:$0xff]   ;;  %v12191_v16 = vld [vmem:[%s17547_s8 + $0x1c8] ss:$16 sps:$4 sm:$0xff]  }
0x19e6   :  { %9107 = vmatprep.subr.bf16.mxu1 %v12193_v63  ;;  %8995 = vmatpush1.bf16.msra.mxu0 %v12188_v60  ;;  %v12199_v30 = vld [vmem:[%s17547_s8 + $0x1ac] ss:$16 sps:$4 sm:$0xff]  }
0x19e7   :  { %v8517_v38 = vadd.f32 %v8501_v21, %v17860_v29  ;;  %8570 = vadd.xlane.f32.xlu1 %v17049_v9  ;;  %8572 = vadd.xlane.f32.xlu0 %v17054_v41  ;;  %v17069_v59 = vadd.f32 %v16975_v3, %v8519_v18  ;;  %v12194_v21 = vld [vmem:[%s17547_s8 + $0x1a0] ss:$16 sps:$4 sm:$0xff]   ;;  %v12197_v29 = vld [vmem:[%s17547_s8 + $0x1a8] ss:$16 sps:$4 sm:$0xff]   ;;  %v12205_v49 = vld [vmem:[%s17547_s8 + $0x18c] ss:$16 sps:$4 sm:$0xff]  }
0x19e8   :  { %9108 = vmatpush1.bf16.msra.mxu1 %v12191_v16  ;;  %8996 = vmatprep.subr.bf16.mxu0 %v12196_v46  ;;  %v12200_v18 = vld [vmem:[%s17547_s8 + $0x180] ss:$16 sps:$4 sm:$0xff]  }
0x19e9   :  { %v17064_v44 = vadd.f32 %v16975_v3, %v8517_v38  ;;  %9109 = vmatprep.subr.bf16.mxu1 %v12199_v30  ;;  %v12202_v38 = vld [vmem:[%s17547_s8 + $0x184] ss:$16 sps:$4 sm:$0xff]  }
0x19ea   :  { %8997 = vmatpush1.bf16.msra.mxu0 %v12194_v21 }
0x19eb   :  { %8576 = vadd.xlane.f32.xlu0 %v17061_v5  ;;  %8574 = vadd.xlane.f32.xlu1 %v17064_v44 }
0x19ec   :  { %9110 = vmatpush1.bf16.msra.mxu1 %v12197_v29  ;;  %8998 = vmatprep.subr.bf16.mxu0 %v12202_v38 }
0x19ed   :  { %9111 = vmatprep.subr.bf16.mxu1 %v12205_v49 }
0x19ee   :  { %8999 = vmatpush1.bf16.msra.mxu0 %v12200_v18 }
0x19ef   :  { %8578 = vadd.xlane.f32.xlu1 %v17069_v59 }
0x19f8   :  { %v8549_v17 = vpop.xlane.xlu0 %8548 }
0x19f9   :  { %v8580_v23 = vmul.f32 0.0078125, %v8549_v17  ;;  %v12203_v17 = vld [vmem:[%s17547_s8 + $0x188] ss:$16 sps:$4 sm:$0xff]  }
0x19fa   :  { %9112 = vmatpush1.bf16.msra.mxu1 %v12203_v17 }
0x19fb   :  { %v17073_v43 = vsub.f32 %v16979_v48, %v8580_v23  ;;  %v12208_v23 = vld [vmem:[%s17547_s8 + $0x164] ss:$16 sps:$4 sm:$0xff]  }
0x19fc   :  { %v8551_v6 = vpop.xlane.xlu1 %8550  ;;  %v8553_v33 = vpop.xlane.xlu0 %8552  ;;  %9000 = vmatprep.subr.bf16.mxu0 %v12208_v23 }
0x19fd   :  { %v8581_v54 = vmul.f32 0.0078125, %v8551_v6  ;;  %v8582_v45 = vmul.f32 0.0078125, %v8553_v33  ;;  %v8612_v32 = vmul.f32 %v17073_v43, %v17073_v43  ;;  %v12211_v6 = vld [vmem:[%s17547_s8 + $0x16c] ss:$16 sps:$4 sm:$0xff]   ;;  %v12206_v33 = vld [vmem:[%s17547_s8 + $0x160] ss:$16 sps:$4 sm:$0xff]  }
0x19fe   :  { %9113 = vmatprep.subr.bf16.mxu1 %v12211_v6  ;;  %9001 = vmatpush1.bf16.msra.mxu0 %v12206_v33 }
0x19ff   :  { %v17078_v10 = vsub.f32 %v16992_v58, %v8581_v54  ;;  %v17081_v3 = vsub.f32 %v16989_v15, %v8582_v45  ;;  %8628 = vadd.xlane.f32.xlu0 %v8612_v32  ;;  %v12209_v54 = vld [vmem:[%s17547_s8 + $0x168] ss:$16 sps:$4 sm:$0xff]   ;;  %v12214_v45 = vld [vmem:[%s17547_s8 + $0x144] ss:$16 sps:$4 sm:$0xff]   ;;  %v12217_v32 = vld [vmem:[%s17547_s8 + $0x14c] ss:$16 sps:$4 sm:$0xff]  }
0x1a00   :  { %v8555_v61 = vpop.xlane.xlu1 %8554  ;;  %v8557_v50 = vpop.xlane.xlu0 %8556  ;;  %9114 = vmatpush1.bf16.msra.mxu1 %v12209_v54  ;;  %9002 = vmatprep.subr.bf16.mxu0 %v12214_v45 }
0x1a01   :  { %v8583_v0 = vmul.f32 0.0078125, %v8555_v61  ;;  %v8584_v1 = vmul.f32 0.0078125, %v8557_v50  ;;  %v8613_v22 = vmul.f32 %v17078_v10, %v17078_v10  ;;  %v8614_v28 = vmul.f32 %v17081_v3, %v17081_v3  ;;  %9115 = vmatprep.subr.bf16.mxu1 %v12217_v32  ;;  %v12220_v61 = vld [vmem:[%s17547_s8 + $0x124] ss:$16 sps:$4 sm:$0xff]   ;;  %v12223_v50 = vld [vmem:[%s17547_s8 + $0x12c] ss:$16 sps:$4 sm:$0xff]  }
0x1a02   :  { %9003 = vmatpush1.bf16.msra.mxu0 %v12212_v42 }
0x1a03   :  { %v17100_v26 = vsub.f32 %v16999_v31, %v8583_v0  ;;  %v17103_v19 = vsub.f32 %v17004_v35, %v8584_v1  ;;  %8630 = vadd.xlane.f32.xlu1 %v8613_v22  ;;  %8632 = vadd.xlane.f32.xlu0 %v8614_v28  ;;  %v12224_v0 = vld [vmem:[%s17547_s8 + $0x100] ss:$16 sps:$4 sm:$0xff]   ;;  %v12226_v1 = vld [vmem:[%s17547_s8 + $0x104] ss:$16 sps:$4 sm:$0xff]   ;;  %v12227_v22 = vld [vmem:[%s17547_s8 + $0x108] ss:$16 sps:$4 sm:$0xff]  }
0x1a04   :  { %v8559_v36 = vpop.xlane.xlu1 %8558  ;;  %v8561_v47 = vpop.xlane.xlu0 %8560  ;;  %9116 = vmatpush1.bf16.msra.mxu1 %v12215_v57  ;;  %9004 = vmatprep.subr.bf16.mxu0 %v12220_v61  ;;  %v12229_v28 = vld [vmem:[%s17547_s8 + $0x10c] ss:$16 sps:$4 sm:$0xff]  }
0x1a05   :  { %v8585_v52 = vmul.f32 0.0078125, %v8559_v36  ;;  %v8586_v14 = vmul.f32 0.0078125, %v8561_v47  ;;  %v8615_v2 = vmul.f32 %v17100_v26, %v17100_v26  ;;  %v8616_v53 = vmul.f32 %v17103_v19, %v17103_v19  ;;  %9117 = vmatprep.subr.bf16.mxu1 %v12223_v50 }
0x1a06   :  { %9005 = vmatpush1.bf16.msra.mxu0 %v12218_v25 }
0x1a07   :  { %v17110_v62 = vsub.f32 %v17014_v24, %v8585_v52  ;;  %v17113_v34 = vsub.f32 %v17011_v11, %v8586_v14  ;;  %8634 = vadd.xlane.f32.xlu1 %v8615_v2  ;;  %8636 = vadd.xlane.f32.xlu0 %v8616_v53 }
0x1a08   :  { %v8563_v56 = vpop.xlane.xlu1 %8562  ;;  %9118 = vmatpush1.bf16.msra.mxu1 %v12221_v37  ;;  %9006 = vmatprep.subr.bf16.mxu0 %v12226_v1 }
0x1a09   :  { %v8587_v51 = vmul.f32 0.0078125, %v8563_v56  ;;  %v8617_v27 = vmul.f32 %v17110_v62, %v17110_v62  ;;  %v8618_v40 = vmul.f32 %v17113_v34, %v17113_v34  ;;  %9119 = vmatprep.subr.bf16.mxu1 %v12229_v28 }
0x1a0a   :  { %9007 = vmatpush1.bf16.msra.mxu0 %v12224_v0 }
0x1a0b   :  { %v17126_v13 = vsub.f32 %v17019_v7, %v8587_v51  ;;  %8638 = vadd.xlane.f32.xlu1 %v8617_v27  ;;  %8640 = vadd.xlane.f32.xlu0 %v8618_v40 }
0x1a0c   :  { %9120 = vmatpush1.bf16.msra.mxu1 %v12227_v22 }
0x1a0d   :  { %v8619_v39 = vmul.f32 %v17126_v13, %v17126_v13 }
0x1a0f   :  { %8642 = vadd.xlane.f32.xlu1 %v8619_v39 }
0x1a68   :  { %v8565_v36 = vpop.xlane.xlu0 %8564 }
0x1a69   :  { %v8588_v47 = vmul.f32 0.0078125, %v8565_v36 }
0x1a6b   :  { %v17209_v52 = vsub.f32 %v17030_v20, %v8588_v47 }
0x1a6c   :  { %v8567_v14 = vpop.xlane.xlu1 %8566  ;;  %v8569_v2 = vpop.xlane.xlu0 %8568 }
0x1a6d   :  { %v8589_v53 = vmul.f32 0.0078125, %v8567_v14  ;;  %v8590_v56 = vmul.f32 0.0078125, %v8569_v2  ;;  %v8620_v51 = vmul.f32 %v17209_v52, %v17209_v52 }
0x1a6f   :  { %v17214_v27 = vsub.f32 %v17041_v55, %v8589_v53  ;;  %v17217_v40 = vsub.f32 %v17038_v4, %v8590_v56  ;;  %8644 = vadd.xlane.f32.xlu0 %v8620_v51 }
0x1a70   :  { %v8571_v8 = vpop.xlane.xlu1 %8570  ;;  %v8573_v63 = vpop.xlane.xlu0 %8572 }
0x1a71   :  { %v8591_v60 = vmul.f32 0.0078125, %v8571_v8  ;;  %v8592_v16 = vmul.f32 0.0078125, %v8573_v63  ;;  %v8621_v39 = vmul.f32 %v17214_v27, %v17214_v27  ;;  %v8622_v46 = vmul.f32 %v17217_v40, %v17217_v40 }
0x1a73   :  { %v17224_v30 = vsub.f32 %v17049_v9, %v8591_v60  ;;  %v17227_v21 = vsub.f32 %v17054_v41, %v8592_v16  ;;  %8646 = vadd.xlane.f32.xlu1 %v8621_v39  ;;  %8648 = vadd.xlane.f32.xlu0 %v8622_v46 }
0x1a74   :  { %v8575_v29 = vpop.xlane.xlu1 %8574  ;;  %v8577_v38 = vpop.xlane.xlu0 %8576 }
0x1a75   :  { %v8593_v49 = vmul.f32 0.0078125, %v8575_v29  ;;  %v8594_v18 = vmul.f32 0.0078125, %v8577_v38  ;;  %v8623_v17 = vmul.f32 %v17224_v30, %v17224_v30  ;;  %v8624_v23 = vmul.f32 %v17227_v21, %v17227_v21 }
0x1a77   :  { %v17234_v6 = vsub.f32 %v17064_v44, %v8593_v49  ;;  %v17237_v33 = vsub.f32 %v17061_v5, %v8594_v18  ;;  %8650 = vadd.xlane.f32.xlu1 %v8623_v17  ;;  %8652 = vadd.xlane.f32.xlu0 %v8624_v23  ;;  %v17252_v17 = vld [vmem:[%s17545_s6 + $0x1] ss:$0 sm:$0xff] }
0x1a78   :  { %v8579_v54 = vpop.xlane.xlu1 %8578 }
0x1a79   :  { %v8595_v45 = vmul.f32 0.0078125, %v8579_v54  ;;  %v8625_v32 = vmul.f32 %v17234_v6, %v17234_v6  ;;  %v8626_v42 = vmul.f32 %v17237_v33, %v17237_v33 }
0x1a7b   :  { %v17244_v57 = vsub.f32 %v17069_v59, %v8595_v45  ;;  %8654 = vadd.xlane.f32.xlu1 %v8625_v32  ;;  %8656 = vadd.xlane.f32.xlu0 %v8626_v42 }
0x1a7d   :  { %v8627_v61 = vmul.f32 %v17244_v57, %v17244_v57 }
0x1a7f   :  { %8658 = vadd.xlane.f32.xlu1 %v8627_v61 }
0x1a88   :  { %v8629_v50 = vpop.xlane.xlu0 %8628 }
0x1a89   :  { %v8660_v25 = vmul.f32 0.0078125, %v8629_v50  ;;  %v17259_v50 = vld [vmem:[%s17546_s7 + $0x1] ss:$0 sm:$0xff] }
0x1a8b   :  { %v8676_v37 = vadd.f32 1e-05, %v8660_v25 }
0x1a8c   :  { %v8631_v0 = vpop.xlane.xlu1 %8630  ;;  %v8633_v1 = vpop.xlane.xlu0 %8632 }
0x1a8d   :  { %12878 = vrsqrt.f32 %v8676_v37  ;;  %v8661_v22 = vmul.f32 0.0078125, %v8631_v0  ;;  %v8662_v28 = vmul.f32 0.0078125, %v8633_v1 }
0x1a8f   :  { %v8677_v36 = vadd.f32 1e-05, %v8661_v22  ;;  %v8678_v47 = vadd.f32 1e-05, %v8662_v28 }
0x1a90   :  { %v8635_v14 = vpop.xlane.xlu1 %8634  ;;  %v8637_v2 = vpop.xlane.xlu0 %8636 }
0x1a91   :  { %12880 = vrsqrt.f32 %v8677_v36  ;;  %v8663_v53 = vmul.f32 0.0078125, %v8635_v14  ;;  %v8664_v51 = vmul.f32 0.0078125, %v8637_v2 }
0x1a92   :  { %12882 = vrsqrt.f32 %v8678_v47 }
0x1a93   :  { %v8679_v56 = vadd.f32 1e-05, %v8663_v53  ;;  %v8680_v60 = vadd.f32 1e-05, %v8664_v51 }
0x1a94   :  { %v8639_v8 = vpop.xlane.xlu1 %8638  ;;  %v8641_v39 = vpop.xlane.xlu0 %8640 }
0x1a95   :  { %12884 = vrsqrt.f32 %v8679_v56  ;;  %v8665_v63 = vmul.f32 0.0078125, %v8639_v8  ;;  %v8666_v49 = vmul.f32 0.0078125, %v8641_v39  ;;  %v12233_v39 = vld [vmem:[%s17549_s10 + $0x1b8] sm:$0xff]  }
0x1a97   :  { %v8681_v16 = vadd.f32 1e-05, %v8665_v63  ;;  %v8682_v45 = vadd.f32 1e-05, %v8666_v49 }
0x1a98   :  { %v8643_v46 = vpop.xlane.xlu1 %8642 }
0x1a99   :  { %12886 = vrsqrt.f32 %v8681_v16  ;;  %v8667_v29 = vmul.f32 0.0078125, %v8643_v46  ;;  %v12230_v16 = vld [vmem:[%s17549_s10 + $0x178] sm:$0xff]   ;;  %v12234_v46 = vld [vmem:[%s17549_s10 + $0x170] sm:$0xff]  }
0x1a9a   :  { %v12879_v38 = vpop.eup %12878  ;;  %12888 = vrsqrt.f32 %v8680_v60  ;;  %11035 = vmatprep.subr.bf16.mxu0 %v12230_v16  ;;  %v12257_v16 = vld [vmem:[%s17549_s10 + $0x188] sm:$0xff]  }
0x1a9b   :  { %v8708_v18 = vmul.f32 %v12879_v38, %v17073_v43  ;;  %v8683_v23 = vadd.f32 1e-05, %v8667_v29  ;;  %v12235_v29 = vld [vmem:[%s17549_s10 + $0x1f0] sm:$0xff]  }
0x1a9d   :  { %v8730_v32 = vmul.f32 %v17252_v17, %v8708_v18  ;;  %12890 = vrsqrt.f32 %v8683_v23  ;;  %v12236_v18 = vld [vmem:[%s17549_s10 + $0x130] sm:$0xff]  }
0x1a9e   :  { %v12881_v54 = vpop.eup %12880  ;;  %12892 = vrsqrt.f32 %v8682_v45  ;;  %v12237_v23 = vld [vmem:[%s17549_s10 + $0x1b0] sm:$0xff]  }
0x1a9f   :  { %v8709_v42 = vmul.f32 %v12881_v54, %v17078_v10  ;;  %v12883_v61 = vpop.eup %12882  ;;  %v8752_v37 = vadd.f32 %v17259_v50, %v8730_v32 }
0x1aa0   :  { %v8710_v1 = vmul.f32 %v12883_v61, %v17081_v3  ;;  %v12239_v61 = vld [vmem:[%s17549_s10 + $0x1e8] sm:$0xff]  }
0x1aa1   :  { %v8731_v43 = vmul.f32 %v17252_v17, %v8709_v42  ;;  %v12238_v42 = vld [vmem:[%s17549_s10 + $0x168] sm:$0xff]  }
0x1aa2   :  { %v12885_v25 = vpop.eup %12884  ;;  %v8732_v47 = vmul.f32 %v17252_v17, %v8710_v1 }
0x1aa3   :  { %v8753_v0 = vadd.f32 %v17259_v50, %v8731_v43  ;;  %v8711_v22 = vmul.f32 %v12885_v25, %v17100_v26  ;;  %v12240_v43 = vld [vmem:[%s17549_s10 + $0x128] sm:$0xff]  }
0x1aa4   :  { %v8754_v3 = vadd.f32 %v17259_v50, %v8732_v47  ;;  %v12246_v47 = vld [vmem:[%s17549_s10 + $0x158] sm:$0xff]  }
0x1aa5   :  { %v8768_v10 = vpack.c.bf16 %v8753_v0, %v8752_v37  ;;  %v8733_v28 = vmul.f32 %v17252_v17, %v8711_v22  ;;  %v12242_v37 = vld [vmem:[%s17549_s10 + $0x160] sm:$0xff]  }
0x1aa6   :  { %v12887_v36 = vpop.eup %12886  ;;  %v12243_v0 = vld [vmem:[%s17549_s10 + $0x1e0] sm:$0xff]  }
0x1aa7   :  { %9025 = vmatmul.mubr.bf16.vlgmr.msra.gmra.mxu0 %v8768_v10  ;;  %9138 = vmatmul.mubr.bf16.vlgmr.msra.gmra.mxu1 %v8768_v10  ;;  %v12889_v14 = vpop.eup %12888  ;;  %v8755_v2 = vadd.f32 %v17259_v50, %v8733_v28  ;;  %v8713_v53 = vmul.f32 %v12887_v36, %v17110_v62  ;;  %v12231_v62 = vld [vmem:[%s17549_s10 + $0x1f8] sm:$0xff]   ;;  %v12244_v22 = vld [vmem:[%s17549_s10 + $0x120] sm:$0xff]  }
0x1aa8   :  { %9034 = vmatprep.mubr.bf16.mxu0 %v17839_v12  ;;  %9147 = vmatprep.mubr.bf16.mxu1 %v17839_v12  ;;  %v8712_v26 = vmul.f32 %v12889_v14, %v17103_v19  ;;  %v12232_v19 = vld [vmem:[%s17549_s10 + $0x138] sm:$0xff]   ;;  %v12245_v10 = vld [vmem:[%s17549_s10 + $0x1a0] sm:$0xff]  }
0x1aa9   :  { %v8769_v56 = vpack.c.bf16 %v8755_v2, %v8754_v3  ;;  %v8735_v51 = vmul.f32 %v17252_v17, %v8713_v53  ;;  %11099 = vmatprep.subr.bf16.mxu1 %v12231_v62  ;;  %11036 = vmatpush3.bf16.msra.mxu0 %v12232_v19  ;;  %v12247_v14 = vld [vmem:[%s17549_s10 + $0x1d8] sm:$0xff]   ;;  %v12250_v3 = vld [vmem:[%s17549_s10 + $0x150] sm:$0xff]   ;;  %v12258_v62 = vld [vmem:[%s17549_s10 + $0x140] sm:$0xff]  }
0x1aaa   :  { %v12891_v8 = vpop.eup %12890  ;;  %v8734_v60 = vmul.f32 %v17252_v17, %v8712_v26  ;;  %11100 = vmatpush3.bf16.msra.mxu1 %v12233_v39  ;;  %11037 = vmatprep.subr.bf16.mxu0 %v12234_v46  ;;  %v12248_v2 = vld [vmem:[%s17549_s10 + $0x118] sm:$0xff]   ;;  %v12251_v26 = vld [vmem:[%s17549_s10 + $0x1d0] sm:$0xff]   ;;  %v12259_v19 = vld [vmem:[%s17549_s10 + $0x1c0] sm:$0xff]  }
0x1aab   :  { %v12893_v63 = vpop.eup %12892  ;;  %v8757_v38 = vadd.f32 %v17259_v50, %v8735_v51  ;;  %v8715_v49 = vmul.f32 %v12891_v8, %v17126_v13  ;;  %11101 = vmatprep.subr.bf16.mxu1 %v12235_v29  ;;  %v12249_v53 = vld [vmem:[%s17549_s10 + $0x198] sm:$0xff]   ;;  %v12253_v51 = vld [vmem:[%s17549_s10 + $0x190] sm:$0xff]   ;;  %v12254_v8 = vld [vmem:[%s17549_s10 + $0x148] sm:$0xff]  }
0x1aac   :  { %v8756_v54 = vadd.f32 %v17259_v50, %v8734_v60  ;;  %v8714_v45 = vmul.f32 %v12893_v63, %v17113_v34  ;;  %v12241_v34 = vld [vmem:[%s17549_s10 + $0x1a8] sm:$0xff]   ;;  %v12260_v39 = vld [vmem:[%s17549_s10 + $0x100] sm:$0xff]  }
0x1aad   :  { %v8737_v13 = vmul.f32 %v17252_v17, %v8715_v49  ;;  %11038 = vmatpush3.bf16.msra.mxu0 %v12236_v18  ;;  %v12255_v63 = vld [vmem:[%s17549_s10 + $0x1c8] sm:$0xff]   ;;  %v12261_v46 = vld [vmem:[%s17549_s10 + $0x180] sm:$0xff]  }
0x1aae   :  { %v8770_v32 = vpack.c.bf16 %v8757_v38, %v8756_v54  ;;  %11102 = vmatpush3.bf16.msra.mxu1 %v12237_v23  ;;  %v8736_v25 = vmul.f32 %v17252_v17, %v8714_v45  ;;  %11039 = vmatprep.subr.bf16.mxu0 %v12238_v42  ;;  %v12256_v60 = vld [vmem:[%s17549_s10 + $0x108] sm:$0xff]  }
0x1aaf   :  { %9035 = vmatmul.mubr.bf16.gmra.mxu0 %v8769_v56  ;;  %9148 = vmatmul.mubr.bf16.gmra.mxu1 %v8769_v56  ;;  %v8759_v1 = vadd.f32 %v17259_v50, %v8737_v13  ;;  %v12252_v56 = vld [vmem:[%s17549_s10 + $0x110] sm:$0xff]  }
0x1ab0   :  { %9044 = vmatprep.mubr.bf16.mxu0 %v17839_v12  ;;  %9157 = vmatprep.mubr.bf16.mxu1 %v17839_v12  ;;  %v8758_v28 = vadd.f32 %v17259_v50, %v8736_v25 }
0x1ab1   :  { %11103 = vmatprep.subr.bf16.mxu1 %v12239_v61  ;;  %11040 = vmatpush3.bf16.msra.mxu0 %v12240_v43 }
0x1ab2   :  { %11104 = vmatpush3.bf16.msra.mxu1 %v12241_v34  ;;  %11041 = vmatprep.subr.bf16.mxu0 %v12242_v37  ;;  %v8771_v36 = vpack.c.bf16 %v8759_v1, %v8758_v28 }
0x1ab3   :  { %11105 = vmatprep.subr.bf16.mxu1 %v12243_v0 }
0x1ab5   :  { %11042 = vmatpush3.bf16.msra.mxu0 %v12244_v22 }
0x1ab6   :  { %11106 = vmatpush3.bf16.msra.mxu1 %v12245_v10  ;;  %11043 = vmatprep.subr.bf16.mxu0 %v12246_v47 }
0x1ab7   :  { %9045 = vmatmul.mubr.bf16.gmra.mxu0 %v8770_v32  ;;  %9158 = vmatmul.mubr.bf16.gmra.mxu1 %v8770_v32 }
0x1ab8   :  { %9054 = vmatprep.mubr.bf16.mxu0 %v17839_v12  ;;  %9167 = vmatprep.mubr.bf16.mxu1 %v17839_v12 }
0x1ab9   :  { %11107 = vmatprep.subr.bf16.mxu1 %v12247_v14  ;;  %11044 = vmatpush3.bf16.msra.mxu0 %v12248_v2 }
0x1aba   :  { %11108 = vmatpush3.bf16.msra.mxu1 %v12249_v53  ;;  %11045 = vmatprep.subr.bf16.mxu0 %v12250_v3 }
0x1abb   :  { %11109 = vmatprep.subr.bf16.mxu1 %v12251_v26 }
0x1abd   :  { %11046 = vmatpush3.bf16.msra.mxu0 %v12252_v56 }
0x1abe   :  { %11110 = vmatpush3.bf16.msra.mxu1 %v12253_v51  ;;  %11047 = vmatprep.subr.bf16.mxu0 %v12254_v8 }
0x1abf   :  { %9055 = vmatmul.mubr.bf16.gmra.mxu0 %v8771_v36  ;;  %9168 = vmatmul.mubr.bf16.gmra.mxu1 %v8771_v36 }
0x1ac0   :  { %9064 = vmatprep.mubr.bf16.mxu0 %v17839_v12  ;;  %9177 = vmatprep.mubr.bf16.mxu1 %v17839_v12 }
0x1ac1   :  { %11111 = vmatprep.subr.bf16.mxu1 %v12255_v63  ;;  %11048 = vmatpush3.bf16.msra.mxu0 %v12256_v60 }
0x1ac2   :  { %11112 = vmatpush3.bf16.msra.mxu1 %v12257_v16  ;;  %11049 = vmatprep.subr.bf16.mxu0 %v12258_v62 }
0x1ac3   :  { %11113 = vmatprep.subr.bf16.mxu1 %v12259_v19 }
0x1ac5   :  { %11050 = vmatpush3.bf16.msra.mxu0 %v12260_v39 }
0x1ac6   :  { %11114 = vmatpush3.bf16.msra.mxu1 %v12261_v46 }
0x1af8   :  { %v8645_v29 = vpop.xlane.xlu0 %8644 }
0x1af9   :  { %v8668_v38 = vmul.f32 0.0078125, %v8645_v29 }
0x1afb   :  { %v8684_v49 = vadd.f32 1e-05, %v8668_v38 }
0x1afc   :  { %v8647_v18 = vpop.xlane.xlu1 %8646  ;;  %v8649_v23 = vpop.xlane.xlu0 %8648 }
0x1afd   :  { %12894 = vrsqrt.f32 %v8684_v49  ;;  %v8669_v54 = vmul.f32 0.0078125, %v8647_v18  ;;  %v8670_v45 = vmul.f32 0.0078125, %v8649_v23 }
0x1aff   :  { %v8685_v32 = vadd.f32 1e-05, %v8669_v54  ;;  %v8686_v13 = vadd.f32 1e-05, %v8670_v45 }
0x1b00   :  { %v8651_v42 = vpop.xlane.xlu1 %8650  ;;  %v8653_v61 = vpop.xlane.xlu0 %8652 }
0x1b01   :  { %12896 = vrsqrt.f32 %v8685_v32  ;;  %v8671_v43 = vmul.f32 0.0078125, %v8651_v42  ;;  %v8672_v25 = vmul.f32 0.0078125, %v8653_v61 }
0x1b02   :  { %12898 = vrsqrt.f32 %v8686_v13 }
0x1b03   :  { %v8687_v34 = vadd.f32 1e-05, %v8671_v43  ;;  %v8688_v1 = vadd.f32 1e-05, %v8672_v25 }
0x1b04   :  { %v8655_v37 = vpop.xlane.xlu1 %8654  ;;  %v8657_v10 = vpop.xlane.xlu0 %8656 }
0x1b05   :  { %12900 = vrsqrt.f32 %v8687_v34  ;;  %v8673_v0 = vmul.f32 0.0078125, %v8655_v37  ;;  %v8674_v14 = vmul.f32 0.0078125, %v8657_v10  ;;  %v17862_v10 = vld [vmem:[#allocation31_spill] sm:$0xff] }
0x1b07   :  { %v8689_v22 = vadd.f32 1e-05, %v8673_v0  ;;  %v8690_v26 = vadd.f32 1e-05, %v8674_v14  ;;  %v17866_v14 = vsub.s32 2, %v17862_v10 }
0x1b08   :  { %v8659_v28 = vpop.xlane.xlu1 %8658 }
0x1b09   :  { %12902 = vrsqrt.f32 %v8689_v22  ;;  %v8675_v36 = vmul.f32 0.0078125, %v8659_v28  ;;  %v17863_v28 = vsub.s32 1, %v17862_v10 }
0x1b0a   :  { %v12895_v47 = vpop.eup %12894  ;;  %12904 = vrsqrt.f32 %v8688_v1 }
0x1b0b   :  { %v8716_v2 = vmul.f32 %v12895_v47, %v17209_v52  ;;  %v8691_v53 = vadd.f32 1e-05, %v8675_v36  ;;  %v17864_v36 = vsub.s32 3, %v17862_v10  ;;  %v17865_v47 = vsub.s32 0, %v17862_v10 }
0x1b0d   :  { %v8738_v51 = vmul.f32 %v17252_v17, %v8716_v2  ;;  %12906 = vrsqrt.f32 %v8691_v53 }
0x1b0e   :  { %v12897_v3 = vpop.eup %12896  ;;  %12908 = vrsqrt.f32 %v8690_v26 }
0x1b0f   :  { %v8717_v56 = vmul.f32 %v12897_v3, %v17214_v27  ;;  %v12899_v8 = vpop.eup %12898  ;;  %v8760_v16 = vadd.f32 %v17259_v50, %v8738_v51 }
0x1b10   :  { %v8718_v19 = vmul.f32 %v12899_v8, %v17217_v40 }
0x1b11   :  { %v8739_v63 = vmul.f32 %v17252_v17, %v8717_v56 }
0x1b12   :  { %v12901_v60 = vpop.eup %12900  ;;  %v8740_v29 = vmul.f32 %v17252_v17, %v8718_v19 }
0x1b13   :  { %v8761_v62 = vadd.f32 %v17259_v50, %v8739_v63  ;;  %v8719_v52 = vmul.f32 %v12901_v60, %v17224_v30 }
0x1b14   :  { %v8762_v40 = vadd.f32 %v17259_v50, %v8740_v29 }
0x1b15   :  { %v8772_v39 = vpack.c.bf16 %v8761_v62, %v8760_v16  ;;  %v8741_v46 = vmul.f32 %v17252_v17, %v8719_v52 }
0x1b16   :  { %v12903_v27 = vpop.eup %12902 }
0x1b17   :  { %9065 = vmatmul.mubr.bf16.gmra.mxu0 %v8772_v39  ;;  %9178 = vmatmul.mubr.bf16.gmra.mxu1 %v8772_v39  ;;  %v12905_v38 = vpop.eup %12904  ;;  %v8763_v49 = vadd.f32 %v17259_v50, %v8741_v46  ;;  %v8721_v18 = vmul.f32 %v12903_v27, %v17234_v6 }
0x1b18   :  { %9074 = vmatprep.mubr.bf16.mxu0 %v17839_v12  ;;  %9187 = vmatprep.mubr.bf16.mxu1 %v17839_v12  ;;  %v8720_v30 = vmul.f32 %v12905_v38, %v17227_v21 }
0x1b19   :  { %v8773_v23 = vpack.c.bf16 %v8763_v49, %v8762_v40  ;;  %v8743_v54 = vmul.f32 %v17252_v17, %v8721_v18 }
0x1b1a   :  { %v12907_v45 = vpop.eup %12906  ;;  %v8742_v13 = vmul.f32 %v17252_v17, %v8720_v30 }
0x1b1b   :  { %v12909_v32 = vpop.eup %12908  ;;  %v8765_v42 = vadd.f32 %v17259_v50, %v8743_v54  ;;  %v8723_v6 = vmul.f32 %v12907_v45, %v17244_v57 }
0x1b1c   :  { %v8764_v61 = vadd.f32 %v17259_v50, %v8742_v13  ;;  %v8722_v21 = vmul.f32 %v12909_v32, %v17237_v33  ;;  %v10399_v33 = vld [vmem:[%s17548_s9 + $0x4] sm:$0xf] }
0x1b1d   :  { %v8745_v34 = vmul.f32 %v17252_v17, %v8723_v6  ;;  %v17433_v2 = vrot.slane %v10399_v33, %v17866_v14 }
0x1b1e   :  { %v8774_v43 = vpack.c.bf16 %v8765_v42, %v8764_v61  ;;  %v8744_v25 = vmul.f32 %v17252_v17, %v8722_v21  ;;  %v17421_v17 = vrot.slane %v10399_v33, %v17863_v28 }
0x1b1f   :  { %9075 = vmatmul.mubr.bf16.gmra.mxu0 %v8773_v23  ;;  %9188 = vmatmul.mubr.bf16.gmra.mxu1 %v8773_v23  ;;  %v8767_v37 = vadd.f32 %v17259_v50, %v8745_v34 }
0x1b20   :  { %9084 = vmatprep.mubr.bf16.mxu0 %v17839_v12  ;;  %9197 = vmatprep.mubr.bf16.mxu1 %v17839_v12  ;;  %v8766_v0 = vadd.f32 %v17259_v50, %v8744_v25  ;;  %v17429_v50 = vrot.slane %v10399_v33, %v17865_v47 }
0x1b22   :  { %v8775_v57 = vpack.c.bf16 %v8767_v37, %v8766_v0 }
0x1b27   :  { %9085 = vmatmul.mubr.bf16.gmra.mxu0 %v8774_v43  ;;  %9198 = vmatmul.mubr.bf16.gmra.mxu1 %v8774_v43 }
0x1b28   :  { %9094 = vmatprep.mubr.bf16.mxu0 %v17839_v12  ;;  %9207 = vmatprep.mubr.bf16.mxu1 %v17839_v12  ;;  %v17425_v12 = vrot.slane %v10399_v33, %v17864_v36 }
0x1b2f   :  { %9095 = vmatmul.mubr.bf16.gmra.mxu0 %v8775_v57  ;;  %9208 = vmatmul.mubr.bf16.gmra.mxu1 %v8775_v57 }
0x1b67   :  { %v9026_v1 = vpop.f32.mrf.mxu0  ;;  %v9139_v22 = vpop.f32.mrf.mxu1 }
0x1b68   :  { %v9027_v16 = vadd.f32 %v9026_v1, %v17429_v50  ;;  %v9140_v62 = vadd.f32 %v9139_v22, %v17433_v2 }
0x1b69   :  { %v9028_v53 = vpop.f32.mrf.mxu0  ;;  %v9141_v3 = vpop.f32.mrf.mxu1 }
0x1b6a   :  { %v9029_v51 = vadd.f32 %v9028_v53, %v17421_v17  ;;  %v9142_v8 = vadd.f32 %v9141_v3, %v17425_v12  ;;  %v9218_v54 = vmax.f32 %v9027_v16, 0.0  ;;  %v9220_v45 = vmax.f32 %v9140_v62, 0.0 }
0x1b6b   :  { %v9030_v26 = vpop.f32.mrf.mxu0  ;;  %v9143_v56 = vpop.f32.mrf.mxu1 }
0x1b6c   :  { %v9031_v63 = vadd.f32 %v9030_v26, %v17429_v50  ;;  %v9144_v60 = vadd.f32 %v9143_v56, %v17433_v2  ;;  %v9219_v18 = vmax.f32 %v9029_v51, 0.0  ;;  %v9221_v40 = vmax.f32 %v9142_v8, 0.0 }
0x1b6d   :  { %v9032_v19 = vpop.f32.mrf.mxu0  ;;  %v9145_v52 = vpop.f32.mrf.mxu1 }
0x1b6e   :  { %v9033_v39 = vadd.f32 %v9032_v19, %v17421_v17  ;;  %v9146_v46 = vadd.f32 %v9145_v52, %v17425_v12  ;;  %v9222_v27 = vmax.f32 %v9031_v63, 0.0  ;;  %v9224_v29 = vmax.f32 %v9144_v60, 0.0 }
0x1b6f   :  { %v9036_v38 = vpop.f32.mrf.mxu0  ;;  %v9149_v49 = vpop.f32.mrf.mxu1 }
0x1b70   :  { %v9223_v30 = vmax.f32 %v9033_v39, 0.0  ;;  %v9225_v23 = vmax.f32 %v9146_v46, 0.0  ;;  %v9282_v61 = vpack.c.bf16 %v9222_v27, %v9218_v54  ;;  %v9284_v21 = vpack.c.bf16 %v9224_v29, %v9220_v45 }
0x1b71   :  { %v9038_v32 = vpop.f32.mrf.mxu0  ;;  %v9151_v13 = vpop.f32.mrf.mxu1  ;;  %v9037_v33 = vadd.f32 %v9036_v38, %v17429_v50  ;;  %v9150_v1 = vadd.f32 %v9149_v49, %v17433_v2 }
0x1b72   :  { %v9283_v42 = vpack.c.bf16 %v9223_v30, %v9219_v18  ;;  %v9285_v6 = vpack.c.bf16 %v9225_v23, %v9221_v40  ;;  %v9039_v43 = vadd.f32 %v9038_v32, %v17421_v17  ;;  %v9152_v37 = vadd.f32 %v9151_v13, %v17425_v12  ;;  %v12262_v32 = vld [vmem:[#allocation5 + $0x38] sm:$0xff]   ;;  %v12263_v13 = vld [vmem:[#allocation5 + $0x30] sm:$0xff]  }
0x1b73   :  { %v9040_v34 = vpop.f32.mrf.mxu0  ;;  %v9153_v25 = vpop.f32.mrf.mxu1  ;;  %v9226_v63 = vmax.f32 %v9037_v33, 0.0  ;;  %v9228_v60 = vmax.f32 %v9150_v1, 0.0  ;;  %11915 = vmatprep.subr.bf16.mxu0 %v12262_v32 }
0x1b74   :  { %v9041_v0 = vadd.f32 %v9040_v34, %v17429_v50  ;;  %v9154_v57 = vadd.f32 %v9153_v25, %v17433_v2  ;;  %9611 = vmatprep.mubr.bf16.mxu0 %v9283_v42  ;;  %9708 = vmatprep.mubr.bf16.mxu1 %v9285_v6  ;;  %v9227_v26 = vmax.f32 %v9039_v43, 0.0  ;;  %v9229_v56 = vmax.f32 %v9152_v37, 0.0 }
0x1b75   :  { %v9042_v22 = vpop.f32.mrf.mxu0  ;;  %v9155_v10 = vpop.f32.mrf.mxu1  ;;  %9612 = vmatmul.mubr.bf16.vlgmr.msra.gmra.mxu0 %v9282_v61  ;;  %9709 = vmatmul.mubr.bf16.vlgmr.msra.gmra.mxu1 %v9284_v21 }
0x1b76   :  { %v9043_v28 = vadd.f32 %v9042_v22, %v17421_v17  ;;  %v9156_v36 = vadd.f32 %v9155_v10, %v17425_v12  ;;  %v9230_v47 = vmax.f32 %v9041_v0, 0.0  ;;  %v9232_v14 = vmax.f32 %v9154_v57, 0.0  ;;  %11916 = vmatpush3.bf16.msra.mxu0 %v12262_v32  ;;  %v12264_v32 = vld [vmem:[#allocation5 + $0x28] sm:$0xff]  }
0x1b77   :  { %v9046_v53 = vpop.f32.mrf.mxu0  ;;  %v9159_v3 = vpop.f32.mrf.mxu1  ;;  %11917 = vmatprep.subr.bf16.mxu0 %v12263_v13 }
0x1b78   :  { %v9231_v51 = vmax.f32 %v9043_v28, 0.0  ;;  %v9233_v8 = vmax.f32 %v9156_v36, 0.0  ;;  %v9286_v39 = vpack.c.bf16 %v9230_v47, %v9226_v63  ;;  %v9288_v46 = vpack.c.bf16 %v9232_v14, %v9228_v60 }
0x1b79   :  { %v9048_v16 = vpop.f32.mrf.mxu0  ;;  %v9161_v62 = vpop.f32.mrf.mxu1  ;;  %v9047_v30 = vadd.f32 %v9046_v53, %v17429_v50  ;;  %v9160_v23 = vadd.f32 %v9159_v3, %v17433_v2 }
0x1b7a   :  { %v9287_v19 = vpack.c.bf16 %v9231_v51, %v9227_v26  ;;  %v9289_v52 = vpack.c.bf16 %v9233_v8, %v9229_v56  ;;  %v9049_v27 = vadd.f32 %v9048_v16, %v17421_v17  ;;  %v9162_v49 = vadd.f32 %v9161_v62, %v17425_v12  ;;  %11918 = vmatpush3.bf16.msra.mxu0 %v12263_v13  ;;  %v12265_v13 = vld [vmem:[#allocation5 + $0x20] sm:$0xff]  }
0x1b7b   :  { %v9050_v29 = vpop.f32.mrf.mxu0  ;;  %v9163_v38 = vpop.f32.mrf.mxu1  ;;  %v9234_v33 = vmax.f32 %v9047_v30, 0.0  ;;  %v9236_v1 = vmax.f32 %v9160_v23, 0.0  ;;  %11919 = vmatprep.subr.bf16.mxu0 %v12264_v32 }
0x1b7c   :  { %v9051_v18 = vadd.f32 %v9050_v29, %v17429_v50  ;;  %v9164_v40 = vadd.f32 %v9163_v38, %v17433_v2  ;;  %9619 = vmatprep.mubr.bf16.mxu0 %v9287_v19  ;;  %9716 = vmatprep.mubr.bf16.mxu1 %v9289_v52  ;;  %v9235_v25 = vmax.f32 %v9049_v27, 0.0  ;;  %v9237_v37 = vmax.f32 %v9162_v49, 0.0 }
0x1b7d   :  { %v9052_v54 = vpop.f32.mrf.mxu0  ;;  %v9165_v45 = vpop.f32.mrf.mxu1  ;;  %9620 = vmatmul.mubr.bf16.gmra.mxu0 %v9286_v39  ;;  %9717 = vmatmul.mubr.bf16.gmra.mxu1 %v9288_v46 }
0x1b7e   :  { %v9053_v42 = vadd.f32 %v9052_v54, %v17421_v17  ;;  %v9166_v6 = vadd.f32 %v9165_v45, %v17425_v12  ;;  %v9238_v61 = vmax.f32 %v9051_v18, 0.0  ;;  %v9240_v21 = vmax.f32 %v9164_v40, 0.0  ;;  %11920 = vmatpush3.bf16.msra.mxu0 %v12264_v32 }
0x1b7f   :  { %v9056_v43 = vpop.f32.mrf.mxu0  ;;  %v9169_v34 = vpop.f32.mrf.mxu1  ;;  %11921 = vmatprep.subr.bf16.mxu0 %v12265_v13 }
0x1b80   :  { %v9239_v0 = vmax.f32 %v9053_v42, 0.0  ;;  %v9241_v57 = vmax.f32 %v9166_v6, 0.0  ;;  %v9290_v47 = vpack.c.bf16 %v9238_v61, %v9234_v33  ;;  %v9292_v14 = vpack.c.bf16 %v9240_v21, %v9236_v1  ;;  %v12266_v42 = vld [vmem:[#allocation5 + $0x18] sm:$0xff]   ;;  %v12267_v6 = vld [vmem:[#allocation5 + $0x10] sm:$0xff]   ;;  %v12268_v61 = vld [vmem:[#allocation5 + $0x8] sm:$0xff]  }
0x1b81   :  { %v9058_v22 = vpop.f32.mrf.mxu0  ;;  %v9171_v10 = vpop.f32.mrf.mxu1  ;;  %v9057_v63 = vadd.f32 %v9056_v43, %v17429_v50  ;;  %v9170_v60 = vadd.f32 %v9169_v34, %v17433_v2  ;;  %v12269_v21 = vld [vmem:[#allocation5] sm:$0xff]  }
0x1b82   :  { %v9291_v28 = vpack.c.bf16 %v9239_v0, %v9235_v25  ;;  %v9293_v36 = vpack.c.bf16 %v9241_v57, %v9237_v37  ;;  %v9059_v53 = vadd.f32 %v9058_v22, %v17421_v17  ;;  %v9172_v56 = vadd.f32 %v9171_v10, %v17425_v12  ;;  %11922 = vmatpush3.bf16.msra.mxu0 %v12265_v13 }
0x1b83   :  { %v9060_v3 = vpop.f32.mrf.mxu0  ;;  %v9173_v26 = vpop.f32.mrf.mxu1  ;;  %v9242_v18 = vmax.f32 %v9057_v63, 0.0  ;;  %v9244_v40 = vmax.f32 %v9170_v60, 0.0  ;;  %11923 = vmatprep.subr.bf16.mxu0 %v12266_v42 }
0x1b84   :  { %v9061_v51 = vadd.f32 %v9060_v3, %v17429_v50  ;;  %v9174_v8 = vadd.f32 %v9173_v26, %v17433_v2  ;;  %9627 = vmatprep.mubr.bf16.mxu0 %v9291_v28  ;;  %9724 = vmatprep.mubr.bf16.mxu1 %v9293_v36  ;;  %v9243_v27 = vmax.f32 %v9059_v53, 0.0  ;;  %v9245_v29 = vmax.f32 %v9172_v56, 0.0 }
0x1b85   :  { %v9062_v16 = vpop.f32.mrf.mxu0  ;;  %v9175_v62 = vpop.f32.mrf.mxu1  ;;  %9628 = vmatmul.mubr.bf16.gmra.mxu0 %v9290_v47  ;;  %9725 = vmatmul.mubr.bf16.gmra.mxu1 %v9292_v14 }
0x1b86   :  { %v9063_v19 = vadd.f32 %v9062_v16, %v17421_v17  ;;  %v9176_v52 = vadd.f32 %v9175_v62, %v17425_v12  ;;  %v9246_v39 = vmax.f32 %v9061_v51, 0.0  ;;  %v9248_v46 = vmax.f32 %v9174_v8, 0.0  ;;  %11924 = vmatpush3.bf16.msra.mxu0 %v12266_v42 }
0x1b87   :  { %11925 = vmatprep.subr.bf16.mxu0 %v12267_v6 }
0x1b88   :  { %v9247_v38 = vmax.f32 %v9063_v19, 0.0  ;;  %v9249_v49 = vmax.f32 %v9176_v52, 0.0  ;;  %v9294_v54 = vpack.c.bf16 %v9246_v39, %v9242_v18  ;;  %v9296_v45 = vpack.c.bf16 %v9248_v46, %v9244_v40 }
0x1b8a   :  { %v9295_v30 = vpack.c.bf16 %v9247_v38, %v9243_v27  ;;  %v9297_v23 = vpack.c.bf16 %v9249_v49, %v9245_v29  ;;  %11926 = vmatpush3.bf16.msra.mxu0 %v12267_v6 }
0x1b8b   :  { %11927 = vmatprep.subr.bf16.mxu0 %v12268_v61 }
0x1b8c   :  { %9635 = vmatprep.mubr.bf16.mxu0 %v9295_v30  ;;  %9732 = vmatprep.mubr.bf16.mxu1 %v9297_v23 }
0x1b8d   :  { %9636 = vmatmul.mubr.bf16.gmra.mxu0 %v9294_v54  ;;  %9733 = vmatmul.mubr.bf16.gmra.mxu1 %v9296_v45 }
0x1b8e   :  { %11928 = vmatpush3.bf16.msra.mxu0 %v12268_v61 }
0x1b8f   :  { %11929 = vmatprep.subr.bf16.mxu0 %v12269_v21 }
0x1b92   :  { %11930 = vmatpush3.bf16.msra.mxu0 %v12269_v21 }
0x1bd7   :  { %v9066_v43 = vpop.f32.mrf.mxu0  ;;  %v9179_v34 = vpop.f32.mrf.mxu1 }
0x1bd8   :  { %v9067_v28 = vadd.f32 %v9066_v43, %v17429_v50  ;;  %v9180_v36 = vadd.f32 %v9179_v34, %v17433_v2 }
0x1bd9   :  { %v9068_v25 = vpop.f32.mrf.mxu0  ;;  %v9181_v37 = vpop.f32.mrf.mxu1 }
0x1bda   :  { %v9069_v33 = vadd.f32 %v9068_v25, %v17421_v17  ;;  %v9182_v1 = vadd.f32 %v9181_v37, %v17425_v12  ;;  %v9250_v19 = vmax.f32 %v9067_v28, 0.0  ;;  %v9252_v52 = vmax.f32 %v9180_v36, 0.0 }
0x1bdb   :  { %v9070_v0 = vpop.f32.mrf.mxu0  ;;  %v9183_v57 = vpop.f32.mrf.mxu1 }
0x1bdc   :  { %v9071_v22 = vadd.f32 %v9070_v0, %v17429_v50  ;;  %v9184_v10 = vadd.f32 %v9183_v57, %v17433_v2  ;;  %v9251_v63 = vmax.f32 %v9069_v33, 0.0  ;;  %v9253_v60 = vmax.f32 %v9182_v1, 0.0 }
0x1bdd   :  { %v9072_v47 = vpop.f32.mrf.mxu0  ;;  %v9185_v14 = vpop.f32.mrf.mxu1 }
0x1bde   :  { %v9073_v53 = vadd.f32 %v9072_v47, %v17421_v17  ;;  %v9186_v3 = vadd.f32 %v9185_v14, %v17425_v12  ;;  %v9254_v26 = vmax.f32 %v9071_v22, 0.0  ;;  %v9256_v56 = vmax.f32 %v9184_v10, 0.0 }
0x1bdf   :  { %v9076_v51 = vpop.f32.mrf.mxu0  ;;  %v9189_v8 = vpop.f32.mrf.mxu1 }
0x1be0   :  { %v9255_v16 = vmax.f32 %v9073_v53, 0.0  ;;  %v9257_v62 = vmax.f32 %v9186_v3, 0.0  ;;  %v9298_v38 = vpack.c.bf16 %v9254_v26, %v9250_v19  ;;  %v9300_v49 = vpack.c.bf16 %v9256_v56, %v9252_v52 }
0x1be1   :  { %v9078_v39 = vpop.f32.mrf.mxu0  ;;  %v9191_v46 = vpop.f32.mrf.mxu1  ;;  %v9077_v32 = vadd.f32 %v9076_v51, %v17429_v50  ;;  %v9190_v13 = vadd.f32 %v9189_v8, %v17433_v2 }
0x1be2   :  { %v9299_v27 = vpack.c.bf16 %v9255_v16, %v9251_v63  ;;  %v9301_v29 = vpack.c.bf16 %v9257_v62, %v9253_v60  ;;  %v9079_v18 = vadd.f32 %v9078_v39, %v17421_v17  ;;  %v9192_v23 = vadd.f32 %v9191_v46, %v17425_v12 }
0x1be3   :  { %v9080_v40 = vpop.f32.mrf.mxu0  ;;  %v9193_v30 = vpop.f32.mrf.mxu1  ;;  %v9258_v22 = vmax.f32 %v9077_v32, 0.0  ;;  %v9260_v10 = vmax.f32 %v9190_v13, 0.0 }
0x1be4   :  { %v9081_v54 = vadd.f32 %v9080_v40, %v17429_v50  ;;  %v9194_v45 = vadd.f32 %v9193_v30, %v17433_v2  ;;  %9643 = vmatprep.mubr.bf16.mxu0 %v9299_v27  ;;  %9740 = vmatprep.mubr.bf16.mxu1 %v9301_v29  ;;  %v9259_v0 = vmax.f32 %v9079_v18, 0.0  ;;  %v9261_v57 = vmax.f32 %v9192_v23, 0.0 }
0x1be5   :  { %v9082_v42 = vpop.f32.mrf.mxu0  ;;  %v9195_v6 = vpop.f32.mrf.mxu1  ;;  %9644 = vmatmul.mubr.bf16.gmra.mxu0 %v9298_v38  ;;  %9741 = vmatmul.mubr.bf16.gmra.mxu1 %v9300_v49 }
0x1be6   :  { %v9083_v61 = vadd.f32 %v9082_v42, %v17421_v17  ;;  %v9196_v21 = vadd.f32 %v9195_v6, %v17425_v12  ;;  %v9262_v43 = vmax.f32 %v9081_v54, 0.0  ;;  %v9264_v34 = vmax.f32 %v9194_v45, 0.0 }
0x1be7   :  { %v9086_v25 = vpop.f32.mrf.mxu0  ;;  %v9199_v37 = vpop.f32.mrf.mxu1 }
0x1be8   :  { %v9263_v33 = vmax.f32 %v9083_v61, 0.0  ;;  %v9265_v1 = vmax.f32 %v9196_v21, 0.0  ;;  %v9302_v53 = vpack.c.bf16 %v9262_v43, %v9258_v22  ;;  %v9304_v3 = vpack.c.bf16 %v9264_v34, %v9260_v10 }
0x1be9   :  { %v9088_v28 = vpop.f32.mrf.mxu0  ;;  %v9201_v36 = vpop.f32.mrf.mxu1  ;;  %v9087_v16 = vadd.f32 %v9086_v25, %v17429_v50  ;;  %v9200_v62 = vadd.f32 %v9199_v37, %v17433_v2 }
0x1bea   :  { %v9303_v47 = vpack.c.bf16 %v9263_v33, %v9259_v0  ;;  %v9305_v14 = vpack.c.bf16 %v9265_v1, %v9261_v57  ;;  %v9089_v26 = vadd.f32 %v9088_v28, %v17421_v17  ;;  %v9202_v8 = vadd.f32 %v9201_v36, %v17425_v12 }
0x1beb   :  { %v9090_v56 = vpop.f32.mrf.mxu0  ;;  %v9203_v51 = vpop.f32.mrf.mxu1  ;;  %v9266_v54 = vmax.f32 %v9087_v16, 0.0  ;;  %v9268_v45 = vmax.f32 %v9200_v62, 0.0 }
0x1bec   :  { %v9091_v63 = vadd.f32 %v9090_v56, %v17429_v50  ;;  %v9204_v60 = vadd.f32 %v9203_v51, %v17433_v2  ;;  %9651 = vmatprep.mubr.bf16.mxu0 %v9303_v47  ;;  %9748 = vmatprep.mubr.bf16.mxu1 %v9305_v14  ;;  %v9267_v18 = vmax.f32 %v9089_v26, 0.0  ;;  %v9269_v40 = vmax.f32 %v9202_v8, 0.0 }
0x1bed   :  { %v9092_v19 = vpop.f32.mrf.mxu0  ;;  %v9205_v52 = vpop.f32.mrf.mxu1  ;;  %9652 = vmatmul.mubr.bf16.gmra.mxu0 %v9302_v53  ;;  %9749 = vmatmul.mubr.bf16.gmra.mxu1 %v9304_v3 }
0x1bee   :  { %v9093_v39 = vadd.f32 %v9092_v19, %v17421_v17  ;;  %v9206_v46 = vadd.f32 %v9205_v52, %v17425_v12  ;;  %v9270_v27 = vmax.f32 %v9091_v63, 0.0  ;;  %v9272_v29 = vmax.f32 %v9204_v60, 0.0 }
0x1bef   :  { %v9096_v38 = vpop.f32.mrf.mxu0  ;;  %v9209_v49 = vpop.f32.mrf.mxu1 }
0x1bf0   :  { %v9271_v30 = vmax.f32 %v9093_v39, 0.0  ;;  %v9273_v23 = vmax.f32 %v9206_v46, 0.0  ;;  %v9306_v61 = vpack.c.bf16 %v9270_v27, %v9266_v54  ;;  %v9308_v21 = vpack.c.bf16 %v9272_v29, %v9268_v45 }
0x1bf1   :  { %v9098_v32 = vpop.f32.mrf.mxu0  ;;  %v9211_v13 = vpop.f32.mrf.mxu1  ;;  %v9097_v33 = vadd.f32 %v9096_v38, %v17429_v50  ;;  %v9210_v1 = vadd.f32 %v9209_v49, %v17433_v2 }
0x1bf2   :  { %v9307_v42 = vpack.c.bf16 %v9271_v30, %v9267_v18  ;;  %v9309_v6 = vpack.c.bf16 %v9273_v23, %v9269_v40  ;;  %v9099_v43 = vadd.f32 %v9098_v32, %v17421_v17  ;;  %v9212_v37 = vadd.f32 %v9211_v13, %v17425_v12 }
0x1bf3   :  { %v9100_v34 = vpop.f32.mrf.mxu0  ;;  %v9213_v25 = vpop.f32.mrf.mxu1  ;;  %v9274_v51 = vmax.f32 %v9097_v33, 0.0  ;;  %v9276_v8 = vmax.f32 %v9210_v1, 0.0 }
0x1bf4   :  { %v9101_v0 = vadd.f32 %v9100_v34, %v17429_v50  ;;  %v9214_v57 = vadd.f32 %v9213_v25, %v17433_v2  ;;  %9659 = vmatprep.mubr.bf16.mxu0 %v9307_v42  ;;  %9756 = vmatprep.mubr.bf16.mxu1 %v9309_v6  ;;  %v9275_v53 = vmax.f32 %v9099_v43, 0.0  ;;  %v9277_v3 = vmax.f32 %v9212_v37, 0.0 }
0x1bf5   :  { %v9102_v22 = vpop.f32.mrf.mxu0  ;;  %v9215_v10 = vpop.f32.mrf.mxu1  ;;  %9660 = vmatmul.mubr.bf16.gmra.mxu0 %v9306_v61  ;;  %9757 = vmatmul.mubr.bf16.gmra.mxu1 %v9308_v21 }
0x1bf6   :  { %v9103_v28 = vadd.f32 %v9102_v22, %v17421_v17  ;;  %v9216_v36 = vadd.f32 %v9215_v10, %v17425_v12  ;;  %v9278_v47 = vmax.f32 %v9101_v0, 0.0  ;;  %v9280_v14 = vmax.f32 %v9214_v57, 0.0  ;;  %v17502_v12 = vld [vmem:[%s17550_s11 + $0x1] ss:$0 sm:$0xff]  ;;  %s13020_s11 = smov [#allocation8]  }
0x1bf7   :  { %s9986_s12 = sshll.u32 %s13020_s11, 4  ;;  %s9987_s12 = int_to_ptr.vmem [resolvable:$true] %s9986_s12 }
0x1bf8   :  { %v9279_v26 = vmax.f32 %v9103_v28, 0.0  ;;  %v9281_v56 = vmax.f32 %v9216_v36, 0.0  ;;  %v9310_v60 = vpack.c.bf16 %v9278_v47, %v9274_v51  ;;  %v9312_v2 = vpack.c.bf16 %v9280_v14, %v9276_v8  ;;  %s12986_s29 = scalar_lea.vmem %s9987_s12, 2048  ;;  %p12991_p2 = scmp.lt.s32.totalorder %s9987_s12, %s9987_s12 }
0x1bf9   :  { %p12987_p1 = scmp.ne.s32.totalorder %s9987_s12, %s12986_s29  ;;  %p12992_p3 = scmp.lt.s32.totalorder %s12986_s29, %s12986_s29 }
0x1bfa   :  { %v9311_v63 = vpack.c.bf16 %v9279_v26, %v9275_v53  ;;  %v9313_v50 = vpack.c.bf16 %v9281_v56, %v9277_v3 }
0x1bfb   :  { %p12993_p4 = por %p12992_p3, %p12991_p2 }
0x1bfc   :  { %9667 = vmatprep.mubr.bf16.mxu0 %v9311_v63  ;;  %9764 = vmatprep.mubr.bf16.mxu1 %v9313_v50 }
0x1bfd   :  { %9668 = vmatmul.mubr.bf16.gmra.mxu0 %v9310_v60  ;;  %9765 = vmatmul.mubr.bf16.gmra.mxu1 %v9312_v2  ;;  %p12994_p5 = pnand %p12993_p4, %p12987_p1 }
0x1c35   :  { %v11051_v16 = vpop.f32.mrf.mxu0  ;;  %v11115_v17 = vpop.f32.mrf.mxu1 }
0x1c37   :  { %v11052_v62 = vpop.f32.mrf.mxu0  ;;  %v11116_v19 = vpop.f32.mrf.mxu1 }
0x1c38   :  { %v11053_v52 = vadd.f32 %v11052_v62, %v11051_v16  ;;  %v11117_v49 = vadd.f32 %v11116_v19, %v11115_v17 }
0x1c39   :  { %v11054_v39 = vpop.f32.mrf.mxu0  ;;  %v11118_v46 = vpop.f32.mrf.mxu1 }
0x1c3a   :  { %v9614_v27 = vadd.f32 %v11053_v52, %v17502_v12 }
0x1c3b   :  { %v11055_v29 = vpop.f32.mrf.mxu0  ;;  %v11119_v38 = vpop.f32.mrf.mxu1 }
0x1c3c   :  { %v11056_v18 = vadd.f32 %v11055_v29, %v11054_v39  ;;  %v9711_v23 = vadd.f32 %v11117_v49, %v9614_v27  ;;  %v11120_v45 = vadd.f32 %v11119_v38, %v11118_v46 }
0x1c3d   :  { %v11057_v40 = vpop.f32.mrf.mxu0  ;;  %v11121_v30 = vpop.f32.mrf.mxu1 }
0x1c3e   :  { %v9617_v54 = vadd.f32 %v11056_v18, %v17502_v12  ;;  %v9773_v43 = vadd.f32 %v9711_v23, %v16979_v48 }
0x1c3f   :  { %v11058_v32 = vpop.f32.mrf.mxu0  ;;  %v11122_v13 = vpop.f32.mrf.mxu1 }
0x1c40   :  { %v9714_v42 = vadd.f32 %v11120_v45, %v9617_v54  ;;  %v11059_v6 = vadd.f32 %v11058_v32, %v11057_v40  ;;  %v11123_v57 = vadd.f32 %v11122_v13, %v11121_v30 }
0x1c41   :  { %v11060_v61 = vpop.f32.mrf.mxu0  ;;  %v11124_v21 = vpop.f32.mrf.mxu1 }
0x1c42   :  { %v9774_v34 = vadd.f32 %v9714_v42, %v16992_v58  ;;  %v9622_v25 = vadd.f32 %v11059_v6, %v17502_v12 }
0x1c43   :  { %v11061_v37 = vpop.f32.mrf.mxu0  ;;  %v11125_v0 = vpop.f32.mrf.mxu1 }
0x1c44   :  { %v11062_v33 = vadd.f32 %v11061_v37, %v11060_v61  ;;  %v9789_v1 = vpack.c.bf16 %v9774_v34, %v9773_v43  ;;  %v9719_v28 = vadd.f32 %v11123_v57, %v9622_v25  ;;  %v11126_v47 = vadd.f32 %v11125_v0, %v11124_v21 }
0x1c45   :  { %v11063_v22 = vpop.f32.mrf.mxu0  ;;  %v11127_v10 = vpop.f32.mrf.mxu1 }
0x1c46   :  { %v9625_v36 = vadd.f32 %v11062_v33, %v17502_v12  ;;  %11931 = vmatprep.mubr.bf16.mxu0 %v9789_v1  ;;  %v9775_v56 = vadd.f32 %v9719_v28, %v16989_v15 }
0x1c47   :  { %v11064_v14 = vpop.f32.mrf.mxu0  ;;  %v11128_v53 = vpop.f32.mrf.mxu1 }
0x1c48   :  { %v9722_v3 = vadd.f32 %v11126_v47, %v9625_v36  ;;  %v11065_v48 = vadd.f32 %v11064_v14, %v11063_v22  ;;  %v11129_v2 = vadd.f32 %v11128_v53, %v11127_v10 }
0x1c49   :  { %v11066_v26 = vpop.f32.mrf.mxu0  ;;  %v11130_v58 = vpop.f32.mrf.mxu1 }
0x1c4a   :  { %v9776_v51 = vadd.f32 %v9722_v3, %v16999_v31  ;;  %v9630_v8 = vadd.f32 %v11065_v48, %v17502_v12 }
0x1c4b   :  { %v11067_v63 = vpop.f32.mrf.mxu0  ;;  %v11131_v50 = vpop.f32.mrf.mxu1 }
0x1c4c   :  { %v9790_v60 = vpack.c.bf16 %v9776_v51, %v9775_v56  ;;  %v11068_v16 = vadd.f32 %v11067_v63, %v11066_v26  ;;  %v9727_v19 = vadd.f32 %v11129_v2, %v9630_v8  ;;  %v11132_v39 = vadd.f32 %v11131_v50, %v11130_v58 }
0x1c4d   :  { %v11069_v17 = vpop.f32.mrf.mxu0  ;;  %v11133_v62 = vpop.f32.mrf.mxu1 }
0x1c4e   :  { %v9633_v52 = vadd.f32 %v11068_v16, %v17502_v12  ;;  %11932 = vmatmul.mubr.bf16.vlgmr.msra.gmra.mxu0 %v9790_v60  ;;  %v9777_v49 = vadd.f32 %v9727_v19, %v17004_v35 }
0x1c4f   :  { %v11070_v46 = vpop.f32.mrf.mxu0  ;;  %v11134_v27 = vpop.f32.mrf.mxu1 }
0x1c50   :  { %v9730_v29 = vadd.f32 %v11132_v39, %v9633_v52  ;;  %v11071_v15 = vadd.f32 %v11070_v46, %v11069_v17  ;;  %v11135_v54 = vadd.f32 %v11134_v27, %v11133_v62 }
0x1c51   :  { %v11072_v38 = vpop.f32.mrf.mxu0  ;;  %v11136_v31 = vpop.f32.mrf.mxu1 }
0x1c52   :  { %v9778_v18 = vadd.f32 %v9730_v29, %v17014_v24  ;;  %v9638_v40 = vadd.f32 %v11071_v15, %v17502_v12 }
0x1c53   :  { %v11073_v30 = vpop.f32.mrf.mxu0  ;;  %v11137_v23 = vpop.f32.mrf.mxu1 }
0x1c54   :  { %v11074_v45 = vadd.f32 %v11073_v30, %v11072_v38  ;;  %v9791_v32 = vpack.c.bf16 %v9778_v18, %v9777_v49  ;;  %v9735_v13 = vadd.f32 %v11135_v54, %v9638_v40  ;;  %v11138_v6 = vadd.f32 %v11137_v23, %v11136_v31 }
0x1c56   :  { %v9641_v42 = vadd.f32 %v11074_v45, %v17502_v12  ;;  %11935 = vmatprep.mubr.bf16.mxu0 %v9791_v32  ;;  %v9779_v21 = vadd.f32 %v9735_v13, %v17011_v11 }
0x1c58   :  { %v9738_v61 = vadd.f32 %v11138_v6, %v9641_v42 }
0x1c5a   :  { %v9780_v43 = vadd.f32 %v9738_v61, %v17019_v7 }
0x1c5c   :  { %v9792_v35 = vpack.c.bf16 %v9780_v43, %v9779_v21 }
0x1c5e   :  { %11936 = vmatmul.mubr.bf16.gmra.mxu0 %v9792_v35 }
0x1ca5   :  { %v11075_v24 = vpop.f32.mrf.mxu0  ;;  %v11139_v34 = vpop.f32.mrf.mxu1 }
0x1ca7   :  { %v11076_v25 = vpop.f32.mrf.mxu0  ;;  %v11140_v37 = vpop.f32.mrf.mxu1 }
0x1ca8   :  { %v11077_v0 = vadd.f32 %v11076_v25, %v11075_v24  ;;  %v11141_v28 = vadd.f32 %v11140_v37, %v11139_v34 }
0x1ca9   :  { %v11078_v57 = vpop.f32.mrf.mxu0  ;;  %v11142_v33 = vpop.f32.mrf.mxu1 }
0x1caa   :  { %v9646_v1 = vadd.f32 %v11077_v0, %v17502_v12 }
0x1cab   :  { %v11079_v22 = vpop.f32.mrf.mxu0  ;;  %v11143_v10 = vpop.f32.mrf.mxu1 }
0x1cac   :  { %v11080_v36 = vadd.f32 %v11079_v22, %v11078_v57  ;;  %v9743_v11 = vadd.f32 %v11141_v28, %v9646_v1  ;;  %v11144_v53 = vadd.f32 %v11143_v10, %v11142_v33 }
0x1cad   :  { %v11081_v47 = vpop.f32.mrf.mxu0  ;;  %v11145_v14 = vpop.f32.mrf.mxu1 }
0x1cae   :  { %v9649_v7 = vadd.f32 %v11080_v36, %v17502_v12  ;;  %v9781_v8 = vadd.f32 %v9743_v11, %v17030_v20 }
0x1caf   :  { %v11082_v3 = vpop.f32.mrf.mxu0  ;;  %v11146_v48 = vpop.f32.mrf.mxu1 }
0x1cb0   :  { %v9746_v26 = vadd.f32 %v11144_v53, %v9649_v7  ;;  %v11083_v58 = vadd.f32 %v11082_v3, %v11081_v47  ;;  %v11147_v16 = vadd.f32 %v11146_v48, %v11145_v14 }
0x1cb1   :  { %v11084_v56 = vpop.f32.mrf.mxu0  ;;  %v11148_v51 = vpop.f32.mrf.mxu1 }
0x1cb2   :  { %v9782_v63 = vadd.f32 %v9746_v26, %v17041_v55  ;;  %v9654_v50 = vadd.f32 %v11083_v58, %v17502_v12 }
0x1cb3   :  { %v11085_v60 = vpop.f32.mrf.mxu0  ;;  %v11149_v2 = vpop.f32.mrf.mxu1 }
0x1cb4   :  { %v11086_v17 = vadd.f32 %v11085_v60, %v11084_v56  ;;  %v9793_v62 = vpack.c.bf16 %v9782_v63, %v9781_v8  ;;  %v9751_v39 = vadd.f32 %v11147_v16, %v9654_v50  ;;  %v11150_v27 = vadd.f32 %v11149_v2, %v11148_v51 }
0x1cb5   :  { %v11087_v19 = vpop.f32.mrf.mxu0  ;;  %v11151_v52 = vpop.f32.mrf.mxu1 }
0x1cb6   :  { %v9657_v46 = vadd.f32 %v11086_v17, %v17502_v12  ;;  %11939 = vmatprep.mubr.bf16.mxu0 %v9793_v62  ;;  %v9783_v49 = vadd.f32 %v9751_v39, %v17038_v4 }
0x1cb7   :  { %v11088_v29 = vpop.f32.mrf.mxu0  ;;  %v11152_v15 = vpop.f32.mrf.mxu1 }
0x1cb8   :  { %v9754_v38 = vadd.f32 %v11150_v27, %v9657_v46  ;;  %v11089_v20 = vadd.f32 %v11088_v29, %v11087_v19  ;;  %v11153_v45 = vadd.f32 %v11152_v15, %v11151_v52 }
0x1cb9   :  { %v11090_v31 = vpop.f32.mrf.mxu0  ;;  %v11154_v55 = vpop.f32.mrf.mxu1 }
0x1cba   :  { %v9784_v18 = vadd.f32 %v9754_v38, %v17049_v9  ;;  %v9662_v40 = vadd.f32 %v11089_v20, %v17502_v12 }
0x1cbb   :  { %v11091_v30 = vpop.f32.mrf.mxu0  ;;  %v11155_v23 = vpop.f32.mrf.mxu1 }
0x1cbc   :  { %v9794_v54 = vpack.c.bf16 %v9784_v18, %v9783_v49  ;;  %v11092_v32 = vadd.f32 %v11091_v30, %v11090_v31  ;;  %v9759_v6 = vadd.f32 %v11153_v45, %v9662_v40  ;;  %v11156_v21 = vadd.f32 %v11155_v23, %v11154_v55 }
0x1cbd   :  { %v11093_v13 = vpop.f32.mrf.mxu0  ;;  %v11157_v42 = vpop.f32.mrf.mxu1 }
0x1cbe   :  { %v9665_v61 = vadd.f32 %v11092_v32, %v17502_v12  ;;  %11940 = vmatmul.mubr.bf16.gmra.mxu0 %v9794_v54  ;;  %v9785_v25 = vadd.f32 %v9759_v6, %v17054_v41 }
0x1cbf   :  { %v11094_v43 = vpop.f32.mrf.mxu0  ;;  %v11158_v35 = vpop.f32.mrf.mxu1 }
0x1cc0   :  { %v9762_v24 = vadd.f32 %v11156_v21, %v9665_v61  ;;  %v11095_v4 = vadd.f32 %v11094_v43, %v11093_v13  ;;  %v11159_v1 = vadd.f32 %v11158_v35, %v11157_v42 }
0x1cc1   :  { %v11096_v34 = vpop.f32.mrf.mxu0  ;;  %v11160_v9 = vpop.f32.mrf.mxu1 }
0x1cc2   :  { %v9786_v37 = vadd.f32 %v9762_v24, %v17064_v44  ;;  %v9670_v0 = vadd.f32 %v11095_v4, %v17502_v12  ;;  %v10530_v44 = vld [vmem:[#allocation7] ss:$0 sm:$0xff] }
0x1cc3   :  { %v11097_v57 = vpop.f32.mrf.mxu0  ;;  %v11161_v33 = vpop.f32.mrf.mxu1 }
0x1cc4   :  { %v11098_v22 = vadd.f32 %v11097_v57, %v11096_v34  ;;  %v9795_v10 = vpack.c.bf16 %v9786_v37, %v9785_v25  ;;  %v9767_v28 = vadd.f32 %v11159_v1, %v9670_v0  ;;  %v11162_v47 = vadd.f32 %v11161_v33, %v11160_v9 }
0x1cc6   :  { %v9673_v36 = vadd.f32 %v11098_v22, %v17502_v12  ;;  %11943 = vmatprep.mubr.bf16.mxu0 %v9795_v10  ;;  %v9787_v11 = vadd.f32 %v9767_v28, %v17061_v5 }
0x1cc8   :  { %v9770_v14 = vadd.f32 %v11162_v47, %v9673_v36 }
0x1cca   :  { %v9788_v7 = vadd.f32 %v9770_v14, %v17069_v59 }
0x1ccc   :  { %v9796_v41 = vpack.c.bf16 %v9788_v7, %v9787_v11 }
0x1cce   :  { %11944 = vmatmul.mubr.bf16.gmra.mxu0 %v9796_v41 }
0x1d0e   :  { %v11933_v53 = vpop.f32.mrf.mxu0 }
0x1d0f   :  { %v9911_v3 = vadd.f32 %v11933_v53, %v10530_v44 }
0x1d10   :  { %v9902_v48 = vpop.f32.mrf.mxu0 }
0x1d11   :  { %9967 = vst [vmem:[#allocation8 + $0x10] sm:$0xff] %v9911_v3  ;;  %v9903_v26 = vadd.f32 %v10530_v44, %v9902_v48 }
0x1d12   :  { %v11934_v58 = vpop.f32.mrf.mxu0 }
0x1d13   :  { %9965 = vst [vmem:[#allocation8] sm:$0xff] %v9903_v26  ;;  %v9914_v56 = vadd.f32 %v11934_v58, %v10530_v44 }
0x1d14   :  { %v9905_v51 = vpop.f32.mrf.mxu0 }
0x1d15   :  { %9968 = vst [vmem:[#allocation8 + $0x18] sm:$0xff] %v9914_v56  ;;  %v9906_v12 = vadd.f32 %v10530_v44, %v9905_v51 }
0x1d17   :  { %9966 = vst [vmem:[#allocation8 + $0x8] sm:$0xff] %v9906_v12 }
0x1d1e   :  { %v11937_v8 = vpop.f32.mrf.mxu0 }
0x1d1f   :  { %v9927_v63 = vadd.f32 %v11937_v8, %v10530_v44 }
0x1d20   :  { %v9918_v5 = vpop.f32.mrf.mxu0 }
0x1d21   :  { %9971 = vst [vmem:[#allocation8 + $0x30] sm:$0xff] %v9927_v63  ;;  %v9919_v59 = vadd.f32 %v10530_v44, %v9918_v5 }
0x1d22   :  { %v11938_v50 = vpop.f32.mrf.mxu0 }
0x1d23   :  { %9969 = vst [vmem:[#allocation8 + $0x20] sm:$0xff] %v9919_v59  ;;  %v9930_v60 = vadd.f32 %v11938_v50, %v10530_v44 }
0x1d24   :  { %v9921_v2 = vpop.f32.mrf.mxu0 }
0x1d25   :  { %9972 = vst [vmem:[#allocation8 + $0x38] sm:$0xff] %v9930_v60  ;;  %v9922_v16 = vadd.f32 %v10530_v44, %v9921_v2 }
0x1d27   :  { %9970 = vst [vmem:[#allocation8 + $0x28] sm:$0xff] %v9922_v16 }
0x1d7e   :  { %v11941_v17 = vpop.f32.mrf.mxu0 }
0x1d7f   :  { %v9943_v62 = vadd.f32 %v11941_v17, %v10530_v44 }
0x1d80   :  { %v9934_v19 = vpop.f32.mrf.mxu0 }
0x1d81   :  { %9975 = vst [vmem:[#allocation8 + $0x50] sm:$0xff] %v9943_v62  ;;  %v9935_v52 = vadd.f32 %v10530_v44, %v9934_v19 }
0x1d82   :  { %v11942_v39 = vpop.f32.mrf.mxu0 }
0x1d83   :  { %9973 = vst [vmem:[#allocation8 + $0x40] sm:$0xff] %v9935_v52  ;;  %v9946_v46 = vadd.f32 %v11942_v39, %v10530_v44 }
0x1d84   :  { %v9937_v27 = vpop.f32.mrf.mxu0 }
0x1d85   :  { %9976 = vst [vmem:[#allocation8 + $0x58] sm:$0xff] %v9946_v46  ;;  %v9938_v29 = vadd.f32 %v10530_v44, %v9937_v27 }
0x1d87   :  { %9974 = vst [vmem:[#allocation8 + $0x48] sm:$0xff] %v9938_v29 }
0x1d8e   :  { %v11945_v15 = vpop.f32.mrf.mxu0 }
0x1d8f   :  { %v9959_v38 = vadd.f32 %v11945_v15, %v10530_v44 }
0x1d90   :  { %v9950_v20 = vpop.f32.mrf.mxu0 }
0x1d91   :  { %9979 = vst [vmem:[#allocation8 + $0x70] sm:$0xff] %v9959_v38  ;;  %v9951_v31 = vadd.f32 %v10530_v44, %v9950_v20 }
0x1d92   :  { %v11946_v55 = vpop.f32.mrf.mxu0 }
0x1d93   :  { %9977 = vst [vmem:[#allocation8 + $0x60] sm:$0xff] %v9951_v31  ;;  %v9962_v49 = vadd.f32 %v11946_v55, %v10530_v44 }
0x1d94   :  { %v9953_v18 = vpop.f32.mrf.mxu0 }
0x1d95   :  { %9980 = vst [vmem:[#allocation8 + $0x78] sm:$0xff] %v9962_v49  ;;  %v9954_v40 = vadd.f32 %v10530_v44, %v9953_v18 }
0x1d97   :  { %9978 = vst [vmem:[#allocation8 + $0x68] sm:$0xff] %v9954_v40 }
0x1d98   :  { %12997 = shalt.err (!%p12994_p5)
}
0x1d99   :  { %s13021_s4 = smov 128   ;;  %s13022_s30 = smov 8  }
0x1d9a   :  { %9992 = dma.vmem_to_hbm [thread:$0]  %s9987_s12, 2048, %s17553_s14, [#allocation4], %s13021_s4, %s13021_s4, %s13022_s30  }
0x1d9b   :  { %13010 = dma.done.wait [#allocation4], 2048  }
0x1d9c   :  { %13011 = vsyncadd [#allocation4], 4294965248 }
0x1d9d   :  { %9996 = vsyncpa [#allocation3], 1 }
0x1d9e   :  { %9997 = vsyncpa [#allocation6], 1 }
0x1d9f   :  { %9998 = vsyncpa [#allocation4], 1 }

</bundles_post_ra>
